<compile_context>
chip_gen: v6e
topology: v6e:2x2x1
jax: 0.10.0
libtpu: 0.0.40
codegen_flags: <defaults>
</compile_context>

<pallas_src>
import math
import collections
from functools import partial

import jax
import jax.numpy as jnp
from jax.experimental import pallas as pl
from jax.experimental.pallas import tpu as pltpu

BN_EPS = 1e-3  # global_params.batch_norm_epsilon
LANE = 128
VMEM_LIMIT = 48 * 1024 * 1024  # > default scoped limit on v5e/v6e/v7x, < v7x physical

BlockArgs = collections.namedtuple(
    "BlockArgs",
    ["kernel_size", "num_repeat", "input_filters", "output_filters",
     "expand_ratio", "id_skip", "stride", "se_ratio"])

GlobalParams = collections.namedtuple(
    "GlobalParams",
    ["batch_norm_momentum", "batch_norm_epsilon", "dropout_rate", "num_classes",
     "width_coefficient", "depth_coefficient", "depth_divisor", "min_depth",
     "drop_connect_rate", "image_size"])


# ----------------------------------------------------------------------------
# Small helpers
# ----------------------------------------------------------------------------
def _cparams(semantics):
    return pltpu.CompilerParams(dimension_semantics=semantics,
                                vmem_limit_bytes=VMEM_LIMIT)


def _pad128(c):
    return ((c + LANE - 1) // LANE) * LANE


def _pad_to(a, shape):
    pads = [(0, t - s) for s, t in zip(a.shape, shape)]
    if all(p == (0, 0) for p in pads):
        return a
    return jnp.pad(a, pads)


def _choose_m_tile(m, target=1024):
    # Row tile: multiple of 8, <= target, and >= 2 grid steps when possible (v7x megacore).
    if m <= 8:
        return m
    tm = min(target, m)
    if -(-m // tm) < 2:
        tm = max(8, ((m // 2 + 7) // 8) * 8)
        if tm >= m:
            tm = 8
    return max(8, (tm // 8) * 8)


# ----------------------------------------------------------------------------
# Pallas kernels
# ----------------------------------------------------------------------------
def _mm_epilogue_kernel(x_ref, w_ref, b_ref, o_ref, *, act):
    # Conv-as-matmul with folded-BN bias and optional swish epilogue.
    # x: (tm, K) bf16, w: (K, N) bf16, b: (1, N) f32 -> o: (tm, N) bf16
    z = jnp.dot(x_ref[...], w_ref[...], preferred_element_type=jnp.float32)
    z = z + b_ref[...]
    if act == "swish":
        z = z * jax.nn.sigmoid(z)
    o_ref[...] = z.astype(o_ref.dtype)


def _dwconv_s1_kernel(xp_ref, w_ref, shift_ref, o_ref, pool_ref, *, k, oh, ow):
    # Stride-1 depthwise conv (channel-tiled), folded BN + swish, fused SE-pool sum.
    # xp: (1, HP, WP, CT) bf16, w: (K*K, CT) f32, shift: (1, CT) f32
    # o : (1, oh, ow, CT) bf16, pool: (1, 1, CT) f32 (sum of swish output over pixels)
    ct = o_ref.shape[-1]
    wk = w_ref[...]           # load taps once; index the register copy below
    sh = shift_ref[...]
    acc = jnp.zeros((oh, ow, ct), jnp.float32)
    for ki in range(k):
        for kj in range(k):
            tap = ki * k + kj
            win = xp_ref[0, ki:ki + oh, kj:kj + ow, :].astype(jnp.float32)
            acc = acc + win * wk[tap:tap + 1, :]
    z = acc + sh
    z = z * jax.nn.sigmoid(z)
    o_ref[0] = z.astype(o_ref.dtype)
    pool_ref[0] = jnp.sum(jnp.sum(z, axis=0), axis=0, keepdims=True)


def _dwconv_s2_kernel(xq_ref, w_ref, shift_ref, o_ref, pool_ref, *, k, s, oh, ow):
    # Strided depthwise conv from the phase-packed (monotone-reshaped) input.
    # xq: (1, HQ, s, WQ, s*C) bf16, w: (K*K, C) f32, shift: (1, C) f32
    # o : (1, oh, ow, C) bf16, pool: (1, 1, C) f32
    c = o_ref.shape[-1]
    wk = w_ref[...]
    sh = shift_ref[...]
    acc = jnp.zeros((oh, ow, c), jnp.float32)
    for ki in range(k):
        for kj in range(k):
            tap = ki * k + kj
            hq, hr = ki // s, ki % s
            wq, wr = kj // s, kj % s
            win = xq_ref[0, hq:hq + oh, hr, wq:wq + ow, wr * c:(wr + 1) * c]
            acc = acc + win.astype(jnp.float32) * wk[tap:tap + 1, :]
    z = acc + sh
    z = z * jax.nn.sigmoid(z)
    o_ref[0] = z.astype(o_ref.dtype)
    pool_ref[0] = jnp.sum(jnp.sum(z, axis=0), axis=0, keepdims=True)


def _se_gate_kernel(p_ref, wr_ref, br_ref, we_ref, be_ref, o_ref, *, inv_hw):
    # Squeeze-excite gate from the fused pooled sums: mean -> reduce -> swish ->
    # expand -> sigmoid.  p: (1, 1, C) f32 sums -> gate o: (1, 1, C) f32
    pooled = p_ref[0] * inv_hw                                            # (1, C)
    s = jnp.dot(pooled, wr_ref[...], preferred_element_type=jnp.float32) + br_ref[...]
    s = s * jax.nn.sigmoid(s)
    s = jnp.dot(s, we_ref[...], preferred_element_type=jnp.float32) + be_ref[...]
    o_ref[0] = jax.nn.sigmoid(s)


def _project_se_kernel(x_ref, g_ref, w_ref, b_ref, *rest, has_residual):
    # Fused: SE gating (bf16) * x -> 1x1 project conv (folded BN) -> optional residual.
    # x: (1, thw, C) bf16, g: (1, 1, C) f32, w: (C, N) bf16, b: (1, N) f32
    # [residual: (1, thw, N) bf16], o: (1, thw, N) bf16
    o_ref = rest[-1]
    xg = x_ref[0] * g_ref[0].astype(x_ref.dtype)                          # bf16 gating
    z = jnp.dot(xg, w_ref[...], preferred_element_type=jnp.float32) + b_ref[...]
    if has_residual:
        z = z + rest[0][0].astype(jnp.float32)
    o_ref[0] = z.astype(o_ref.dtype)


def _pool_fc_kernel(x_ref, w_ref, b_ref, o_ref, *, inv_hw):
    # Fused per-batch global average pool + final FC.
    # x: (1, HW, C) bf16, w: (C, classes) bf16, b: (1, classes) f32 -> o: (1, 1, classes) f32
    pooled = jnp.sum(x_ref[0].astype(jnp.float32), axis=0, keepdims=True) * inv_hw
    o_ref[0] = jnp.dot(pooled.astype(w_ref.dtype), w_ref[...],
                       preferred_element_type=jnp.float32) + b_ref[...]


# ----------------------------------------------------------------------------
# pallas_call wrappers
# ----------------------------------------------------------------------------
def fused_matmul(x, w, b, act="none", out_dtype=jnp.bfloat16):
    # x: (M, K) bf16, w: (K, N) bf16, b: (1, N) f32
    M, K = x.shape
    N = w.shape[1]
    tm = _choose_m_tile(M, target=1024)
    grid = (pl.cdiv(M, tm),)
    return pl.pallas_call(
        partial(_mm_epilogue_kernel, act=act),
        out_shape=jax.ShapeDtypeStruct((M, N), out_dtype),
        grid=grid,
        in_specs=[pl.BlockSpec((tm, K), lambda i: (i, 0)),
                  pl.BlockSpec((K, N), lambda i: (0, 0)),
                  pl.BlockSpec((1, N), lambda i: (0, 0))],
        out_specs=pl.BlockSpec((tm, N), lambda i: (i, 0)),
        compiler_params=_cparams(("parallel",)),
    )(x, w, b)


def conv1x1_bn(x4, w, b, act):
    B, H, W, C = x4.shape
    y = fused_matmul(x4.reshape(B * H * W, C), w, b, act=act)
    return y.reshape(B, H, W, w.shape[1])


def _same_pad(ih, iw, kh, kw, s):
    # same-padding semantics of Conv2dDynamicSamePadding
    oh, ow = math.ceil(ih / s), math.ceil(iw / s)
    ph = max((oh - 1) * s + kh - ih, 0)
    pw = max((ow - 1) * s + kw - iw, 0)
    return oh, ow, ph, pw


def _extract_patches(x, kh, kw, s):
    # data-movement glue: used only for the tiny 1-channel stem conv
    B, H, W, C = x.shape
    oh, ow, ph, pw = _same_pad(H, W, kh, kw, s)
    xp = jnp.pad(x, ((0, 0), (ph // 2, ph - ph // 2), (pw // 2, pw - pw // 2), (0, 0)))
    taps = []
    for i in range(kh):
        for j in range(kw):
            taps.append(xp[:, i:i + (oh - 1) * s + 1:s, j:j + (ow - 1) * s + 1:s, :])
    return jnp.stack(taps, axis=3), oh, ow


def conv_stem(x4, w2, b, k, stride):
    # generic KxK conv (stem) via im2col -> fused matmul; contraction dim padded to x8.
    B, H, W, C = x4.shape
    patches, oh, ow = _extract_patches(x4, k, k, stride)
    cols = patches.reshape(B * oh * ow, k * k * C)
    kp = w2.shape[0]
    if cols.shape[1] < kp:
        cols = jnp.pad(cols, ((0, 0), (0, kp - cols.shape[1])))
    y = fused_matmul(cols, w2, b, act="swish")
    return y.reshape(B, oh, ow, w2.shape[1])


def depthwise_bn_swish_pool(x4, w_kk_c, shift, k, stride):
    """Depthwise conv + folded BN + swish, fused per-(batch, channel) SE-pool sum."""
    B, H, W, C = x4.shape
    s = stride
    oh, ow, ph, pw = _same_pad(H, W, k, k, s)
    xp = jnp.pad(x4, ((0, 0), (ph // 2, ph - ph // 2), (pw // 2, pw - pw // 2), (0, 0)))
    HP, WP = xp.shape[1], xp.shape[2]

    out_shapes = (jax.ShapeDtypeStruct((B, oh, ow, C), jnp.bfloat16),
                  jax.ShapeDtypeStruct((B, 1, C), jnp.float32))

    if s == 1:
        ct = min(C, LANE)                  # channel tiling (no halo needed: depthwise)
        nct = C // ct
        y, pooled = pl.pallas_call(
            partial(_dwconv_s1_kernel, k=k, oh=oh, ow=ow),
            out_shape=out_shapes,
            grid=(B, nct),
            in_specs=[pl.BlockSpec((1, HP, WP, ct), lambda b, c: (b, 0, 0, c)),
                      pl.BlockSpec((k * k, ct), lambda b, c: (0, c)),
                      pl.BlockSpec((1, ct), lambda b, c: (0, c))],
            out_specs=(pl.BlockSpec((1, oh, ow, ct), lambda b, c: (b, 0, 0, c)),
                       pl.BlockSpec((1, 1, ct), lambda b, c: (b, 0, c))),
            compiler_params=_cparams(("parallel", "parallel")),
        )(xp, w_kk_c, shift)
    else:
        # Stride-phase packing via monotone reshapes only (no transpose / extra HBM pass).
        HPq, WPq = -(-HP // s), -(-WP // s)
        if HPq * s != HP or WPq * s != WP:
            xp = jnp.pad(xp, ((0, 0), (0, HPq * s - HP), (0, WPq * s - WP), (0, 0)))
        xq = xp.reshape(B, HPq, s, WPq, s * C)
        y, pooled = pl.pallas_call(
            partial(_dwconv_s2_kernel, k=k, s=s, oh=oh, ow=ow),
            out_shape=out_shapes,
            grid=(B,),
            in_specs=[pl.BlockSpec((1, HPq, s, WPq, s * C), lambda b: (b, 0, 0, 0, 0)),
                      pl.BlockSpec((k * k, C), lambda b: (0, 0)),
                      pl.BlockSpec((1, C), lambda b: (0, 0))],
            out_specs=(pl.BlockSpec((1, oh, ow, C), lambda b: (b, 0, 0, 0)),
                       pl.BlockSpec((1, 1, C), lambda b: (b, 0, 0))),
            compiler_params=_cparams(("parallel",)),
        )(xq, w_kk_c, shift)
    return y, pooled


def se_gate(pooled_sum, hw, se):
    # pooled_sum: (B, 1, C) f32 sums over spatial; returns gate (B, 1, C) f32.
    B, _, C = pooled_sum.shape
    csq = se["w_reduce"].shape[1]
    return pl.pallas_call(
        partial(_se_gate_kernel, inv_hw=1.0 / float(hw)),
        out_shape=jax.ShapeDtypeStruct((B, 1, C), jnp.float32),
        grid=(B,),
        in_specs=[pl.BlockSpec((1, 1, C), lambda b: (b, 0, 0)),
                  pl.BlockSpec((C, csq), lambda b: (0, 0)),
                  pl.BlockSpec((1, csq), lambda b: (0, 0)),
                  pl.BlockSpec((csq, C), lambda b: (0, 0)),
                  pl.BlockSpec((1, C), lambda b: (0, 0))],
        out_specs=pl.BlockSpec((1, 1, C), lambda b: (b, 0, 0)),
        compiler_params=_cparams(("parallel",)),
    )(pooled_sum, se["w_reduce"], se["b_reduce"], se["w_expand"], se["b_expand"])


def project_se_residual(x4, gate, w, b, residual4=None):
    B, H, W, C = x4.shape
    HW = H * W
    N = w.shape[1]
    thw = _choose_m_tile(HW, target=512)
    grid = (B, pl.cdiv(HW, thw))
    in_specs = [pl.BlockSpec((1, thw, C), lambda bb, ii: (bb, ii, 0)),
                pl.BlockSpec((1, 1, C), lambda bb, ii: (bb, 0, 0)),
                pl.BlockSpec((C, N), lambda bb, ii: (0, 0)),
                pl.BlockSpec((1, N), lambda bb, ii: (0, 0))]
    args = [x4.reshape(B, HW, C), gate, w, b]
    has_res = residual4 is not None
    if has_res:
        in_specs.append(pl.BlockSpec((1, thw, N), lambda bb, ii: (bb, ii, 0)))
        args.append(residual4.reshape(B, HW, N))
    y = pl.pallas_call(
        partial(_project_se_kernel, has_residual=has_res),
        out_shape=jax.ShapeDtypeStruct((B, HW, N), jnp.bfloat16),
        grid=grid,
        in_specs=in_specs,
        out_specs=pl.BlockSpec((1, thw, N), lambda bb, ii: (bb, ii, 0)),
        compiler_params=_cparams(("parallel", "parallel")),
    )(*args)
    return y.reshape(B, H, W, N)


def pool_fc(x4, w, b):
    B, H, W, C = x4.shape
    HW = H * W
    ncls = w.shape[1]
    y = pl.pallas_call(
        partial(_pool_fc_kernel, inv_hw=1.0 / float(HW)),
        out_shape=jax.ShapeDtypeStruct((B, 1, ncls), jnp.float32),
        grid=(B,),
        in_specs=[pl.BlockSpec((1, HW, C), lambda bb: (bb, 0, 0)),
                  pl.BlockSpec((C, ncls), lambda bb: (0, 0)),
                  pl.BlockSpec((1, ncls), lambda bb: (0, 0))],
        out_specs=pl.BlockSpec((1, 1, ncls), lambda bb: (bb, 0, 0)),
        compiler_params=_cparams(("parallel",)),
    )(x4.reshape(B, HW, C), w, b)
    return y.reshape(B, ncls)


# ----------------------------------------------------------------------------
# Model construction (mirrors EfficientNet.__init__ / MBConvBlock.__init__)
# ----------------------------------------------------------------------------
def round_filters(filters, gp):
    multiplier = gp.width_coefficient
    if not multiplier:
        return filters
    divisor = gp.depth_divisor
    min_depth = gp.min_depth or divisor
    filters *= multiplier
    new_filters = max(min_depth, int(filters + divisor / 2) // divisor * divisor)
    if new_filters < 0.9 * filters:
        new_filters += divisor
    return int(new_filters)


def round_repeats(repeats, gp):
    multiplier = gp.depth_coefficient
    if not multiplier:
        return repeats
    return int(math.ceil(multiplier * repeats))


def build_config():
    blocks_args = [
        BlockArgs(kernel_size=3, num_repeat=1, input_filters=32, output_filters=16,
                  expand_ratio=1, id_skip=True, stride=[1], se_ratio=0.25),
        BlockArgs(kernel_size=3, num_repeat=2, input_filters=16, output_filters=24,
                  expand_ratio=6, id_skip=True, stride=[2], se_ratio=0.25),
    ]
    gp = GlobalParams(batch_norm_momentum=0.99, batch_norm_epsilon=BN_EPS,
                      dropout_rate=0.2, num_classes=10,
                      width_coefficient=None, depth_coefficient=None,
                      depth_divisor=8, min_depth=None,
                      drop_connect_rate=0.2, image_size=None)
    return blocks_args, gp


def init_params(key, blocks_args, gp):
    keys = iter(jax.random.split(key, 512))

    def nrm(shape, scale=0.1):
        return scale * jax.random.normal(next(keys), shape, jnp.float32)

    def bn_params(c):
        return dict(gamma=1.0 + 0.1 * jax.random.normal(next(keys), (c,), jnp.float32),
                    beta=0.1 * jax.random.normal(next(keys), (c,), jnp.float32),
                    mean=0.1 * jax.random.normal(next(keys), (c,), jnp.float32),
                    var=1.0 + 0.1 * jnp.abs(jax.random.normal(next(keys), (c,), jnp.float32)))

    params = {}
    stem_out = round_filters(32, gp)          # in_channels = 1 per the reference module
    params["stem_w"] = nrm((stem_out, 1, 3, 3))
    params["bn0"] = bn_params(stem_out)

    block_list = []
    for ba in blocks_args:
        ba = ba._replace(input_filters=round_filters(ba.input_filters, gp),
                         output_filters=round_filters(ba.output_filters, gp),
                         num_repeat=round_repeats(ba.num_repeat, gp))
        block_list.append(ba)
        if ba.num_repeat > 1:
            ba = ba._replace(input_filters=ba.output_filters, stride=1)
        for _ in range(ba.num_repeat - 1):
            block_list.append(ba)

    blocks = []
    for ba in block_list:
        inp = ba.input_filters
        oup = inp * ba.expand_ratio
        bp = {"args": dict(kernel_size=ba.kernel_size, expand_ratio=ba.expand_ratio,
                           id_skip=ba.id_skip, stride=ba.stride,
                           input_filters=ba.input_filters,
                           output_filters=ba.output_filters)}
        if ba.expand_ratio != 1:
            bp["expand_w"] = nrm((oup, inp, 1, 1))
            bp["bn0"] = bn_params(oup)
        bp["dw_w"] = nrm((oup, 1, ba.kernel_size, ba.kernel_size))
        bp["bn1"] = bn_params(oup)
        csq = max(1, int(inp * ba.se_ratio))
        bp["se"] = dict(w_reduce=nrm((oup, csq)), b_reduce=nrm((1, csq)),
                        w_expand=nrm((csq, oup)), b_expand=nrm((1, oup)))
        bp["project_w"] = nrm((ba.output_filters, oup, 1, 1))
        bp["bn2"] = bn_params(ba.output_filters)
        blocks.append(bp)
    params["blocks"] = blocks

    head_in = block_list[-1].output_filters
    head_out = round_filters(1280, gp)
    params["head_w"] = nrm((head_out, head_in, 1, 1))
    params["bn1"] = bn_params(head_out)
    params["fc_w"] = nrm((head_out, gp.num_classes))
    params["fc_b"] = nrm((1, gp.num_classes))
    return params


# ----------------------------------------------------------------------------
# Inference parameter prep: fold BN into conv weights, pad channels to 128 lanes,
# cast matmul weights to bf16.
# ----------------------------------------------------------------------------
def _fold_bn(bn):
    scale = bn["gamma"] / jnp.sqrt(bn["var"] + BN_EPS)
    shift = bn["beta"] - bn["mean"] * scale
    return scale, shift


def prepare_inference_params(raw):
    p = {}
    # Stem: fold BN, im2col layout, pad contraction dim to x8 and out channels to x128.
    scale, shift = _fold_bn(raw["bn0"])
    cout = raw["stem_w"].shape[0]
    w = jnp.transpose(raw["stem_w"], (2, 3, 1, 0)).reshape(-1, cout) * scale[None, :]
    kpad = ((w.shape[0] + 7) // 8) * 8
    npad = _pad128(cout)
    p["stem_w"] = _pad_to(w, (kpad, npad)).astype(jnp.bfloat16)
    p["stem_b"] = _pad_to(shift[None, :], (1, npad))

    blocks = []
    for bp in raw["blocks"]:
        args = bp["args"]
        nb = {"args": args}
        inp = args["input_filters"]
        oup = inp * args["expand_ratio"]
        outf = args["output_filters"]
        inp_p, oup_p, outf_p = _pad128(inp), _pad128(oup), _pad128(outf)
        if args["expand_ratio"] != 1:
            scale, shift = _fold_bn(bp["bn0"])
            w = bp["expand_w"][:, :, 0, 0].T * scale[None, :]
            nb["expand_w"] = _pad_to(w, (inp_p, oup_p)).astype(jnp.bfloat16)
            nb["expand_b"] = _pad_to(shift[None, :], (1, oup_p))
        scale, shift = _fold_bn(bp["bn1"])
        k = args["kernel_size"]
        wd = jnp.transpose(bp["dw_w"][:, 0], (1, 2, 0)).reshape(k * k, -1) * scale[None, :]
        nb["dw_w"] = _pad_to(wd, (k * k, oup_p))            # f32 taps (VPU work)
        nb["dw_b"] = _pad_to(shift[None, :], (1, oup_p))
        se = bp["se"]
        csq = se["w_reduce"].shape[1]
        nb["se"] = dict(w_reduce=_pad_to(se["w_reduce"], (oup_p, csq)),
                        b_reduce=se["b_reduce"],
                        w_expand=_pad_to(se["w_expand"], (csq, oup_p)),
                        b_expand=_pad_to(se["b_expand"], (1, oup_p)))
        scale, shift = _fold_bn(bp["bn2"])
        w = bp["project_w"][:, :, 0, 0].T * scale[None, :]
        nb["project_w"] = _pad_to(w, (oup_p, outf_p)).astype(jnp.bfloat16)
        nb["project_b"] = _pad_to(shift[None, :], (1, outf_p))
        blocks.append(nb)
    p["blocks"] = blocks

    scale, shift = _fold_bn(raw["bn1"])
    w = raw["head_w"][:, :, 0, 0].T * scale[None, :]
    hin_p, hout_p = _pad128(w.shape[0]), _pad128(w.shape[1])
    p["head_w"] = _pad_to(w, (hin_p, hout_p)).astype(jnp.bfloat16)
    p["head_b"] = _pad_to(shift[None, :], (1, hout_p))
    p["fc_w"] = _pad_to(raw["fc_w"], (hout_p, raw["fc_w"].shape[1])).astype(jnp.bfloat16)
    p["fc_b"] = raw["fc_b"]
    return p


# ----------------------------------------------------------------------------
# Forward pass
# ----------------------------------------------------------------------------
def mbconv_forward(bp, inputs):
    ba = bp["args"]
    x = inputs
    if ba["expand_ratio"] != 1:
        x = conv1x1_bn(x, bp["expand_w"], bp["expand_b"], act="swish")
    s = ba["stride"]
    s_int = s[0] if isinstance(s, (list, tuple)) else s
    x, pooled_sum = depthwise_bn_swish_pool(x, bp["dw_w"], bp["dw_b"],
                                            ba["kernel_size"], s_int)
    _, oh, ow, _ = x.shape
    gate = se_gate(pooled_sum, oh * ow, bp["se"])
    # Mirrors the torch reference exactly: `stride == 1` with stride stored as a list
    # ([1]) for the first block of a stage is False, so only repeat blocks get the skip.
    use_skip = (ba["id_skip"] and ba["stride"] == 1
                and ba["input_filters"] == ba["output_filters"])
    residual = inputs if use_skip else None
    # TODO(synk): training-mode drop_connect is stochastic; eval-mode is identity.
    x = project_se_residual(x, gate, bp["project_w"], bp["project_b"], residual)
    return x


def efficientnet_forward(params, x_nchw):
    x = jnp.transpose(x_nchw, (0, 2, 3, 1)).astype(jnp.bfloat16)   # NCHW -> NHWC bf16
    x = conv_stem(x, params["stem_w"], params["stem_b"], 3, 2)
    for bp in params["blocks"]:
        x = mbconv_forward(bp, x)
    x = conv1x1_bn(x, params["head_w"], params["head_b"], act="swish")
    # TODO(synk): training-mode dropout is stochastic; eval-mode is identity.
    logits = pool_fc(x, params["fc_w"], params["fc_b"])
    return logits


if __name__ == "__main__":
    key = jax.random.PRNGKey(0)
    k_param, k_x = jax.random.split(key)
    blocks_args, gp = build_config()
    raw = init_params(k_param, blocks_args, gp)
    params = prepare_inference_params(raw)
    # input matches the module: in_channels = 1, NCHW
    x = jax.random.normal(k_x, (2, 1, 16, 16), jnp.float32)
    fwd = jax.jit(lambda inp: efficientnet_forward(params, inp))
    logits = fwd(x)
    jax.block_until_ready(logits)
    assert logits.shape == (2, gp.num_classes)
    print("KERNEL_OK")
</pallas_src>

<mosaic_0001>
module attributes {stable_mosaic.version = 11 : i64} {
  func.func @_se_gate_kernel(%arg0: i32, %arg1: memref<1x1x128xf32, #tpu.memory_space<vmem>>, %arg2: memref<128x8xf32, #tpu.memory_space<vmem>>, %arg3: memref<1x8xf32, #tpu.memory_space<vmem>>, %arg4: memref<8x128xf32, #tpu.memory_space<vmem>>, %arg5: memref<1x128xf32, #tpu.memory_space<vmem>>, %arg6: memref<1x1x128xf32, #tpu.memory_space<vmem>>) attributes {dimension_semantics = [#tpu.dimension_semantics<parallel>], iteration_bounds = array<i64: 2>, scalar_prefetch = 0 : i64, scratch_operands = 0 : i64, tpu.core_type = #tpu.core_type<tc>, window_params = [{transform_indices = @transform_0, window_bounds = array<i64: 1, 1, 128>}, {pipeline_mode = #tpu.pipeline_mode<synchronous>, transform_indices = @transform_1, window_bounds = array<i64: 128, 8>}, {pipeline_mode = #tpu.pipeline_mode<synchronous>, transform_indices = @transform_2, window_bounds = array<i64: 1, 8>}, {pipeline_mode = #tpu.pipeline_mode<synchronous>, transform_indices = @transform_3, window_bounds = array<i64: 8, 128>}, {pipeline_mode = #tpu.pipeline_mode<synchronous>, transform_indices = @transform_4, window_bounds = array<i64: 1, 128>}, {transform_indices = @transform_5, window_bounds = array<i64: 1, 1, 128>}]} {
    %c0 = arith.constant 0 : index
    %c0_0 = arith.constant 0 : index
    %c0_1 = arith.constant 0 : index
    %0 = vector.load %arg1[%c0, %c0_0, %c0_1] : memref<1x1x128xf32, #tpu.memory_space<vmem>>, vector<1x1x128xf32>
    %1 = vector.shape_cast %0 : vector<1x1x128xf32> to vector<1x128xf32>
    %cst = arith.constant 1.562500e-02 : f32
    %2 = vector.broadcast %cst : f32 to vector<1x128xf32>
    %3 = arith.mulf %1, %2 : vector<1x128xf32>
    %c0_2 = arith.constant 0 : index
    %c0_3 = arith.constant 0 : index
    %4 = vector.load %arg2[%c0_2, %c0_3] : memref<128x8xf32, #tpu.memory_space<vmem>>, vector<128x8xf32>
    %cst_4 = arith.constant dense<0.000000e+00> : vector<1x8xf32>
    %5 = tpu.matmul %3, %4, %cst_4 {dimension_numbers = #tpu.dot_dimension_numbers<[1], [0], [0], [1], [0, 0, 1, 1], [], []>} : vector<1x128xf32>, vector<128x8xf32>, vector<1x8xf32> -> vector<1x8xf32>
    %c0_5 = arith.constant 0 : index
    %c0_6 = arith.constant 0 : index
    %6 = vector.load %arg3[%c0_5, %c0_6] : memref<1x8xf32, #tpu.memory_space<vmem>>, vector<1x8xf32>
    %7 = arith.addf %5, %6 : vector<1x8xf32>
    %8 = arith.negf %7 : vector<1x8xf32>
    %9 = math.exp %8 : vector<1x8xf32>
    %cst_7 = arith.constant 1.000000e+00 : f32
    %10 = vector.broadcast %cst_7 : f32 to vector<1x8xf32>
    %11 = arith.addf %10, %9 : vector<1x8xf32>
    %12 = arith.divf %10, %11 : vector<1x8xf32>
    %13 = arith.mulf %7, %12 : vector<1x8xf32>
    %c0_8 = arith.constant 0 : index
    %c0_9 = arith.constant 0 : index
    %14 = vector.load %arg4[%c0_8, %c0_9] : memref<8x128xf32, #tpu.memory_space<vmem>>, vector<8x128xf32>
    %cst_10 = arith.constant dense<0.000000e+00> : vector<1x128xf32>
    %15 = tpu.matmul %13, %14, %cst_10 {dimension_numbers = #tpu.dot_dimension_numbers<[1], [0], [0], [1], [0, 0, 1, 1], [], []>} : vector<1x8xf32>, vector<8x128xf32>, vector<1x128xf32> -> vector<1x128xf32>
    %c0_11 = arith.constant 0 : index
    %c0_12 = arith.constant 0 : index
    %16 = vector.load %arg5[%c0_11, %c0_12] : memref<1x128xf32, #tpu.memory_space<vmem>>, vector<1x128xf32>
    %17 = arith.addf %15, %16 : vector<1x128xf32>
    %18 = arith.negf %17 : vector<1x128xf32>
    %19 = math.exp %18 : vector<1x128xf32>
    %cst_13 = arith.constant 1.000000e+00 : f32
    %20 = vector.broadcast %cst_13 : f32 to vector<1x128xf32>
    %21 = arith.addf %20, %19 : vector<1x128xf32>
    %22 = arith.divf %20, %21 : vector<1x128xf32>
    %c0_14 = arith.constant 0 : index
    %c0_15 = arith.constant 0 : index
    %c0_16 = arith.constant 0 : index
    %23 = vector.load %arg6[%c0_14, %c0_15, %c0_16] : memref<1x1x128xf32, #tpu.memory_space<vmem>>, vector<1x1x128xf32>
    %24 = vector.shape_cast %23 : vector<1x1x128xf32> to vector<1x128xf32>
    %25 = vector.shape_cast %22 : vector<1x128xf32> to vector<1x1x128xf32>
    tpu.vector_store %arg6[%c0_14, %c0_15, %c0_16], %25 {strides = array<i32>} : memref<1x1x128xf32, #tpu.memory_space<vmem>>, vector<1x1x128xf32>,
    return
  }
  func.func @transform_0(%arg0: i32) -> (i32, i32, i32) {
    %c0_i32 = arith.constant 0 : i32
    %c0_i32_0 = arith.constant 0 : i32
    %c0_i32_1 = arith.constant 0 : i32
    return %arg0, %c0_i32, %c0_i32_0 : i32, i32, i32
  }
  func.func @transform_1(%arg0: i32) -> (i32, i32) {
    %c0_i32 = arith.constant 0 : i32
    %c0_i32_0 = arith.constant 0 : i32
    %c0_i32_1 = arith.constant 0 : i32
    return %c0_i32, %c0_i32_0 : i32, i32
  }
  func.func @transform_2(%arg0: i32) -> (i32, i32) {
    %c0_i32 = arith.constant 0 : i32
    %c0_i32_0 = arith.constant 0 : i32
    %c0_i32_1 = arith.constant 0 : i32
    return %c0_i32, %c0_i32_0 : i32, i32
  }
  func.func @transform_3(%arg0: i32) -> (i32, i32) {
    %c0_i32 = arith.constant 0 : i32
    %c0_i32_0 = arith.constant 0 : i32
    %c0_i32_1 = arith.constant 0 : i32
    return %c0_i32, %c0_i32_0 : i32, i32
  }
  func.func @transform_4(%arg0: i32) -> (i32, i32) {
    %c0_i32 = arith.constant 0 : i32
    %c0_i32_0 = arith.constant 0 : i32
    %c0_i32_1 = arith.constant 0 : i32
    return %c0_i32, %c0_i32_0 : i32, i32
  }
  func.func @transform_5(%arg0: i32) -> (i32, i32, i32) {
    %c0_i32 = arith.constant 0 : i32
    %c0_i32_0 = arith.constant 0 : i32
    %c0_i32_1 = arith.constant 0 : i32
    return %arg0, %c0_i32, %c0_i32_0 : i32, i32, i32
  }
}

module attributes {stable_mosaic.version = 11 : i64} {
  func.func @_dwconv_s1_kernel(%arg0: i32, %arg1: i32, %arg2: memref<1x10x10x128xbf16, #tpu.memory_space<vmem>>, %arg3: memref<9x128xf32, #tpu.memory_space<vmem>>, %arg4: memref<1x128xf32, #tpu.memory_space<vmem>>, %arg5: memref<1x8x8x128xbf16, #tpu.memory_space<vmem>>, %arg6: memref<1x1x128xf32, #tpu.memory_space<vmem>>) attributes {dimension_semantics = [#tpu.dimension_semantics<parallel>, #tpu.dimension_semantics<parallel>], iteration_bounds = array<i64: 2, 1>, scalar_prefetch = 0 : i64, scratch_operands = 0 : i64, tpu.core_type = #tpu.core_type<tc>, window_params = [{transform_indices = @transform_0, window_bounds = array<i64: 1, 10, 10, 128>}, {transform_indices = @transform_1, window_bounds = array<i64: 9, 128>}, {transform_indices = @transform_2, window_bounds = array<i64: 1, 128>}, {transform_indices = @transform_3, window_bounds = array<i64: 1, 8, 8, 128>}, {transform_indices = @transform_4, window_bounds = array<i64: 1, 1, 128>}]} {
    %c0 = arith.constant 0 : index
    %c0_0 = arith.constant 0 : index
    %0 = vector.load %arg3[%c0, %c0_0] : memref<9x128xf32, #tpu.memory_space<vmem>>, vector<9x128xf32>
    %c0_1 = arith.constant 0 : index
    %c0_2 = arith.constant 0 : index
    %1 = vector.load %arg4[%c0_1, %c0_2] : memref<1x128xf32, #tpu.memory_space<vmem>>, vector<1x128xf32>
    %cst = arith.constant 0.000000e+00 : f32
    %2 = vector.broadcast %cst : f32 to vector<8x8x128xf32>
    %c0_3 = arith.constant 0 : index
    %c0_4 = arith.constant 0 : index
    %c0_5 = arith.constant 0 : index
    %c0_6 = arith.constant 0 : index
    %3 = vector.load %arg2[%c0_3, %c0_4, %c0_5, %c0_6] : memref<1x10x10x128xbf16, #tpu.memory_space<vmem>>, vector<1x8x8x128xbf16>
    %4 = vector.shape_cast %3 : vector<1x8x8x128xbf16> to vector<8x8x128xbf16>
    %5 = arith.extf %4 : vector<8x8x128xbf16> to vector<8x8x128xf32>
    %6 = vector.extract_strided_slice %0 {offsets = [0, 0], sizes = [1, 128], strides = [1, 1]} : vector<9x128xf32> to vector<1x128xf32>
    %7 = vector.shape_cast %6 : vector<1x128xf32> to vector<1x1x128xf32>
    %8 = vector.broadcast %7 : vector<1x1x128xf32> to vector<8x8x128xf32>
    %9 = arith.mulf %5, %8 : vector<8x8x128xf32>
    %10 = arith.addf %2, %9 : vector<8x8x128xf32>
    %c0_7 = arith.constant 0 : index
    %c0_8 = arith.constant 0 : index
    %c1 = arith.constant 1 : index
    %c0_9 = arith.constant 0 : index
    %11 = vector.load %arg2[%c0_7, %c0_8, %c1, %c0_9] : memref<1x10x10x128xbf16, #tpu.memory_space<vmem>>, vector<1x8x8x128xbf16>
    %12 = vector.shape_cast %11 : vector<1x8x8x128xbf16> to vector<8x8x128xbf16>
    %13 = arith.extf %12 : vector<8x8x128xbf16> to vector<8x8x128xf32>
    %14 = vector.extract_strided_slice %0 {offsets = [1, 0], sizes = [1, 128], strides = [1, 1]} : vector<9x128xf32> to vector<1x128xf32>
    %15 = vector.shape_cast %14 : vector<1x128xf32> to vector<1x1x128xf32>
    %16 = vector.broadcast %15 : vector<1x1x128xf32> to vector<8x8x128xf32>
    %17 = arith.mulf %13, %16 : vector<8x8x128xf32>
    %18 = arith.addf %10, %17 : vector<8x8x128xf32>
    %c0_10 = arith.constant 0 : index
    %c0_11 = arith.constant 0 : index
    %c2 = arith.constant 2 : index
    %c0_12 = arith.constant 0 : index
    %19 = vector.load %arg2[%c0_10, %c0_11, %c2, %c0_12] : memref<1x10x10x128xbf16, #tpu.memory_space<vmem>>, vector<1x8x8x128xbf16>
    %20 = vector.shape_cast %19 : vector<1x8x8x128xbf16> to vector<8x8x128xbf16>
    %21 = arith.extf %20 : vector<8x8x128xbf16> to vector<8x8x128xf32>
    %22 = vector.extract_strided_slice %0 {offsets = [2, 0], sizes = [1, 128], strides = [1, 1]} : vector<9x128xf32> to vector<1x128xf32>
    %23 = vector.shape_cast %22 : vector<1x128xf32> to vector<1x1x128xf32>
    %24 = vector.broadcast %23 : vector<1x1x128xf32> to vector<8x8x128xf32>
    %25 = arith.mulf %21, %24 : vector<8x8x128xf32>
    %26 = arith.addf %18, %25 : vector<8x8x128xf32>
    %c0_13 = arith.constant 0 : index
    %c1_14 = arith.constant 1 : index
    %c0_15 = arith.constant 0 : index
    %c0_16 = arith.constant 0 : index
    %27 = vector.load %arg2[%c0_13, %c1_14, %c0_15, %c0_16] : memref<1x10x10x128xbf16, #tpu.memory_space<vmem>>, vector<1x8x8x128xbf16>
    %28 = vector.shape_cast %27 : vector<1x8x8x128xbf16> to vector<8x8x128xbf16>
    %29 = arith.extf %28 : vector<8x8x128xbf16> to vector<8x8x128xf32>
    %30 = vector.extract_strided_slice %0 {offsets = [3, 0], sizes = [1, 128], strides = [1, 1]} : vector<9x128xf32> to vector<1x128xf32>
    %31 = vector.shape_cast %30 : vector<1x128xf32> to vector<1x1x128xf32>
    %32 = vector.broadcast %31 : vector<1x1x128xf32> to vector<8x8x128xf32>
    %33 = arith.mulf %29, %32 : vector<8x8x128xf32>
    %34 = arith.addf %26, %33 : vector<8x8x128xf32>
    %c0_17 = arith.constant 0 : index
    %c1_18 = arith.constant 1 : index
    %c1_19 = arith.constant 1 : index
    %c0_20 = arith.constant 0 : index
    %35 = vector.load %arg2[%c0_17, %c1_18, %c1_19, %c0_20] : memref<1x10x10x128xbf16, #tpu.memory_space<vmem>>, vector<1x8x8x128xbf16>
    %36 = vector.shape_cast %35 : vector<1x8x8x128xbf16> to vector<8x8x128xbf16>
    %37 = arith.extf %36 : vector<8x8x128xbf16> to vector<8x8x128xf32>
    %38 = vector.extract_strided_slice %0 {offsets = [4, 0], sizes = [1, 128], strides = [1, 1]} : vector<9x128xf32> to vector<1x128xf32>
    %39 = vector.shape_cast %38 : vector<1x128xf32> to vector<1x1x128xf32>
    %40 = vector.broadcast %39 : vector<1x1x128xf32> to vector<8x8x128xf32>
    %41 = arith.mulf %37, %40 : vector<8x8x128xf32>
    %42 = arith.addf %34, %41 : vector<8x8x128xf32>
    %c0_21 = arith.constant 0 : index
    %c1_22 = arith.constant 1 : index
    %c2_23 = arith.constant 2 : index
    %c0_24 = arith.constant 0 : index
    %43 = vector.load %arg2[%c0_21, %c1_22, %c2_23, %c0_24] : memref<1x10x10x128xbf16, #tpu.memory_space<vmem>>, vector<1x8x8x128xbf16>
    %44 = vector.shape_cast %43 : vector<1x8x8x128xbf16> to vector<8x8x128xbf16>
    %45 = arith.extf %44 : vector<8x8x128xbf16> to vector<8x8x128xf32>
    %46 = vector.extract_strided_slice %0 {offsets = [5, 0], sizes = [1, 128], strides = [1, 1]} : vector<9x128xf32> to vector<1x128xf32>
    %47 = vector.shape_cast %46 : vector<1x128xf32> to vector<1x1x128xf32>
    %48 = vector.broadcast %47 : vector<1x1x128xf32> to vector<8x8x128xf32>
    %49 = arith.mulf %45, %48 : vector<8x8x128xf32>
    %50 = arith.addf %42, %49 : vector<8x8x128xf32>
    %c0_25 = arith.constant 0 : index
    %c2_26 = arith.constant 2 : index
    %c0_27 = arith.constant 0 : index
    %c0_28 = arith.constant 0 : index
    %51 = vector.load %arg2[%c0_25, %c2_26, %c0_27, %c0_28] : memref<1x10x10x128xbf16, #tpu.memory_space<vmem>>, vector<1x8x8x128xbf16>
    %52 = vector.shape_cast %51 : vector<1x8x8x128xbf16> to vector<8x8x128xbf16>
    %53 = arith.extf %52 : vector<8x8x128xbf16> to vector<8x8x128xf32>
    %54 = vector.extract_strided_slice %0 {offsets = [6, 0], sizes = [1, 128], strides = [1, 1]} : vector<9x128xf32> to vector<1x128xf32>
    %55 = vector.shape_cast %54 : vector<1x128xf32> to vector<1x1x128xf32>
    %56 = vector.broadcast %55 : vector<1x1x128xf32> to vector<8x8x128xf32>
    %57 = arith.mulf %53, %56 : vector<8x8x128xf32>
    %58 = arith.addf %50, %57 : vector<8x8x128xf32>
    %c0_29 = arith.constant 0 : index
    %c2_30 = arith.constant 2 : index
    %c1_31 = arith.constant 1 : index
    %c0_32 = arith.constant 0 : index
    %59 = vector.load %arg2[%c0_29, %c2_30, %c1_31, %c0_32] : memref<1x10x10x128xbf16, #tpu.memory_space<vmem>>, vector<1x8x8x128xbf16>
    %60 = vector.shape_cast %59 : vector<1x8x8x128xbf16> to vector<8x8x128xbf16>
    %61 = arith.extf %60 : vector<8x8x128xbf16> to vector<8x8x128xf32>
    %62 = vector.extract_strided_slice %0 {offsets = [7, 0], sizes = [1, 128], strides = [1, 1]} : vector<9x128xf32> to vector<1x128xf32>
    %63 = vector.shape_cast %62 : vector<1x128xf32> to vector<1x1x128xf32>
    %64 = vector.broadcast %63 : vector<1x1x128xf32> to vector<8x8x128xf32>
    %65 = arith.mulf %61, %64 : vector<8x8x128xf32>
    %66 = arith.addf %58, %65 : vector<8x8x128xf32>
    %c0_33 = arith.constant 0 : index
    %c2_34 = arith.constant 2 : index
    %c2_35 = arith.constant 2 : index
    %c0_36 = arith.constant 0 : index
    %67 = vector.load %arg2[%c0_33, %c2_34, %c2_35, %c0_36] : memref<1x10x10x128xbf16, #tpu.memory_space<vmem>>, vector<1x8x8x128xbf16>
    %68 = vector.shape_cast %67 : vector<1x8x8x128xbf16> to vector<8x8x128xbf16>
    %69 = arith.extf %68 : vector<8x8x128xbf16> to vector<8x8x128xf32>
    %70 = vector.extract_strided_slice %0 {offsets = [8, 0], sizes = [1, 128], strides = [1, 1]} : vector<9x128xf32> to vector<1x128xf32>
    %71 = vector.shape_cast %70 : vector<1x128xf32> to vector<1x1x128xf32>
    %72 = vector.broadcast %71 : vector<1x1x128xf32> to vector<8x8x128xf32>
    %73 = arith.mulf %69, %72 : vector<8x8x128xf32>
    %74 = arith.addf %66, %73 : vector<8x8x128xf32>
    %75 = vector.shape_cast %1 : vector<1x128xf32> to vector<1x1x128xf32>
    %76 = vector.broadcast %75 : vector<1x1x128xf32> to vector<8x8x128xf32>
    %77 = arith.addf %74, %76 : vector<8x8x128xf32>
    %78 = arith.negf %77 : vector<8x8x128xf32>
    %79 = math.exp %78 : vector<8x8x128xf32>
    %cst_37 = arith.constant 1.000000e+00 : f32
    %80 = vector.broadcast %cst_37 : f32 to vector<8x8x128xf32>
    %81 = arith.addf %80, %79 : vector<8x8x128xf32>
    %82 = arith.divf %80, %81 : vector<8x8x128xf32>
    %83 = arith.mulf %77, %82 : vector<8x8x128xf32>
    %84 = arith.truncf %83 : vector<8x8x128xf32> to vector<8x8x128xbf16>
    %c0_38 = arith.constant 0 : index
    %c0_39 = arith.constant 0 : index
    %c0_40 = arith.constant 0 : index
    %c0_41 = arith.constant 0 : index
    %85 = vector.load %arg5[%c0_38, %c0_39, %c0_40, %c0_41] : memref<1x8x8x128xbf16, #tpu.memory_space<vmem>>, vector<1x8x8x128xbf16>
    %86 = vector.shape_cast %85 : vector<1x8x8x128xbf16> to vector<8x8x128xbf16>
    %87 = vector.shape_cast %84 : vector<8x8x128xbf16> to vector<1x8x8x128xbf16>
    tpu.vector_store %arg5[%c0_38, %c0_39, %c0_40, %c0_41], %87 {strides = array<i32>} : memref<1x8x8x128xbf16, #tpu.memory_space<vmem>>, vector<1x8x8x128xbf16>,
    %cst_42 = arith.constant dense<0.000000e+00> : vector<8x128xf32>
    %88 = vector.multi_reduction <add>, %83, %cst_42 [0] : vector<8x8x128xf32> to vector<8x128xf32>
    %cst_43 = arith.constant dense<0.000000e+00> : vector<128xf32>
    %89 = vector.multi_reduction <add>, %88, %cst_43 [0] : vector<8x128xf32> to vector<128xf32>
    %90 = vector.shape_cast %89 : vector<128xf32> to vector<1x128xf32>
    %c0_44 = arith.constant 0 : index
    %c0_45 = arith.constant 0 : index
    %c0_46 = arith.constant 0 : index
    %91 = vector.load %arg6[%c0_44, %c0_45, %c0_46] : memref<1x1x128xf32, #tpu.memory_space<vmem>>, vector<1x1x128xf32>
    %92 = vector.shape_cast %91 : vector<1x1x128xf32> to vector<1x128xf32>
    %93 = vector.shape_cast %90 : vector<1x128xf32> to vector<1x1x128xf32>
    tpu.vector_store %arg6[%c0_44, %c0_45, %c0_46], %93 {strides = array<i32>} : memref<1x1x128xf32, #tpu.memory_space<vmem>>, vector<1x1x128xf32>,
    return
  }
  func.func @transform_0(%arg0: i32, %arg1: i32) -> (i32, i32, i32, i32) {
    %c0_i32 = arith.constant 0 : i32
    %c0_i32_0 = arith.constant 0 : i32
    %c0_i32_1 = arith.constant 0 : i32
    return %arg0, %c0_i32, %c0_i32_0, %arg1 : i32, i32, i32, i32
  }
  func.func @transform_1(%arg0: i32, %arg1: i32) -> (i32, i32) {
    %c0_i32 = arith.constant 0 : i32
    %c0_i32_0 = arith.constant 0 : i32
    return %c0_i32, %arg1 : i32, i32
  }
  func.func @transform_2(%arg0: i32, %arg1: i32) -> (i32, i32) {
    %c0_i32 = arith.constant 0 : i32
    %c0_i32_0 = arith.constant 0 : i32
    return %c0_i32, %arg1 : i32, i32
  }
  func.func @transform_3(%arg0: i32, %arg1: i32) -> (i32, i32, i32, i32) {
    %c0_i32 = arith.constant 0 : i32
    %c0_i32_0 = arith.constant 0 : i32
    %c0_i32_1 = arith.constant 0 : i32
    return %arg0, %c0_i32, %c0_i32_0, %arg1 : i32, i32, i32, i32
  }
  func.func @transform_4(%arg0: i32, %arg1: i32) -> (i32, i32, i32) {
    %c0_i32 = arith.constant 0 : i32
    %c0_i32_0 = arith.constant 0 : i32
    return %arg0, %c0_i32, %arg1 : i32, i32, i32
  }
}

module attributes {stable_mosaic.version = 11 : i64} {
  func.func @_mm_epilogue_kernel(%arg0: i32, %arg1: memref<64x16xbf16, #tpu.memory_space<vmem>>, %arg2: memref<16x128xbf16, #tpu.memory_space<vmem>>, %arg3: memref<1x128xf32, #tpu.memory_space<vmem>>, %arg4: memref<64x128xbf16, #tpu.memory_space<vmem>>) attributes {dimension_semantics = [#tpu.dimension_semantics<parallel>], iteration_bounds = array<i64: 2>, scalar_prefetch = 0 : i64, scratch_operands = 0 : i64, tpu.core_type = #tpu.core_type<tc>, window_params = [{transform_indices = @transform_0, window_bounds = array<i64: 64, 16>}, {pipeline_mode = #tpu.pipeline_mode<synchronous>, transform_indices = @transform_1, window_bounds = array<i64: 16, 128>}, {pipeline_mode = #tpu.pipeline_mode<synchronous>, transform_indices = @transform_2, window_bounds = array<i64: 1, 128>}, {transform_indices = @transform_3, window_bounds = array<i64: 64, 128>}]} {
    %c0 = arith.constant 0 : index
    %c0_0 = arith.constant 0 : index
    %0 = vector.load %arg1[%c0, %c0_0] : memref<64x16xbf16, #tpu.memory_space<vmem>>, vector<64x16xbf16>
    %c0_1 = arith.constant 0 : index
    %c0_2 = arith.constant 0 : index
    %1 = vector.load %arg2[%c0_1, %c0_2] : memref<16x128xbf16, #tpu.memory_space<vmem>>, vector<16x128xbf16>
    %cst = arith.constant dense<0.000000e+00> : vector<64x128xf32>
    %2 = tpu.matmul %0, %1, %cst {dimension_numbers = #tpu.dot_dimension_numbers<[1], [0], [0], [1], [0, 0, 1, 1], [], []>} : vector<64x16xbf16>, vector<16x128xbf16>, vector<64x128xf32> -> vector<64x128xf32>
    %c0_3 = arith.constant 0 : index
    %c0_4 = arith.constant 0 : index
    %3 = vector.load %arg3[%c0_3, %c0_4] : memref<1x128xf32, #tpu.memory_space<vmem>>, vector<1x128xf32>
    %4 = vector.broadcast %3 : vector<1x128xf32> to vector<64x128xf32>
    %5 = arith.addf %2, %4 : vector<64x128xf32>
    %6 = arith.negf %5 : vector<64x128xf32>
    %7 = math.exp %6 : vector<64x128xf32>
    %cst_5 = arith.constant 1.000000e+00 : f32
    %8 = vector.broadcast %cst_5 : f32 to vector<64x128xf32>
    %9 = arith.addf %8, %7 : vector<64x128xf32>
    %10 = arith.divf %8, %9 : vector<64x128xf32>
    %11 = arith.mulf %5, %10 : vector<64x128xf32>
    %12 = arith.truncf %11 : vector<64x128xf32> to vector<64x128xbf16>
    %c0_6 = arith.constant 0 : index
    %c0_7 = arith.constant 0 : index
    %13 = vector.load %arg4[%c0_6, %c0_7] : memref<64x128xbf16, #tpu.memory_space<vmem>>, vector<64x128xbf16>
    tpu.vector_store %arg4[%c0_6, %c0_7], %12 {strides = array<i32>} : memref<64x128xbf16, #tpu.memory_space<vmem>>, vector<64x128xbf16>,
    return
  }
  func.func @transform_0(%arg0: i32) -> (i32, i32) {
    %c0_i32 = arith.constant 0 : i32
    %c0_i32_0 = arith.constant 0 : i32
    return %arg0, %c0_i32 : i32, i32
  }
  func.func @transform_1(%arg0: i32) -> (i32, i32) {
    %c0_i32 = arith.constant 0 : i32
    %c0_i32_0 = arith.constant 0 : i32
    %c0_i32_1 = arith.constant 0 : i32
    return %c0_i32, %c0_i32_0 : i32, i32
  }
  func.func @transform_2(%arg0: i32) -> (i32, i32) {
    %c0_i32 = arith.constant 0 : i32
    %c0_i32_0 = arith.constant 0 : i32
    %c0_i32_1 = arith.constant 0 : i32
    return %c0_i32, %c0_i32_0 : i32, i32
  }
  func.func @transform_3(%arg0: i32) -> (i32, i32) {
    %c0_i32 = arith.constant 0 : i32
    %c0_i32_0 = arith.constant 0 : i32
    return %arg0, %c0_i32 : i32, i32
  }
}

module attributes {stable_mosaic.version = 11 : i64} {
  func.func @_project_se_kernel(%arg0: i32, %arg1: i32, %arg2: memref<1x32x128xbf16, #tpu.memory_space<vmem>>, %arg3: memref<1x1x128xf32, #tpu.memory_space<vmem>>, %arg4: memref<128x128xbf16, #tpu.memory_space<vmem>>, %arg5: memref<1x128xf32, #tpu.memory_space<vmem>>, %arg6: memref<1x32x128xbf16, #tpu.memory_space<vmem>>) attributes {dimension_semantics = [#tpu.dimension_semantics<parallel>, #tpu.dimension_semantics<parallel>], iteration_bounds = array<i64: 2, 2>, scalar_prefetch = 0 : i64, scratch_operands = 0 : i64, tpu.core_type = #tpu.core_type<tc>, window_params = [{transform_indices = @transform_0, window_bounds = array<i64: 1, 32, 128>}, {transform_indices = @transform_1, window_bounds = array<i64: 1, 1, 128>}, {pipeline_mode = #tpu.pipeline_mode<synchronous>, transform_indices = @transform_2, window_bounds = array<i64: 128, 128>}, {pipeline_mode = #tpu.pipeline_mode<synchronous>, transform_indices = @transform_3, window_bounds = array<i64: 1, 128>}, {transform_indices = @transform_4, window_bounds = array<i64: 1, 32, 128>}]} {
    %c0 = arith.constant 0 : index
    %c0_0 = arith.constant 0 : index
    %c0_1 = arith.constant 0 : index
    %0 = vector.load %arg2[%c0, %c0_0, %c0_1] : memref<1x32x128xbf16, #tpu.memory_space<vmem>>, vector<1x32x128xbf16>
    %1 = vector.shape_cast %0 : vector<1x32x128xbf16> to vector<32x128xbf16>
    %c0_2 = arith.constant 0 : index
    %c0_3 = arith.constant 0 : index
    %c0_4 = arith.constant 0 : index
    %2 = vector.load %arg3[%c0_2, %c0_3, %c0_4] : memref<1x1x128xf32, #tpu.memory_space<vmem>>, vector<1x1x128xf32>
    %3 = vector.shape_cast %2 : vector<1x1x128xf32> to vector<1x128xf32>
    %4 = arith.truncf %3 : vector<1x128xf32> to vector<1x128xbf16>
    %5 = vector.broadcast %4 : vector<1x128xbf16> to vector<32x128xbf16>
    %6 = arith.mulf %1, %5 : vector<32x128xbf16>
    %c0_5 = arith.constant 0 : index
    %c0_6 = arith.constant 0 : index
    %7 = vector.load %arg4[%c0_5, %c0_6] : memref<128x128xbf16, #tpu.memory_space<vmem>>, vector<128x128xbf16>
    %cst = arith.constant dense<0.000000e+00> : vector<32x128xf32>
    %8 = tpu.matmul %6, %7, %cst {dimension_numbers = #tpu.dot_dimension_numbers<[1], [0], [0], [1], [0, 0, 1, 1], [], []>} : vector<32x128xbf16>, vector<128x128xbf16>, vector<32x128xf32> -> vector<32x128xf32>
    %c0_7 = arith.constant 0 : index
    %c0_8 = arith.constant 0 : index
    %9 = vector.load %arg5[%c0_7, %c0_8] : memref<1x128xf32, #tpu.memory_space<vmem>>, vector<1x128xf32>
    %10 = vector.broadcast %9 : vector<1x128xf32> to vector<32x128xf32>
    %11 = arith.addf %8, %10 : vector<32x128xf32>
    %12 = arith.truncf %11 : vector<32x128xf32> to vector<32x128xbf16>
    %c0_9 = arith.constant 0 : index
    %c0_10 = arith.constant 0 : index
    %c0_11 = arith.constant 0 : index
    %13 = vector.load %arg6[%c0_9, %c0_10, %c0_11] : memref<1x32x128xbf16, #tpu.memory_space<vmem>>, vector<1x32x128xbf16>
    %14 = vector.shape_cast %13 : vector<1x32x128xbf16> to vector<32x128xbf16>
    %15 = vector.shape_cast %12 : vector<32x128xbf16> to vector<1x32x128xbf16>
    tpu.vector_store %arg6[%c0_9, %c0_10, %c0_11], %15 {strides = array<i32>} : memref<1x32x128xbf16, #tpu.memory_space<vmem>>, vector<1x32x128xbf16>,
    return
  }
  func.func @transform_0(%arg0: i32, %arg1: i32) -> (i32, i32, i32) {
    %c0_i32 = arith.constant 0 : i32
    %c0_i32_0 = arith.constant 0 : i32
    return %arg0, %arg1, %c0_i32 : i32, i32, i32
  }
  func.func @transform_1(%arg0: i32, %arg1: i32) -> (i32, i32, i32) {
    %c0_i32 = arith.constant 0 : i32
    %c0_i32_0 = arith.constant 0 : i32
    %c0_i32_1 = arith.constant 0 : i32
    return %arg0, %c0_i32, %c0_i32_0 : i32, i32, i32
  }
  func.func @transform_2(%arg0: i32, %arg1: i32) -> (i32, i32) {
    %c0_i32 = arith.constant 0 : i32
    %c0_i32_0 = arith.constant 0 : i32
    %c0_i32_1 = arith.constant 0 : i32
    return %c0_i32, %c0_i32_0 : i32, i32
  }
  func.func @transform_3(%arg0: i32, %arg1: i32) -> (i32, i32) {
    %c0_i32 = arith.constant 0 : i32
    %c0_i32_0 = arith.constant 0 : i32
    %c0_i32_1 = arith.constant 0 : i32
    return %c0_i32, %c0_i32_0 : i32, i32
  }
  func.func @transform_4(%arg0: i32, %arg1: i32) -> (i32, i32, i32) {
    %c0_i32 = arith.constant 0 : i32
    %c0_i32_0 = arith.constant 0 : i32
    return %arg0, %arg1, %c0_i32 : i32, i32, i32
  }
}

module attributes {stable_mosaic.version = 11 : i64} {
  func.func @_mm_epilogue_kernel(%arg0: i32, %arg1: memref<64x128xbf16, #tpu.memory_space<vmem>>, %arg2: memref<128x128xbf16, #tpu.memory_space<vmem>>, %arg3: memref<1x128xf32, #tpu.memory_space<vmem>>, %arg4: memref<64x128xbf16, #tpu.memory_space<vmem>>) attributes {dimension_semantics = [#tpu.dimension_semantics<parallel>], iteration_bounds = array<i64: 2>, scalar_prefetch = 0 : i64, scratch_operands = 0 : i64, tpu.core_type = #tpu.core_type<tc>, window_params = [{transform_indices = @transform_0, window_bounds = array<i64: 64, 128>}, {pipeline_mode = #tpu.pipeline_mode<synchronous>, transform_indices = @transform_1, window_bounds = array<i64: 128, 128>}, {pipeline_mode = #tpu.pipeline_mode<synchronous>, transform_indices = @transform_2, window_bounds = array<i64: 1, 128>}, {transform_indices = @transform_3, window_bounds = array<i64: 64, 128>}]} {
    %c0 = arith.constant 0 : index
    %c0_0 = arith.constant 0 : index
    %0 = vector.load %arg1[%c0, %c0_0] : memref<64x128xbf16, #tpu.memory_space<vmem>>, vector<64x128xbf16>
    %c0_1 = arith.constant 0 : index
    %c0_2 = arith.constant 0 : index
    %1 = vector.load %arg2[%c0_1, %c0_2] : memref<128x128xbf16, #tpu.memory_space<vmem>>, vector<128x128xbf16>
    %cst = arith.constant dense<0.000000e+00> : vector<64x128xf32>
    %2 = tpu.matmul %0, %1, %cst {dimension_numbers = #tpu.dot_dimension_numbers<[1], [0], [0], [1], [0, 0, 1, 1], [], []>} : vector<64x128xbf16>, vector<128x128xbf16>, vector<64x128xf32> -> vector<64x128xf32>
    %c0_3 = arith.constant 0 : index
    %c0_4 = arith.constant 0 : index
    %3 = vector.load %arg3[%c0_3, %c0_4] : memref<1x128xf32, #tpu.memory_space<vmem>>, vector<1x128xf32>
    %4 = vector.broadcast %3 : vector<1x128xf32> to vector<64x128xf32>
    %5 = arith.addf %2, %4 : vector<64x128xf32>
    %6 = arith.negf %5 : vector<64x128xf32>
    %7 = math.exp %6 : vector<64x128xf32>
    %cst_5 = arith.constant 1.000000e+00 : f32
    %8 = vector.broadcast %cst_5 : f32 to vector<64x128xf32>
    %9 = arith.addf %8, %7 : vector<64x128xf32>
    %10 = arith.divf %8, %9 : vector<64x128xf32>
    %11 = arith.mulf %5, %10 : vector<64x128xf32>
    %12 = arith.truncf %11 : vector<64x128xf32> to vector<64x128xbf16>
    %c0_6 = arith.constant 0 : index
    %c0_7 = arith.constant 0 : index
    %13 = vector.load %arg4[%c0_6, %c0_7] : memref<64x128xbf16, #tpu.memory_space<vmem>>, vector<64x128xbf16>
    tpu.vector_store %arg4[%c0_6, %c0_7], %12 {strides = array<i32>} : memref<64x128xbf16, #tpu.memory_space<vmem>>, vector<64x128xbf16>,
    return
  }
  func.func @transform_0(%arg0: i32) -> (i32, i32) {
    %c0_i32 = arith.constant 0 : i32
    %c0_i32_0 = arith.constant 0 : i32
    return %arg0, %c0_i32 : i32, i32
  }
  func.func @transform_1(%arg0: i32) -> (i32, i32) {
    %c0_i32 = arith.constant 0 : i32
    %c0_i32_0 = arith.constant 0 : i32
    %c0_i32_1 = arith.constant 0 : i32
    return %c0_i32, %c0_i32_0 : i32, i32
  }
  func.func @transform_2(%arg0: i32) -> (i32, i32) {
    %c0_i32 = arith.constant 0 : i32
    %c0_i32_0 = arith.constant 0 : i32
    %c0_i32_1 = arith.constant 0 : i32
    return %c0_i32, %c0_i32_0 : i32, i32
  }
  func.func @transform_3(%arg0: i32) -> (i32, i32) {
    %c0_i32 = arith.constant 0 : i32
    %c0_i32_0 = arith.constant 0 : i32
    return %arg0, %c0_i32 : i32, i32
  }
}

module attributes {stable_mosaic.version = 11 : i64} {
  func.func @_dwconv_s2_kernel(%arg0: i32, %arg1: memref<1x5x2x5x256xbf16, #tpu.memory_space<vmem>>, %arg2: memref<9x128xf32, #tpu.memory_space<vmem>>, %arg3: memref<1x128xf32, #tpu.memory_space<vmem>>, %arg4: memref<1x4x4x128xbf16, #tpu.memory_space<vmem>>, %arg5: memref<1x1x128xf32, #tpu.memory_space<vmem>>) attributes {dimension_semantics = [#tpu.dimension_semantics<parallel>], iteration_bounds = array<i64: 2>, scalar_prefetch = 0 : i64, scratch_operands = 0 : i64, tpu.core_type = #tpu.core_type<tc>, window_params = [{transform_indices = @transform_0, window_bounds = array<i64: 1, 5, 2, 5, 256>}, {pipeline_mode = #tpu.pipeline_mode<synchronous>, transform_indices = @transform_1, window_bounds = array<i64: 9, 128>}, {pipeline_mode = #tpu.pipeline_mode<synchronous>, transform_indices = @transform_2, window_bounds = array<i64: 1, 128>}, {transform_indices = @transform_3, window_bounds = array<i64: 1, 4, 4, 128>}, {transform_indices = @transform_4, window_bounds = array<i64: 1, 1, 128>}]} {
    %c0 = arith.constant 0 : index
    %c0_0 = arith.constant 0 : index
    %0 = vector.load %arg2[%c0, %c0_0] : memref<9x128xf32, #tpu.memory_space<vmem>>, vector<9x128xf32>
    %c0_1 = arith.constant 0 : index
    %c0_2 = arith.constant 0 : index
    %1 = vector.load %arg3[%c0_1, %c0_2] : memref<1x128xf32, #tpu.memory_space<vmem>>, vector<1x128xf32>
    %cst = arith.constant 0.000000e+00 : f32
    %2 = vector.broadcast %cst : f32 to vector<4x4x128xf32>
    %c0_3 = arith.constant 0 : index
    %c0_4 = arith.constant 0 : index
    %c0_5 = arith.constant 0 : index
    %c0_6 = arith.constant 0 : index
    %c0_7 = arith.constant 0 : index
    %3 = vector.load %arg1[%c0_3, %c0_4, %c0_5, %c0_6, %c0_7] : memref<1x5x2x5x256xbf16, #tpu.memory_space<vmem>>, vector<1x4x1x4x128xbf16>
    %4 = vector.shape_cast %3 : vector<1x4x1x4x128xbf16> to vector<4x4x128xbf16>
    %5 = arith.extf %4 : vector<4x4x128xbf16> to vector<4x4x128xf32>
    %6 = vector.extract_strided_slice %0 {offsets = [0, 0], sizes = [1, 128], strides = [1, 1]} : vector<9x128xf32> to vector<1x128xf32>
    %7 = vector.shape_cast %6 : vector<1x128xf32> to vector<1x1x128xf32>
    %8 = vector.broadcast %7 : vector<1x1x128xf32> to vector<4x4x128xf32>
    %9 = arith.mulf %5, %8 : vector<4x4x128xf32>
    %10 = arith.addf %2, %9 : vector<4x4x128xf32>
    %c0_8 = arith.constant 0 : index
    %c0_9 = arith.constant 0 : index
    %c0_10 = arith.constant 0 : index
    %c0_11 = arith.constant 0 : index
    %c128 = arith.constant 128 : index
    %11 = vector.load %arg1[%c0_8, %c0_9, %c0_10, %c0_11, %c128] : memref<1x5x2x5x256xbf16, #tpu.memory_space<vmem>>, vector<1x4x1x4x128xbf16>
    %12 = vector.shape_cast %11 : vector<1x4x1x4x128xbf16> to vector<4x4x128xbf16>
    %13 = arith.extf %12 : vector<4x4x128xbf16> to vector<4x4x128xf32>
    %14 = vector.extract_strided_slice %0 {offsets = [1, 0], sizes = [1, 128], strides = [1, 1]} : vector<9x128xf32> to vector<1x128xf32>
    %15 = vector.shape_cast %14 : vector<1x128xf32> to vector<1x1x128xf32>
    %16 = vector.broadcast %15 : vector<1x1x128xf32> to vector<4x4x128xf32>
    %17 = arith.mulf %13, %16 : vector<4x4x128xf32>
    %18 = arith.addf %10, %17 : vector<4x4x128xf32>
    %c0_12 = arith.constant 0 : index
    %c0_13 = arith.constant 0 : index
    %c0_14 = arith.constant 0 : index
    %c1 = arith.constant 1 : index
    %c0_15 = arith.constant 0 : index
    %19 = vector.load %arg1[%c0_12, %c0_13, %c0_14, %c1, %c0_15] : memref<1x5x2x5x256xbf16, #tpu.memory_space<vmem>>, vector<1x4x1x4x128xbf16>
    %20 = vector.shape_cast %19 : vector<1x4x1x4x128xbf16> to vector<4x4x128xbf16>
    %21 = arith.extf %20 : vector<4x4x128xbf16> to vector<4x4x128xf32>
    %22 = vector.extract_strided_slice %0 {offsets = [2, 0], sizes = [1, 128], strides = [1, 1]} : vector<9x128xf32> to vector<1x128xf32>
    %23 = vector.shape_cast %22 : vector<1x128xf32> to vector<1x1x128xf32>
    %24 = vector.broadcast %23 : vector<1x1x128xf32> to vector<4x4x128xf32>
    %25 = arith.mulf %21, %24 : vector<4x4x128xf32>
    %26 = arith.addf %18, %25 : vector<4x4x128xf32>
    %c0_16 = arith.constant 0 : index
    %c0_17 = arith.constant 0 : index
    %c1_18 = arith.constant 1 : index
    %c0_19 = arith.constant 0 : index
    %c0_20 = arith.constant 0 : index
    %27 = vector.load %arg1[%c0_16, %c0_17, %c1_18, %c0_19, %c0_20] : memref<1x5x2x5x256xbf16, #tpu.memory_space<vmem>>, vector<1x4x1x4x128xbf16>
    %28 = vector.shape_cast %27 : vector<1x4x1x4x128xbf16> to vector<4x4x128xbf16>
    %29 = arith.extf %28 : vector<4x4x128xbf16> to vector<4x4x128xf32>
    %30 = vector.extract_strided_slice %0 {offsets = [3, 0], sizes = [1, 128], strides = [1, 1]} : vector<9x128xf32> to vector<1x128xf32>
    %31 = vector.shape_cast %30 : vector<1x128xf32> to vector<1x1x128xf32>
    %32 = vector.broadcast %31 : vector<1x1x128xf32> to vector<4x4x128xf32>
    %33 = arith.mulf %29, %32 : vector<4x4x128xf32>
    %34 = arith.addf %26, %33 : vector<4x4x128xf32>
    %c0_21 = arith.constant 0 : index
    %c0_22 = arith.constant 0 : index
    %c1_23 = arith.constant 1 : index
    %c0_24 = arith.constant 0 : index
    %c128_25 = arith.constant 128 : index
    %35 = vector.load %arg1[%c0_21, %c0_22, %c1_23, %c0_24, %c128_25] : memref<1x5x2x5x256xbf16, #tpu.memory_space<vmem>>, vector<1x4x1x4x128xbf16>
    %36 = vector.shape_cast %35 : vector<1x4x1x4x128xbf16> to vector<4x4x128xbf16>
    %37 = arith.extf %36 : vector<4x4x128xbf16> to vector<4x4x128xf32>
    %38 = vector.extract_strided_slice %0 {offsets = [4, 0], sizes = [1, 128], strides = [1, 1]} : vector<9x128xf32> to vector<1x128xf32>
    %39 = vector.shape_cast %38 : vector<1x128xf32> to vector<1x1x128xf32>
    %40 = vector.broadcast %39 : vector<1x1x128xf32> to vector<4x4x128xf32>
    %41 = arith.mulf %37, %40 : vector<4x4x128xf32>
    %42 = arith.addf %34, %41 : vector<4x4x128xf32>
    %c0_26 = arith.constant 0 : index
    %c0_27 = arith.constant 0 : index
    %c1_28 = arith.constant 1 : index
    %c1_29 = arith.constant 1 : index
    %c0_30 = arith.constant 0 : index
    %43 = vector.load %arg1[%c0_26, %c0_27, %c1_28, %c1_29, %c0_30] : memref<1x5x2x5x256xbf16, #tpu.memory_space<vmem>>, vector<1x4x1x4x128xbf16>
    %44 = vector.shape_cast %43 : vector<1x4x1x4x128xbf16> to vector<4x4x128xbf16>
    %45 = arith.extf %44 : vector<4x4x128xbf16> to vector<4x4x128xf32>
    %46 = vector.extract_strided_slice %0 {offsets = [5, 0], sizes = [1, 128], strides = [1, 1]} : vector<9x128xf32> to vector<1x128xf32>
    %47 = vector.shape_cast %46 : vector<1x128xf32> to vector<1x1x128xf32>
    %48 = vector.broadcast %47 : vector<1x1x128xf32> to vector<4x4x128xf32>
    %49 = arith.mulf %45, %48 : vector<4x4x128xf32>
    %50 = arith.addf %42, %49 : vector<4x4x128xf32>
    %c0_31 = arith.constant 0 : index
    %c1_32 = arith.constant 1 : index
    %c0_33 = arith.constant 0 : index
    %c0_34 = arith.constant 0 : index
    %c0_35 = arith.constant 0 : index
    %51 = vector.load %arg1[%c0_31, %c1_32, %c0_33, %c0_34, %c0_35] : memref<1x5x2x5x256xbf16, #tpu.memory_space<vmem>>, vector<1x4x1x4x128xbf16>
    %52 = vector.shape_cast %51 : vector<1x4x1x4x128xbf16> to vector<4x4x128xbf16>
    %53 = arith.extf %52 : vector<4x4x128xbf16> to vector<4x4x128xf32>
    %54 = vector.extract_strided_slice %0 {offsets = [6, 0], sizes = [1, 128], strides = [1, 1]} : vector<9x128xf32> to vector<1x128xf32>
    %55 = vector.shape_cast %54 : vector<1x128xf32> to vector<1x1x128xf32>
    %56 = vector.broadcast %55 : vector<1x1x128xf32> to vector<4x4x128xf32>
    %57 = arith.mulf %53, %56 : vector<4x4x128xf32>
    %58 = arith.addf %50, %57 : vector<4x4x128xf32>
    %c0_36 = arith.constant 0 : index
    %c1_37 = arith.constant 1 : index
    %c0_38 = arith.constant 0 : index
    %c0_39 = arith.constant 0 : index
    %c128_40 = arith.constant 128 : index
    %59 = vector.load %arg1[%c0_36, %c1_37, %c0_38, %c0_39, %c128_40] : memref<1x5x2x5x256xbf16, #tpu.memory_space<vmem>>, vector<1x4x1x4x128xbf16>
    %60 = vector.shape_cast %59 : vector<1x4x1x4x128xbf16> to vector<4x4x128xbf16>
    %61 = arith.extf %60 : vector<4x4x128xbf16> to vector<4x4x128xf32>
    %62 = vector.extract_strided_slice %0 {offsets = [7, 0], sizes = [1, 128], strides = [1, 1]} : vector<9x128xf32> to vector<1x128xf32>
    %63 = vector.shape_cast %62 : vector<1x128xf32> to vector<1x1x128xf32>
    %64 = vector.broadcast %63 : vector<1x1x128xf32> to vector<4x4x128xf32>
    %65 = arith.mulf %61, %64 : vector<4x4x128xf32>
    %66 = arith.addf %58, %65 : vector<4x4x128xf32>
    %c0_41 = arith.constant 0 : index
    %c1_42 = arith.constant 1 : index
    %c0_43 = arith.constant 0 : index
    %c1_44 = arith.constant 1 : index
    %c0_45 = arith.constant 0 : index
    %67 = vector.load %arg1[%c0_41, %c1_42, %c0_43, %c1_44, %c0_45] : memref<1x5x2x5x256xbf16, #tpu.memory_space<vmem>>, vector<1x4x1x4x128xbf16>
    %68 = vector.shape_cast %67 : vector<1x4x1x4x128xbf16> to vector<4x4x128xbf16>
    %69 = arith.extf %68 : vector<4x4x128xbf16> to vector<4x4x128xf32>
    %70 = vector.extract_strided_slice %0 {offsets = [8, 0], sizes = [1, 128], strides = [1, 1]} : vector<9x128xf32> to vector<1x128xf32>
    %71 = vector.shape_cast %70 : vector<1x128xf32> to vector<1x1x128xf32>
    %72 = vector.broadcast %71 : vector<1x1x128xf32> to vector<4x4x128xf32>
    %73 = arith.mulf %69, %72 : vector<4x4x128xf32>
    %74 = arith.addf %66, %73 : vector<4x4x128xf32>
    %75 = vector.shape_cast %1 : vector<1x128xf32> to vector<1x1x128xf32>
    %76 = vector.broadcast %75 : vector<1x1x128xf32> to vector<4x4x128xf32>
    %77 = arith.addf %74, %76 : vector<4x4x128xf32>
    %78 = arith.negf %77 : vector<4x4x128xf32>
    %79 = math.exp %78 : vector<4x4x128xf32>
    %cst_46 = arith.constant 1.000000e+00 : f32
    %80 = vector.broadcast %cst_46 : f32 to vector<4x4x128xf32>
    %81 = arith.addf %80, %79 : vector<4x4x128xf32>
    %82 = arith.divf %80, %81 : vector<4x4x128xf32>
    %83 = arith.mulf %77, %82 : vector<4x4x128xf32>
    %84 = arith.truncf %83 : vector<4x4x128xf32> to vector<4x4x128xbf16>
    %c0_47 = arith.constant 0 : index
    %c0_48 = arith.constant 0 : index
    %c0_49 = arith.constant 0 : index
    %c0_50 = arith.constant 0 : index
    %85 = vector.load %arg4[%c0_47, %c0_48, %c0_49, %c0_50] : memref<1x4x4x128xbf16, #tpu.memory_space<vmem>>, vector<1x4x4x128xbf16>
    %86 = vector.shape_cast %85 : vector<1x4x4x128xbf16> to vector<4x4x128xbf16>
    %87 = vector.shape_cast %84 : vector<4x4x128xbf16> to vector<1x4x4x128xbf16>
    tpu.vector_store %arg4[%c0_47, %c0_48, %c0_49, %c0_50], %87 {strides = array<i32>} : memref<1x4x4x128xbf16, #tpu.memory_space<vmem>>, vector<1x4x4x128xbf16>,
    %cst_51 = arith.constant dense<0.000000e+00> : vector<4x128xf32>
    %88 = vector.multi_reduction <add>, %83, %cst_51 [0] : vector<4x4x128xf32> to vector<4x128xf32>
    %cst_52 = arith.constant dense<0.000000e+00> : vector<128xf32>
    %89 = vector.multi_reduction <add>, %88, %cst_52 [0] : vector<4x128xf32> to vector<128xf32>
    %90 = vector.shape_cast %89 : vector<128xf32> to vector<1x128xf32>
    %c0_53 = arith.constant 0 : index
    %c0_54 = arith.constant 0 : index
    %c0_55 = arith.constant 0 : index
    %91 = vector.load %arg5[%c0_53, %c0_54, %c0_55] : memref<1x1x128xf32, #tpu.memory_space<vmem>>, vector<1x1x128xf32>
    %92 = vector.shape_cast %91 : vector<1x1x128xf32> to vector<1x128xf32>
    %93 = vector.shape_cast %90 : vector<1x128xf32> to vector<1x1x128xf32>
    tpu.vector_store %arg5[%c0_53, %c0_54, %c0_55], %93 {strides = array<i32>} : memref<1x1x128xf32, #tpu.memory_space<vmem>>, vector<1x1x128xf32>,
    return
  }
  func.func @transform_0(%arg0: i32) -> (i32, i32, i32, i32, i32) {
    %c0_i32 = arith.constant 0 : i32
    %c0_i32_0 = arith.constant 0 : i32
    %c0_i32_1 = arith.constant 0 : i32
    %c0_i32_2 = arith.constant 0 : i32
    %c0_i32_3 = arith.constant 0 : i32
    return %arg0, %c0_i32, %c0_i32_0, %c0_i32_1, %c0_i32_2 : i32, i32, i32, i32, i32
  }
  func.func @transform_1(%arg0: i32) -> (i32, i32) {
    %c0_i32 = arith.constant 0 : i32
    %c0_i32_0 = arith.constant 0 : i32
    %c0_i32_1 = arith.constant 0 : i32
    return %c0_i32, %c0_i32_0 : i32, i32
  }
  func.func @transform_2(%arg0: i32) -> (i32, i32) {
    %c0_i32 = arith.constant 0 : i32
    %c0_i32_0 = arith.constant 0 : i32
    %c0_i32_1 = arith.constant 0 : i32
    return %c0_i32, %c0_i32_0 : i32, i32
  }
  func.func @transform_3(%arg0: i32) -> (i32, i32, i32, i32) {
    %c0_i32 = arith.constant 0 : i32
    %c0_i32_0 = arith.constant 0 : i32
    %c0_i32_1 = arith.constant 0 : i32
    %c0_i32_2 = arith.constant 0 : i32
    return %arg0, %c0_i32, %c0_i32_0, %c0_i32_1 : i32, i32, i32, i32
  }
  func.func @transform_4(%arg0: i32) -> (i32, i32, i32) {
    %c0_i32 = arith.constant 0 : i32
    %c0_i32_0 = arith.constant 0 : i32
    %c0_i32_1 = arith.constant 0 : i32
    return %arg0, %c0_i32, %c0_i32_0 : i32, i32, i32
  }
}

module attributes {stable_mosaic.version = 11 : i64} {
  func.func @_project_se_kernel(%arg0: i32, %arg1: i32, %arg2: memref<1x8x128xbf16, #tpu.memory_space<vmem>>, %arg3: memref<1x1x128xf32, #tpu.memory_space<vmem>>, %arg4: memref<128x128xbf16, #tpu.memory_space<vmem>>, %arg5: memref<1x128xf32, #tpu.memory_space<vmem>>, %arg6: memref<1x8x128xbf16, #tpu.memory_space<vmem>>) attributes {dimension_semantics = [#tpu.dimension_semantics<parallel>, #tpu.dimension_semantics<parallel>], iteration_bounds = array<i64: 2, 2>, scalar_prefetch = 0 : i64, scratch_operands = 0 : i64, tpu.core_type = #tpu.core_type<tc>, window_params = [{transform_indices = @transform_0, window_bounds = array<i64: 1, 8, 128>}, {transform_indices = @transform_1, window_bounds = array<i64: 1, 1, 128>}, {pipeline_mode = #tpu.pipeline_mode<synchronous>, transform_indices = @transform_2, window_bounds = array<i64: 128, 128>}, {pipeline_mode = #tpu.pipeline_mode<synchronous>, transform_indices = @transform_3, window_bounds = array<i64: 1, 128>}, {transform_indices = @transform_4, window_bounds = array<i64: 1, 8, 128>}]} {
    %c0 = arith.constant 0 : index
    %c0_0 = arith.constant 0 : index
    %c0_1 = arith.constant 0 : index
    %0 = vector.load %arg2[%c0, %c0_0, %c0_1] : memref<1x8x128xbf16, #tpu.memory_space<vmem>>, vector<1x8x128xbf16>
    %1 = vector.shape_cast %0 : vector<1x8x128xbf16> to vector<8x128xbf16>
    %c0_2 = arith.constant 0 : index
    %c0_3 = arith.constant 0 : index
    %c0_4 = arith.constant 0 : index
    %2 = vector.load %arg3[%c0_2, %c0_3, %c0_4] : memref<1x1x128xf32, #tpu.memory_space<vmem>>, vector<1x1x128xf32>
    %3 = vector.shape_cast %2 : vector<1x1x128xf32> to vector<1x128xf32>
    %4 = arith.truncf %3 : vector<1x128xf32> to vector<1x128xbf16>
    %5 = vector.broadcast %4 : vector<1x128xbf16> to vector<8x128xbf16>
    %6 = arith.mulf %1, %5 : vector<8x128xbf16>
    %c0_5 = arith.constant 0 : index
    %c0_6 = arith.constant 0 : index
    %7 = vector.load %arg4[%c0_5, %c0_6] : memref<128x128xbf16, #tpu.memory_space<vmem>>, vector<128x128xbf16>
    %cst = arith.constant dense<0.000000e+00> : vector<8x128xf32>
    %8 = tpu.matmul %6, %7, %cst {dimension_numbers = #tpu.dot_dimension_numbers<[1], [0], [0], [1], [0, 0, 1, 1], [], []>} : vector<8x128xbf16>, vector<128x128xbf16>, vector<8x128xf32> -> vector<8x128xf32>
    %c0_7 = arith.constant 0 : index
    %c0_8 = arith.constant 0 : index
    %9 = vector.load %arg5[%c0_7, %c0_8] : memref<1x128xf32, #tpu.memory_space<vmem>>, vector<1x128xf32>
    %10 = vector.broadcast %9 : vector<1x128xf32> to vector<8x128xf32>
    %11 = arith.addf %8, %10 : vector<8x128xf32>
    %12 = arith.truncf %11 : vector<8x128xf32> to vector<8x128xbf16>
    %c0_9 = arith.constant 0 : index
    %c0_10 = arith.constant 0 : index
    %c0_11 = arith.constant 0 : index
    %13 = vector.load %arg6[%c0_9, %c0_10, %c0_11] : memref<1x8x128xbf16, #tpu.memory_space<vmem>>, vector<1x8x128xbf16>
    %14 = vector.shape_cast %13 : vector<1x8x128xbf16> to vector<8x128xbf16>
    %15 = vector.shape_cast %12 : vector<8x128xbf16> to vector<1x8x128xbf16>
    tpu.vector_store %arg6[%c0_9, %c0_10, %c0_11], %15 {strides = array<i32>} : memref<1x8x128xbf16, #tpu.memory_space<vmem>>, vector<1x8x128xbf16>,
    return
  }
  func.func @transform_0(%arg0: i32, %arg1: i32) -> (i32, i32, i32) {
    %c0_i32 = arith.constant 0 : i32
    %c0_i32_0 = arith.constant 0 : i32
    return %arg0, %arg1, %c0_i32 : i32, i32, i32
  }
  func.func @transform_1(%arg0: i32, %arg1: i32) -> (i32, i32, i32) {
    %c0_i32 = arith.constant 0 : i32
    %c0_i32_0 = arith.constant 0 : i32
    %c0_i32_1 = arith.constant 0 : i32
    return %arg0, %c0_i32, %c0_i32_0 : i32, i32, i32
  }
  func.func @transform_2(%arg0: i32, %arg1: i32) -> (i32, i32) {
    %c0_i32 = arith.constant 0 : i32
    %c0_i32_0 = arith.constant 0 : i32
    %c0_i32_1 = arith.constant 0 : i32
    return %c0_i32, %c0_i32_0 : i32, i32
  }
  func.func @transform_3(%arg0: i32, %arg1: i32) -> (i32, i32) {
    %c0_i32 = arith.constant 0 : i32
    %c0_i32_0 = arith.constant 0 : i32
    %c0_i32_1 = arith.constant 0 : i32
    return %c0_i32, %c0_i32_0 : i32, i32
  }
  func.func @transform_4(%arg0: i32, %arg1: i32) -> (i32, i32, i32) {
    %c0_i32 = arith.constant 0 : i32
    %c0_i32_0 = arith.constant 0 : i32
    return %arg0, %arg1, %c0_i32 : i32, i32, i32
  }
}

module attributes {stable_mosaic.version = 11 : i64} {
  func.func @_mm_epilogue_kernel(%arg0: i32, %arg1: memref<16x128xbf16, #tpu.memory_space<vmem>>, %arg2: memref<128x256xbf16, #tpu.memory_space<vmem>>, %arg3: memref<1x256xf32, #tpu.memory_space<vmem>>, %arg4: memref<16x256xbf16, #tpu.memory_space<vmem>>) attributes {dimension_semantics = [#tpu.dimension_semantics<parallel>], iteration_bounds = array<i64: 2>, scalar_prefetch = 0 : i64, scratch_operands = 0 : i64, tpu.core_type = #tpu.core_type<tc>, window_params = [{transform_indices = @transform_0, window_bounds = array<i64: 16, 128>}, {pipeline_mode = #tpu.pipeline_mode<synchronous>, transform_indices = @transform_1, window_bounds = array<i64: 128, 256>}, {pipeline_mode = #tpu.pipeline_mode<synchronous>, transform_indices = @transform_2, window_bounds = array<i64: 1, 256>}, {transform_indices = @transform_3, window_bounds = array<i64: 16, 256>}]} {
    %c0 = arith.constant 0 : index
    %c0_0 = arith.constant 0 : index
    %0 = vector.load %arg1[%c0, %c0_0] : memref<16x128xbf16, #tpu.memory_space<vmem>>, vector<16x128xbf16>
    %c0_1 = arith.constant 0 : index
    %c0_2 = arith.constant 0 : index
    %1 = vector.load %arg2[%c0_1, %c0_2] : memref<128x256xbf16, #tpu.memory_space<vmem>>, vector<128x256xbf16>
    %cst = arith.constant dense<0.000000e+00> : vector<16x256xf32>
    %2 = tpu.matmul %0, %1, %cst {dimension_numbers = #tpu.dot_dimension_numbers<[1], [0], [0], [1], [0, 0, 1, 1], [], []>} : vector<16x128xbf16>, vector<128x256xbf16>, vector<16x256xf32> -> vector<16x256xf32>
    %c0_3 = arith.constant 0 : index
    %c0_4 = arith.constant 0 : index
    %3 = vector.load %arg3[%c0_3, %c0_4] : memref<1x256xf32, #tpu.memory_space<vmem>>, vector<1x256xf32>
    %4 = vector.broadcast %3 : vector<1x256xf32> to vector<16x256xf32>
    %5 = arith.addf %2, %4 : vector<16x256xf32>
    %6 = arith.negf %5 : vector<16x256xf32>
    %7 = math.exp %6 : vector<16x256xf32>
    %cst_5 = arith.constant 1.000000e+00 : f32
    %8 = vector.broadcast %cst_5 : f32 to vector<16x256xf32>
    %9 = arith.addf %8, %7 : vector<16x256xf32>
    %10 = arith.divf %8, %9 : vector<16x256xf32>
    %11 = arith.mulf %5, %10 : vector<16x256xf32>
    %12 = arith.truncf %11 : vector<16x256xf32> to vector<16x256xbf16>
    %c0_6 = arith.constant 0 : index
    %c0_7 = arith.constant 0 : index
    %13 = vector.load %arg4[%c0_6, %c0_7] : memref<16x256xbf16, #tpu.memory_space<vmem>>, vector<16x256xbf16>
    tpu.vector_store %arg4[%c0_6, %c0_7], %12 {strides = array<i32>} : memref<16x256xbf16, #tpu.memory_space<vmem>>, vector<16x256xbf16>,
    return
  }
  func.func @transform_0(%arg0: i32) -> (i32, i32) {
    %c0_i32 = arith.constant 0 : i32
    %c0_i32_0 = arith.constant 0 : i32
    return %arg0, %c0_i32 : i32, i32
  }
  func.func @transform_1(%arg0: i32) -> (i32, i32) {
    %c0_i32 = arith.constant 0 : i32
    %c0_i32_0 = arith.constant 0 : i32
    %c0_i32_1 = arith.constant 0 : i32
    return %c0_i32, %c0_i32_0 : i32, i32
  }
  func.func @transform_2(%arg0: i32) -> (i32, i32) {
    %c0_i32 = arith.constant 0 : i32
    %c0_i32_0 = arith.constant 0 : i32
    %c0_i32_1 = arith.constant 0 : i32
    return %c0_i32, %c0_i32_0 : i32, i32
  }
  func.func @transform_3(%arg0: i32) -> (i32, i32) {
    %c0_i32 = arith.constant 0 : i32
    %c0_i32_0 = arith.constant 0 : i32
    return %arg0, %c0_i32 : i32, i32
  }
}

module attributes {stable_mosaic.version = 11 : i64} {
  func.func @_se_gate_kernel(%arg0: i32, %arg1: memref<1x1x128xf32, #tpu.memory_space<vmem>>, %arg2: memref<128x4xf32, #tpu.memory_space<vmem>>, %arg3: memref<1x4xf32, #tpu.memory_space<vmem>>, %arg4: memref<4x128xf32, #tpu.memory_space<vmem>>, %arg5: memref<1x128xf32, #tpu.memory_space<vmem>>, %arg6: memref<1x1x128xf32, #tpu.memory_space<vmem>>) attributes {dimension_semantics = [#tpu.dimension_semantics<parallel>], iteration_bounds = array<i64: 2>, scalar_prefetch = 0 : i64, scratch_operands = 0 : i64, tpu.core_type = #tpu.core_type<tc>, window_params = [{transform_indices = @transform_0, window_bounds = array<i64: 1, 1, 128>}, {pipeline_mode = #tpu.pipeline_mode<synchronous>, transform_indices = @transform_1, window_bounds = array<i64: 128, 4>}, {pipeline_mode = #tpu.pipeline_mode<synchronous>, transform_indices = @transform_2, window_bounds = array<i64: 1, 4>}, {pipeline_mode = #tpu.pipeline_mode<synchronous>, transform_indices = @transform_3, window_bounds = array<i64: 4, 128>}, {pipeline_mode = #tpu.pipeline_mode<synchronous>, transform_indices = @transform_4, window_bounds = array<i64: 1, 128>}, {transform_indices = @transform_5, window_bounds = array<i64: 1, 1, 128>}]} {
    %c0 = arith.constant 0 : index
    %c0_0 = arith.constant 0 : index
    %c0_1 = arith.constant 0 : index
    %0 = vector.load %arg1[%c0, %c0_0, %c0_1] : memref<1x1x128xf32, #tpu.memory_space<vmem>>, vector<1x1x128xf32>
    %1 = vector.shape_cast %0 : vector<1x1x128xf32> to vector<1x128xf32>
    %cst = arith.constant 6.250000e-02 : f32
    %2 = vector.broadcast %cst : f32 to vector<1x128xf32>
    %3 = arith.mulf %1, %2 : vector<1x128xf32>
    %c0_2 = arith.constant 0 : index
    %c0_3 = arith.constant 0 : index
    %4 = vector.load %arg2[%c0_2, %c0_3] : memref<128x4xf32, #tpu.memory_space<vmem>>, vector<128x4xf32>
    %cst_4 = arith.constant dense<0.000000e+00> : vector<1x4xf32>
    %5 = tpu.matmul %3, %4, %cst_4 {dimension_numbers = #tpu.dot_dimension_numbers<[1], [0], [0], [1], [0, 0, 1, 1], [], []>} : vector<1x128xf32>, vector<128x4xf32>, vector<1x4xf32> -> vector<1x4xf32>
    %c0_5 = arith.constant 0 : index
    %c0_6 = arith.constant 0 : index
    %6 = vector.load %arg3[%c0_5, %c0_6] : memref<1x4xf32, #tpu.memory_space<vmem>>, vector<1x4xf32>
    %7 = arith.addf %5, %6 : vector<1x4xf32>
    %8 = arith.negf %7 : vector<1x4xf32>
    %9 = math.exp %8 : vector<1x4xf32>
    %cst_7 = arith.constant 1.000000e+00 : f32
    %10 = vector.broadcast %cst_7 : f32 to vector<1x4xf32>
    %11 = arith.addf %10, %9 : vector<1x4xf32>
    %12 = arith.divf %10, %11 : vector<1x4xf32>
    %13 = arith.mulf %7, %12 : vector<1x4xf32>
    %c0_8 = arith.constant 0 : index
    %c0_9 = arith.constant 0 : index
    %14 = vector.load %arg4[%c0_8, %c0_9] : memref<4x128xf32, #tpu.memory_space<vmem>>, vector<4x128xf32>
    %cst_10 = arith.constant dense<0.000000e+00> : vector<1x128xf32>
    %15 = tpu.matmul %13, %14, %cst_10 {dimension_numbers = #tpu.dot_dimension_numbers<[1], [0], [0], [1], [0, 0, 1, 1], [], []>} : vector<1x4xf32>, vector<4x128xf32>, vector<1x128xf32> -> vector<1x128xf32>
    %c0_11 = arith.constant 0 : index
    %c0_12 = arith.constant 0 : index
    %16 = vector.load %arg5[%c0_11, %c0_12] : memref<1x128xf32, #tpu.memory_space<vmem>>, vector<1x128xf32>
    %17 = arith.addf %15, %16 : vector<1x128xf32>
    %18 = arith.negf %17 : vector<1x128xf32>
    %19 = math.exp %18 : vector<1x128xf32>
    %cst_13 = arith.constant 1.000000e+00 : f32
    %20 = vector.broadcast %cst_13 : f32 to vector<1x128xf32>
    %21 = arith.addf %20, %19 : vector<1x128xf32>
    %22 = arith.divf %20, %21 : vector<1x128xf32>
    %c0_14 = arith.constant 0 : index
    %c0_15 = arith.constant 0 : index
    %c0_16 = arith.constant 0 : index
    %23 = vector.load %arg6[%c0_14, %c0_15, %c0_16] : memref<1x1x128xf32, #tpu.memory_space<vmem>>, vector<1x1x128xf32>
    %24 = vector.shape_cast %23 : vector<1x1x128xf32> to vector<1x128xf32>
    %25 = vector.shape_cast %22 : vector<1x128xf32> to vector<1x1x128xf32>
    tpu.vector_store %arg6[%c0_14, %c0_15, %c0_16], %25 {strides = array<i32>} : memref<1x1x128xf32, #tpu.memory_space<vmem>>, vector<1x1x128xf32>,
    return
  }
  func.func @transform_0(%arg0: i32) -> (i32, i32, i32) {
    %c0_i32 = arith.constant 0 : i32
    %c0_i32_0 = arith.constant 0 : i32
    %c0_i32_1 = arith.constant 0 : i32
    return %arg0, %c0_i32, %c0_i32_0 : i32, i32, i32
  }
  func.func @transform_1(%arg0: i32) -> (i32, i32) {
    %c0_i32 = arith.constant 0 : i32
    %c0_i32_0 = arith.constant 0 : i32
    %c0_i32_1 = arith.constant 0 : i32
    return %c0_i32, %c0_i32_0 : i32, i32
  }
  func.func @transform_2(%arg0: i32) -> (i32, i32) {
    %c0_i32 = arith.constant 0 : i32
    %c0_i32_0 = arith.constant 0 : i32
    %c0_i32_1 = arith.constant 0 : i32
    return %c0_i32, %c0_i32_0 : i32, i32
  }
  func.func @transform_3(%arg0: i32) -> (i32, i32) {
    %c0_i32 = arith.constant 0 : i32
    %c0_i32_0 = arith.constant 0 : i32
    %c0_i32_1 = arith.constant 0 : i32
    return %c0_i32, %c0_i32_0 : i32, i32
  }
  func.func @transform_4(%arg0: i32) -> (i32, i32) {
    %c0_i32 = arith.constant 0 : i32
    %c0_i32_0 = arith.constant 0 : i32
    %c0_i32_1 = arith.constant 0 : i32
    return %c0_i32, %c0_i32_0 : i32, i32
  }
  func.func @transform_5(%arg0: i32) -> (i32, i32, i32) {
    %c0_i32 = arith.constant 0 : i32
    %c0_i32_0 = arith.constant 0 : i32
    %c0_i32_1 = arith.constant 0 : i32
    return %arg0, %c0_i32, %c0_i32_0 : i32, i32, i32
  }
}

module attributes {stable_mosaic.version = 11 : i64} {
  func.func @_dwconv_s1_kernel(%arg0: i32, %arg1: i32, %arg2: memref<1x6x6x128xbf16, #tpu.memory_space<vmem>>, %arg3: memref<9x128xf32, #tpu.memory_space<vmem>>, %arg4: memref<1x128xf32, #tpu.memory_space<vmem>>, %arg5: memref<1x4x4x128xbf16, #tpu.memory_space<vmem>>, %arg6: memref<1x1x128xf32, #tpu.memory_space<vmem>>) attributes {dimension_semantics = [#tpu.dimension_semantics<parallel>, #tpu.dimension_semantics<parallel>], iteration_bounds = array<i64: 2, 2>, scalar_prefetch = 0 : i64, scratch_operands = 0 : i64, tpu.core_type = #tpu.core_type<tc>, window_params = [{transform_indices = @transform_0, window_bounds = array<i64: 1, 6, 6, 128>}, {transform_indices = @transform_1, window_bounds = array<i64: 9, 128>}, {transform_indices = @transform_2, window_bounds = array<i64: 1, 128>}, {transform_indices = @transform_3, window_bounds = array<i64: 1, 4, 4, 128>}, {transform_indices = @transform_4, window_bounds = array<i64: 1, 1, 128>}]} {
    %c0 = arith.constant 0 : index
    %c0_0 = arith.constant 0 : index
    %0 = vector.load %arg3[%c0, %c0_0] : memref<9x128xf32, #tpu.memory_space<vmem>>, vector<9x128xf32>
    %c0_1 = arith.constant 0 : index
    %c0_2 = arith.constant 0 : index
    %1 = vector.load %arg4[%c0_1, %c0_2] : memref<1x128xf32, #tpu.memory_space<vmem>>, vector<1x128xf32>
    %cst = arith.constant 0.000000e+00 : f32
    %2 = vector.broadcast %cst : f32 to vector<4x4x128xf32>
    %c0_3 = arith.constant 0 : index
    %c0_4 = arith.constant 0 : index
    %c0_5 = arith.constant 0 : index
    %c0_6 = arith.constant 0 : index
    %3 = vector.load %arg2[%c0_3, %c0_4, %c0_5, %c0_6] : memref<1x6x6x128xbf16, #tpu.memory_space<vmem>>, vector<1x4x4x128xbf16>
    %4 = vector.shape_cast %3 : vector<1x4x4x128xbf16> to vector<4x4x128xbf16>
    %5 = arith.extf %4 : vector<4x4x128xbf16> to vector<4x4x128xf32>
    %6 = vector.extract_strided_slice %0 {offsets = [0, 0], sizes = [1, 128], strides = [1, 1]} : vector<9x128xf32> to vector<1x128xf32>
    %7 = vector.shape_cast %6 : vector<1x128xf32> to vector<1x1x128xf32>
    %8 = vector.broadcast %7 : vector<1x1x128xf32> to vector<4x4x128xf32>
    %9 = arith.mulf %5, %8 : vector<4x4x128xf32>
    %10 = arith.addf %2, %9 : vector<4x4x128xf32>
    %c0_7 = arith.constant 0 : index
    %c0_8 = arith.constant 0 : index
    %c1 = arith.constant 1 : index
    %c0_9 = arith.constant 0 : index
    %11 = vector.load %arg2[%c0_7, %c0_8, %c1, %c0_9] : memref<1x6x6x128xbf16, #tpu.memory_space<vmem>>, vector<1x4x4x128xbf16>
    %12 = vector.shape_cast %11 : vector<1x4x4x128xbf16> to vector<4x4x128xbf16>
    %13 = arith.extf %12 : vector<4x4x128xbf16> to vector<4x4x128xf32>
    %14 = vector.extract_strided_slice %0 {offsets = [1, 0], sizes = [1, 128], strides = [1, 1]} : vector<9x128xf32> to vector<1x128xf32>
    %15 = vector.shape_cast %14 : vector<1x128xf32> to vector<1x1x128xf32>
    %16 = vector.broadcast %15 : vector<1x1x128xf32> to vector<4x4x128xf32>
    %17 = arith.mulf %13, %16 : vector<4x4x128xf32>
    %18 = arith.addf %10, %17 : vector<4x4x128xf32>
    %c0_10 = arith.constant 0 : index
    %c0_11 = arith.constant 0 : index
    %c2 = arith.constant 2 : index
    %c0_12 = arith.constant 0 : index
    %19 = vector.load %arg2[%c0_10, %c0_11, %c2, %c0_12] : memref<1x6x6x128xbf16, #tpu.memory_space<vmem>>, vector<1x4x4x128xbf16>
    %20 = vector.shape_cast %19 : vector<1x4x4x128xbf16> to vector<4x4x128xbf16>
    %21 = arith.extf %20 : vector<4x4x128xbf16> to vector<4x4x128xf32>
    %22 = vector.extract_strided_slice %0 {offsets = [2, 0], sizes = [1, 128], strides = [1, 1]} : vector<9x128xf32> to vector<1x128xf32>
    %23 = vector.shape_cast %22 : vector<1x128xf32> to vector<1x1x128xf32>
    %24 = vector.broadcast %23 : vector<1x1x128xf32> to vector<4x4x128xf32>
    %25 = arith.mulf %21, %24 : vector<4x4x128xf32>
    %26 = arith.addf %18, %25 : vector<4x4x128xf32>
    %c0_13 = arith.constant 0 : index
    %c1_14 = arith.constant 1 : index
    %c0_15 = arith.constant 0 : index
    %c0_16 = arith.constant 0 : index
    %27 = vector.load %arg2[%c0_13, %c1_14, %c0_15, %c0_16] : memref<1x6x6x128xbf16, #tpu.memory_space<vmem>>, vector<1x4x4x128xbf16>
    %28 = vector.shape_cast %27 : vector<1x4x4x128xbf16> to vector<4x4x128xbf16>
    %29 = arith.extf %28 : vector<4x4x128xbf16> to vector<4x4x128xf32>
    %30 = vector.extract_strided_slice %0 {offsets = [3, 0], sizes = [1, 128], strides = [1, 1]} : vector<9x128xf32> to vector<1x128xf32>
    %31 = vector.shape_cast %30 : vector<1x128xf32> to vector<1x1x128xf32>
    %32 = vector.broadcast %31 : vector<1x1x128xf32> to vector<4x4x128xf32>
    %33 = arith.mulf %29, %32 : vector<4x4x128xf32>
    %34 = arith.addf %26, %33 : vector<4x4x128xf32>
    %c0_17 = arith.constant 0 : index
    %c1_18 = arith.constant 1 : index
    %c1_19 = arith.constant 1 : index
    %c0_20 = arith.constant 0 : index
    %35 = vector.load %arg2[%c0_17, %c1_18, %c1_19, %c0_20] : memref<1x6x6x128xbf16, #tpu.memory_space<vmem>>, vector<1x4x4x128xbf16>
    %36 = vector.shape_cast %35 : vector<1x4x4x128xbf16> to vector<4x4x128xbf16>
    %37 = arith.extf %36 : vector<4x4x128xbf16> to vector<4x4x128xf32>
    %38 = vector.extract_strided_slice %0 {offsets = [4, 0], sizes = [1, 128], strides = [1, 1]} : vector<9x128xf32> to vector<1x128xf32>
    %39 = vector.shape_cast %38 : vector<1x128xf32> to vector<1x1x128xf32>
    %40 = vector.broadcast %39 : vector<1x1x128xf32> to vector<4x4x128xf32>
    %41 = arith.mulf %37, %40 : vector<4x4x128xf32>
    %42 = arith.addf %34, %41 : vector<4x4x128xf32>
    %c0_21 = arith.constant 0 : index
    %c1_22 = arith.constant 1 : index
    %c2_23 = arith.constant 2 : index
    %c0_24 = arith.constant 0 : index
    %43 = vector.load %arg2[%c0_21, %c1_22, %c2_23, %c0_24] : memref<1x6x6x128xbf16, #tpu.memory_space<vmem>>, vector<1x4x4x128xbf16>
    %44 = vector.shape_cast %43 : vector<1x4x4x128xbf16> to vector<4x4x128xbf16>
    %45 = arith.extf %44 : vector<4x4x128xbf16> to vector<4x4x128xf32>
    %46 = vector.extract_strided_slice %0 {offsets = [5, 0], sizes = [1, 128], strides = [1, 1]} : vector<9x128xf32> to vector<1x128xf32>
    %47 = vector.shape_cast %46 : vector<1x128xf32> to vector<1x1x128xf32>
    %48 = vector.broadcast %47 : vector<1x1x128xf32> to vector<4x4x128xf32>
    %49 = arith.mulf %45, %48 : vector<4x4x128xf32>
    %50 = arith.addf %42, %49 : vector<4x4x128xf32>
    %c0_25 = arith.constant 0 : index
    %c2_26 = arith.constant 2 : index
    %c0_27 = arith.constant 0 : index
    %c0_28 = arith.constant 0 : index
    %51 = vector.load %arg2[%c0_25, %c2_26, %c0_27, %c0_28] : memref<1x6x6x128xbf16, #tpu.memory_space<vmem>>, vector<1x4x4x128xbf16>
    %52 = vector.shape_cast %51 : vector<1x4x4x128xbf16> to vector<4x4x128xbf16>
    %53 = arith.extf %52 : vector<4x4x128xbf16> to vector<4x4x128xf32>
    %54 = vector.extract_strided_slice %0 {offsets = [6, 0], sizes = [1, 128], strides = [1, 1]} : vector<9x128xf32> to vector<1x128xf32>
    %55 = vector.shape_cast %54 : vector<1x128xf32> to vector<1x1x128xf32>
    %56 = vector.broadcast %55 : vector<1x1x128xf32> to vector<4x4x128xf32>
    %57 = arith.mulf %53, %56 : vector<4x4x128xf32>
    %58 = arith.addf %50, %57 : vector<4x4x128xf32>
    %c0_29 = arith.constant 0 : index
    %c2_30 = arith.constant 2 : index
    %c1_31 = arith.constant 1 : index
    %c0_32 = arith.constant 0 : index
    %59 = vector.load %arg2[%c0_29, %c2_30, %c1_31, %c0_32] : memref<1x6x6x128xbf16, #tpu.memory_space<vmem>>, vector<1x4x4x128xbf16>
    %60 = vector.shape_cast %59 : vector<1x4x4x128xbf16> to vector<4x4x128xbf16>
    %61 = arith.extf %60 : vector<4x4x128xbf16> to vector<4x4x128xf32>
    %62 = vector.extract_strided_slice %0 {offsets = [7, 0], sizes = [1, 128], strides = [1, 1]} : vector<9x128xf32> to vector<1x128xf32>
    %63 = vector.shape_cast %62 : vector<1x128xf32> to vector<1x1x128xf32>
    %64 = vector.broadcast %63 : vector<1x1x128xf32> to vector<4x4x128xf32>
    %65 = arith.mulf %61, %64 : vector<4x4x128xf32>
    %66 = arith.addf %58, %65 : vector<4x4x128xf32>
    %c0_33 = arith.constant 0 : index
    %c2_34 = arith.constant 2 : index
    %c2_35 = arith.constant 2 : index
    %c0_36 = arith.constant 0 : index
    %67 = vector.load %arg2[%c0_33, %c2_34, %c2_35, %c0_36] : memref<1x6x6x128xbf16, #tpu.memory_space<vmem>>, vector<1x4x4x128xbf16>
    %68 = vector.shape_cast %67 : vector<1x4x4x128xbf16> to vector<4x4x128xbf16>
    %69 = arith.extf %68 : vector<4x4x128xbf16> to vector<4x4x128xf32>
    %70 = vector.extract_strided_slice %0 {offsets = [8, 0], sizes = [1, 128], strides = [1, 1]} : vector<9x128xf32> to vector<1x128xf32>
    %71 = vector.shape_cast %70 : vector<1x128xf32> to vector<1x1x128xf32>
    %72 = vector.broadcast %71 : vector<1x1x128xf32> to vector<4x4x128xf32>
    %73 = arith.mulf %69, %72 : vector<4x4x128xf32>
    %74 = arith.addf %66, %73 : vector<4x4x128xf32>
    %75 = vector.shape_cast %1 : vector<1x128xf32> to vector<1x1x128xf32>
    %76 = vector.broadcast %75 : vector<1x1x128xf32> to vector<4x4x128xf32>
    %77 = arith.addf %74, %76 : vector<4x4x128xf32>
    %78 = arith.negf %77 : vector<4x4x128xf32>
    %79 = math.exp %78 : vector<4x4x128xf32>
    %cst_37 = arith.constant 1.000000e+00 : f32
    %80 = vector.broadcast %cst_37 : f32 to vector<4x4x128xf32>
    %81 = arith.addf %80, %79 : vector<4x4x128xf32>
    %82 = arith.divf %80, %81 : vector<4x4x128xf32>
    %83 = arith.mulf %77, %82 : vector<4x4x128xf32>
    %84 = arith.truncf %83 : vector<4x4x128xf32> to vector<4x4x128xbf16>
    %c0_38 = arith.constant 0 : index
    %c0_39 = arith.constant 0 : index
    %c0_40 = arith.constant 0 : index
    %c0_41 = arith.constant 0 : index
    %85 = vector.load %arg5[%c0_38, %c0_39, %c0_40, %c0_41] : memref<1x4x4x128xbf16, #tpu.memory_space<vmem>>, vector<1x4x4x128xbf16>
    %86 = vector.shape_cast %85 : vector<1x4x4x128xbf16> to vector<4x4x128xbf16>
    %87 = vector.shape_cast %84 : vector<4x4x128xbf16> to vector<1x4x4x128xbf16>
    tpu.vector_store %arg5[%c0_38, %c0_39, %c0_40, %c0_41], %87 {strides = array<i32>} : memref<1x4x4x128xbf16, #tpu.memory_space<vmem>>, vector<1x4x4x128xbf16>,
    %cst_42 = arith.constant dense<0.000000e+00> : vector<4x128xf32>
    %88 = vector.multi_reduction <add>, %83, %cst_42 [0] : vector<4x4x128xf32> to vector<4x128xf32>
    %cst_43 = arith.constant dense<0.000000e+00> : vector<128xf32>
    %89 = vector.multi_reduction <add>, %88, %cst_43 [0] : vector<4x128xf32> to vector<128xf32>
    %90 = vector.shape_cast %89 : vector<128xf32> to vector<1x128xf32>
    %c0_44 = arith.constant 0 : index
    %c0_45 = arith.constant 0 : index
    %c0_46 = arith.constant 0 : index
    %91 = vector.load %arg6[%c0_44, %c0_45, %c0_46] : memref<1x1x128xf32, #tpu.memory_space<vmem>>, vector<1x1x128xf32>
    %92 = vector.shape_cast %91 : vector<1x1x128xf32> to vector<1x128xf32>
    %93 = vector.shape_cast %90 : vector<1x128xf32> to vector<1x1x128xf32>
    tpu.vector_store %arg6[%c0_44, %c0_45, %c0_46], %93 {strides = array<i32>} : memref<1x1x128xf32, #tpu.memory_space<vmem>>, vector<1x1x128xf32>,
    return
  }
  func.func @transform_0(%arg0: i32, %arg1: i32) -> (i32, i32, i32, i32) {
    %c0_i32 = arith.constant 0 : i32
    %c0_i32_0 = arith.constant 0 : i32
    %c0_i32_1 = arith.constant 0 : i32
    return %arg0, %c0_i32, %c0_i32_0, %arg1 : i32, i32, i32, i32
  }
  func.func @transform_1(%arg0: i32, %arg1: i32) -> (i32, i32) {
    %c0_i32 = arith.constant 0 : i32
    %c0_i32_0 = arith.constant 0 : i32
    return %c0_i32, %arg1 : i32, i32
  }
  func.func @transform_2(%arg0: i32, %arg1: i32) -> (i32, i32) {
    %c0_i32 = arith.constant 0 : i32
    %c0_i32_0 = arith.constant 0 : i32
    return %c0_i32, %arg1 : i32, i32
  }
  func.func @transform_3(%arg0: i32, %arg1: i32) -> (i32, i32, i32, i32) {
    %c0_i32 = arith.constant 0 : i32
    %c0_i32_0 = arith.constant 0 : i32
    %c0_i32_1 = arith.constant 0 : i32
    return %arg0, %c0_i32, %c0_i32_0, %arg1 : i32, i32, i32, i32
  }
  func.func @transform_4(%arg0: i32, %arg1: i32) -> (i32, i32, i32) {
    %c0_i32 = arith.constant 0 : i32
    %c0_i32_0 = arith.constant 0 : i32
    return %arg0, %c0_i32, %arg1 : i32, i32, i32
  }
}

module attributes {stable_mosaic.version = 11 : i64} {
  func.func @_se_gate_kernel(%arg0: i32, %arg1: memref<1x1x256xf32, #tpu.memory_space<vmem>>, %arg2: memref<256x6xf32, #tpu.memory_space<vmem>>, %arg3: memref<1x6xf32, #tpu.memory_space<vmem>>, %arg4: memref<6x256xf32, #tpu.memory_space<vmem>>, %arg5: memref<1x256xf32, #tpu.memory_space<vmem>>, %arg6: memref<1x1x256xf32, #tpu.memory_space<vmem>>) attributes {dimension_semantics = [#tpu.dimension_semantics<parallel>], iteration_bounds = array<i64: 2>, scalar_prefetch = 0 : i64, scratch_operands = 0 : i64, tpu.core_type = #tpu.core_type<tc>, window_params = [{transform_indices = @transform_0, window_bounds = array<i64: 1, 1, 256>}, {pipeline_mode = #tpu.pipeline_mode<synchronous>, transform_indices = @transform_1, window_bounds = array<i64: 256, 6>}, {pipeline_mode = #tpu.pipeline_mode<synchronous>, transform_indices = @transform_2, window_bounds = array<i64: 1, 6>}, {pipeline_mode = #tpu.pipeline_mode<synchronous>, transform_indices = @transform_3, window_bounds = array<i64: 6, 256>}, {pipeline_mode = #tpu.pipeline_mode<synchronous>, transform_indices = @transform_4, window_bounds = array<i64: 1, 256>}, {transform_indices = @transform_5, window_bounds = array<i64: 1, 1, 256>}]} {
    %c0 = arith.constant 0 : index
    %c0_0 = arith.constant 0 : index
    %c0_1 = arith.constant 0 : index
    %0 = vector.load %arg1[%c0, %c0_0, %c0_1] : memref<1x1x256xf32, #tpu.memory_space<vmem>>, vector<1x1x256xf32>
    %1 = vector.shape_cast %0 : vector<1x1x256xf32> to vector<1x256xf32>
    %cst = arith.constant 6.250000e-02 : f32
    %2 = vector.broadcast %cst : f32 to vector<1x256xf32>
    %3 = arith.mulf %1, %2 : vector<1x256xf32>
    %c0_2 = arith.constant 0 : index
    %c0_3 = arith.constant 0 : index
    %4 = vector.load %arg2[%c0_2, %c0_3] : memref<256x6xf32, #tpu.memory_space<vmem>>, vector<256x6xf32>
    %cst_4 = arith.constant dense<0.000000e+00> : vector<1x6xf32>
    %5 = tpu.matmul %3, %4, %cst_4 {dimension_numbers = #tpu.dot_dimension_numbers<[1], [0], [0], [1], [0, 0, 1, 1], [], []>} : vector<1x256xf32>, vector<256x6xf32>, vector<1x6xf32> -> vector<1x6xf32>
    %c0_5 = arith.constant 0 : index
    %c0_6 = arith.constant 0 : index
    %6 = vector.load %arg3[%c0_5, %c0_6] : memref<1x6xf32, #tpu.memory_space<vmem>>, vector<1x6xf32>
    %7 = arith.addf %5, %6 : vector<1x6xf32>
    %8 = arith.negf %7 : vector<1x6xf32>
    %9 = math.exp %8 : vector<1x6xf32>
    %cst_7 = arith.constant 1.000000e+00 : f32
    %10 = vector.broadcast %cst_7 : f32 to vector<1x6xf32>
    %11 = arith.addf %10, %9 : vector<1x6xf32>
    %12 = arith.divf %10, %11 : vector<1x6xf32>
    %13 = arith.mulf %7, %12 : vector<1x6xf32>
    %c0_8 = arith.constant 0 : index
    %c0_9 = arith.constant 0 : index
    %14 = vector.load %arg4[%c0_8, %c0_9] : memref<6x256xf32, #tpu.memory_space<vmem>>, vector<6x256xf32>
    %cst_10 = arith.constant dense<0.000000e+00> : vector<1x256xf32>
    %15 = tpu.matmul %13, %14, %cst_10 {dimension_numbers = #tpu.dot_dimension_numbers<[1], [0], [0], [1], [0, 0, 1, 1], [], []>} : vector<1x6xf32>, vector<6x256xf32>, vector<1x256xf32> -> vector<1x256xf32>
    %c0_11 = arith.constant 0 : index
    %c0_12 = arith.constant 0 : index
    %16 = vector.load %arg5[%c0_11, %c0_12] : memref<1x256xf32, #tpu.memory_space<vmem>>, vector<1x256xf32>
    %17 = arith.addf %15, %16 : vector<1x256xf32>
    %18 = arith.negf %17 : vector<1x256xf32>
    %19 = math.exp %18 : vector<1x256xf32>
    %cst_13 = arith.constant 1.000000e+00 : f32
    %20 = vector.broadcast %cst_13 : f32 to vector<1x256xf32>
    %21 = arith.addf %20, %19 : vector<1x256xf32>
    %22 = arith.divf %20, %21 : vector<1x256xf32>
    %c0_14 = arith.constant 0 : index
    %c0_15 = arith.constant 0 : index
    %c0_16 = arith.constant 0 : index
    %23 = vector.load %arg6[%c0_14, %c0_15, %c0_16] : memref<1x1x256xf32, #tpu.memory_space<vmem>>, vector<1x1x256xf32>
    %24 = vector.shape_cast %23 : vector<1x1x256xf32> to vector<1x256xf32>
    %25 = vector.shape_cast %22 : vector<1x256xf32> to vector<1x1x256xf32>
    tpu.vector_store %arg6[%c0_14, %c0_15, %c0_16], %25 {strides = array<i32>} : memref<1x1x256xf32, #tpu.memory_space<vmem>>, vector<1x1x256xf32>,
    return
  }
  func.func @transform_0(%arg0: i32) -> (i32, i32, i32) {
    %c0_i32 = arith.constant 0 : i32
    %c0_i32_0 = arith.constant 0 : i32
    %c0_i32_1 = arith.constant 0 : i32
    return %arg0, %c0_i32, %c0_i32_0 : i32, i32, i32
  }
  func.func @transform_1(%arg0: i32) -> (i32, i32) {
    %c0_i32 = arith.constant 0 : i32
    %c0_i32_0 = arith.constant 0 : i32
    %c0_i32_1 = arith.constant 0 : i32
    return %c0_i32, %c0_i32_0 : i32, i32
  }
  func.func @transform_2(%arg0: i32) -> (i32, i32) {
    %c0_i32 = arith.constant 0 : i32
    %c0_i32_0 = arith.constant 0 : i32
    %c0_i32_1 = arith.constant 0 : i32
    return %c0_i32, %c0_i32_0 : i32, i32
  }
  func.func @transform_3(%arg0: i32) -> (i32, i32) {
    %c0_i32 = arith.constant 0 : i32
    %c0_i32_0 = arith.constant 0 : i32
    %c0_i32_1 = arith.constant 0 : i32
    return %c0_i32, %c0_i32_0 : i32, i32
  }
  func.func @transform_4(%arg0: i32) -> (i32, i32) {
    %c0_i32 = arith.constant 0 : i32
    %c0_i32_0 = arith.constant 0 : i32
    %c0_i32_1 = arith.constant 0 : i32
    return %c0_i32, %c0_i32_0 : i32, i32
  }
  func.func @transform_5(%arg0: i32) -> (i32, i32, i32) {
    %c0_i32 = arith.constant 0 : i32
    %c0_i32_0 = arith.constant 0 : i32
    %c0_i32_1 = arith.constant 0 : i32
    return %arg0, %c0_i32, %c0_i32_0 : i32, i32, i32
  }
}

module attributes {stable_mosaic.version = 11 : i64} {
  func.func @_project_se_kernel(%arg0: i32, %arg1: i32, %arg2: memref<1x8x256xbf16, #tpu.memory_space<vmem>>, %arg3: memref<1x1x256xf32, #tpu.memory_space<vmem>>, %arg4: memref<256x128xbf16, #tpu.memory_space<vmem>>, %arg5: memref<1x128xf32, #tpu.memory_space<vmem>>, %arg6: memref<1x8x128xbf16, #tpu.memory_space<vmem>>, %arg7: memref<1x8x128xbf16, #tpu.memory_space<vmem>>) attributes {dimension_semantics = [#tpu.dimension_semantics<parallel>, #tpu.dimension_semantics<parallel>], iteration_bounds = array<i64: 2, 2>, scalar_prefetch = 0 : i64, scratch_operands = 0 : i64, tpu.core_type = #tpu.core_type<tc>, window_params = [{transform_indices = @transform_0, window_bounds = array<i64: 1, 8, 256>}, {transform_indices = @transform_1, window_bounds = array<i64: 1, 1, 256>}, {pipeline_mode = #tpu.pipeline_mode<synchronous>, transform_indices = @transform_2, window_bounds = array<i64: 256, 128>}, {pipeline_mode = #tpu.pipeline_mode<synchronous>, transform_indices = @transform_3, window_bounds = array<i64: 1, 128>}, {transform_indices = @transform_4, window_bounds = array<i64: 1, 8, 128>}, {transform_indices = @transform_5, window_bounds = array<i64: 1, 8, 128>}]} {
    %c0 = arith.constant 0 : index
    %c0_0 = arith.constant 0 : index
    %c0_1 = arith.constant 0 : index
    %0 = vector.load %arg2[%c0, %c0_0, %c0_1] : memref<1x8x256xbf16, #tpu.memory_space<vmem>>, vector<1x8x256xbf16>
    %1 = vector.shape_cast %0 : vector<1x8x256xbf16> to vector<8x256xbf16>
    %c0_2 = arith.constant 0 : index
    %c0_3 = arith.constant 0 : index
    %c0_4 = arith.constant 0 : index
    %2 = vector.load %arg3[%c0_2, %c0_3, %c0_4] : memref<1x1x256xf32, #tpu.memory_space<vmem>>, vector<1x1x256xf32>
    %3 = vector.shape_cast %2 : vector<1x1x256xf32> to vector<1x256xf32>
    %4 = arith.truncf %3 : vector<1x256xf32> to vector<1x256xbf16>
    %5 = vector.broadcast %4 : vector<1x256xbf16> to vector<8x256xbf16>
    %6 = arith.mulf %1, %5 : vector<8x256xbf16>
    %c0_5 = arith.constant 0 : index
    %c0_6 = arith.constant 0 : index
    %7 = vector.load %arg4[%c0_5, %c0_6] : memref<256x128xbf16, #tpu.memory_space<vmem>>, vector<256x128xbf16>
    %cst = arith.constant dense<0.000000e+00> : vector<8x128xf32>
    %8 = tpu.matmul %6, %7, %cst {dimension_numbers = #tpu.dot_dimension_numbers<[1], [0], [0], [1], [0, 0, 1, 1], [], []>} : vector<8x256xbf16>, vector<256x128xbf16>, vector<8x128xf32> -> vector<8x128xf32>
    %c0_7 = arith.constant 0 : index
    %c0_8 = arith.constant 0 : index
    %9 = vector.load %arg5[%c0_7, %c0_8] : memref<1x128xf32, #tpu.memory_space<vmem>>, vector<1x128xf32>
    %10 = vector.broadcast %9 : vector<1x128xf32> to vector<8x128xf32>
    %11 = arith.addf %8, %10 : vector<8x128xf32>
    %c0_9 = arith.constant 0 : index
    %c0_10 = arith.constant 0 : index
    %c0_11 = arith.constant 0 : index
    %12 = vector.load %arg6[%c0_9, %c0_10, %c0_11] : memref<1x8x128xbf16, #tpu.memory_space<vmem>>, vector<1x8x128xbf16>
    %13 = vector.shape_cast %12 : vector<1x8x128xbf16> to vector<8x128xbf16>
    %14 = arith.extf %13 : vector<8x128xbf16> to vector<8x128xf32>
    %15 = arith.addf %11, %14 : vector<8x128xf32>
    %16 = arith.truncf %15 : vector<8x128xf32> to vector<8x128xbf16>
    %c0_12 = arith.constant 0 : index
    %c0_13 = arith.constant 0 : index
    %c0_14 = arith.constant 0 : index
    %17 = vector.load %arg7[%c0_12, %c0_13, %c0_14] : memref<1x8x128xbf16, #tpu.memory_space<vmem>>, vector<1x8x128xbf16>
    %18 = vector.shape_cast %17 : vector<1x8x128xbf16> to vector<8x128xbf16>
    %19 = vector.shape_cast %16 : vector<8x128xbf16> to vector<1x8x128xbf16>
    tpu.vector_store %arg7[%c0_12, %c0_13, %c0_14], %19 {strides = array<i32>} : memref<1x8x128xbf16, #tpu.memory_space<vmem>>, vector<1x8x128xbf16>,
    return
  }
  func.func @transform_0(%arg0: i32, %arg1: i32) -> (i32, i32, i32) {
    %c0_i32 = arith.constant 0 : i32
    %c0_i32_0 = arith.constant 0 : i32
    return %arg0, %arg1, %c0_i32 : i32, i32, i32
  }
  func.func @transform_1(%arg0: i32, %arg1: i32) -> (i32, i32, i32) {
    %c0_i32 = arith.constant 0 : i32
    %c0_i32_0 = arith.constant 0 : i32
    %c0_i32_1 = arith.constant 0 : i32
    return %arg0, %c0_i32, %c0_i32_0 : i32, i32, i32
  }
  func.func @transform_2(%arg0: i32, %arg1: i32) -> (i32, i32) {
    %c0_i32 = arith.constant 0 : i32
    %c0_i32_0 = arith.constant 0 : i32
    %c0_i32_1 = arith.constant 0 : i32
    return %c0_i32, %c0_i32_0 : i32, i32
  }
  func.func @transform_3(%arg0: i32, %arg1: i32) -> (i32, i32) {
    %c0_i32 = arith.constant 0 : i32
    %c0_i32_0 = arith.constant 0 : i32
    %c0_i32_1 = arith.constant 0 : i32
    return %c0_i32, %c0_i32_0 : i32, i32
  }
  func.func @transform_4(%arg0: i32, %arg1: i32) -> (i32, i32, i32) {
    %c0_i32 = arith.constant 0 : i32
    %c0_i32_0 = arith.constant 0 : i32
    return %arg0, %arg1, %c0_i32 : i32, i32, i32
  }
  func.func @transform_5(%arg0: i32, %arg1: i32) -> (i32, i32, i32) {
    %c0_i32 = arith.constant 0 : i32
    %c0_i32_0 = arith.constant 0 : i32
    return %arg0, %arg1, %c0_i32 : i32, i32, i32
  }
}

module attributes {stable_mosaic.version = 11 : i64} {
  func.func @_mm_epilogue_kernel(%arg0: i32, %arg1: memref<16x128xbf16, #tpu.memory_space<vmem>>, %arg2: memref<128x1280xbf16, #tpu.memory_space<vmem>>, %arg3: memref<1x1280xf32, #tpu.memory_space<vmem>>, %arg4: memref<16x1280xbf16, #tpu.memory_space<vmem>>) attributes {dimension_semantics = [#tpu.dimension_semantics<parallel>], iteration_bounds = array<i64: 2>, scalar_prefetch = 0 : i64, scratch_operands = 0 : i64, tpu.core_type = #tpu.core_type<tc>, window_params = [{transform_indices = @transform_0, window_bounds = array<i64: 16, 128>}, {pipeline_mode = #tpu.pipeline_mode<synchronous>, transform_indices = @transform_1, window_bounds = array<i64: 128, 1280>}, {pipeline_mode = #tpu.pipeline_mode<synchronous>, transform_indices = @transform_2, window_bounds = array<i64: 1, 1280>}, {transform_indices = @transform_3, window_bounds = array<i64: 16, 1280>}]} {
    %c0 = arith.constant 0 : index
    %c0_0 = arith.constant 0 : index
    %0 = vector.load %arg1[%c0, %c0_0] : memref<16x128xbf16, #tpu.memory_space<vmem>>, vector<16x128xbf16>
    %c0_1 = arith.constant 0 : index
    %c0_2 = arith.constant 0 : index
    %1 = vector.load %arg2[%c0_1, %c0_2] : memref<128x1280xbf16, #tpu.memory_space<vmem>>, vector<128x1280xbf16>
    %cst = arith.constant dense<0.000000e+00> : vector<16x1280xf32>
    %2 = tpu.matmul %0, %1, %cst {dimension_numbers = #tpu.dot_dimension_numbers<[1], [0], [0], [1], [0, 0, 1, 1], [], []>} : vector<16x128xbf16>, vector<128x1280xbf16>, vector<16x1280xf32> -> vector<16x1280xf32>
    %c0_3 = arith.constant 0 : index
    %c0_4 = arith.constant 0 : index
    %3 = vector.load %arg3[%c0_3, %c0_4] : memref<1x1280xf32, #tpu.memory_space<vmem>>, vector<1x1280xf32>
    %4 = vector.broadcast %3 : vector<1x1280xf32> to vector<16x1280xf32>
    %5 = arith.addf %2, %4 : vector<16x1280xf32>
    %6 = arith.negf %5 : vector<16x1280xf32>
    %7 = math.exp %6 : vector<16x1280xf32>
    %cst_5 = arith.constant 1.000000e+00 : f32
    %8 = vector.broadcast %cst_5 : f32 to vector<16x1280xf32>
    %9 = arith.addf %8, %7 : vector<16x1280xf32>
    %10 = arith.divf %8, %9 : vector<16x1280xf32>
    %11 = arith.mulf %5, %10 : vector<16x1280xf32>
    %12 = arith.truncf %11 : vector<16x1280xf32> to vector<16x1280xbf16>
    %c0_6 = arith.constant 0 : index
    %c0_7 = arith.constant 0 : index
    %13 = vector.load %arg4[%c0_6, %c0_7] : memref<16x1280xbf16, #tpu.memory_space<vmem>>, vector<16x1280xbf16>
    tpu.vector_store %arg4[%c0_6, %c0_7], %12 {strides = array<i32>} : memref<16x1280xbf16, #tpu.memory_space<vmem>>, vector<16x1280xbf16>,
    return
  }
  func.func @transform_0(%arg0: i32) -> (i32, i32) {
    %c0_i32 = arith.constant 0 : i32
    %c0_i32_0 = arith.constant 0 : i32
    return %arg0, %c0_i32 : i32, i32
  }
  func.func @transform_1(%arg0: i32) -> (i32, i32) {
    %c0_i32 = arith.constant 0 : i32
    %c0_i32_0 = arith.constant 0 : i32
    %c0_i32_1 = arith.constant 0 : i32
    return %c0_i32, %c0_i32_0 : i32, i32
  }
  func.func @transform_2(%arg0: i32) -> (i32, i32) {
    %c0_i32 = arith.constant 0 : i32
    %c0_i32_0 = arith.constant 0 : i32
    %c0_i32_1 = arith.constant 0 : i32
    return %c0_i32, %c0_i32_0 : i32, i32
  }
  func.func @transform_3(%arg0: i32) -> (i32, i32) {
    %c0_i32 = arith.constant 0 : i32
    %c0_i32_0 = arith.constant 0 : i32
    return %arg0, %c0_i32 : i32, i32
  }
}

module attributes {stable_mosaic.version = 11 : i64} {
  func.func @_pool_fc_kernel(%arg0: i32, %arg1: memref<1x16x1280xbf16, #tpu.memory_space<vmem>>, %arg2: memref<1280x10xbf16, #tpu.memory_space<vmem>>, %arg3: memref<1x10xf32, #tpu.memory_space<vmem>>, %arg4: memref<1x1x10xf32, #tpu.memory_space<vmem>>) attributes {dimension_semantics = [#tpu.dimension_semantics<parallel>], iteration_bounds = array<i64: 2>, scalar_prefetch = 0 : i64, scratch_operands = 0 : i64, tpu.core_type = #tpu.core_type<tc>, window_params = [{transform_indices = @transform_0, window_bounds = array<i64: 1, 16, 1280>}, {pipeline_mode = #tpu.pipeline_mode<synchronous>, transform_indices = @transform_1, window_bounds = array<i64: 1280, 10>}, {pipeline_mode = #tpu.pipeline_mode<synchronous>, transform_indices = @transform_2, window_bounds = array<i64: 1, 10>}, {transform_indices = @transform_3, window_bounds = array<i64: 1, 1, 10>}]} {
    %c0 = arith.constant 0 : index
    %c0_0 = arith.constant 0 : index
    %c0_1 = arith.constant 0 : index
    %0 = vector.load %arg1[%c0, %c0_0, %c0_1] : memref<1x16x1280xbf16, #tpu.memory_space<vmem>>, vector<1x16x1280xbf16>
    %1 = vector.shape_cast %0 : vector<1x16x1280xbf16> to vector<16x1280xbf16>
    %2 = arith.extf %1 : vector<16x1280xbf16> to vector<16x1280xf32>
    %cst = arith.constant dense<0.000000e+00> : vector<1280xf32>
    %3 = vector.multi_reduction <add>, %2, %cst [0] : vector<16x1280xf32> to vector<1280xf32>
    %4 = vector.shape_cast %3 : vector<1280xf32> to vector<1x1280xf32>
    %cst_2 = arith.constant 6.250000e-02 : f32
    %5 = vector.broadcast %cst_2 : f32 to vector<1x1280xf32>
    %6 = arith.mulf %4, %5 : vector<1x1280xf32>
    %7 = arith.truncf %6 : vector<1x1280xf32> to vector<1x1280xbf16>
    %c0_3 = arith.constant 0 : index
    %c0_4 = arith.constant 0 : index
    %8 = vector.load %arg2[%c0_3, %c0_4] : memref<1280x10xbf16, #tpu.memory_space<vmem>>, vector<1280x10xbf16>
    %cst_5 = arith.constant dense<0.000000e+00> : vector<1x10xf32>
    %9 = tpu.matmul %7, %8, %cst_5 {dimension_numbers = #tpu.dot_dimension_numbers<[1], [0], [0], [1], [0, 0, 1, 1], [], []>} : vector<1x1280xbf16>, vector<1280x10xbf16>, vector<1x10xf32> -> vector<1x10xf32>
    %c0_6 = arith.constant 0 : index
    %c0_7 = arith.constant 0 : index
    %10 = vector.load %arg3[%c0_6, %c0_7] : memref<1x10xf32, #tpu.memory_space<vmem>>, vector<1x10xf32>
    %11 = arith.addf %9, %10 : vector<1x10xf32>
    %c0_8 = arith.constant 0 : index
    %c0_9 = arith.constant 0 : index
    %c0_10 = arith.constant 0 : index
    %12 = vector.load %arg4[%c0_8, %c0_9, %c0_10] : memref<1x1x10xf32, #tpu.memory_space<vmem>>, vector<1x1x10xf32>
    %13 = vector.shape_cast %12 : vector<1x1x10xf32> to vector<1x10xf32>
    %14 = vector.shape_cast %11 : vector<1x10xf32> to vector<1x1x10xf32>
    tpu.vector_store %arg4[%c0_8, %c0_9, %c0_10], %14 {strides = array<i32>} : memref<1x1x10xf32, #tpu.memory_space<vmem>>, vector<1x1x10xf32>,
    return
  }
  func.func @transform_0(%arg0: i32) -> (i32, i32, i32) {
    %c0_i32 = arith.constant 0 : i32
    %c0_i32_0 = arith.constant 0 : i32
    %c0_i32_1 = arith.constant 0 : i32
    return %arg0, %c0_i32, %c0_i32_0 : i32, i32, i32
  }
  func.func @transform_1(%arg0: i32) -> (i32, i32) {
    %c0_i32 = arith.constant 0 : i32
    %c0_i32_0 = arith.constant 0 : i32
    %c0_i32_1 = arith.constant 0 : i32
    return %c0_i32, %c0_i32_0 : i32, i32
  }
  func.func @transform_2(%arg0: i32) -> (i32, i32) {
    %c0_i32 = arith.constant 0 : i32
    %c0_i32_0 = arith.constant 0 : i32
    %c0_i32_1 = arith.constant 0 : i32
    return %c0_i32, %c0_i32_0 : i32, i32
  }
  func.func @transform_3(%arg0: i32) -> (i32, i32, i32) {
    %c0_i32 = arith.constant 0 : i32
    %c0_i32_0 = arith.constant 0 : i32
    %c0_i32_1 = arith.constant 0 : i32
    return %arg0, %c0_i32, %c0_i32_0 : i32, i32, i32
  }
}

</mosaic_0001>

<bundles_post_ra>
// kernel: _lambda_.16
= control target key start
LH: loop header
LB: loop body
LE: loop exit
PB: predicated region body
PF: predicated region fallthrough
CT: control target
= control target key end

     0   :  { %s565_s18 = smov 0   ;;  %s647_s0 = inlined_call_operand.vmem [shape: f32[2,1,128], index: 0, kind: input, shape index: {}]   ;;  %s648_s1 = inlined_call_operand.vmem [shape: f32[128,8], index: 1, kind: input, shape index: {}]   ;;  %s649_s2 = inlined_call_operand.vmem [shape: f32[1,8], index: 2, kind: input, shape index: {}]   ;;  %s650_s3 = inlined_call_operand.vmem [shape: f32[8,128], index: 3, kind: input, shape index: {}]   ;;  %s651_s4 = inlined_call_operand.vmem [shape: f32[1,128], index: 4, kind: input, shape index: {}]   ;;  %s652_s5 = inlined_call_operand.vmem [shape: f32[2,1,128], index: 5, kind: output, shape index: {}]  }
   0x1 LB: > { %s438_s19 = sadd.s32 4294967295, %s531_s18   ;;  %p442_p0 = scmp.ge.s32.totalorder %s531_s18, 1  ;;  %s531_s18 = sphi %s565_s18, %s15_s18  }
   0x2   : > { %p185_p1 = scmp.lt.s32.totalorder %s531_s18, 3 }
   0x4   : > { %p186_p2 = pnand %p442_p0, %p185_p1 }
   0x5   : > { %p209_p3 = scmp.lt.s32.totalorder (!%p186_p2), %s438_s19, 1 }
   0x6   : > { %189 = sbr.rel (%p186_p2) target bundleno = 501 (0x1f5), region = 40 }
   0xb   : > { %v232_v0 = vld [vmem:[%s648_s1 + $0x78] sm:$0xff]  ;;  %v533_v1 = vmov 0.0   ;;  %v231_v2 = vld [vmem:[%s648_s1 + $0x70] sm:$0xff]  ;;  %vm534_vm0 = vmmov 0   ;;  %v230_v3 = vld [vmem:[%s648_s1 + $0x68] sm:$0xff]  ;;  %s654_s19 = smov (!%p209_p3, %s438_s19), 1 }
   0xc   : > { %467 = vmatprep.subr.mxu0 %v533_v1  ;;  %499 = vmatprep.mubr.msk.f32.mxu0 %vm534_vm0, %v533_v1  ;;  %v229_v4 = vld [vmem:[%s648_s1 + $0x60] sm:$0xff]  ;;  %v228_v5 = vld [vmem:[%s648_s1 + $0x58] sm:$0xff]  ;;  %v227_v6 = vld [vmem:[%s648_s1 + $0x50] sm:$0xff]  ;;  %s211_s25 = scalar_lea.vmem %s647_s0, %s654_s19  ;;  %vm313_vm1 = vcmask 64512   ;;  %s214_s15 = scalar_lea.vmem %s652_s5, %s654_s19 }
   0xd   : > { %468 = vmatpush3.msra.mxu0 %v232_v0  ;;  %502 = vmatprep.subr.mxu1 %v533_v1  ;;  %v226_v7 = vld [vmem:[%s648_s1 + $0x48] sm:$0xff]  ;;  %v225_v8 = vld [vmem:[%s648_s1 + $0x40] sm:$0xff]  ;;  %v224_v9 = vld [vmem:[%s648_s1 + $0x38] sm:$0xff] }
   0xe   : > { %469 = vmatprep.subr.mxu0 %v533_v1  ;;  %504 = vmatprep.mubr.msk.f32.mxu1 %vm534_vm0, %v533_v1  ;;  %v223_v10 = vld [vmem:[%s648_s1 + $0x30] sm:$0xff]  ;;  %v222_v11 = vld [vmem:[%s648_s1 + $0x28] sm:$0xff]  ;;  %v221_v12 = vld [vmem:[%s648_s1 + $0x20] sm:$0xff] }
   0xf   : > { %470 = vmatpush3.msra.mxu0 %v231_v2  ;;  %v220_v13 = vld [vmem:[%s648_s1 + $0x18] sm:$0xff]  ;;  %v219_v14 = vld [vmem:[%s648_s1 + $0x10] sm:$0xff]  ;;  %v215_v15 = vld [vmem:[%s211_s25] sm:$0x1] }
  0x10   : > { %471 = vmatprep.subr.mxu0 %v533_v1  ;;  %v218_v16 = vld [vmem:[%s648_s1 + $0x8] sm:$0xff]  ;;  %v217_v17 = vld [vmem:[%s648_s1] sm:$0xff]  ;;  %v216_v18 = vmul.f32 0.015625, %v215_v15 }
  0x11   : > { %472 = vmatpush3.msra.mxu0 %v230_v3  ;;  %v311_v19 = vld [vmem:[%s650_s3] sm:$0xff] }
  0x12   : > { %473 = vmatprep.subr.mxu0 %v533_v1  ;;  %503 = vmatpush3.msra.mxu1 %v311_v19  ;;  %v233_v20 = vld [vmem:[%s649_s2] sm:$0x1] }
  0x13   : > { %474 = vmatpush3.msra.mxu0 %v229_v4  ;;  %v312_v29 = vld [vmem:[%s651_s4] sm:$0x1] }
  0x14   : > { %475 = vmatprep.subr.mxu0 %v533_v1 }
  0x15   : > { %476 = vmatpush3.msra.mxu0 %v228_v5 }
  0x16   : > { %477 = vmatprep.subr.mxu0 %v533_v1 }
  0x17   : > { %478 = vmatpush3.msra.mxu0 %v227_v6 }
  0x18   : > { %479 = vmatprep.subr.mxu0 %v533_v1 }
  0x19   : > { %480 = vmatpush3.msra.mxu0 %v226_v7 }
  0x1a   : > { %481 = vmatprep.subr.mxu0 %v533_v1 }
  0x1b   : > { %482 = vmatpush3.msra.mxu0 %v225_v8 }
  0x1c   : > { %483 = vmatprep.subr.mxu0 %v533_v1 }
  0x1d   : > { %484 = vmatpush3.msra.mxu0 %v224_v9 }
  0x1e   : > { %485 = vmatprep.subr.mxu0 %v533_v1 }
  0x1f   : > { %486 = vmatpush3.msra.mxu0 %v223_v10 }
  0x20   : > { %487 = vmatprep.subr.mxu0 %v533_v1 }
  0x21   : > { %488 = vmatpush3.msra.mxu0 %v222_v11 }
  0x22   : > { %489 = vmatprep.subr.mxu0 %v533_v1 }
  0x23   : > { %490 = vmatpush3.msra.mxu0 %v221_v12 }
  0x24   : > { %491 = vmatprep.subr.mxu0 %v533_v1 }
  0x25   : > { %492 = vmatpush3.msra.mxu0 %v220_v13 }
  0x26   : > { %493 = vmatprep.subr.mxu0 %v533_v1 }
  0x27   : > { %494 = vmatpush3.msra.mxu0 %v219_v14 }
  0x28   : > { %495 = vmatprep.subr.mxu0 %v533_v1 }
  0x29   : > { %496 = vmatpush3.msra.mxu0 %v218_v16 }
  0x2a   : > { %497 = vmatprep.subr.mxu0 %v533_v1 }
  0x2b   : > { %498 = vmatpush3.msra.mxu0 %v217_v17 }
  0x2c   : > { %500 = vmatmul.mubr.f32.vlgmr.msra.gmra.mxu0 %v216_v18 }
  0xec   : > { %v300_v21 = vpop.f32.mrf.mxu0 }
  0xed   : > { %v301_v22 = vadd.f32 %v300_v21, %v233_v20 }
  0xee   : > { %v501_v23 = vpop.f32.mrf.mxu0 }
  0xef   : > { %v443_v24 = vmul.f32 -1.442695, %v301_v22 }
  0xf1   : > { %517 = vpow2.f32 %v443_v24 }
  0xfe   : > { %v518_v25 = vpop.eup %517 }
  0xff   : > { %v307_v26 = vadd.f32 1.0, %v518_v25 }
 0x101   : > { %519 = vrcp.f32 %v307_v26 }
 0x10e   : > { %v520_v27 = vpop.eup %519 }
 0x10f   : > { %v310_v28 = vmul.f32 %v520_v27, %v301_v22 }
 0x111   : > { %505 = vmatmul.mubr.msk.f32.vlgmr.msra.gmra.mxu1 %vm313_vm1, %v310_v28 }
 0x1d1   : > { %v383_v30 = vpop.f32.mrf.mxu1 }
 0x1d2   : > { %v384_v31 = vadd.f32 %v383_v30, %v312_v29 }
 0x1d3   : > { %v506_v32 = vpop.f32.mrf.mxu1 }
 0x1d4   : > { %v445_v33 = vmul.f32 -1.442695, %v384_v31 }
 0x1d6   : > { %521 = vpow2.f32 %v445_v33 }
 0x1e3   : > { %v522_v34 = vpop.eup %521 }
 0x1e4   : > { %v390_v35 = vadd.f32 1.0, %v522_v34 }
 0x1e6   : > { %523 = vrcp.f32 %v390_v35 }
 0x1f3   : > { %v524_v36 = vpop.eup %523 }
 0x1f4   : > { %393 = vst [vmem:[%s214_s15] sm:$0x1] %v524_v36 }
 0x1f5 PF: > { %s15_s18 = sadd.s32 1, %s531_s18  }
 0x1f6   : > { %p12_p4 = scmp.ge.s32.totalorder %s15_s18, 4  }
 0x1f8   :  { %14 = sbr.rel (!%p12_p4) target bundleno = 1 (0x1), region = 70 }

// kernel: _lambda_.14
= control target key start
LH: loop header
LB: loop body
LE: loop exit
PB: predicated region body
PF: predicated region fallthrough
CT: control target
= control target key end

     0   :  { %s606_s12 = smov 0   ;;  %s644_s0 = inlined_call_operand.vmem [shape: bf16[128,16], index: 0, kind: input, shape index: {}]   ;;  %s645_s1 = inlined_call_operand.vmem [shape: bf16[16,128], index: 1, kind: input, shape index: {}]   ;;  %s646_s2 = inlined_call_operand.vmem [shape: f32[1,128], index: 2, kind: input, shape index: {}]   ;;  %s647_s3 = inlined_call_operand.vmem [shape: bf16[128,128], index: 3, kind: output, shape index: {}]  }
   0x1 LB: > { %s448_s13 = sadd.s32 4294967295, %s584_s12   ;;  %p452_p0 = scmp.ge.s32.totalorder %s584_s12, 1  ;;  %s584_s12 = sphi %s606_s12, %s13_s12  }
   0x2   : > { %p138_p1 = scmp.lt.s32.totalorder %s584_s12, 3 }
   0x4   : > { %p139_p2 = pnand %p452_p0, %p138_p1 }
   0x5   : > { %s453_s16 = sshll.u32 (!%p139_p2), %s448_s13, 3 }
   0x6   : > { %142 = sbr.rel (%p139_p2) target bundleno = 255 (0xff), region = 32  ;;  %p163_p3 = scmp.lt.s32.totalorder (!%p139_p2), %s453_s16, 15 }
   0xb   : > { %v541_v0 = vld [vmem:[%s645_s1] sm:$0xff]   ;;  %s649_s16 = smov (!%p163_p3, %s453_s16), 15  ;;  %vm218_vm0 = vcmask 130048  }
   0xc   : > { %521 = vmatprep.subr.bf16.mxu0 %v541_v0  ;;  %531 = vmatprep.subr.bf16.mxu1 %v541_v0  ;;  %s454_s17 = sshll.u32 %s649_s16, 2  ;;  %v457_v5 = vld [vmem:[%s646_s2] ss:$0 sm:$0xff] }
   0xd   : > { %522 = vmatpush3.bf16.msra.mxu0 %v541_v0  ;;  %532 = vmatpush3.bf16.msra.mxu1 %v541_v0  ;;  %s166_s20 = scalar_lea.vmem %s644_s0, %s454_s17  ;;  %s172_s25 = scalar_lea.vmem %s647_s3, %s454_s17 }
   0xe   : > { %v542_v1 = vld [vmem:[%s166_s20] sm:$0xff]   ;;  %v543_v2 = vld [vmem:[%s166_s20 + $0x10] sm:$0xff]   ;;  %v544_v3 = vld [vmem:[%s166_s20 + $0x8] sm:$0xff]  }
   0xf   : > { %523 = vmatprep.mubr.msk.bf16.mxu0 %vm218_vm0, %v542_v1  ;;  %527 = vmatprep.mubr.msk.bf16.mxu1 %vm218_vm0, %v543_v2  ;;  %v545_v4 = vld [vmem:[%s166_s20 + $0x18] sm:$0xff]  }
  0x10   : > { %524 = vmatmul.mubr.msk.bf16.vlgmr.msra.gmra.mxu0 %vm218_vm0, %v544_v3  ;;  %528 = vmatmul.mubr.msk.bf16.vlgmr.msra.gmra.mxu1 %vm218_vm0, %v545_v4 }
  0xd0   : > { %v525_v6 = vpop.f32.mrf.mxu0  ;;  %v529_v8 = vpop.f32.mrf.mxu1 }
  0xd1   : > { %v274_v7 = vadd.f32 %v525_v6, %v457_v5  ;;  %v290_v9 = vadd.f32 %v529_v8, %v457_v5 }
  0xd2   : > { %v265_v10 = vpop.f32.mrf.mxu0  ;;  %v281_v13 = vpop.f32.mrf.mxu1 }
  0xd3   : > { %v469_v11 = vmul.f32 -1.442695, %v274_v7  ;;  %v628_v12 = vadd.f32 %v457_v5, %v265_v10  ;;  %v473_v14 = vmul.f32 -1.442695, %v290_v9  ;;  %v630_v15 = vadd.f32 %v457_v5, %v281_v13 }
  0xd4   : > { %v526_v16 = vpop.f32.mrf.mxu0  ;;  %v530_v19 = vpop.f32.mrf.mxu1 }
  0xd5   : > { %546 = vpow2.f32 %v469_v11  ;;  %v467_v17 = vmul.f32 -1.442695, %v628_v12  ;;  %v277_v18 = vadd.f32 %v526_v16, %v457_v5  ;;  %v471_v20 = vmul.f32 -1.442695, %v630_v15 }
  0xd6   : > { %548 = vpow2.f32 %v473_v14  ;;  %v293_v21 = vadd.f32 %v530_v19, %v457_v5  ;;  %v268_v22 = vpop.f32.mrf.mxu0  ;;  %v284_v25 = vpop.f32.mrf.mxu1 }
  0xd7   : > { %550 = vpow2.f32 %v467_v17  ;;  %v470_v23 = vmul.f32 -1.442695, %v277_v18  ;;  %v269_v24 = vadd.f32 %v457_v5, %v268_v22  ;;  %v285_v27 = vadd.f32 %v457_v5, %v284_v25 }
  0xd8   : > { %552 = vpow2.f32 %v471_v20  ;;  %v474_v26 = vmul.f32 -1.442695, %v293_v21 }
  0xd9   : > { %554 = vpow2.f32 %v470_v23  ;;  %v468_v28 = vmul.f32 -1.442695, %v269_v24  ;;  %v472_v29 = vmul.f32 -1.442695, %v285_v27 }
  0xda   : > { %556 = vpow2.f32 %v474_v26 }
  0xdb   : > { %558 = vpow2.f32 %v468_v28 }
  0xdc   : > { %560 = vpow2.f32 %v472_v29 }
  0xe2   : > { %v547_v30 = vpop.eup %546 }
  0xe3   : > { %v549_v31 = vpop.eup %548  ;;  %v322_v32 = vadd.f32 1.0, %v547_v30 }
  0xe4   : > { %v551_v33 = vpop.eup %550  ;;  %v326_v34 = vadd.f32 1.0, %v549_v31 }
  0xe5   : > { %v553_v35 = vpop.eup %552  ;;  %562 = vrcp.f32 %v322_v32  ;;  %v320_v36 = vadd.f32 1.0, %v551_v33 }
  0xe6   : > { %v555_v37 = vpop.eup %554  ;;  %564 = vrcp.f32 %v326_v34  ;;  %v324_v38 = vadd.f32 1.0, %v553_v35 }
  0xe7   : > { %v557_v39 = vpop.eup %556  ;;  %566 = vrcp.f32 %v320_v36  ;;  %v323_v40 = vadd.f32 1.0, %v555_v37 }
  0xe8   : > { %v559_v41 = vpop.eup %558  ;;  %568 = vrcp.f32 %v324_v38  ;;  %v327_v42 = vadd.f32 1.0, %v557_v39 }
  0xe9   : > { %v561_v43 = vpop.eup %560  ;;  %570 = vrcp.f32 %v323_v40  ;;  %v321_v44 = vadd.f32 1.0, %v559_v41 }
  0xea   : > { %572 = vrcp.f32 %v327_v42  ;;  %v325_v45 = vadd.f32 1.0, %v561_v43 }
  0xeb   : > { %574 = vrcp.f32 %v321_v44 }
  0xec   : > { %576 = vrcp.f32 %v325_v45 }
  0xf2   : > { %v563_v46 = vpop.eup %562 }
  0xf3   : > { %v565_v47 = vpop.eup %564  ;;  %v346_v52 = vmul.f32 %v563_v46, %v274_v7 }
  0xf4   : > { %v567_v48 = vpop.eup %566  ;;  %v350_v55 = vmul.f32 %v565_v47, %v290_v9 }
  0xf5   : > { %v569_v49 = vpop.eup %568  ;;  %v344_v58 = vmul.f32 %v567_v48, %v628_v12 }
  0xf6   : > { %v571_v50 = vpop.eup %570  ;;  %v348_v61 = vmul.f32 %v569_v49, %v630_v15 }
  0xf7   : > { %v573_v51 = vpop.eup %572  ;;  %v347_v53 = vmul.f32 %v571_v50, %v277_v18 }
  0xf8   : > { %v575_v54 = vpop.eup %574  ;;  %v351_v56 = vmul.f32 %v573_v51, %v293_v21 }
  0xf9   : > { %v577_v57 = vpop.eup %576  ;;  %v501_v59 = vpack.c.bf16 %v347_v53, %v346_v52  ;;  %v345_v60 = vmul.f32 %v575_v54, %v269_v24 }
  0xfa   : > { %v511_v62 = vpack.c.bf16 %v351_v56, %v350_v55  ;;  %v349_v63 = vmul.f32 %v577_v57, %v285_v27 }
  0xfb   : > { %513 = vst [vmem:[%s172_s25 + $0x8] sm:$0xff] %v501_v59   ;;  %v496_v0 = vpack.c.bf16 %v345_v60, %v344_v58 }
  0xfc   : > { %515 = vst [vmem:[%s172_s25 + $0x18] sm:$0xff] %v511_v62   ;;  %v506_v1 = vpack.c.bf16 %v349_v63, %v348_v61 }
  0xfd   : > { %497 = vst [vmem:[%s172_s25] sm:$0xff] %v496_v0  }
  0xfe   : > { %514 = vst [vmem:[%s172_s25 + $0x10] sm:$0xff] %v506_v1  }
  0xff PF: > { %s13_s12 = sadd.s32 1, %s584_s12  }
 0x100   : > { %p10_p4 = scmp.ge.s32.totalorder %s13_s12, 4  }
 0x102   :  { %12 = sbr.rel (!%p10_p4) target bundleno = 1 (0x1), region = 62 }

// kernel: _lambda_.17
= control target key start
LH: loop header
LB: loop body
LE: loop exit
PB: predicated region body
PF: predicated region fallthrough
CT: control target
= control target key end

     0   :  { %s711_s15 = smov 0   ;;  %s713_s16 = smov 0   ;;  %s799_s0 = inlined_call_operand.vmem [shape: bf16[2,64,128], index: 0, kind: input, shape index: {}]   ;;  %s800_s1 = inlined_call_operand.vmem [shape: f32[2,1,128], index: 1, kind: input, shape index: {}]   ;;  %s801_s2 = inlined_call_operand.vmem [shape: bf16[128,128], index: 2, kind: input, shape index: {}]   ;;  %s802_s3 = inlined_call_operand.vmem [shape: f32[1,128], index: 3, kind: input, shape index: {}]   ;;  %s803_s4 = inlined_call_operand.vmem [shape: bf16[2,64,128], index: 4, kind: output, shape index: {}]  }
   0x1   :  { %s715_s17 = smov 0   ;;  %s717_s18 = smov 0  }
   0x2   :  { %s719_s19 = smov 0  }
   0x3 LB: > { %s23_s20 = sadd.s32 1, %s676_s17  ;;  %s26_s21 = sadd.s32 1, %s680_s18  ;;  %s684_s19 = sphi %s719_s19, %s14_s19   ;;  %s680_s18 = sphi %s717_s18, %s807_s18   ;;  %s676_s17 = sphi %s715_s17, %s806_s17   ;;  %s672_s16 = sphi %s713_s16, %s805_s16   ;;  %s668_s15 = sphi %s711_s15, %s804_s15  }
   0x4   : > { %p24_p0 = scmp.ge.s32.totalorder %s23_s20, 2  ;;  %p528_p1 = scmp.ge.s32.totalorder %s684_s19, 1 }
   0x5   : > { %p191_p2 = scmp.lt.s32.totalorder %s684_s19, 5 }
   0x6   : > { %s809_s20 = smov (%p24_p0, %s23_s20), 0  ;;  %s811_s21 = smov (!%p24_p0, %s26_s21), %s680_s18 }
   0x7   : > { %p192_p3 = pnand %p528_p1, %p191_p2  ;;  %p28_p4 = scmp.ge.s32.totalorder %s811_s21, 2 }
   0x8   : > { %s529_s24 = sshll.u32 (!%p192_p3), %s668_s15, 2  ;;  %p229_p5 = scmp.lt.s32.totalorder (!%p192_p3), %s672_s16, 1 }
   0x9   : > { %s813_s21 = smov (%p28_p4, %s811_s21), 0  ;;  %195 = sbr.rel (%p192_p3) target bundleno = 251 (0xfb), region = 36 }
   0xa   : > { %p231_p6 = scmp.lt.s32.totalorder (!%p192_p3), %s529_s24, 7 }
   0xe   : > { %v638_v0 = vld [vmem:[%s801_s2 + $0x38] sm:$0xff]   ;;  %v639_v1 = vld [vmem:[%s801_s2 + $0x30] sm:$0xff]   ;;  %v261_v2 = vlaneseq  ;;  %s815_s16 = smov (!%p229_p5, %s672_s16), 1  ;;  %v640_v3 = vld [vmem:[%s801_s2 + $0x28] sm:$0xff]   ;;  %s817_s24 = smov (!%p231_p6, %s529_s24), 7 }
   0xf   : > { %578 = vmatprep.subr.bf16.mxu0 %v638_v0  ;;  %s530_s29 = sshll.u32 %s815_s16, 3  ;;  %s240_s6 = scalar_lea.vmem %s800_s1, %s815_s16  ;;  %v641_v5 = vld [vmem:[%s801_s2 + $0x20] sm:$0xff]   ;;  %v642_v10 = vld [vmem:[%s801_s2 + $0x18] sm:$0xff]   ;;  %v643_v15 = vld [vmem:[%s801_s2 + $0x10] sm:$0xff]  }
  0x10   : > { %579 = vmatpush3.bf16.msra.mxu0 %v638_v0  ;;  %s753_s7 = sadd.s32 %s530_s29, %s817_s24  ;;  %v262_v4 = vshrl.u32 %v261_v2, 7  ;;  %v256_v6 = vld [vmem:[%s240_s6] sm:$0x1]  ;;  %v644_v19 = vld [vmem:[%s801_s2 + $0x8] sm:$0xff]  }
  0x11   : > { %580 = vmatprep.subr.bf16.mxu0 %v639_v1  ;;  %s531_s10 = sshll.u32 %s753_s7, 2  ;;  %v257_v7 = vpack.c.bf16 %v256_v6, %v256_v6  ;;  %v645_v22 = vld [vmem:[%s801_s2] sm:$0xff]  }
  0x12   : > { %v263_v8 = vsub.s32 0, %v262_v4  ;;  %s236_s13 = scalar_lea.vmem %s799_s0, %s531_s10  ;;  %v536_v27 = vld [vmem:[%s802_s3] ss:$0 sm:$0xff]  ;;  %s249_s5 = scalar_lea.vmem %s803_s4, %s531_s10 }
  0x13   : > { %v259_v9 = vpack.i.b16 %v257_v7, %v257_v7  ;;  %v252_v12 = vld [vmem:[%s236_s13] sm:$0xf]  ;;  %v253_v13 = vld [vmem:[%s236_s13 + $0x4] sm:$0xf]  ;;  %v254_v20 = vld [vmem:[%s236_s13 + $0x8] sm:$0xf] }
  0x14   : > { %581 = vmatpush3.bf16.msra.mxu0 %v639_v1  ;;  %v255_v21 = vld [vmem:[%s236_s13 + $0xc] sm:$0xf] }
  0x15   : > { %582 = vmatprep.subr.bf16.mxu0 %v640_v3  ;;  %v264_v11 = vrot.slane %v259_v9, %v263_v8 }
  0x17   : > { %v535_v14 = vcombine.low %v264_v11, %v264_v11 }
  0x18   : > { %583 = vmatpush3.bf16.msra.mxu0 %v640_v3 }
  0x19   : > { %584 = vmatprep.subr.bf16.mxu0 %v641_v5  ;;  %v269_v16 = vmul.bf16 %v535_v14, %v252_v12  ;;  %v270_v17 = vmul.bf16 %v535_v14, %v253_v13  ;;  %v271_v23 = vmul.bf16 %v535_v14, %v254_v20  ;;  %v272_v24 = vmul.bf16 %v535_v14, %v255_v21 }
  0x1b   : > { %v537_v18 = vcombine.low %v269_v16, %v270_v17  ;;  %v538_v25 = vcombine.low %v271_v23, %v272_v24 }
  0x1c   : > { %585 = vmatpush3.bf16.msra.mxu0 %v641_v5 }
  0x1d   : > { %586 = vmatprep.subr.bf16.mxu0 %v642_v10  ;;  %594 = vmatprep.mubr.bf16.mxu0 %v537_v18 }
  0x20   : > { %587 = vmatpush3.bf16.msra.mxu0 %v642_v10 }
  0x21   : > { %588 = vmatprep.subr.bf16.mxu0 %v643_v15 }
  0x24   : > { %589 = vmatpush3.bf16.msra.mxu0 %v643_v15 }
  0x25   : > { %590 = vmatprep.subr.bf16.mxu0 %v644_v19 }
  0x28   : > { %591 = vmatpush3.bf16.msra.mxu0 %v644_v19 }
  0x29   : > { %592 = vmatprep.subr.bf16.mxu0 %v645_v22 }
  0x2c   : > { %593 = vmatpush3.bf16.msra.mxu0 %v645_v22 }
  0x2f   : > { %595 = vmatmul.mubr.bf16.vlgmr.msra.gmra.mxu0 %v538_v25 }
  0xef   : > { %v596_v26 = vpop.f32.mrf.mxu0 }
  0xf0   : > { %v399_v30 = vadd.f32 %v596_v26, %v536_v27 }
  0xf1   : > { %v390_v28 = vpop.f32.mrf.mxu0 }
  0xf2   : > { %v391_v33 = vadd.f32 %v536_v27, %v390_v28 }
  0xf3   : > { %v597_v29 = vpop.f32.mrf.mxu0 }
  0xf4   : > { %v402_v31 = vadd.f32 %v597_v29, %v536_v27 }
  0xf5   : > { %v393_v32 = vpop.f32.mrf.mxu0 }
  0xf6   : > { %v565_v34 = vpack.c.bf16 %v402_v31, %v399_v30  ;;  %v394_v35 = vadd.f32 %v536_v27, %v393_v32 }
  0xf8   : > { %567 = vst [vmem:[%s249_s5 + $0x8] sm:$0xff] %v565_v34   ;;  %v560_v36 = vpack.c.bf16 %v394_v35, %v391_v33 }
  0xfa   : > { %561 = vst [vmem:[%s249_s5] sm:$0xff] %v560_v36  }
  0xfb PF: > { %s14_s19 = sadd.s32 1, %s684_s19   ;;  %s804_s15 = smov %s676_s17 }
  0xfc   : > { %p11_p7 = scmp.ge.s32.totalorder %s14_s19, 6   ;;  %s805_s16 = smov %s680_s18 }
  0xfd   : > { %s806_s17 = smov %s809_s20  ;;  %s807_s18 = smov %s813_s21 }
  0xfe   :  { %13 = sbr.rel (!%p11_p7) target bundleno = 3 (0x3), region = 69 }

// kernel: _lambda_.15
= control target key start
LH: loop header
LB: loop body
LE: loop exit
PB: predicated region body
PF: predicated region fallthrough
CT: control target
= control target key end

     0   :  { %s1390_s15 = smov 0   ;;  %s1392_s16 = smov 0   ;;  %s1871_s0 = inlined_call_operand.vmem [shape: bf16[2,10,10,128], index: 0, kind: input, shape index: {}]   ;;  %s1872_s1 = inlined_call_operand.vmem [shape: f32[9,128], index: 1, kind: input, shape index: {}]   ;;  %s1873_s2 = inlined_call_operand.vmem [shape: f32[1,128], index: 2, kind: input, shape index: {}]   ;;  %s1874_s3 = inlined_call_operand.vmem [shape: bf16[2,8,8,128], index: 3, kind: output, shape index: {0}]   ;;  %s1875_s4 = inlined_call_operand.vmem [shape: f32[2,1,128], index: 4, kind: output, shape index: {1}]  }
   0x1   :  { %s1394_s17 = smov 0  }
   0x2 LB: > { %s27_s18 = sadd.s32 1, %s1359_s16  ;;  %p1196_p0 = scmp.ge.s32.totalorder %s1363_s17, 1  ;;  %s1363_s17 = sphi %s1394_s17, %s15_s17   ;;  %s1359_s16 = sphi %s1392_s16, %s1877_s16   ;;  %s1355_s15 = sphi %s1390_s15, %s1876_s15  }
   0x3   : > { %p29_p1 = scmp.ge.s32.totalorder %s27_s18, 2  ;;  %p203_p2 = scmp.lt.s32.totalorder %s1363_s17, 3 }
   0x5   : > { %s1879_s18 = smov (%p29_p1, %s27_s18), 0  ;;  %p204_p3 = pnand %p1196_p0, %p203_p2 }
   0x6   : > { %p248_p4 = scmp.lt.s32.totalorder (!%p204_p3), %s1355_s15, 1 }
   0x7   : > { %207 = sbr.rel (%p204_p3) target bundleno = 183 (0xb7), region = 32 }
   0xc   : > { %v296_v0 = vlaneseq  ;;  %s1881_s15 = smov (!%p248_p4, %s1355_s15), 1  ;;  %v277_v2 = vld [vmem:[%s1872_s1] sm:$0xff]  ;;  %vm368_vm0 = vcmask 1046528   ;;  %vm461_vm1 = vcmask 1045504  }
   0xd   : > { %s1284_s21 = smul.u32 80, %s1881_s15  ;;  %s1260_s29 = sshll.u32 %s1881_s15, 5 }
   0xe   : > { %v297_v1 = vshrl.u32 %v296_v0, 7  ;;  %s270_s6 = scalar_lea.vmem %s1874_s3, %s1260_s29  ;;  %s276_s9 = scalar_lea.vmem %s1875_s4, %s1881_s15 }
   0xf   : > { %s1417_s24 = scalar_lea.vmem %s1871_s0, %s1284_s21 }
  0x10   : > { %v298_v3 = vsub.s32 0, %v297_v1  ;;  %v334_v4 = vsub.s32 1, %v297_v1  ;;  %v427_v5 = vsub.s32 2, %v297_v1  ;;  %v521_v6 = vsub.s32 3, %v297_v1  ;;  %v280_v15 = vld [vmem:[%s1417_s24] ss:$8 sps:$4 sm:$0xff]  }
  0x11   : > { %v557_v7 = vsub.s32 4, %v297_v1  ;;  %v649_v8 = vsub.s32 5, %v297_v1  ;;  %v742_v9 = vsub.s32 6, %v297_v1  ;;  %v778_v10 = vsub.s32 7, %v297_v1  ;;  %v282_v16 = vld [vmem:[%s1417_s24 + $0x10] ss:$8 sps:$4 sm:$0xff]  }
  0x12   : > { %v299_v11 = vrot.slane %v277_v2, %v298_v3  ;;  %v335_v12 = vrot.slane %v277_v2, %v334_v4  ;;  %v1419_v13 = vrot.slane %v277_v2, %v427_v5  ;;  %v1421_v14 = vrot.slane %v277_v2, %v521_v6  ;;  %v284_v17 = vld [vmem:[%s1417_s24 + $0x20] ss:$8 sps:$4 sm:$0xff]   ;;  %v286_v22 = vld [vmem:[%s1417_s24 + $0x30] ss:$8 sps:$4 sm:$0xff]   ;;  %v1436_v27 = vld [vmem:[%s1417_s24 + $0x4] sm:$0x1] }
  0x13   : > { %v1426_v18 = vrot.slane %v277_v2, %v557_v7  ;;  %v1428_v19 = vrot.slane %v277_v2, %v649_v8  ;;  %v1430_v20 = vrot.slane %v277_v2, %v742_v9  ;;  %v1432_v21 = vrot.slane %v277_v2, %v778_v10  ;;  %v1439_v28 = vld [vmem:[%s1417_s24 + $0xc] sm:$0x1]  ;;  %v1442_v33 = vld [vmem:[%s1417_s24 + $0x14] sm:$0x1]  ;;  %v1445_v34 = vld [vmem:[%s1417_s24 + $0x1c] sm:$0x1] }
  0x14   : > { %v288_v23 = vunpack.c.l.bf16 %v280_v15  ;;  %v289_v24 = vunpack.c.h.bf16 %v280_v15  ;;  %v290_v25 = vunpack.c.l.bf16 %v282_v16  ;;  %v291_v26 = vunpack.c.h.bf16 %v282_v16  ;;  %v1448_v35 = vld [vmem:[%s1417_s24 + $0x24] sm:$0x1]  ;;  %v1455_v40 = vld [vmem:[%s1417_s24 + $0x2c] sm:$0x1]  ;;  %v1458_v41 = vld [vmem:[%s1417_s24 + $0x34] sm:$0x1] }
  0x15   : > { %v292_v29 = vunpack.c.l.bf16 %v284_v17  ;;  %v293_v30 = vunpack.c.h.bf16 %v284_v17  ;;  %v294_v31 = vunpack.c.l.bf16 %v286_v22  ;;  %v295_v32 = vunpack.c.h.bf16 %v286_v22  ;;  %v1461_v42 = vld [vmem:[%s1417_s24 + $0x3c] sm:$0x1] }
  0x16   : > { %v300_v36 = vmul.f32 %v299_v11, %v288_v23  ;;  %v301_v37 = vmul.f32 %v299_v11, %v289_v24  ;;  %v1450_v38 = vmul.f32 %v299_v11, %v290_v25  ;;  %v1452_v39 = vmul.f32 %v299_v11, %v291_v26 }
  0x17   : > { %v304_v43 = vmul.f32 %v299_v11, %v292_v29  ;;  %v1463_v44 = vmul.f32 %v299_v11, %v293_v30  ;;  %v1465_v45 = vmul.f32 %v299_v11, %v294_v31  ;;  %v1467_v46 = vmul.f32 %v299_v11, %v295_v32 }
  0x18   : > { %v324_v47 = vunpack.c.l.bf16 %v1436_v27  ;;  %v325_v48 = vunpack.c.l.bf16 %v1439_v28  ;;  %v326_v49 = vunpack.c.l.bf16 %v1442_v33  ;;  %v327_v50 = vunpack.c.l.bf16 %v1445_v34 }
  0x19   : > { %v328_v51 = vunpack.c.l.bf16 %v1448_v35  ;;  %v329_v52 = vunpack.c.l.bf16 %v1455_v40  ;;  %v330_v53 = vunpack.c.l.bf16 %v1458_v41  ;;  %v331_v54 = vunpack.c.l.bf16 %v1461_v42 }
  0x1a   : > { %v336_v55 = vmul.f32 %v335_v12, %v288_v23  ;;  %v337_v56 = vmul.f32 %v335_v12, %v324_v47  ;;  %v338_v57 = vmul.f32 %v335_v12, %v289_v24  ;;  %v339_v58 = vmul.f32 %v335_v12, %v325_v48 }
  0x1b   : > { %v340_v59 = vmul.f32 %v335_v12, %v290_v25  ;;  %v341_v60 = vmul.f32 %v335_v12, %v326_v49  ;;  %v342_v61 = vmul.f32 %v335_v12, %v291_v26  ;;  %v343_v62 = vmul.f32 %v335_v12, %v327_v50 }
  0x1c   : > { %v344_v63 = vmul.f32 %v335_v12, %v292_v29  ;;  %v345_v0 = vmul.f32 %v335_v12, %v328_v51  ;;  %v346_v1 = vmul.f32 %v335_v12, %v293_v30  ;;  %v347_v2 = vmul.f32 %v335_v12, %v329_v52 }
  0x1d   : > { %v348_v3 = vmul.f32 %v335_v12, %v294_v31  ;;  %v349_v4 = vmul.f32 %v335_v12, %v330_v53  ;;  %v350_v5 = vmul.f32 %v335_v12, %v295_v32  ;;  %v351_v6 = vmul.f32 %v335_v12, %v331_v54  ;;  %v409_v31 = vld [vmem:[%s1417_s24] sm:$0xe]  ;;  %v410_v32 = vld [vmem:[%s1417_s24 + $0x8] sm:$0xe] }
  0x1e   : > { %v369_v7 = vrot.slane %v336_v55, 1  ;;  %v370_v8 = vrot.slane %v337_v56, 1  ;;  %v372_v9 = vrot.slane %v338_v57, 1  ;;  %v373_v10 = vrot.slane %v339_v58, 1 }
  0x1f   : > { %v375_v11 = vrot.slane %v340_v59, 1  ;;  %v376_v15 = vrot.slane %v341_v60, 1  ;;  %v378_v16 = vrot.slane %v342_v61, 1  ;;  %v379_v17 = vrot.slane %v343_v62, 1  ;;  %v411_v59 = vld [vmem:[%s1417_s24 + $0x10] sm:$0xe] }
  0x20   : > { %v371_v22 = vsel %vm368_vm0, %v369_v7, %v370_v8  ;;  %v374_v23 = vsel %vm368_vm0, %v372_v9, %v373_v10  ;;  %v381_v24 = vrot.slane %v344_v63, 1  ;;  %v382_v25 = vrot.slane %v345_v0, 1  ;;  %v412_v0 = vld [vmem:[%s1417_s24 + $0x18] sm:$0xe]  ;;  %v414_v8 = vld [vmem:[%s1417_s24 + $0x28] sm:$0xe] }
  0x21   : > { %v377_v12 = vsel %vm368_vm0, %v375_v11, %v376_v15  ;;  %v380_v26 = vsel %vm368_vm0, %v378_v16, %v379_v17  ;;  %v384_v29 = vrot.slane %v346_v1, 1  ;;  %v385_v30 = vrot.slane %v347_v2, 1  ;;  %v413_v1 = vld [vmem:[%s1417_s24 + $0x20] sm:$0xe]  ;;  %v416_v9 = vld [vmem:[%s1417_s24 + $0x38] sm:$0xe] }
  0x22   : > { %v383_v55 = vsel %vm368_vm0, %v381_v24, %v382_v25  ;;  %v387_v56 = vrot.slane %v348_v3, 1  ;;  %v388_v57 = vrot.slane %v349_v4, 1  ;;  %v390_v58 = vrot.slane %v350_v5, 1  ;;  %v415_v5 = vld [vmem:[%s1417_s24 + $0x30] sm:$0xe] }
  0x23   : > { %v386_v60 = vsel %vm368_vm0, %v384_v29, %v385_v30  ;;  %v391_v61 = vrot.slane %v351_v6, 1  ;;  %v1502_v62 = vadd.f32 %v371_v22, %v300_v36  ;;  %v1504_v63 = vadd.f32 %v374_v23, %v301_v37 }
  0x24   : > { %v389_v2 = vsel %vm368_vm0, %v387_v56, %v388_v57  ;;  %v403_v7 = vadd.f32 %v377_v12, %v1450_v38  ;;  %v404_v3 = vadd.f32 %v380_v26, %v1452_v39  ;;  %v405_v4 = vadd.f32 %v383_v55, %v304_v43 }
  0x25   : > { %v392_v10 = vsel %vm368_vm0, %v390_v58, %v391_v61  ;;  %v406_v36 = vadd.f32 %v386_v60, %v1463_v44  ;;  %v407_v37 = vadd.f32 %v389_v2, %v1465_v45  ;;  %v417_v6 = vunpack.c.l.bf16 %v409_v31 }
  0x26   : > { %v408_v11 = vadd.f32 %v392_v10, %v1467_v46  ;;  %v418_v15 = vunpack.c.l.bf16 %v410_v32  ;;  %v419_v16 = vunpack.c.l.bf16 %v411_v59  ;;  %v420_v17 = vunpack.c.l.bf16 %v412_v0  ;;  %v1200_v0 = vld [vmem:[%s1417_s24 + $0x8] ss:$8 sps:$4 sm:$0xff]  }
  0x27   : > { %v421_v22 = vunpack.c.l.bf16 %v413_v1  ;;  %v422_v38 = vunpack.c.l.bf16 %v414_v8  ;;  %v423_v23 = vunpack.c.l.bf16 %v415_v5  ;;  %v424_v39 = vunpack.c.l.bf16 %v416_v9  ;;  %v1202_v9 = vld [vmem:[%s1417_s24 + $0x18] ss:$8 sps:$4 sm:$0xff]  }
  0x28   : > { %v429_v43 = vmul.f32 %v1419_v13, %v417_v6  ;;  %v430_v24 = vmul.f32 %v1419_v13, %v324_v47  ;;  %v431_v44 = vmul.f32 %v1419_v13, %v418_v15  ;;  %v432_v45 = vmul.f32 %v1419_v13, %v325_v48 }
  0x29   : > { %v433_v46 = vmul.f32 %v1419_v13, %v419_v16  ;;  %v434_v25 = vmul.f32 %v1419_v13, %v326_v49  ;;  %v435_v12 = vmul.f32 %v1419_v13, %v420_v17  ;;  %v436_v27 = vmul.f32 %v1419_v13, %v327_v50  ;;  %v1204_v17 = vld [vmem:[%s1417_s24 + $0x28] ss:$8 sps:$4 sm:$0xff]  }
  0x2a   : > { %v437_v47 = vmul.f32 %v1419_v13, %v421_v22  ;;  %v438_v28 = vmul.f32 %v1419_v13, %v328_v51  ;;  %v439_v48 = vmul.f32 %v1419_v13, %v422_v38  ;;  %v440_v33 = vmul.f32 %v1419_v13, %v329_v52  ;;  %v1206_v22 = vld [vmem:[%s1417_s24 + $0x38] ss:$8 sps:$4 sm:$0xff]  }
  0x2b   : > { %v441_v49 = vmul.f32 %v1419_v13, %v423_v23  ;;  %v442_v34 = vmul.f32 %v1419_v13, %v330_v53  ;;  %v443_v50 = vmul.f32 %v1419_v13, %v424_v39  ;;  %v444_v35 = vmul.f32 %v1419_v13, %v331_v54 }
  0x2c   : > { %v462_v26 = vrot.slane %v429_v43, 2  ;;  %v463_v51 = vrot.slane %v430_v24, 2  ;;  %v465_v29 = vrot.slane %v431_v44, 2  ;;  %v466_v30 = vrot.slane %v432_v45, 2 }
  0x2d   : > { %v468_v31 = vrot.slane %v433_v46, 2  ;;  %v469_v40 = vrot.slane %v434_v25, 2  ;;  %v471_v52 = vrot.slane %v435_v12, 2  ;;  %v472_v32 = vrot.slane %v436_v27, 2  ;;  %v1572_v12 = vld [vmem:[%s1417_s24 + $0x14] sm:$0x1] }
  0x2e   : > { %v464_v55 = vsel %vm461_vm1, %v462_v26, %v463_v51  ;;  %v467_v41 = vsel %vm461_vm1, %v465_v29, %v466_v30  ;;  %v474_v53 = vrot.slane %v437_v47, 2  ;;  %v475_v56 = vrot.slane %v438_v28, 2  ;;  %v1592_v29 = vld [vmem:[%s1417_s24 + $0x34] sm:$0x1]  ;;  %v1595_v30 = vld [vmem:[%s1417_s24 + $0x3c] sm:$0x1] }
  0x2f   : > { %v470_v42 = vsel %vm461_vm1, %v468_v31, %v469_v40  ;;  %v473_v13 = vsel %vm461_vm1, %v471_v52, %v472_v32  ;;  %v477_v54 = vrot.slane %v439_v48, 2  ;;  %v478_v57 = vrot.slane %v440_v33, 2  ;;  %v1579_v33 = vld [vmem:[%s1417_s24 + $0x1c] sm:$0x1]  ;;  %v1598_v31 = vld [vmem:[%s1417_s24 + $0x44] sm:$0x1] }
  0x30   : > { %v476_v58 = vsel %vm461_vm1, %v474_v53, %v475_v56  ;;  %v480_v59 = vrot.slane %v441_v49, 2  ;;  %v481_v60 = vrot.slane %v442_v34, 2  ;;  %v483_v61 = vrot.slane %v443_v50, 2  ;;  %v1582_v49 = vld [vmem:[%s1417_s24 + $0x24] sm:$0x1] }
  0x31   : > { %v479_v1 = vsel %vm461_vm1, %v477_v54, %v478_v57  ;;  %v484_v2 = vrot.slane %v444_v35, 2  ;;  %v494_v8 = vadd.f32 %v464_v55, %v1502_v62  ;;  %v495_v5 = vadd.f32 %v467_v41, %v1504_v63  ;;  %v1585_v34 = vld [vmem:[%s1417_s24 + $0x2c] sm:$0x1] }
  0x32   : > { %v482_v10 = vsel %vm461_vm1, %v480_v59, %v481_v60  ;;  %v496_v6 = vadd.f32 %v470_v42, %v403_v7  ;;  %v497_v15 = vadd.f32 %v473_v13, %v404_v3  ;;  %v498_v16 = vadd.f32 %v476_v58, %v405_v4 }
  0x33   : > { %v485_v38 = vsel %vm461_vm1, %v483_v61, %v484_v2  ;;  %v499_v23 = vadd.f32 %v479_v1, %v406_v36  ;;  %v500_v39 = vadd.f32 %v482_v10, %v407_v37  ;;  %v511_v43 = vunpack.c.l.bf16 %v1200_v0 }
  0x34   : > { %v501_v24 = vadd.f32 %v485_v38, %v408_v11  ;;  %v512_v44 = vunpack.c.h.bf16 %v1200_v0  ;;  %v513_v62 = vunpack.c.l.bf16 %v1202_v9  ;;  %v514_v63 = vunpack.c.h.bf16 %v1202_v9  ;;  %v1569_v11 = vld [vmem:[%s1417_s24 + $0xc] sm:$0x1] }
  0x35   : > { %v515_v45 = vunpack.c.l.bf16 %v1204_v17  ;;  %v516_v7 = vunpack.c.h.bf16 %v1204_v17  ;;  %v517_v3 = vunpack.c.l.bf16 %v1206_v22  ;;  %v518_v4 = vunpack.c.h.bf16 %v1206_v22 }
  0x36   : > { %v523_v46 = vmul.f32 %v1421_v14, %v511_v43  ;;  %v524_v25 = vmul.f32 %v1421_v14, %v512_v44  ;;  %v525_v36 = vmul.f32 %v1421_v14, %v513_v62  ;;  %v526_v37 = vmul.f32 %v1421_v14, %v514_v63 }
  0x37   : > { %v527_v27 = vmul.f32 %v1421_v14, %v515_v45  ;;  %v528_v47 = vmul.f32 %v1421_v14, %v516_v7  ;;  %v529_v28 = vmul.f32 %v1421_v14, %v517_v3  ;;  %v530_v48 = vmul.f32 %v1421_v14, %v518_v4 }
  0x38   : > { %v531_v50 = vadd.f32 %v523_v46, %v494_v8  ;;  %v532_v35 = vadd.f32 %v524_v25, %v495_v5  ;;  %v1587_v26 = vadd.f32 %v525_v36, %v496_v6  ;;  %v1589_v51 = vadd.f32 %v526_v37, %v497_v15  ;;  %v1216_v37 = vld [vmem:[%s1417_s24 + $0x8] sm:$0xe] }
  0x39   : > { %v535_v40 = vadd.f32 %v527_v27, %v498_v16  ;;  %v1600_v14 = vadd.f32 %v528_v47, %v499_v23  ;;  %v1602_v52 = vadd.f32 %v529_v28, %v500_v39  ;;  %v1604_v32 = vadd.f32 %v530_v48, %v501_v24  ;;  %v1217_v27 = vld [vmem:[%s1417_s24 + $0x10] sm:$0xe] }
  0x3a   : > { %v547_v55 = vunpack.c.l.bf16 %v1569_v11  ;;  %v548_v41 = vunpack.c.l.bf16 %v1572_v12  ;;  %v549_v53 = vunpack.c.l.bf16 %v1579_v33  ;;  %v550_v56 = vunpack.c.l.bf16 %v1582_v49 }
  0x3b   : > { %v551_v42 = vunpack.c.l.bf16 %v1585_v34  ;;  %v552_v13 = vunpack.c.l.bf16 %v1592_v29  ;;  %v553_v54 = vunpack.c.l.bf16 %v1595_v30  ;;  %v554_v57 = vunpack.c.l.bf16 %v1598_v31 }
  0x3c   : > { %v559_v58 = vmul.f32 %v1426_v18, %v511_v43  ;;  %v560_v59 = vmul.f32 %v1426_v18, %v547_v55  ;;  %v561_v60 = vmul.f32 %v1426_v18, %v512_v44  ;;  %v562_v61 = vmul.f32 %v1426_v18, %v548_v41 }
  0x3d   : > { %v563_v0 = vmul.f32 %v1426_v18, %v513_v62  ;;  %v564_v1 = vmul.f32 %v1426_v18, %v549_v53  ;;  %v565_v2 = vmul.f32 %v1426_v18, %v514_v63  ;;  %v566_v8 = vmul.f32 %v1426_v18, %v550_v56 }
  0x3e   : > { %v567_v5 = vmul.f32 %v1426_v18, %v515_v45  ;;  %v568_v9 = vmul.f32 %v1426_v18, %v551_v42  ;;  %v569_v10 = vmul.f32 %v1426_v18, %v516_v7  ;;  %v570_v6 = vmul.f32 %v1426_v18, %v552_v13 }
  0x3f   : > { %v571_v15 = vmul.f32 %v1426_v18, %v517_v3  ;;  %v572_v16 = vmul.f32 %v1426_v18, %v553_v54  ;;  %v573_v17 = vmul.f32 %v1426_v18, %v518_v4  ;;  %v574_v22 = vmul.f32 %v1426_v18, %v554_v57 }
  0x40   : > { %v591_v38 = vrot.slane %v559_v58, 1  ;;  %v592_v23 = vrot.slane %v560_v59, 1  ;;  %v594_v39 = vrot.slane %v561_v60, 1  ;;  %v595_v43 = vrot.slane %v562_v61, 1  ;;  %v1218_v59 = vld [vmem:[%s1417_s24 + $0x18] sm:$0xe] }
  0x41   : > { %v597_v24 = vrot.slane %v563_v0, 1  ;;  %v598_v44 = vrot.slane %v564_v1, 1  ;;  %v600_v62 = vrot.slane %v565_v2, 1  ;;  %v601_v63 = vrot.slane %v566_v8, 1  ;;  %v1219_v2 = vld [vmem:[%s1417_s24 + $0x20] sm:$0xe] }
  0x42   : > { %v593_v45 = vsel %vm368_vm0, %v591_v38, %v592_v23  ;;  %v596_v7 = vsel %vm368_vm0, %v594_v39, %v595_v43  ;;  %v603_v3 = vrot.slane %v567_v5, 1  ;;  %v604_v4 = vrot.slane %v568_v9, 1  ;;  %v1220_v8 = vld [vmem:[%s1417_s24 + $0x28] sm:$0xe]  ;;  %v1221_v38 = vld [vmem:[%s1417_s24 + $0x30] sm:$0xe] }
  0x43   : > { %v599_v18 = vsel %vm368_vm0, %v597_v24, %v598_v44  ;;  %v602_v46 = vsel %vm368_vm0, %v600_v62, %v601_v63  ;;  %v606_v25 = vrot.slane %v569_v10, 1  ;;  %v607_v36 = vrot.slane %v570_v6, 1  ;;  %v1223_v23 = vld [vmem:[%s1417_s24 + $0x40] sm:$0xe] }
  0x44   : > { %v605_v47 = vsel %vm368_vm0, %v603_v3, %v604_v4  ;;  %v609_v28 = vrot.slane %v571_v15, 1  ;;  %v610_v48 = vrot.slane %v572_v16, 1  ;;  %v612_v58 = vrot.slane %v573_v17, 1  ;;  %v1222_v15 = vld [vmem:[%s1417_s24 + $0x38] sm:$0xe] }
  0x45   : > { %v608_v60 = vsel %vm368_vm0, %v606_v25, %v607_v36  ;;  %v613_v61 = vrot.slane %v574_v22, 1  ;;  %v623_v0 = vadd.f32 %v593_v45, %v531_v50  ;;  %v624_v1 = vadd.f32 %v596_v7, %v532_v35 }
  0x46   : > { %v611_v5 = vsel %vm368_vm0, %v609_v28, %v610_v48  ;;  %v625_v9 = vadd.f32 %v599_v18, %v1587_v26  ;;  %v626_v10 = vadd.f32 %v602_v46, %v1589_v51  ;;  %v627_v6 = vadd.f32 %v605_v47, %v535_v40 }
  0x47   : > { %v614_v16 = vsel %vm368_vm0, %v612_v58, %v613_v61  ;;  %v628_v17 = vadd.f32 %v608_v60, %v1600_v14  ;;  %v629_v22 = vadd.f32 %v611_v5, %v1602_v52  ;;  %v639_v50 = vunpack.c.l.bf16 %v1216_v37  ;;  %v1226_v5 = vld [vmem:[%s1417_s24 + $0x20] ss:$8 sps:$4 sm:$0xff]  }
  0x48   : > { %v630_v35 = vadd.f32 %v614_v16, %v1604_v32  ;;  %v640_v39 = vunpack.c.l.bf16 %v1217_v27  ;;  %v641_v43 = vunpack.c.l.bf16 %v1218_v59  ;;  %v642_v24 = vunpack.c.l.bf16 %v1219_v2  ;;  %v1224_v59 = vld [vmem:[%s1417_s24 + $0x10] ss:$8 sps:$4 sm:$0xff]  }
  0x49   : > { %v643_v44 = vunpack.c.l.bf16 %v1220_v8  ;;  %v644_v26 = vunpack.c.l.bf16 %v1221_v38  ;;  %v645_v62 = vunpack.c.l.bf16 %v1222_v15  ;;  %v646_v51 = vunpack.c.l.bf16 %v1223_v23 }
  0x4a   : > { %v651_v40 = vmul.f32 %v1428_v19, %v639_v50  ;;  %v652_v63 = vmul.f32 %v1428_v19, %v547_v55  ;;  %v653_v14 = vmul.f32 %v1428_v19, %v640_v39  ;;  %v654_v52 = vmul.f32 %v1428_v19, %v548_v41  ;;  %v1228_v50 = vld [vmem:[%s1417_s24 + $0x30] ss:$8 sps:$4 sm:$0xff]   ;;  %v1230_v39 = vld [vmem:[%s1417_s24 + $0x40] ss:$8 sps:$4 sm:$0xff]  }
  0x4b   : > { %v655_v32 = vmul.f32 %v1428_v19, %v641_v43  ;;  %v656_v45 = vmul.f32 %v1428_v19, %v549_v53  ;;  %v657_v7 = vmul.f32 %v1428_v19, %v642_v24  ;;  %v658_v11 = vmul.f32 %v1428_v19, %v550_v56 }
  0x4c   : > { %v659_v55 = vmul.f32 %v1428_v19, %v643_v44  ;;  %v660_v12 = vmul.f32 %v1428_v19, %v551_v42  ;;  %v661_v41 = vmul.f32 %v1428_v19, %v644_v26  ;;  %v662_v33 = vmul.f32 %v1428_v19, %v552_v13 }
  0x4d   : > { %v663_v53 = vmul.f32 %v1428_v19, %v645_v62  ;;  %v664_v49 = vmul.f32 %v1428_v19, %v553_v54  ;;  %v665_v56 = vmul.f32 %v1428_v19, %v646_v51  ;;  %v666_v34 = vmul.f32 %v1428_v19, %v554_v57 }
  0x4e   : > { %v683_v3 = vrot.slane %v651_v40, 2  ;;  %v684_v42 = vrot.slane %v652_v63, 2  ;;  %v686_v4 = vrot.slane %v653_v14, 2  ;;  %v687_v18 = vrot.slane %v654_v52, 2  ;;  %v1719_v52 = vld [vmem:[%s1417_s24 + $0x1c] sm:$0x1] }
  0x4f   : > { %v689_v46 = vrot.slane %v655_v32, 2  ;;  %v690_v29 = vrot.slane %v656_v45, 2  ;;  %v692_v13 = vrot.slane %v657_v7, 2  ;;  %v693_v25 = vrot.slane %v658_v11, 2 }
  0x50   : > { %v685_v36 = vsel %vm461_vm1, %v683_v3, %v684_v42  ;;  %v688_v30 = vsel %vm461_vm1, %v686_v4, %v687_v18  ;;  %v695_v54 = vrot.slane %v659_v55, 2  ;;  %v696_v37 = vrot.slane %v660_v12, 2  ;;  %v1726_v55 = vld [vmem:[%s1417_s24 + $0x24] sm:$0x1]  ;;  %v1729_v12 = vld [vmem:[%s1417_s24 + $0x2c] sm:$0x1] }
  0x51   : > { %v691_v31 = vsel %vm461_vm1, %v689_v46, %v690_v29  ;;  %v694_v19 = vsel %vm461_vm1, %v692_v13, %v693_v25  ;;  %v698_v57 = vrot.slane %v661_v41, 2  ;;  %v699_v27 = vrot.slane %v662_v33, 2  ;;  %v1732_v41 = vld [vmem:[%s1417_s24 + $0x34] sm:$0x1]  ;;  %v1742_v3 = vld [vmem:[%s1417_s24 + $0x44] sm:$0x1] }
  0x52   : > { %v697_v47 = vsel %vm461_vm1, %v695_v54, %v696_v37  ;;  %v701_v28 = vrot.slane %v663_v53, 2  ;;  %v702_v48 = vrot.slane %v664_v49, 2  ;;  %v704_v58 = vrot.slane %v665_v56, 2  ;;  %v1745_v42 = vld [vmem:[%s1417_s24 + $0x4c] sm:$0x1] }
  0x53   : > { %v700_v60 = vsel %vm461_vm1, %v698_v57, %v699_v27  ;;  %v705_v61 = vrot.slane %v666_v34, 2  ;;  %v715_v2 = vadd.f32 %v685_v36, %v623_v0  ;;  %v716_v8 = vadd.f32 %v688_v30, %v624_v1  ;;  %v1739_v34 = vld [vmem:[%s1417_s24 + $0x3c] sm:$0x1] }
  0x54   : > { %v703_v38 = vsel %vm461_vm1, %v701_v28, %v702_v48  ;;  %v717_v15 = vadd.f32 %v691_v31, %v625_v9  ;;  %v718_v23 = vadd.f32 %v694_v19, %v626_v10  ;;  %v719_v16 = vadd.f32 %v697_v47, %v627_v6 }
  0x55   : > { %v706_v43 = vsel %vm461_vm1, %v704_v58, %v705_v61  ;;  %v720_v24 = vadd.f32 %v700_v60, %v628_v17  ;;  %v721_v44 = vadd.f32 %v703_v38, %v629_v22  ;;  %v732_v26 = vunpack.c.l.bf16 %v1224_v59 }
  0x56   : > { %v722_v62 = vadd.f32 %v706_v43, %v630_v35  ;;  %v733_v51 = vunpack.c.h.bf16 %v1224_v59  ;;  %v734_v40 = vunpack.c.l.bf16 %v1226_v5  ;;  %v735_v0 = vunpack.c.h.bf16 %v1226_v5  ;;  %v1716_v35 = vld [vmem:[%s1417_s24 + $0x14] sm:$0x1] }
  0x57   : > { %v736_v1 = vunpack.c.l.bf16 %v1228_v50  ;;  %v737_v9 = vunpack.c.h.bf16 %v1228_v50  ;;  %v738_v10 = vunpack.c.l.bf16 %v1230_v39  ;;  %v739_v6 = vunpack.c.h.bf16 %v1230_v39 }
  0x58   : > { %v744_v63 = vmul.f32 %v1430_v20, %v732_v26  ;;  %v745_v14 = vmul.f32 %v1430_v20, %v733_v51  ;;  %v746_v17 = vmul.f32 %v1430_v20, %v734_v40  ;;  %v747_v22 = vmul.f32 %v1430_v20, %v735_v0 }
  0x59   : > { %v748_v32 = vmul.f32 %v1430_v20, %v736_v1  ;;  %v749_v45 = vmul.f32 %v1430_v20, %v737_v9  ;;  %v750_v7 = vmul.f32 %v1430_v20, %v738_v10  ;;  %v751_v11 = vmul.f32 %v1430_v20, %v739_v6 }
  0x5a   : > { %v752_v33 = vadd.f32 %v744_v63, %v715_v2  ;;  %v753_v53 = vadd.f32 %v745_v14, %v716_v8  ;;  %v1734_v49 = vadd.f32 %v746_v17, %v717_v15  ;;  %v1736_v56 = vadd.f32 %v747_v22, %v718_v23  ;;  %v1240_v63 = vld [vmem:[%s1417_s24 + $0x10] sm:$0xe]  ;;  %v1241_v14 = vld [vmem:[%s1417_s24 + $0x18] sm:$0xe] }
  0x5b   : > { %v756_v4 = vadd.f32 %v748_v32, %v719_v16  ;;  %v1747_v20 = vadd.f32 %v749_v45, %v720_v24  ;;  %v1749_v18 = vadd.f32 %v750_v7, %v721_v44  ;;  %v1751_v46 = vadd.f32 %v751_v11, %v722_v62  ;;  %v1242_v7 = vld [vmem:[%s1417_s24 + $0x20] sm:$0xe] }
  0x5c   : > { %v768_v29 = vunpack.c.l.bf16 %v1716_v35  ;;  %v769_v13 = vunpack.c.l.bf16 %v1719_v52  ;;  %v770_v25 = vunpack.c.l.bf16 %v1726_v55  ;;  %v771_v36 = vunpack.c.l.bf16 %v1729_v12 }
  0x5d   : > { %v772_v30 = vunpack.c.l.bf16 %v1732_v41  ;;  %v773_v54 = vunpack.c.l.bf16 %v1739_v34  ;;  %v774_v37 = vunpack.c.l.bf16 %v1742_v3  ;;  %v775_v31 = vunpack.c.l.bf16 %v1745_v42 }
  0x5e   : > { %v780_v19 = vmul.f32 %v1432_v21, %v732_v26  ;;  %v781_v57 = vmul.f32 %v1432_v21, %v768_v29  ;;  %v782_v27 = vmul.f32 %v1432_v21, %v733_v51  ;;  %v783_v47 = vmul.f32 %v1432_v21, %v769_v13 }
  0x5f   : > { %v784_v28 = vmul.f32 %v1432_v21, %v734_v40  ;;  %v785_v48 = vmul.f32 %v1432_v21, %v770_v25  ;;  %v786_v58 = vmul.f32 %v1432_v21, %v735_v0  ;;  %v787_v59 = vmul.f32 %v1432_v21, %v771_v36 }
  0x60   : > { %v788_v60 = vmul.f32 %v1432_v21, %v736_v1  ;;  %v789_v61 = vmul.f32 %v1432_v21, %v772_v30  ;;  %v790_v2 = vmul.f32 %v1432_v21, %v737_v9  ;;  %v791_v8 = vmul.f32 %v1432_v21, %v773_v54 }
  0x61   : > { %v792_v5 = vmul.f32 %v1432_v21, %v738_v10  ;;  %v793_v38 = vmul.f32 %v1432_v21, %v774_v37  ;;  %v794_v15 = vmul.f32 %v1432_v21, %v739_v6  ;;  %v795_v23 = vmul.f32 %v1432_v21, %v775_v31 }
  0x62   : > { %v812_v16 = vrot.slane %v780_v19, 1  ;;  %v813_v50 = vrot.slane %v781_v57, 1  ;;  %v815_v39 = vrot.slane %v782_v27, 1  ;;  %v816_v43 = vrot.slane %v783_v47, 1  ;;  %v1243_v47 = vld [vmem:[%s1417_s24 + $0x28] sm:$0xe] }
  0x63   : > { %v818_v24 = vrot.slane %v784_v28, 1  ;;  %v819_v44 = vrot.slane %v785_v48, 1  ;;  %v821_v26 = vrot.slane %v786_v58, 1  ;;  %v822_v62 = vrot.slane %v787_v59, 1  ;;  %v1244_v28 = vld [vmem:[%s1417_s24 + $0x30] sm:$0xe] }
  0x64   : > { %v814_v51 = vsel %vm368_vm0, %v812_v16, %v813_v50  ;;  %v817_v40 = vsel %vm368_vm0, %v815_v39, %v816_v43  ;;  %v824_v0 = vrot.slane %v788_v60, 1  ;;  %v825_v1 = vrot.slane %v789_v61, 1  ;;  %v1245_v61 = vld [vmem:[%s1417_s24 + $0x38] sm:$0xe] }
  0x65   : > { %v820_v21 = vsel %vm368_vm0, %v818_v24, %v819_v44  ;;  %v823_v9 = vsel %vm368_vm0, %v821_v26, %v822_v62  ;;  %v827_v10 = vrot.slane %v790_v2, 1  ;;  %v828_v6 = vrot.slane %v791_v8, 1  ;;  %v1246_v2 = vld [vmem:[%s1417_s24 + $0x40] sm:$0xe]  ;;  %v1247_v8 = vld [vmem:[%s1417_s24 + $0x48] sm:$0xe] }
  0x66   : > { %v826_v17 = vsel %vm368_vm0, %v824_v0, %v825_v1  ;;  %v830_v22 = vrot.slane %v792_v5, 1  ;;  %v831_v32 = vrot.slane %v793_v38, 1  ;;  %v833_v45 = vrot.slane %v794_v15, 1  ;;  %v1248_v5 = vld [vmem:[%s1872_s1 + $0x8] ss:$0 sm:$0xff] }
  0x67   : > { %v829_v11 = vsel %vm368_vm0, %v827_v10, %v828_v6  ;;  %v834_v19 = vrot.slane %v795_v23, 1  ;;  %v1802_v57 = vadd.f32 %v814_v51, %v752_v33  ;;  %v1804_v27 = vadd.f32 %v817_v40, %v753_v53 }
  0x68   : > { %v832_v48 = vsel %vm368_vm0, %v830_v22, %v831_v32  ;;  %v846_v58 = vadd.f32 %v820_v21, %v1734_v49  ;;  %v847_v59 = vadd.f32 %v823_v9, %v1736_v56  ;;  %v848_v60 = vadd.f32 %v826_v17, %v756_v4 }
  0x69   : > { %v835_v33 = vsel %vm368_vm0, %v833_v45, %v834_v19  ;;  %v849_v53 = vadd.f32 %v829_v11, %v1747_v20  ;;  %v850_v38 = vadd.f32 %v832_v48, %v1749_v18  ;;  %v860_v15 = vunpack.c.l.bf16 %v1240_v63 }
  0x6a   : > { %v851_v23 = vadd.f32 %v835_v33, %v1751_v46  ;;  %v861_v49 = vunpack.c.l.bf16 %v1241_v14  ;;  %v862_v16 = vunpack.c.l.bf16 %v1242_v7  ;;  %v863_v56 = vunpack.c.l.bf16 %v1243_v47  ;;  %v1249_v14 = vld [vmem:[%s1873_s2] ss:$0 sm:$0xff] }
  0x6b   : > { %v864_v4 = vunpack.c.l.bf16 %v1244_v28  ;;  %v865_v50 = vunpack.c.l.bf16 %v1245_v61  ;;  %v866_v39 = vunpack.c.l.bf16 %v1246_v2  ;;  %v867_v43 = vunpack.c.l.bf16 %v1247_v8 }
  0x6c   : > { %v872_v24 = vmul.f32 %v1248_v5, %v860_v15  ;;  %v873_v44 = vmul.f32 %v1248_v5, %v768_v29  ;;  %v874_v26 = vmul.f32 %v1248_v5, %v861_v49  ;;  %v875_v20 = vmul.f32 %v1248_v5, %v769_v13 }
  0x6d   : > { %v876_v62 = vmul.f32 %v1248_v5, %v862_v16  ;;  %v877_v18 = vmul.f32 %v1248_v5, %v770_v25  ;;  %v878_v46 = vmul.f32 %v1248_v5, %v863_v56  ;;  %v879_v51 = vmul.f32 %v1248_v5, %v771_v36 }
  0x6e   : > { %v880_v40 = vmul.f32 %v1248_v5, %v864_v4  ;;  %v881_v0 = vmul.f32 %v1248_v5, %v772_v30  ;;  %v882_v1 = vmul.f32 %v1248_v5, %v865_v50  ;;  %v883_v35 = vmul.f32 %v1248_v5, %v773_v54 }
  0x6f   : > { %v884_v29 = vmul.f32 %v1248_v5, %v866_v39  ;;  %v885_v52 = vmul.f32 %v1248_v5, %v774_v37  ;;  %v886_v13 = vmul.f32 %v1248_v5, %v867_v43  ;;  %v887_v55 = vmul.f32 %v1248_v5, %v775_v31 }
  0x70   : > { %v904_v25 = vrot.slane %v872_v24, 2  ;;  %v905_v21 = vrot.slane %v873_v44, 2  ;;  %v907_v12 = vrot.slane %v874_v26, 2  ;;  %v908_v36 = vrot.slane %v875_v20, 2 }
  0x71   : > { %v910_v9 = vrot.slane %v876_v62, 2  ;;  %v911_v10 = vrot.slane %v877_v18, 2  ;;  %v913_v41 = vrot.slane %v878_v46, 2  ;;  %v914_v30 = vrot.slane %v879_v51, 2 }
  0x72   : > { %v906_v6 = vsel %vm461_vm1, %v904_v25, %v905_v21  ;;  %v909_v34 = vsel %vm461_vm1, %v907_v12, %v908_v36  ;;  %v916_v54 = vrot.slane %v880_v40, 2  ;;  %v917_v63 = vrot.slane %v881_v0, 2 }
  0x73   : > { %v912_v3 = vsel %vm461_vm1, %v910_v9, %v911_v10  ;;  %v915_v37 = vsel %vm461_vm1, %v913_v41, %v914_v30  ;;  %v919_v42 = vrot.slane %v882_v1, 2  ;;  %v920_v31 = vrot.slane %v883_v35, 2 }
  0x74   : > { %v918_v17 = vsel %vm461_vm1, %v916_v54, %v917_v63  ;;  %v922_v22 = vrot.slane %v884_v29, 2  ;;  %v923_v32 = vrot.slane %v885_v52, 2  ;;  %v925_v45 = vrot.slane %v886_v13, 2 }
  0x75   : > { %v921_v7 = vsel %vm461_vm1, %v919_v42, %v920_v31  ;;  %v926_v11 = vrot.slane %v887_v55, 2  ;;  %v936_v19 = vadd.f32 %v906_v6, %v1802_v57  ;;  %v937_v47 = vadd.f32 %v909_v34, %v1804_v27 }
  0x76   : > { %v924_v28 = vsel %vm461_vm1, %v922_v22, %v923_v32  ;;  %v938_v48 = vadd.f32 %v912_v3, %v846_v58  ;;  %v939_v61 = vadd.f32 %v915_v37, %v847_v59  ;;  %v940_v2 = vadd.f32 %v918_v17, %v848_v60 }
  0x77   : > { %v927_v8 = vsel %vm461_vm1, %v925_v45, %v926_v11  ;;  %v941_v5 = vadd.f32 %v921_v7, %v849_v53  ;;  %v942_v33 = vadd.f32 %v924_v28, %v850_v38  ;;  %v950_v15 = vadd.f32 %v1249_v14, %v936_v19 }
  0x78   : > { %v943_v49 = vadd.f32 %v927_v8, %v851_v23  ;;  %v951_v16 = vadd.f32 %v1249_v14, %v937_v47  ;;  %v952_v56 = vadd.f32 %v1249_v14, %v938_v48  ;;  %v953_v4 = vadd.f32 %v1249_v14, %v939_v61 }
  0x79   : > { %v954_v50 = vadd.f32 %v1249_v14, %v940_v2  ;;  %v955_v39 = vadd.f32 %v1249_v14, %v941_v5  ;;  %v1850_v43 = vadd.f32 %v1249_v14, %v942_v33  ;;  %v1250_v57 = vmul.f32 -1.442695, %v950_v15 }
  0x7a   : > { %v957_v27 = vadd.f32 %v1249_v14, %v943_v49  ;;  %v1251_v24 = vmul.f32 -1.442695, %v951_v16  ;;  %v1252_v44 = vmul.f32 -1.442695, %v952_v56  ;;  %v1253_v58 = vmul.f32 -1.442695, %v953_v4 }
  0x7b   : > { %1309 = vpow2.f32 %v1250_v57  ;;  %v1254_v59 = vmul.f32 -1.442695, %v954_v50  ;;  %v1255_v60 = vmul.f32 -1.442695, %v955_v39  ;;  %v1256_v53 = vmul.f32 -1.442695, %v1850_v43 }
  0x7c   : > { %1311 = vpow2.f32 %v1251_v24  ;;  %v1257_v38 = vmul.f32 -1.442695, %v957_v27 }
  0x7d   : > { %1313 = vpow2.f32 %v1252_v44 }
  0x7e   : > { %1315 = vpow2.f32 %v1253_v58 }
  0x7f   : > { %1317 = vpow2.f32 %v1254_v59 }
  0x80   : > { %1319 = vpow2.f32 %v1255_v60 }
  0x81   : > { %1321 = vpow2.f32 %v1256_v53 }
  0x82   : > { %1323 = vpow2.f32 %v1257_v38 }
  0x88   : > { %v1310_v23 = vpop.eup %1309 }
  0x89   : > { %v1312_v26 = vpop.eup %1311  ;;  %v982_v20 = vadd.f32 1.0, %v1310_v23 }
  0x8a   : > { %v1314_v62 = vpop.eup %1313  ;;  %v983_v18 = vadd.f32 1.0, %v1312_v26 }
  0x8b   : > { %v1316_v46 = vpop.eup %1315  ;;  %v984_v51 = vadd.f32 1.0, %v1314_v62  ;;  %1325 = vrcp.f32 %v982_v20 }
  0x8c   : > { %v1318_v40 = vpop.eup %1317  ;;  %v985_v0 = vadd.f32 1.0, %v1316_v46  ;;  %1327 = vrcp.f32 %v983_v18 }
  0x8d   : > { %v1320_v1 = vpop.eup %1319  ;;  %v986_v35 = vadd.f32 1.0, %v1318_v40  ;;  %1329 = vrcp.f32 %v984_v51 }
  0x8e   : > { %v1322_v29 = vpop.eup %1321  ;;  %v987_v52 = vadd.f32 1.0, %v1320_v1  ;;  %1331 = vrcp.f32 %v985_v0 }
  0x8f   : > { %v1324_v13 = vpop.eup %1323  ;;  %v988_v55 = vadd.f32 1.0, %v1322_v29  ;;  %1333 = vrcp.f32 %v986_v35 }
  0x90   : > { %v989_v25 = vadd.f32 1.0, %v1324_v13  ;;  %1335 = vrcp.f32 %v987_v52 }
  0x91   : > { %1337 = vrcp.f32 %v988_v55 }
  0x92   : > { %1339 = vrcp.f32 %v989_v25 }
  0x98   : > { %v1326_v21 = vpop.eup %1325 }
  0x99   : > { %v1328_v12 = vpop.eup %1327  ;;  %v1006_v36 = vmul.f32 %v1326_v21, %v950_v15 }
  0x9a   : > { %v1330_v9 = vpop.eup %1329  ;;  %v1007_v10 = vmul.f32 %v1328_v12, %v951_v16 }
  0x9b   : > { %v1332_v41 = vpop.eup %1331  ;;  %v1008_v30 = vmul.f32 %v1330_v9, %v952_v56 }
  0x9c   : > { %v1334_v6 = vpop.eup %1333  ;;  %v1009_v34 = vmul.f32 %v1332_v41, %v953_v4  ;;  %v1264_v54 = vpack.c.bf16 %v1007_v10, %v1006_v36  ;;  %v1030_v63 = vadd.f32 %v1007_v10, %v1006_v36 }
  0x9d   : > { %v1336_v3 = vpop.eup %1335  ;;  %v1010_v42 = vmul.f32 %v1334_v6, %v954_v50 }
  0x9e   : > { %v1338_v37 = vpop.eup %1337  ;;  %v1011_v31 = vmul.f32 %v1336_v3, %v955_v39  ;;  %1265 = vst [vmem:[%s270_s6] sm:$0xff] %v1264_v54   ;;  %v1269_v14 = vpack.c.bf16 %v1009_v34, %v1008_v30  ;;  %v1031_v17 = vadd.f32 %v1030_v63, %v1008_v30 }
  0x9f   : > { %v1340_v22 = vpop.eup %1339  ;;  %v1012_v32 = vmul.f32 %v1338_v37, %v1850_v43 }
  0xa0   : > { %v1013_v45 = vmul.f32 %v1340_v22, %v957_v27  ;;  %1281 = vst [vmem:[%s270_s6 + $0x8] sm:$0xff] %v1269_v14   ;;  %v1274_v7 = vpack.c.bf16 %v1011_v31, %v1010_v42  ;;  %v1032_v11 = vadd.f32 %v1031_v17, %v1009_v34 }
  0xa2   : > { %1282 = vst [vmem:[%s270_s6 + $0x10] sm:$0xff] %v1274_v7   ;;  %v1279_v19 = vpack.c.bf16 %v1013_v45, %v1012_v32  ;;  %v1033_v47 = vadd.f32 %v1032_v11, %v1010_v42 }
  0xa4   : > { %1283 = vst [vmem:[%s270_s6 + $0x18] sm:$0xff] %v1279_v19   ;;  %v1034_v28 = vadd.f32 %v1033_v47, %v1011_v31 }
  0xa6   : > { %v1035_v48 = vadd.f32 %v1034_v28, %v1012_v32 }
  0xa8   : > { %v1036_v61 = vadd.f32 %v1035_v48, %v1013_v45 }
  0xaa   : > { %v1037_v2 = vrot.slane %v1036_v61, 4 }
  0xac   : > { %v1038_v8 = vadd.f32 %v1037_v2, %v1036_v61 }
  0xae   : > { %v1039_v5 = vrot.slane %v1038_v8, 2 }
  0xb0   : > { %v1040_v33 = vadd.f32 %v1039_v5, %v1038_v8 }
  0xb2   : > { %v1041_v15 = vrot.slane %v1040_v33, 1 }
  0xb4   : > { %v1042_v49 = vadd.f32 %v1041_v15, %v1040_v33 }
  0xb6   : > { %1043 = vst [vmem:[%s276_s9] sm:$0x1] %v1042_v49 }
  0xb7 PF: > { %s15_s17 = sadd.s32 1, %s1363_s17   ;;  %s1876_s15 = smov %s1359_s16 }
  0xb8   : > { %p12_p5 = scmp.ge.s32.totalorder %s15_s17, 4   ;;  %s1877_s16 = smov %s1879_s18 }
  0xba   :  { %14 = sbr.rel (!%p12_p5) target bundleno = 2 (0x2), region = 82 }

// kernel: _lambda_.18
= control target key start
LH: loop header
LB: loop body
LE: loop exit
PB: predicated region body
PF: predicated region fallthrough
CT: control target
= control target key end

     0   :  { %s698_s12 = smov 0   ;;  %s759_s0 = inlined_call_operand.vmem [shape: bf16[128,128], index: 0, kind: input, shape index: {}]   ;;  %s760_s1 = inlined_call_operand.vmem [shape: bf16[128,128], index: 1, kind: input, shape index: {}]   ;;  %s761_s2 = inlined_call_operand.vmem [shape: f32[1,128], index: 2, kind: input, shape index: {}]   ;;  %s762_s3 = inlined_call_operand.vmem [shape: bf16[128,128], index: 3, kind: output, shape index: {}]  }
   0x1 LB: > { %s495_s13 = sadd.s32 4294967295, %s676_s12   ;;  %p499_p0 = scmp.ge.s32.totalorder %s676_s12, 1  ;;  %s676_s12 = sphi %s698_s12, %s13_s12  }
   0x2   : > { %p138_p1 = scmp.lt.s32.totalorder %s676_s12, 3 }
   0x4   : > { %p139_p2 = pnand %p499_p0, %p138_p1 }
   0x5   : > { %s500_s16 = sshll.u32 (!%p139_p2), %s495_s13, 3 }
   0x6   : > { %142 = sbr.rel (%p139_p2) target bundleno = 283 (0x11b), region = 32  ;;  %p163_p3 = scmp.lt.s32.totalorder (!%p139_p2), %s500_s16, 15 }
   0xb   : > { %v626_v0 = vld [vmem:[%s760_s1 + $0x38] sm:$0xff]   ;;  %v627_v1 = vld [vmem:[%s760_s1 + $0x30] sm:$0xff]   ;;  %s764_s16 = smov (!%p163_p3, %s500_s16), 15  ;;  %v628_v2 = vld [vmem:[%s760_s1 + $0x28] sm:$0xff]  }
   0xc   : > { %578 = vmatprep.subr.bf16.mxu0 %v626_v0  ;;  %602 = vmatprep.subr.bf16.mxu1 %v626_v0  ;;  %s501_s21 = sshll.u32 %s764_s16, 2  ;;  %v629_v3 = vld [vmem:[%s760_s1 + $0x20] sm:$0xff]   ;;  %v630_v6 = vld [vmem:[%s760_s1 + $0x18] sm:$0xff]   ;;  %v631_v7 = vld [vmem:[%s760_s1 + $0x10] sm:$0xff]  }
   0xd   : > { %579 = vmatpush3.bf16.msra.mxu0 %v626_v0  ;;  %610 = vmatpush3.bf16.msra.mxu1 %v626_v0  ;;  %s723_s24 = scalar_lea.vmem %s759_s0, %s501_s21  ;;  %v632_v8 = vld [vmem:[%s760_s1 + $0x8] sm:$0xff]   ;;  %v633_v9 = vld [vmem:[%s760_s1] sm:$0xff]   ;;  %s172_s13 = scalar_lea.vmem %s762_s3, %s501_s21 }
   0xe   : > { %580 = vmatprep.subr.bf16.mxu0 %v627_v1  ;;  %603 = vmatprep.subr.bf16.mxu1 %v627_v1  ;;  %v634_v4 = vld [vmem:[%s723_s24] sm:$0xff]   ;;  %v635_v5 = vld [vmem:[%s723_s24 + $0x10] sm:$0xff]   ;;  %v636_v10 = vld [vmem:[%s723_s24 + $0x8] sm:$0xff]  }
   0xf   : > { %594 = vmatprep.mubr.bf16.mxu0 %v634_v4  ;;  %598 = vmatprep.mubr.bf16.mxu1 %v635_v5  ;;  %v637_v11 = vld [vmem:[%s723_s24 + $0x18] sm:$0xff]   ;;  %v504_v12 = vld [vmem:[%s761_s2] ss:$0 sm:$0xff] }
  0x11   : > { %581 = vmatpush3.bf16.msra.mxu0 %v627_v1  ;;  %611 = vmatpush3.bf16.msra.mxu1 %v627_v1 }
  0x12   : > { %582 = vmatprep.subr.bf16.mxu0 %v628_v2  ;;  %604 = vmatprep.subr.bf16.mxu1 %v628_v2 }
  0x15   : > { %583 = vmatpush3.bf16.msra.mxu0 %v628_v2  ;;  %612 = vmatpush3.bf16.msra.mxu1 %v628_v2 }
  0x16   : > { %584 = vmatprep.subr.bf16.mxu0 %v629_v3  ;;  %605 = vmatprep.subr.bf16.mxu1 %v629_v3 }
  0x19   : > { %585 = vmatpush3.bf16.msra.mxu0 %v629_v3  ;;  %613 = vmatpush3.bf16.msra.mxu1 %v629_v3 }
  0x1a   : > { %586 = vmatprep.subr.bf16.mxu0 %v630_v6  ;;  %606 = vmatprep.subr.bf16.mxu1 %v630_v6 }
  0x1d   : > { %587 = vmatpush3.bf16.msra.mxu0 %v630_v6  ;;  %614 = vmatpush3.bf16.msra.mxu1 %v630_v6 }
  0x1e   : > { %588 = vmatprep.subr.bf16.mxu0 %v631_v7  ;;  %607 = vmatprep.subr.bf16.mxu1 %v631_v7 }
  0x21   : > { %589 = vmatpush3.bf16.msra.mxu0 %v631_v7  ;;  %615 = vmatpush3.bf16.msra.mxu1 %v631_v7 }
  0x22   : > { %590 = vmatprep.subr.bf16.mxu0 %v632_v8  ;;  %608 = vmatprep.subr.bf16.mxu1 %v632_v8 }
  0x25   : > { %591 = vmatpush3.bf16.msra.mxu0 %v632_v8  ;;  %616 = vmatpush3.bf16.msra.mxu1 %v632_v8 }
  0x26   : > { %592 = vmatprep.subr.bf16.mxu0 %v633_v9  ;;  %609 = vmatprep.subr.bf16.mxu1 %v633_v9 }
  0x29   : > { %593 = vmatpush3.bf16.msra.mxu0 %v633_v9  ;;  %617 = vmatpush3.bf16.msra.mxu1 %v633_v9 }
  0x2c   : > { %595 = vmatmul.mubr.bf16.vlgmr.msra.gmra.mxu0 %v636_v10  ;;  %599 = vmatmul.mubr.bf16.vlgmr.msra.gmra.mxu1 %v637_v11 }
  0xec   : > { %v596_v13 = vpop.f32.mrf.mxu0  ;;  %v600_v14 = vpop.f32.mrf.mxu1 }
  0xed   : > { %v321_v15 = vadd.f32 %v596_v13, %v504_v12  ;;  %v337_v16 = vadd.f32 %v600_v14, %v504_v12 }
  0xee   : > { %v312_v17 = vpop.f32.mrf.mxu0  ;;  %v328_v18 = vpop.f32.mrf.mxu1 }
  0xef   : > { %v519_v19 = vmul.f32 -1.442695, %v321_v15  ;;  %v523_v20 = vmul.f32 -1.442695, %v337_v16  ;;  %v313_v21 = vadd.f32 %v504_v12, %v312_v17  ;;  %v747_v22 = vadd.f32 %v504_v12, %v328_v18 }
  0xf0   : > { %v597_v23 = vpop.f32.mrf.mxu0  ;;  %v601_v24 = vpop.f32.mrf.mxu1 }
  0xf1   : > { %638 = vpow2.f32 %v519_v19  ;;  %v517_v25 = vmul.f32 -1.442695, %v313_v21  ;;  %v521_v26 = vmul.f32 -1.442695, %v747_v22  ;;  %v324_v27 = vadd.f32 %v597_v23, %v504_v12 }
  0xf2   : > { %640 = vpow2.f32 %v523_v20  ;;  %v340_v28 = vadd.f32 %v601_v24, %v504_v12  ;;  %v315_v29 = vpop.f32.mrf.mxu0  ;;  %v331_v30 = vpop.f32.mrf.mxu1 }
  0xf3   : > { %642 = vpow2.f32 %v517_v25  ;;  %v520_v31 = vmul.f32 -1.442695, %v324_v27  ;;  %v316_v32 = vadd.f32 %v504_v12, %v315_v29  ;;  %v332_v33 = vadd.f32 %v504_v12, %v331_v30 }
  0xf4   : > { %644 = vpow2.f32 %v521_v26  ;;  %v524_v34 = vmul.f32 -1.442695, %v340_v28 }
  0xf5   : > { %646 = vpow2.f32 %v520_v31  ;;  %v518_v35 = vmul.f32 -1.442695, %v316_v32  ;;  %v522_v36 = vmul.f32 -1.442695, %v332_v33 }
  0xf6   : > { %648 = vpow2.f32 %v524_v34 }
  0xf7   : > { %650 = vpow2.f32 %v518_v35 }
  0xf8   : > { %652 = vpow2.f32 %v522_v36 }
  0xfe   : > { %v639_v37 = vpop.eup %638 }
  0xff   : > { %v641_v38 = vpop.eup %640  ;;  %v369_v39 = vadd.f32 1.0, %v639_v37 }
 0x100   : > { %v643_v40 = vpop.eup %642  ;;  %v373_v41 = vadd.f32 1.0, %v641_v38 }
 0x101   : > { %v645_v42 = vpop.eup %644  ;;  %654 = vrcp.f32 %v369_v39  ;;  %v367_v43 = vadd.f32 1.0, %v643_v40 }
 0x102   : > { %v647_v44 = vpop.eup %646  ;;  %656 = vrcp.f32 %v373_v41  ;;  %v371_v45 = vadd.f32 1.0, %v645_v42 }
 0x103   : > { %v649_v46 = vpop.eup %648  ;;  %658 = vrcp.f32 %v367_v43  ;;  %v370_v47 = vadd.f32 1.0, %v647_v44 }
 0x104   : > { %v651_v48 = vpop.eup %650  ;;  %660 = vrcp.f32 %v371_v45  ;;  %v374_v49 = vadd.f32 1.0, %v649_v46 }
 0x105   : > { %v653_v50 = vpop.eup %652  ;;  %662 = vrcp.f32 %v370_v47  ;;  %v368_v51 = vadd.f32 1.0, %v651_v48 }
 0x106   : > { %664 = vrcp.f32 %v374_v49  ;;  %v372_v52 = vadd.f32 1.0, %v653_v50 }
 0x107   : > { %666 = vrcp.f32 %v368_v51 }
 0x108   : > { %668 = vrcp.f32 %v372_v52 }
 0x10e   : > { %v655_v53 = vpop.eup %654 }
 0x10f   : > { %v657_v54 = vpop.eup %656  ;;  %v393_v59 = vmul.f32 %v655_v53, %v321_v15 }
 0x110   : > { %v659_v55 = vpop.eup %658  ;;  %v397_v62 = vmul.f32 %v657_v54, %v337_v16 }
 0x111   : > { %v661_v56 = vpop.eup %660  ;;  %v391_v1 = vmul.f32 %v659_v55, %v313_v21 }
 0x112   : > { %v663_v57 = vpop.eup %662  ;;  %v395_v4 = vmul.f32 %v661_v56, %v747_v22 }
 0x113   : > { %v665_v58 = vpop.eup %664  ;;  %v394_v60 = vmul.f32 %v663_v57, %v324_v27 }
 0x114   : > { %v667_v61 = vpop.eup %666  ;;  %v398_v63 = vmul.f32 %v665_v58, %v340_v28 }
 0x115   : > { %v669_v0 = vpop.eup %668  ;;  %v551_v2 = vpack.c.bf16 %v394_v60, %v393_v59  ;;  %v392_v3 = vmul.f32 %v667_v61, %v316_v32 }
 0x116   : > { %v561_v5 = vpack.c.bf16 %v398_v63, %v397_v62  ;;  %v396_v6 = vmul.f32 %v669_v0, %v332_v33 }
 0x117   : > { %563 = vst [vmem:[%s172_s13 + $0x8] sm:$0xff] %v551_v2   ;;  %v546_v7 = vpack.c.bf16 %v392_v3, %v391_v1 }
 0x118   : > { %565 = vst [vmem:[%s172_s13 + $0x18] sm:$0xff] %v561_v5   ;;  %v556_v8 = vpack.c.bf16 %v396_v6, %v395_v4 }
 0x119   : > { %547 = vst [vmem:[%s172_s13] sm:$0xff] %v546_v7  }
 0x11a   : > { %564 = vst [vmem:[%s172_s13 + $0x10] sm:$0xff] %v556_v8  }
 0x11b PF: > { %s13_s12 = sadd.s32 1, %s676_s12  }
 0x11c   : > { %p10_p4 = scmp.ge.s32.totalorder %s13_s12, 4  }
 0x11e   :  { %12 = sbr.rel (!%p10_p4) target bundleno = 1 (0x1), region = 62 }

// kernel: _lambda_.21
= control target key start
LH: loop header
LB: loop body
LE: loop exit
PB: predicated region body
PF: predicated region fallthrough
CT: control target
= control target key end

     0   :  { %s629_s15 = smov 0   ;;  %s631_s16 = smov 0   ;;  %s714_s0 = inlined_call_operand.vmem [shape: bf16[2,16,128], index: 0, kind: input, shape index: {}]   ;;  %s715_s1 = inlined_call_operand.vmem [shape: f32[2,1,128], index: 1, kind: input, shape index: {}]   ;;  %s716_s2 = inlined_call_operand.vmem [shape: bf16[128,128], index: 2, kind: input, shape index: {}]   ;;  %s717_s3 = inlined_call_operand.vmem [shape: f32[1,128], index: 3, kind: input, shape index: {}]   ;;  %s718_s4 = inlined_call_operand.vmem [shape: bf16[2,16,128], index: 4, kind: output, shape index: {}]  }
   0x1   :  { %s633_s17 = smov 0   ;;  %s635_s18 = smov 0  }
   0x2   :  { %s637_s19 = smov 0  }
   0x3 LB: > { %s23_s20 = sadd.s32 1, %s592_s17  ;;  %s26_s21 = sadd.s32 1, %s596_s18  ;;  %s600_s19 = sphi %s637_s19, %s14_s19   ;;  %s596_s18 = sphi %s635_s18, %s722_s18   ;;  %s592_s17 = sphi %s633_s17, %s721_s17   ;;  %s588_s16 = sphi %s631_s16, %s720_s16   ;;  %s584_s15 = sphi %s629_s15, %s719_s15  }
   0x4   : > { %p24_p0 = scmp.ge.s32.totalorder %s23_s20, 2  ;;  %p467_p1 = scmp.ge.s32.totalorder %s600_s19, 1 }
   0x5   : > { %p189_p2 = scmp.lt.s32.totalorder %s600_s19, 5 }
   0x6   : > { %s724_s20 = smov (%p24_p0, %s23_s20), 0  ;;  %s726_s21 = smov (!%p24_p0, %s26_s21), %s596_s18 }
   0x7   : > { %p190_p3 = pnand %p467_p1, %p189_p2  ;;  %p28_p4 = scmp.ge.s32.totalorder %s726_s21, 2 }
   0x8   : > { %p224_p5 = scmp.lt.s32.totalorder (!%p190_p3), %s588_s16, 1  ;;  %p226_p6 = scmp.lt.s32.totalorder (!%p190_p3), %s584_s15, 1 }
   0x9   : > { %s728_s21 = smov (%p28_p4, %s726_s21), 0  ;;  %193 = sbr.rel (%p190_p3) target bundleno = 246 (0xf6), region = 36 }
   0xe   : > { %v554_v0 = vld [vmem:[%s716_s2 + $0x38] sm:$0xff]   ;;  %v602_v1 = vmov 0.0   ;;  %v555_v2 = vld [vmem:[%s716_s2 + $0x30] sm:$0xff]   ;;  %vm603_vm0 = vmmov 0   ;;  %v556_v3 = vld [vmem:[%s716_s2 + $0x28] sm:$0xff]   ;;  %s730_s16 = smov (!%p224_p5, %s588_s16), 1  ;;  %v250_v5 = vlaneseq }
   0xf   : > { %492 = vmatprep.subr.bf16.mxu0 %v602_v1  ;;  %508 = vmatprep.mubr.msk.bf16.mxu0 %vm603_vm0, %v602_v1  ;;  %v557_v4 = vld [vmem:[%s716_s2 + $0x20] sm:$0xff]   ;;  %s234_s6 = scalar_lea.vmem %s715_s1, %s730_s16  ;;  %s732_s15 = smov (!%p226_p6, %s584_s15), 1  ;;  %v558_v6 = vld [vmem:[%s716_s2 + $0x18] sm:$0xff]   ;;  %v559_v10 = vld [vmem:[%s716_s2 + $0x10] sm:$0xff]  }
  0x10   : > { %493 = vmatpush3.bf16.msra.mxu0 %v554_v0  ;;  %s468_s9 = sshll.u32 %s730_s16, 1  ;;  %v245_v7 = vld [vmem:[%s234_s6] sm:$0x1]  ;;  %v251_v9 = vshrl.u32 %v250_v5, 7  ;;  %v560_v13 = vld [vmem:[%s716_s2 + $0x8] sm:$0xff]  }
  0x11   : > { %494 = vmatprep.subr.bf16.mxu0 %v602_v1  ;;  %s229_s10 = sadd.s32 %s468_s9, %s732_s15  ;;  %v246_v8 = vpack.c.bf16 %v245_v7, %v245_v7  ;;  %v561_v15 = vld [vmem:[%s716_s2] sm:$0xff]  }
  0x12   : > { %s469_s13 = sshll.u32 %s229_s10, 2  ;;  %v252_v12 = vsub.s32 0, %v251_v9  ;;  %v472_v18 = vld [vmem:[%s717_s3] ss:$0 sm:$0xff] }
  0x13   : > { %v248_v11 = vpack.i.b16 %v246_v8, %v246_v8  ;;  %s231_s15 = scalar_lea.vmem %s714_s0, %s469_s13  ;;  %s242_s30 = scalar_lea.vmem %s718_s4, %s469_s13 }
  0x14   : > { %495 = vmatpush3.bf16.msra.mxu0 %v555_v2  ;;  %v244_v16 = vld [vmem:[%s231_s15] sm:$0xf] }
  0x15   : > { %496 = vmatprep.subr.bf16.mxu0 %v602_v1  ;;  %v253_v14 = vrot.slane %v248_v11, %v252_v12 }
  0x17   : > { %v254_v17 = vmul.bf16 %v253_v14, %v244_v16 }
  0x18   : > { %497 = vmatpush3.bf16.msra.mxu0 %v556_v3 }
  0x19   : > { %498 = vmatprep.subr.bf16.mxu0 %v602_v1 }
  0x1c   : > { %499 = vmatpush3.bf16.msra.mxu0 %v557_v4 }
  0x1d   : > { %500 = vmatprep.subr.bf16.mxu0 %v602_v1 }
  0x20   : > { %501 = vmatpush3.bf16.msra.mxu0 %v558_v6 }
  0x21   : > { %502 = vmatprep.subr.bf16.mxu0 %v602_v1 }
  0x24   : > { %503 = vmatpush3.bf16.msra.mxu0 %v559_v10 }
  0x25   : > { %504 = vmatprep.subr.bf16.mxu0 %v602_v1 }
  0x28   : > { %505 = vmatpush3.bf16.msra.mxu0 %v560_v13 }
  0x29   : > { %506 = vmatprep.subr.bf16.mxu0 %v602_v1 }
  0x2c   : > { %507 = vmatpush3.bf16.msra.mxu0 %v561_v15 }
  0x2f   : > { %509 = vmatmul.mubr.bf16.vlgmr.msra.gmra.mxu0 %v254_v17 }
  0xef   : > { %v360_v19 = vpop.f32.mrf.mxu0 }
  0xf0   : > { %v361_v20 = vadd.f32 %v472_v18, %v360_v19 }
  0xf1   : > { %v510_v21 = vpop.f32.mrf.mxu0 }
  0xf2   : > { %v366_v22 = vpack.c.bf16 %v361_v20, %v361_v20 }
  0xf3   : > { %v363_v23 = vpop.f32.mrf.mxu0 }
  0xf4   : > { %367 = vst [vmem:[%s242_s30] sm:$0xf] %v366_v22 }
  0xf5   : > { %v511_v24 = vpop.f32.mrf.mxu0 }
  0xf6 PF: > { %s14_s19 = sadd.s32 1, %s600_s19   ;;  %s719_s15 = smov %s592_s17 }
  0xf7   : > { %p11_p7 = scmp.ge.s32.totalorder %s14_s19, 6   ;;  %s720_s16 = smov %s596_s18 }
  0xf8   : > { %s721_s17 = smov %s724_s20  ;;  %s722_s18 = smov %s728_s21 }
  0xf9   :  { %13 = sbr.rel (!%p11_p7) target bundleno = 3 (0x3), region = 69 }

// kernel: _lambda_.19
= control target key start
LH: loop header
LB: loop body
LE: loop exit
PB: predicated region body
PF: predicated region fallthrough
CT: control target
= control target key end

     0   :  { %s669_s15 = smov 0   ;;  %s813_s0 = inlined_call_operand.vmem [shape: bf16[2,5,2,5,256], index: 0, kind: input, shape index: {}]   ;;  %s814_s1 = inlined_call_operand.vmem [shape: f32[9,128], index: 1, kind: input, shape index: {}]   ;;  %s815_s2 = inlined_call_operand.vmem [shape: f32[1,128], index: 2, kind: input, shape index: {}]   ;;  %s816_s3 = inlined_call_operand.vmem [shape: bf16[2,4,4,128], index: 3, kind: output, shape index: {0}]   ;;  %s817_s4 = inlined_call_operand.vmem [shape: f32[2,1,128], index: 4, kind: output, shape index: {1}]  }
   0x1 LB: > { %s570_s16 = sadd.s32 4294967295, %s642_s15   ;;  %p574_p0 = scmp.ge.s32.totalorder %s642_s15, 1  ;;  %s642_s15 = sphi %s669_s15, %s15_s15  }
   0x2   : > { %p165_p1 = scmp.lt.s32.totalorder %s642_s15, 3 }
   0x4   : > { %p166_p2 = pnand %p574_p0, %p165_p1 }
   0x5   : > { %p194_p3 = scmp.lt.s32.totalorder (!%p166_p2), %s570_s16, 1 }
   0x6   : > { %169 = sbr.rel (%p166_p2) target bundleno = 112 (0x70), region = 32 }
   0xb   : > { %v218_v0 = vlaneseq  ;;  %s819_s16 = smov (!%p194_p3, %s570_s16), 1  ;;  %v207_v2 = vld [vmem:[%s814_s1] sm:$0xff]  ;;  %v717_v37 = vld [vmem:[%s814_s1 + $0x8] ss:$0 sm:$0xff]  ;;  %vm474_vm0 = vcmask 1043456  }
   0xc   : > { %s611_s19 = smul.u32 80, %s819_s16  ;;  %s610_s27 = sshll.u32 %s819_s16, 3 }
   0xd   : > { %v219_v1 = vshrl.u32 %v218_v0, 7  ;;  %s203_s30 = scalar_lea.vmem %s816_s3, %s610_s27  ;;  %s206_s7 = scalar_lea.vmem %s817_s4, %s819_s16 }
   0xe   : > { %s686_s22 = scalar_lea.vmem %s813_s0, %s611_s19 }
   0xf   : > { %v220_v3 = vsub.s32 0, %v219_v1  ;;  %v240_v4 = vsub.s32 1, %v219_v1  ;;  %v260_v5 = vsub.s32 2, %v219_v1  ;;  %v293_v6 = vsub.s32 3, %v219_v1  ;;  %v210_v14 = vld [vmem:[%s686_s22] sm:$0x3] }
  0x10   : > { %v313_v7 = vsub.s32 4, %v219_v1  ;;  %v333_v8 = vsub.s32 5, %v219_v1  ;;  %v366_v9 = vsub.s32 6, %v219_v1  ;;  %v386_v13 = vsub.s32 7, %v219_v1  ;;  %v230_v15 = vld [vmem:[%s686_s22 + $0x4] sm:$0x3] }
  0x11   : > { %v688_v10 = vrot.slane %v207_v2, %v220_v3  ;;  %v690_v11 = vrot.slane %v207_v2, %v240_v4  ;;  %v692_v12 = vrot.slane %v207_v2, %v260_v5  ;;  %v250_v16 = vld [vmem:[%s686_s22] sm:$0x7]  ;;  %v697_v17 = vrot.slane %v207_v2, %v293_v6  ;;  %v578_v21 = vld [vmem:[%s686_s22 + $0x8] sm:$0x3]  ;;  %v582_v22 = vld [vmem:[%s686_s22 + $0xc] sm:$0x3] }
  0x12   : > { %v214_v18 = vunpack.c.l.bf16 %v210_v14  ;;  %v234_v19 = vunpack.c.l.bf16 %v230_v15  ;;  %v254_v20 = vunpack.c.l.bf16 %v250_v16  ;;  %v586_v23 = vld [vmem:[%s686_s22 + $0x8] sm:$0x7]  ;;  %v702_v24 = vrot.slane %v207_v2, %v333_v8  ;;  %v590_v29 = vld [vmem:[%s686_s22 + $0x10] sm:$0x3]  ;;  %v594_v34 = vld [vmem:[%s686_s22 + $0x14] sm:$0x3] }
  0x13   : > { %v287_v25 = vunpack.c.l.bf16 %v578_v21  ;;  %v307_v26 = vunpack.c.l.bf16 %v582_v22  ;;  %v704_v27 = vrot.slane %v207_v2, %v313_v7  ;;  %v327_v28 = vunpack.c.l.bf16 %v586_v23  ;;  %v598_v30 = vld [vmem:[%s686_s22 + $0x10] sm:$0x7]  ;;  %v231_v36 = vld [vmem:[%s686_s22 + $0x14] sm:$0x3]  ;;  %v579_v43 = vld [vmem:[%s686_s22 + $0x18] sm:$0x3] }
  0x14   : > { %v222_v31 = vmul.f32 %v688_v10, %v214_v18  ;;  %v242_v32 = vmul.f32 %v690_v11, %v234_v19  ;;  %v262_v33 = vmul.f32 %v692_v12, %v254_v20  ;;  %v211_v35 = vld [vmem:[%s686_s22 + $0x10] sm:$0x3]  ;;  %v360_v39 = vunpack.c.l.bf16 %v590_v29  ;;  %v583_v48 = vld [vmem:[%s686_s22 + $0x1c] sm:$0x3]  ;;  %v587_v49 = vld [vmem:[%s686_s22 + $0x18] sm:$0x7] }
  0x15   : > { %v295_v38 = vmul.f32 %v697_v17, %v287_v25  ;;  %v720_v40 = vrot.slane %v207_v2, %v366_v9  ;;  %v722_v41 = vrot.slane %v207_v2, %v386_v13  ;;  %v251_v42 = vld [vmem:[%s686_s22 + $0x10] sm:$0x7]  ;;  %v335_v46 = vmul.f32 %v702_v24, %v327_v28  ;;  %v591_v62 = vld [vmem:[%s686_s22 + $0x20] sm:$0x3]  ;;  %v232_v5 = vld [vmem:[%s686_s22 + $0x24] sm:$0x3] }
  0x16   : > { %v246_v44 = vadd.f32 %v242_v32, %v222_v31  ;;  %v270_v45 = vrot.slane %v262_v33, 1  ;;  %v400_v47 = vunpack.c.l.bf16 %v598_v30  ;;  %v315_v50 = vmul.f32 %v704_v27, %v307_v26  ;;  %v599_v63 = vld [vmem:[%s686_s22 + $0x20] sm:$0x7]  ;;  %v595_v13 = vld [vmem:[%s686_s22 + $0x24] sm:$0x3] }
  0x17   : > { %v380_v51 = vunpack.c.l.bf16 %v594_v34  ;;  %v215_v52 = vunpack.c.l.bf16 %v211_v35  ;;  %v235_v53 = vunpack.c.l.bf16 %v231_v36  ;;  %v255_v56 = vunpack.c.l.bf16 %v251_v42  ;;  %v212_v4 = vld [vmem:[%s686_s22 + $0x20] sm:$0x3]  ;;  %v580_v20 = vld [vmem:[%s686_s22 + $0x28] sm:$0x3]  ;;  %v584_v26 = vld [vmem:[%s686_s22 + $0x2c] sm:$0x3] }
  0x18   : > { %v278_v54 = vadd.f32 %v270_v45, %v246_v44  ;;  %v731_v55 = vmul.f32 %v717_v37, %v400_v47  ;;  %v288_v57 = vunpack.c.l.bf16 %v579_v43  ;;  %v308_v60 = vunpack.c.l.bf16 %v583_v48  ;;  %v252_v19 = vld [vmem:[%s686_s22 + $0x20] sm:$0x7]  ;;  %v588_v32 = vld [vmem:[%s686_s22 + $0x28] sm:$0x7]  ;;  %v600_v44 = vld [vmem:[%s686_s22 + $0x30] sm:$0x7] }
  0x19   : > { %v223_v58 = vmul.f32 %v688_v10, %v215_v52  ;;  %v243_v59 = vmul.f32 %v690_v11, %v235_v53  ;;  %v328_v61 = vunpack.c.l.bf16 %v587_v49  ;;  %v343_v1 = vrot.slane %v335_v46, 1  ;;  %v213_v49 = vld [vmem:[%s686_s22 + $0x30] sm:$0x3] }
  0x1a   : > { %v299_v0 = vadd.f32 %v295_v38, %v278_v54  ;;  %v368_v2 = vmul.f32 %v720_v40, %v360_v39  ;;  %v263_v3 = vmul.f32 %v692_v12, %v255_v56  ;;  %v388_v6 = vmul.f32 %v722_v41, %v380_v51  ;;  %v592_v54 = vld [vmem:[%s686_s22 + $0x30] sm:$0x3]  ;;  %v764_v56 = vld [vmem:[%s815_s2] ss:$0 sm:$0xff] }
  0x1b   : > { %v416_v7 = vrot.slane %v731_v55, 1  ;;  %v247_v8 = vadd.f32 %v243_v59, %v223_v58  ;;  %v296_v9 = vmul.f32 %v697_v17, %v288_v57  ;;  %v336_v16 = vmul.f32 %v702_v24, %v328_v61  ;;  %v596_v55 = vld [vmem:[%s686_s22 + $0x34] sm:$0x3] }
  0x1c   : > { %v319_v14 = vadd.f32 %v315_v50, %v299_v0  ;;  %v271_v15 = vrot.slane %v263_v3, 1  ;;  %v401_v18 = vunpack.c.l.bf16 %v599_v63  ;;  %v316_v21 = vmul.f32 %v704_v27, %v308_v60  ;;  %v233_v61 = vld [vmem:[%s686_s22 + $0x34] sm:$0x3]  ;;  %v581_v3 = vld [vmem:[%s686_s22 + $0x38] sm:$0x3] }
  0x1d   : > { %v361_v22 = vunpack.c.l.bf16 %v591_v62  ;;  %v216_v23 = vunpack.c.l.bf16 %v212_v4  ;;  %v236_v25 = vunpack.c.l.bf16 %v232_v5  ;;  %v381_v30 = vunpack.c.l.bf16 %v595_v13 }
  0x1e   : > { %v351_v28 = vadd.f32 %v343_v1, %v319_v14  ;;  %v279_v29 = vadd.f32 %v271_v15, %v247_v8  ;;  %v409_v31 = vmul.f32 %v717_v37, %v401_v18  ;;  %v256_v35 = vunpack.c.l.bf16 %v252_v19  ;;  %v589_v18 = vld [vmem:[%s686_s22 + $0x38] sm:$0x7] }
  0x1f   : > { %v224_v33 = vmul.f32 %v688_v10, %v216_v23  ;;  %v244_v34 = vmul.f32 %v690_v11, %v236_v25  ;;  %v289_v36 = vunpack.c.l.bf16 %v580_v20  ;;  %v344_v42 = vrot.slane %v336_v16, 1 }
  0x20   : > { %v372_v38 = vadd.f32 %v368_v2, %v351_v28  ;;  %v300_v39 = vadd.f32 %v296_v9, %v279_v29  ;;  %v309_v43 = vunpack.c.l.bf16 %v584_v26  ;;  %v369_v45 = vmul.f32 %v720_v40, %v361_v22  ;;  %v253_v2 = vld [vmem:[%s686_s22 + $0x30] sm:$0x7]  ;;  %v585_v9 = vld [vmem:[%s686_s22 + $0x3c] sm:$0x3] }
  0x21   : > { %v248_v46 = vadd.f32 %v244_v34, %v224_v33  ;;  %v264_v47 = vmul.f32 %v692_v12, %v256_v35  ;;  %v329_v48 = vunpack.c.l.bf16 %v588_v32  ;;  %v389_v52 = vmul.f32 %v722_v41, %v381_v30  ;;  %v593_v34 = vld [vmem:[%s686_s22 + $0x40] sm:$0x3] }
  0x22   : > { %v392_v50 = vadd.f32 %v388_v6, %v372_v38  ;;  %v320_v51 = vadd.f32 %v316_v21, %v300_v39  ;;  %v417_v53 = vrot.slane %v409_v31, 1  ;;  %v297_v58 = vmul.f32 %v697_v17, %v289_v36  ;;  %v601_v35 = vld [vmem:[%s686_s22 + $0x40] sm:$0x7] }
  0x23   : > { %v272_v57 = vrot.slane %v264_v47, 1  ;;  %v337_v59 = vmul.f32 %v702_v24, %v329_v48  ;;  %v402_v60 = vunpack.c.l.bf16 %v600_v44  ;;  %v317_v0 = vmul.f32 %v704_v27, %v309_v43 }
  0x24   : > { %v424_v62 = vadd.f32 %v416_v7, %v392_v50  ;;  %v352_v63 = vadd.f32 %v344_v42, %v320_v51  ;;  %v217_v1 = vunpack.c.l.bf16 %v213_v49  ;;  %v362_v6 = vunpack.c.l.bf16 %v592_v54 }
  0x25   : > { %v280_v4 = vadd.f32 %v272_v57, %v248_v46  ;;  %v345_v5 = vrot.slane %v337_v59, 1  ;;  %v382_v8 = vunpack.c.l.bf16 %v596_v55  ;;  %v237_v16 = vunpack.c.l.bf16 %v233_v61 }
  0x26   : > { %v774_v13 = vadd.f32 %v764_v56, %v424_v62  ;;  %v373_v14 = vadd.f32 %v369_v45, %v352_v63  ;;  %v225_v15 = vmul.f32 %v688_v10, %v217_v1  ;;  %v410_v19 = vmul.f32 %v717_v37, %v402_v60 }
  0x27   : > { %v301_v7 = vadd.f32 %v297_v58, %v280_v4  ;;  %v257_v20 = vunpack.c.l.bf16 %v253_v2  ;;  %v290_v21 = vunpack.c.l.bf16 %v581_v3  ;;  %v245_v25 = vmul.f32 %v690_v11, %v237_v16 }
  0x28   : > { %v604_v22 = vmul.f32 -1.442695, %v774_v13  ;;  %v393_v23 = vadd.f32 %v389_v52, %v373_v14  ;;  %v310_v26 = vunpack.c.l.bf16 %v585_v9  ;;  %v370_v29 = vmul.f32 %v720_v40, %v362_v6 }
  0x29   : > { %v321_v28 = vadd.f32 %v317_v0, %v301_v7  ;;  %v265_v10 = vmul.f32 %v692_v12, %v257_v20  ;;  %v330_v30 = vunpack.c.l.bf16 %v589_v18  ;;  %v390_v32 = vmul.f32 %v722_v41, %v382_v8  ;;  %v597_v12 = vld [vmem:[%s686_s22 + $0x44] sm:$0x3] }
  0x2a   : > { %620 = vpow2.f32 %v604_v22  ;;  %v425_v31 = vadd.f32 %v417_v53, %v393_v23  ;;  %v249_v33 = vadd.f32 %v245_v25, %v225_v15  ;;  %v298_v39 = vmul.f32 %v697_v17, %v290_v21 }
  0x2b   : > { %v353_v36 = vadd.f32 %v345_v5, %v321_v28  ;;  %v273_v38 = vrot.slane %v265_v10, 1  ;;  %v338_v11 = vmul.f32 %v702_v24, %v330_v30  ;;  %v418_v43 = vrot.slane %v410_v19, 1 }
  0x2c   : > { %v435_v42 = vadd.f32 %v764_v56, %v425_v31  ;;  %v318_v44 = vmul.f32 %v704_v27, %v310_v26  ;;  %v363_v47 = vunpack.c.l.bf16 %v593_v34  ;;  %v403_v48 = vunpack.c.l.bf16 %v601_v35 }
  0x2d   : > { %v374_v45 = vadd.f32 %v370_v29, %v353_v36  ;;  %v281_v46 = vadd.f32 %v273_v38, %v249_v33  ;;  %v346_v52 = vrot.slane %v338_v11, 1  ;;  %v383_v53 = vunpack.c.l.bf16 %v597_v12 }
  0x2e   : > { %v605_v49 = vmul.f32 -1.442695, %v435_v42  ;;  %v371_v24 = vmul.f32 %v720_v40, %v363_v47  ;;  %v411_v55 = vmul.f32 %v717_v37, %v403_v48 }
  0x2f   : > { %v394_v50 = vadd.f32 %v390_v32, %v374_v45  ;;  %v302_v51 = vadd.f32 %v298_v39, %v281_v46  ;;  %v391_v58 = vmul.f32 %v722_v41, %v383_v53 }
  0x30   : > { %622 = vpow2.f32 %v605_v49  ;;  %v419_v61 = vrot.slane %v411_v55, 1 }
  0x31   : > { %v426_v54 = vadd.f32 %v418_v43, %v394_v50  ;;  %v322_v17 = vadd.f32 %v318_v44, %v302_v51 }
  0x33   : > { %v436_v57 = vadd.f32 %v764_v56, %v426_v54  ;;  %v354_v27 = vadd.f32 %v346_v52, %v322_v17 }
  0x35   : > { %v606_v59 = vmul.f32 -1.442695, %v436_v57  ;;  %v375_v60 = vadd.f32 %v371_v24, %v354_v27 }
  0x37   : > { %v621_v62 = vpop.eup %620  ;;  %624 = vpow2.f32 %v606_v59  ;;  %v395_v63 = vadd.f32 %v391_v58, %v375_v60 }
  0x38   : > { %v450_v0 = vadd.f32 1.0, %v621_v62 }
  0x39   : > { %v427_v1 = vadd.f32 %v419_v61, %v395_v63 }
  0x3a   : > { %626 = vrcp.f32 %v450_v0 }
  0x3b   : > { %v437_v2 = vadd.f32 %v764_v56, %v427_v1 }
  0x3d   : > { %v623_v40 = vpop.eup %622  ;;  %v607_v3 = vmul.f32 -1.442695, %v437_v2 }
  0x3e   : > { %v451_v37 = vadd.f32 1.0, %v623_v40 }
  0x3f   : > { %628 = vpow2.f32 %v607_v3 }
  0x40   : > { %630 = vrcp.f32 %v451_v37 }
  0x44   : > { %v625_v4 = vpop.eup %624 }
  0x45   : > { %v452_v5 = vadd.f32 1.0, %v625_v4 }
  0x47   : > { %v627_v41 = vpop.eup %626  ;;  %632 = vrcp.f32 %v452_v5 }
  0x48   : > { %v462_v6 = vmul.f32 %v627_v41, %v774_v13 }
  0x4a   : > { %v466_v8 = vpack.c.bf16 %v462_v6, %v462_v6  ;;  %v475_v7 = vsel %vm474_vm0, %v462_v6, 0.0 }
  0x4c   : > { %v629_v9 = vpop.eup %628  ;;  %470 = vst [vmem:[%s203_s30] sm:$0x3] %v466_v8 }
  0x4d   : > { %v631_v56 = vpop.eup %630  ;;  %v453_v14 = vadd.f32 1.0, %v629_v9 }
  0x4e   : > { %v463_v15 = vmul.f32 %v631_v56, %v435_v42 }
  0x4f   : > { %634 = vrcp.f32 %v453_v14 }
  0x50   : > { %v467_v16 = vpack.c.bf16 %v463_v15, %v463_v15  ;;  %v476_v19 = vsel %vm474_vm0, %v463_v15, 0.0 }
  0x51   : > { %v477_v21 = vadd.f32 %v476_v19, %v475_v7 }
  0x52   : > { %471 = vst [vmem:[%s203_s30 + $0x2] sm:$0x3] %v467_v16 }
  0x54   : > { %v633_v18 = vpop.eup %632 }
  0x55   : > { %v464_v13 = vmul.f32 %v633_v18, %v436_v57 }
  0x57   : > { %v468_v20 = vpack.c.bf16 %v464_v13, %v464_v13  ;;  %v478_v22 = vsel %vm474_vm0, %v464_v13, 0.0 }
  0x58   : > { %v479_v25 = vadd.f32 %v478_v22, %v477_v21 }
  0x59   : > { %472 = vst [vmem:[%s203_s30 + $0x4] sm:$0x3] %v468_v20 }
  0x5c   : > { %v635_v23 = vpop.eup %634 }
  0x5d   : > { %v465_v26 = vmul.f32 %v635_v23, %v437_v2 }
  0x5f   : > { %v469_v28 = vpack.c.bf16 %v465_v26, %v465_v26  ;;  %v480_v29 = vsel %vm474_vm0, %v465_v26, 0.0 }
  0x60   : > { %v481_v10 = vadd.f32 %v480_v29, %v479_v25 }
  0x61   : > { %473 = vst [vmem:[%s203_s30 + $0x6] sm:$0x3] %v469_v28 }
  0x62   : > { %v482_v30 = vsel %vm474_vm0, %v481_v10, 0.0 }
  0x63   : > { %v483_v31 = vrot.slane %v482_v30, 4 }
  0x65   : > { %v484_v32 = vadd.f32 %v483_v31, %v482_v30 }
  0x67   : > { %v485_v33 = vrot.slane %v484_v32, 2 }
  0x69   : > { %v486_v34 = vadd.f32 %v485_v33, %v484_v32 }
  0x6b   : > { %v487_v35 = vrot.slane %v486_v34, 1 }
  0x6d   : > { %v488_v36 = vadd.f32 %v487_v35, %v486_v34 }
  0x6f   : > { %489 = vst [vmem:[%s206_s7] sm:$0x1] %v488_v36 }
  0x70 PF: > { %s15_s15 = sadd.s32 1, %s642_s15  }
  0x71   : > { %p12_p4 = scmp.ge.s32.totalorder %s15_s15, 4  }
  0x73   :  { %14 = sbr.rel (!%p12_p4) target bundleno = 1 (0x1), region = 76 }

// kernel: _lambda_.22
= control target key start
LH: loop header
LB: loop body
LE: loop exit
PB: predicated region body
PF: predicated region fallthrough
CT: control target
= control target key end

     0   :  { %s553_s12 = smov 0   ;;  %s625_s0 = inlined_call_operand.vmem [shape: bf16[32,128], index: 0, kind: input, shape index: {}]   ;;  %s626_s1 = inlined_call_operand.vmem [shape: bf16[128,256], index: 1, kind: input, shape index: {}]   ;;  %s627_s2 = inlined_call_operand.vmem [shape: f32[1,256], index: 2, kind: input, shape index: {}]   ;;  %s628_s3 = inlined_call_operand.vmem [shape: bf16[32,256], index: 3, kind: output, shape index: {}]  }
   0x1 LB: > { %s436_s13 = sadd.s32 4294967295, %s530_s12   ;;  %p440_p0 = scmp.ge.s32.totalorder %s530_s12, 1  ;;  %s530_s12 = sphi %s553_s12, %s13_s12  }
   0x2   : > { %p138_p1 = scmp.lt.s32.totalorder %s530_s12, 3 }
   0x4   : > { %p139_p2 = pnand %p440_p0, %p138_p1 }
   0x5   : > { %s441_s16 = sshll.u32 (!%p139_p2), %s436_s13, 1 }
   0x6   : > { %142 = sbr.rel (%p139_p2) target bundleno = 282 (0x11a), region = 32  ;;  %p164_p3 = scmp.lt.s32.totalorder (!%p139_p2), %s441_s16, 3 }
   0xb   : > { %v483_v0 = vld [vmem:[%s626_s1 + $0x74] ss:$8 sps:$4 sm:$0xff]   ;;  %v485_v1 = vld [vmem:[%s626_s1 + $0x70] ss:$8 sps:$4 sm:$0xff]   ;;  %v532_v2 = vmov 0   ;;  %s630_s16 = smov (!%p164_p3, %s441_s16), 3  ;;  %v197_v18 = vlaneseq }
   0xc   : > { %325 = vmatprep.mubr.bf16.mxu0 %v532_v2  ;;  %293 = vmatprep.subr.bf16.mxu0 %v483_v0  ;;  %v486_v3 = vld [vmem:[%s626_s1 + $0x64] ss:$8 sps:$4 sm:$0xff]   ;;  %v488_v4 = vld [vmem:[%s626_s1 + $0x60] ss:$8 sps:$4 sm:$0xff]   ;;  %v489_v5 = vld [vmem:[%s626_s1 + $0x54] ss:$8 sps:$4 sm:$0xff]  }
   0xd   : > { %294 = vmatpush1.bf16.msra.mxu0 %v485_v1  ;;  %s442_s25 = sshll.u32 %s630_s16, 2  ;;  %v491_v6 = vld [vmem:[%s626_s1 + $0x50] ss:$8 sps:$4 sm:$0xff]   ;;  %v492_v7 = vld [vmem:[%s626_s1 + $0x44] ss:$8 sps:$4 sm:$0xff]   ;;  %v198_v19 = vshrl.u32 %v197_v18, 7 }
   0xe   : > { %295 = vmatprep.subr.bf16.mxu0 %v486_v3  ;;  %s167_s5 = scalar_lea.vmem %s625_s0, %s442_s25  ;;  %v494_v8 = vld [vmem:[%s626_s1 + $0x40] ss:$8 sps:$4 sm:$0xff]   ;;  %v495_v9 = vld [vmem:[%s626_s1 + $0x34] ss:$8 sps:$4 sm:$0xff]   ;;  %v497_v10 = vld [vmem:[%s626_s1 + $0x30] ss:$8 sps:$4 sm:$0xff]  }
   0xf   : > { %v498_v11 = vld [vmem:[%s626_s1 + $0x24] ss:$8 sps:$4 sm:$0xff]   ;;  %v500_v12 = vld [vmem:[%s626_s1 + $0x20] ss:$8 sps:$4 sm:$0xff]   ;;  %v501_v13 = vld [vmem:[%s626_s1 + $0x14] ss:$8 sps:$4 sm:$0xff]  }
  0x10   : > { %v503_v14 = vld [vmem:[%s626_s1 + $0x10] ss:$8 sps:$4 sm:$0xff]   ;;  %v504_v15 = vld [vmem:[%s626_s1 + $0x4] ss:$8 sps:$4 sm:$0xff]   ;;  %v506_v16 = vld [vmem:[%s626_s1] ss:$8 sps:$4 sm:$0xff]  }
  0x11   : > { %296 = vmatpush1.bf16.msra.mxu0 %v488_v4  ;;  %v507_v17 = vld [vmem:[%s167_s5] sm:$0xff]   ;;  %v199_v20 = vsub.s32 0, %v198_v19  ;;  %v203_v22 = vsub.s32 1, %v198_v19  ;;  %s471_s28 = sshll.u32 %s630_s16, 3 }
  0x12   : > { %297 = vmatprep.subr.bf16.mxu0 %v489_v5  ;;  %v195_v21 = vld [vmem:[%s627_s2] sm:$0x3]  ;;  %s174_s4 = scalar_lea.vmem %s628_s3, %s471_s28 }
  0x13   : > { %v200_v23 = vrot.slane %v195_v21, %v199_v20  ;;  %v204_v24 = vrot.slane %v195_v21, %v203_v22 }
  0x15   : > { %298 = vmatpush1.bf16.msra.mxu0 %v491_v6 }
  0x16   : > { %299 = vmatprep.subr.bf16.mxu0 %v492_v7 }
  0x19   : > { %300 = vmatpush1.bf16.msra.mxu0 %v494_v8 }
  0x1a   : > { %301 = vmatprep.subr.bf16.mxu0 %v495_v9 }
  0x1d   : > { %302 = vmatpush1.bf16.msra.mxu0 %v497_v10 }
  0x1e   : > { %303 = vmatprep.subr.bf16.mxu0 %v498_v11 }
  0x21   : > { %304 = vmatpush1.bf16.msra.mxu0 %v500_v12 }
  0x22   : > { %305 = vmatprep.subr.bf16.mxu0 %v501_v13 }
  0x25   : > { %306 = vmatpush1.bf16.msra.mxu0 %v503_v14 }
  0x26   : > { %307 = vmatprep.subr.bf16.mxu0 %v504_v15 }
  0x29   : > { %308 = vmatpush1.bf16.msra.mxu0 %v506_v16 }
  0x2c   : > { %326 = vmatmul.mubr.bf16.vlgmr.msra.gmra.mxu0 %v507_v17 }
  0xec   : > { %v327_v25 = vpop.f32.mrf.mxu0 }
  0xed   : > { %v328_v26 = vadd.f32 %v327_v25, %v200_v23 }
  0xee   : > { %v329_v27 = vpop.f32.mrf.mxu0 }
  0xef   : > { %v463_v28 = vmul.f32 -1.442695, %v328_v26  ;;  %v330_v29 = vadd.f32 %v329_v27, %v204_v24 }
  0xf0   : > { %v331_v30 = vpop.f32.mrf.mxu0 }
  0xf1   : > { %508 = vpow2.f32 %v463_v28  ;;  %v464_v31 = vmul.f32 -1.442695, %v330_v29  ;;  %v332_v32 = vadd.f32 %v331_v30, %v200_v23 }
  0xf2   : > { %v333_v33 = vpop.f32.mrf.mxu0 }
  0xf3   : > { %510 = vpow2.f32 %v464_v31  ;;  %v465_v34 = vmul.f32 -1.442695, %v332_v32  ;;  %v334_v35 = vadd.f32 %v333_v33, %v204_v24 }
  0xf5   : > { %512 = vpow2.f32 %v465_v34  ;;  %v466_v36 = vmul.f32 -1.442695, %v334_v35 }
  0xf7   : > { %514 = vpow2.f32 %v466_v36 }
  0xfe   : > { %v509_v37 = vpop.eup %508 }
  0xff   : > { %v348_v38 = vadd.f32 1.0, %v509_v37 }
 0x100   : > { %v511_v39 = vpop.eup %510 }
 0x101   : > { %516 = vrcp.f32 %v348_v38  ;;  %v349_v40 = vadd.f32 1.0, %v511_v39 }
 0x102   : > { %v513_v41 = vpop.eup %512 }
 0x103   : > { %518 = vrcp.f32 %v349_v40  ;;  %v350_v42 = vadd.f32 1.0, %v513_v41 }
 0x104   : > { %v515_v43 = vpop.eup %514 }
 0x105   : > { %520 = vrcp.f32 %v350_v42  ;;  %v351_v44 = vadd.f32 1.0, %v515_v43 }
 0x107   : > { %522 = vrcp.f32 %v351_v44 }
 0x10e   : > { %v517_v45 = vpop.eup %516 }
 0x10f   : > { %v360_v47 = vmul.f32 %v517_v45, %v328_v26 }
 0x110   : > { %v519_v46 = vpop.eup %518 }
 0x111   : > { %v361_v48 = vmul.f32 %v519_v46, %v330_v29 }
 0x112   : > { %v521_v49 = vpop.eup %520 }
 0x113   : > { %v472_v50 = vpack.c.bf16 %v361_v48, %v360_v47  ;;  %v362_v52 = vmul.f32 %v521_v49, %v332_v32 }
 0x114   : > { %v523_v51 = vpop.eup %522 }
 0x115   : > { %376 = vst [vmem:[%s174_s4] sm:$0xff] %v472_v50  ;;  %v363_v53 = vmul.f32 %v523_v51, %v334_v35 }
 0x117   : > { %v473_v54 = vpack.c.bf16 %v363_v53, %v362_v52 }
 0x119   : > { %377 = vst [vmem:[%s174_s4 + $0x8] sm:$0xff] %v473_v54 }
 0x11a PF: > { %s13_s12 = sadd.s32 1, %s530_s12  }
 0x11b   : > { %p10_p4 = scmp.ge.s32.totalorder %s13_s12, 4  }
 0x11d   :  { %12 = sbr.rel (!%p10_p4) target bundleno = 1 (0x1), region = 62 }

// kernel: _lambda_.20
= control target key start
LH: loop header
LB: loop body
LE: loop exit
PB: predicated region body
PF: predicated region fallthrough
CT: control target
= control target key end

     0   :  { %s570_s18 = smov 0   ;;  %s652_s0 = inlined_call_operand.vmem [shape: f32[2,1,128], index: 0, kind: input, shape index: {}]   ;;  %s653_s1 = inlined_call_operand.vmem [shape: f32[128,4], index: 1, kind: input, shape index: {}]   ;;  %s654_s2 = inlined_call_operand.vmem [shape: f32[1,4], index: 2, kind: input, shape index: {}]   ;;  %s655_s3 = inlined_call_operand.vmem [shape: f32[4,128], index: 3, kind: input, shape index: {}]   ;;  %s656_s4 = inlined_call_operand.vmem [shape: f32[1,128], index: 4, kind: input, shape index: {}]   ;;  %s657_s5 = inlined_call_operand.vmem [shape: f32[2,1,128], index: 5, kind: output, shape index: {}]  }
   0x1 LB: > { %s442_s19 = sadd.s32 4294967295, %s536_s18   ;;  %p446_p0 = scmp.ge.s32.totalorder %s536_s18, 1  ;;  %s536_s18 = sphi %s570_s18, %s15_s18  }
   0x2   : > { %p185_p1 = scmp.lt.s32.totalorder %s536_s18, 3 }
   0x4   : > { %p186_p2 = pnand %p446_p0, %p185_p1 }
   0x5   : > { %p209_p3 = scmp.lt.s32.totalorder (!%p186_p2), %s442_s19, 1 }
   0x6   : > { %189 = sbr.rel (%p186_p2) target bundleno = 501 (0x1f5), region = 40 }
   0xb   : > { %v232_v0 = vld [vmem:[%s653_s1 + $0x78] sm:$0xff]  ;;  %v538_v1 = vmov 0.0   ;;  %v231_v2 = vld [vmem:[%s653_s1 + $0x70] sm:$0xff]  ;;  %vm539_vm0 = vmmov 0   ;;  %v230_v3 = vld [vmem:[%s653_s1 + $0x68] sm:$0xff]  ;;  %s659_s19 = smov (!%p209_p3, %s442_s19), 1 }
   0xc   : > { %472 = vmatprep.subr.mxu0 %v538_v1  ;;  %504 = vmatprep.mubr.msk.f32.mxu0 %vm539_vm0, %v538_v1  ;;  %v229_v4 = vld [vmem:[%s653_s1 + $0x60] sm:$0xff]  ;;  %v228_v5 = vld [vmem:[%s653_s1 + $0x58] sm:$0xff]  ;;  %v227_v6 = vld [vmem:[%s653_s1 + $0x50] sm:$0xff]  ;;  %s211_s25 = scalar_lea.vmem %s652_s0, %s659_s19  ;;  %vm317_vm1 = vcmask 1043456   ;;  %vm313_vm2 = vcmask 31744   ;;  %s214_s15 = scalar_lea.vmem %s657_s5, %s659_s19 }
   0xd   : > { %473 = vmatpush3.msra.mxu0 %v232_v0  ;;  %507 = vmatprep.subr.mxu1 %v538_v1  ;;  %v226_v7 = vld [vmem:[%s653_s1 + $0x48] sm:$0xff]  ;;  %v225_v8 = vld [vmem:[%s653_s1 + $0x40] sm:$0xff]  ;;  %v224_v9 = vld [vmem:[%s653_s1 + $0x38] sm:$0xff] }
   0xe   : > { %474 = vmatprep.subr.mxu0 %v538_v1  ;;  %509 = vmatprep.mubr.msk.f32.mxu1 %vm539_vm0, %v538_v1  ;;  %v223_v10 = vld [vmem:[%s653_s1 + $0x30] sm:$0xff]  ;;  %v222_v11 = vld [vmem:[%s653_s1 + $0x28] sm:$0xff]  ;;  %v221_v12 = vld [vmem:[%s653_s1 + $0x20] sm:$0xff] }
   0xf   : > { %475 = vmatpush3.msra.mxu0 %v231_v2  ;;  %v220_v13 = vld [vmem:[%s653_s1 + $0x18] sm:$0xff]  ;;  %v219_v14 = vld [vmem:[%s653_s1 + $0x10] sm:$0xff]  ;;  %v215_v15 = vld [vmem:[%s211_s25] sm:$0x1] }
  0x10   : > { %476 = vmatprep.subr.mxu0 %v538_v1  ;;  %v218_v16 = vld [vmem:[%s653_s1 + $0x8] sm:$0xff]  ;;  %v217_v17 = vld [vmem:[%s653_s1] sm:$0xff]  ;;  %v216_v18 = vmul.f32 0.0625, %v215_v15 }
  0x11   : > { %477 = vmatpush3.msra.mxu0 %v230_v3  ;;  %v311_v19 = vld [vmem:[%s655_s3] sm:$0xf] }
  0x12   : > { %478 = vmatprep.subr.mxu0 %v538_v1  ;;  %508 = vmatpush3.msk.msra.mxu1 %vm317_vm1, %v311_v19  ;;  %v233_v20 = vld [vmem:[%s654_s2] sm:$0x1] }
  0x13   : > { %479 = vmatpush3.msra.mxu0 %v229_v4  ;;  %v312_v29 = vld [vmem:[%s656_s4] sm:$0x1] }
  0x14   : > { %480 = vmatprep.subr.mxu0 %v538_v1 }
  0x15   : > { %481 = vmatpush3.msra.mxu0 %v228_v5 }
  0x16   : > { %482 = vmatprep.subr.mxu0 %v538_v1 }
  0x17   : > { %483 = vmatpush3.msra.mxu0 %v227_v6 }
  0x18   : > { %484 = vmatprep.subr.mxu0 %v538_v1 }
  0x19   : > { %485 = vmatpush3.msra.mxu0 %v226_v7 }
  0x1a   : > { %486 = vmatprep.subr.mxu0 %v538_v1 }
  0x1b   : > { %487 = vmatpush3.msra.mxu0 %v225_v8 }
  0x1c   : > { %488 = vmatprep.subr.mxu0 %v538_v1 }
  0x1d   : > { %489 = vmatpush3.msra.mxu0 %v224_v9 }
  0x1e   : > { %490 = vmatprep.subr.mxu0 %v538_v1 }
  0x1f   : > { %491 = vmatpush3.msra.mxu0 %v223_v10 }
  0x20   : > { %492 = vmatprep.subr.mxu0 %v538_v1 }
  0x21   : > { %493 = vmatpush3.msra.mxu0 %v222_v11 }
  0x22   : > { %494 = vmatprep.subr.mxu0 %v538_v1 }
  0x23   : > { %495 = vmatpush3.msra.mxu0 %v221_v12 }
  0x24   : > { %496 = vmatprep.subr.mxu0 %v538_v1 }
  0x25   : > { %497 = vmatpush3.msra.mxu0 %v220_v13 }
  0x26   : > { %498 = vmatprep.subr.mxu0 %v538_v1 }
  0x27   : > { %499 = vmatpush3.msra.mxu0 %v219_v14 }
  0x28   : > { %500 = vmatprep.subr.mxu0 %v538_v1 }
  0x29   : > { %501 = vmatpush3.msra.mxu0 %v218_v16 }
  0x2a   : > { %502 = vmatprep.subr.mxu0 %v538_v1 }
  0x2b   : > { %503 = vmatpush3.msra.mxu0 %v217_v17 }
  0x2c   : > { %505 = vmatmul.mubr.f32.vlgmr.msra.gmra.mxu0 %v216_v18 }
  0xec   : > { %v300_v21 = vpop.f32.mrf.mxu0 }
  0xed   : > { %v301_v22 = vadd.f32 %v300_v21, %v233_v20 }
  0xee   : > { %v506_v23 = vpop.f32.mrf.mxu0 }
  0xef   : > { %v447_v24 = vmul.f32 -1.442695, %v301_v22 }
  0xf1   : > { %522 = vpow2.f32 %v447_v24 }
  0xfe   : > { %v523_v25 = vpop.eup %522 }
  0xff   : > { %v307_v26 = vadd.f32 1.0, %v523_v25 }
 0x101   : > { %524 = vrcp.f32 %v307_v26 }
 0x10e   : > { %v525_v27 = vpop.eup %524 }
 0x10f   : > { %v310_v28 = vmul.f32 %v525_v27, %v301_v22 }
 0x111   : > { %510 = vmatmul.mubr.msk.f32.vlgmr.msra.gmra.mxu1 %vm313_vm2, %v310_v28 }
 0x1d1   : > { %v387_v30 = vpop.f32.mrf.mxu1 }
 0x1d2   : > { %v388_v31 = vadd.f32 %v387_v30, %v312_v29 }
 0x1d3   : > { %v511_v32 = vpop.f32.mrf.mxu1 }
 0x1d4   : > { %v450_v33 = vmul.f32 -1.442695, %v388_v31 }
 0x1d6   : > { %526 = vpow2.f32 %v450_v33 }
 0x1e3   : > { %v527_v34 = vpop.eup %526 }
 0x1e4   : > { %v394_v35 = vadd.f32 1.0, %v527_v34 }
 0x1e6   : > { %528 = vrcp.f32 %v394_v35 }
 0x1f3   : > { %v529_v36 = vpop.eup %528 }
 0x1f4   : > { %397 = vst [vmem:[%s214_s15] sm:$0x1] %v529_v36 }
 0x1f5 PF: > { %s15_s18 = sadd.s32 1, %s536_s18  }
 0x1f6   : > { %p12_p4 = scmp.ge.s32.totalorder %s15_s18, 4  }
 0x1f8   :  { %14 = sbr.rel (!%p12_p4) target bundleno = 1 (0x1), region = 70 }

// kernel: _lambda_.23
= control target key start
LH: loop header
LB: loop body
LE: loop exit
PB: predicated region body
PF: predicated region fallthrough
CT: control target
= control target key end

     0   :  { %s1122_s15 = smov 0   ;;  %s1124_s16 = smov 0   ;;  %s1411_s0 = inlined_call_operand.vmem [shape: bf16[2,6,6,256], index: 0, kind: input, shape index: {}]   ;;  %s1412_s1 = inlined_call_operand.vmem [shape: f32[9,256], index: 1, kind: input, shape index: {}]   ;;  %s1413_s2 = inlined_call_operand.vmem [shape: f32[1,256], index: 2, kind: input, shape index: {}]   ;;  %s1414_s3 = inlined_call_operand.vmem [shape: bf16[2,4,4,256], index: 3, kind: output, shape index: {0}]   ;;  %s1415_s4 = inlined_call_operand.vmem [shape: f32[2,1,256], index: 4, kind: output, shape index: {1}]  }
   0x1   :  { %s1126_s17 = smov 0   ;;  %s1128_s18 = smov 0  }
   0x2   :  { %s1130_s19 = smov 0   ;;  %s1132_s20 = smov 0  }
   0x3   :  { %s1134_s21 = smov 0   ;;  %s1136_s22 = smov 0  }
   0x4   :  { %s1138_s23 = smov 0  }
   0x5 LB: > { %s888_s24 = sadd.s32 4294967295, %s1095_s23   ;;  %s24_s25 = sadd.s32 1, %s1087_s21  ;;  %s1095_s23 = sphi %s1138_s23, %s15_s23   ;;  %s1091_s22 = sphi %s1136_s22, %s1426_s22   ;;  %s1087_s21 = sphi %s1134_s21, %s1425_s21   ;;  %s1083_s20 = sphi %s1132_s20, %s1424_s20   ;;  %s1079_s19 = sphi %s1130_s19, %s1423_s19   ;;  %s1075_s18 = sphi %s1128_s18, %s1422_s18   ;;  %s1071_s17 = sphi %s1126_s17, %s1421_s17   ;;  %s1067_s16 = sphi %s1124_s16, %s1420_s16   ;;  %s1063_s15 = sphi %s1122_s15, %s1419_s15  }
   0x6   : > { %p25_p0 = scmp.ge.s32.totalorder %s24_s25, 2  ;;  %s27_s26 = sadd.s32 1, %s1091_s22 }
   0x7   : > { %s36_s27 = sadd.s32 1, %s1075_s18  ;;  %p43_p1 = scmp.ne.s32.totalorder %s1075_s18, %s1071_s17 }
   0x8   : > { %s1428_s25 = smov (%p25_p0, %s24_s25), 0  ;;  %s1430_s26 = smov (!%p25_p0, %s27_s26), %s1091_s22 }
   0x9   : > { %s32_s28 = ssub.s32 %s1087_s21, %s1428_s25  ;;  %p44_p2 = scmp.eq.s32.totalorder %s1095_s23, 0 }
   0xa   : > { %p29_p3 = scmp.ge.s32.totalorder %s1430_s26, 2  ;;  %p60_p4 = scmp.eq.s32.totalorder %s32_s28, 0 }
   0xb   : > { %p1182_p5 = por %p44_p2, %p43_p1  ;;  %s62_s30 = sadd.s32 1, %s1067_s16 }
   0xc   : > { %s1432_s26 = smov (%p29_p3, %s1430_s26), 0  ;;  %p69_p6 = scmp.ne.s32.totalorder %s1067_s16, %s1063_s15 }
   0xd   : > { %s1190_s5 = scalar_select %p60_p4, %s1067_s16, %s62_s30  }
   0xe   : > { %s31_s6 = ssub.s32 %s1091_s22, %s1432_s26  ;;  %p127_p7 = scmp.eq.s32.totalorder %s888_s24, 3 }
   0xf   : > { %s33_s7 = sor.u32 %s32_s28, %s31_s6  ;;  %p1196_p9 = por %p69_p6, %p44_p2 }
  0x10   : > { %p34_p8 = scmp.eq.s32.totalorder %s33_s7, 0  ;;  %p1203_p10 = por %p127_p7, %p43_p1 }
  0x11   : > { %p891_p11 = scmp.ge.s32.totalorder %s1095_s23, 4 }
  0x12   : > { %s1208_s10 = scalar_select %p34_p8, %s1075_s18, %s36_s27  }
  0x13   : > { %177 = sbr.rel (%p891_p11) target bundleno = 40 (0x28), region = 16 }
  0x18   : > { %180 = sbr.rel (!%p1182_p5) target bundleno = 35 (0x23), region = 20  ;;  %s182_s11 = sand.u32 (%p1182_p5), 1, %s1075_s18  }
  0x19   : > { %s935_s12 = smul.u32 (%p1182_p5), 12, %s1091_s22 }
  0x1a   : > { %s934_s13 = smul.u32 (%p1182_p5), 24, %s182_s11 }
  0x1b   : > { %s186_s14 = sadd.s32 (%p1182_p5), %s1087_s21, %s935_s12 }
  0x1c   : > { %s892_s24 = sshll.u32 (%p1182_p5), %s186_s14, 2  ;;  %s184_s27 = scalar_lea.vmem (%p1182_p5), [#allocation2], %s934_s13 }
  0x1d   : > { %s188_s6 = scalar_lea.vmem %s1411_s0, %s892_s24 }
  0x1e   : > { %v205_v0 = vld [vmem:[%s188_s6] sm:$0xf]  ;;  %v207_v1 = vld [vmem:[%s188_s6 + $0x8] sm:$0xf]  ;;  %v209_v2 = vld [vmem:[%s188_s6 + $0x10] sm:$0xf] }
  0x1f   : > { %206 = vst [vmem:[%s184_s27] sm:$0xf] %v205_v0  ;;  %208 = vst [vmem:[%s184_s27 + $0x4] sm:$0xf] %v207_v1  ;;  %v211_v3 = vld [vmem:[%s188_s6 + $0x18] sm:$0xf] }
  0x20   : > { %210 = vst [vmem:[%s184_s27 + $0x8] sm:$0xf] %v209_v2  ;;  %v213_v4 = vld [vmem:[%s188_s6 + $0x20] sm:$0xf]  ;;  %v215_v5 = vld [vmem:[%s188_s6 + $0x28] sm:$0xf] }
  0x21   : > { %212 = vst [vmem:[%s184_s27 + $0xc] sm:$0xf] %v211_v3  ;;  %214 = vst [vmem:[%s184_s27 + $0x10] sm:$0xf] %v213_v4 }
  0x22   : > { %216 = vst [vmem:[%s184_s27 + $0x14] sm:$0xf] %v215_v5 }
  0x23 PF: > { %252 = sbr.rel (!%p1196_p9) target bundleno = 40 (0x28), region = 61  ;;  %s254_s29 = sand.u32 (%p1196_p9), 1, %s1067_s16  }
  0x24   : > { %s894_s7 = sshll.u32 (%p1196_p9), %s1087_s21, 3  ;;  %s893_s11 = sshll.u32 (%p1196_p9), %s254_s29, 4 }
  0x25   : > { %s258_s14 = scalar_lea.vmem (%p1196_p9), %s1412_s1, %s894_s7  ;;  %s256_s24 = scalar_lea.vmem (%p1196_p9), [#allocation3], %s893_s11 }
  0x26   : > { %v289_v6 = vld [vmem:[%s258_s14] sm:$0xff] (%p1196_p9)  ;;  %v291_v7 = vld [vmem:[%s258_s14 + $0x10] sm:$0xff] (%p1196_p9) }
  0x27   : > { %290 = vst [vmem:[%s256_s24] sm:$0xff] (%p1196_p9), %v289_v6  ;;  %292 = vst [vmem:[%s256_s24 + $0x8] sm:$0xff] (%p1196_p9), %v291_v7 }
  0x28 PF: > { %p895_p12 = scmp.ge.s32.totalorder %s1095_s23, 1  ;;  %p303_p13 = scmp.lt.s32.totalorder %s1095_s23, 5 }
  0x2a   : > { %p304_p0 = pnand %p895_p12, %p303_p13 }
  0x2b   : > { %s310_s8 = sand.u32 (!%p304_p0), 1, %s1071_s17   ;;  %s317_s28 = sand.u32 (!%p304_p0), 1, %s1063_s15  }
  0x2c   : > { %307 = sbr.rel (%p304_p0) target bundleno = 151 (0x97), region = 103  ;;  %s1232_s6 = sshll.u32 (!%p304_p0), %s317_s28, 4 }
  0x2d   : > { %s936_s30 = smul.u32 (!%p304_p0), 24, %s310_s8  ;;  %s319_s27 = scalar_lea.vmem (!%p304_p0), [#allocation3], %s1232_s6 }
  0x2e   : > { %p355_p1 = scmp.lt.s32.totalorder (!%p304_p0), %s1079_s19, 1  ;;  %s897_s13 = sshll.u32 (!%p304_p0), %s310_s8, 3 }
  0x2f   : > { %s1237_s29 = scalar_lea.vmem (!%p304_p0), [#allocation2], %s936_s30  ;;  %s1356_s14 = scalar_lea.vmem (!%p304_p0), [#allocation4], %s897_s13 }
  0x30   : > { %p358_p2 = scmp.lt.s32.totalorder (!%p304_p0), %s1083_s20, 1 }
  0x31   : > { %v376_v8 = vlaneseq  ;;  %v365_v10 = vld [vmem:[%s319_s27] sm:$0xff]  ;;  %v368_v11 = vld [vmem:[%s1237_s29] sm:$0x3]  ;;  %v899_v19 = vld [vmem:[%s1237_s29 + $0x4] sm:$0x3]  ;;  %s1299_s15 = scalar_select %p355_p1, %s1079_s19, 1 }
  0x32   : > { %v388_v13 = vld [vmem:[%s1237_s29] sm:$0x7]  ;;  %v372_v14 = vunpack.c.l.bf16 %v368_v11  ;;  %v457_v22 = vunpack.c.l.bf16 %v899_v19  ;;  %v903_v24 = vld [vmem:[%s1237_s29 + $0x4] sm:$0x7]  ;;  %v911_v30 = vld [vmem:[%s1237_s29 + $0x8] sm:$0x3] }
  0x33   : > { %v377_v9 = vshrl.u32 %v376_v8, 7  ;;  %v392_v15 = vunpack.c.l.bf16 %v388_v13  ;;  %v420_v17 = vld [vmem:[%s1237_s29] sm:$0x6]  ;;  %v907_v25 = vld [vmem:[%s1237_s29 + $0x4] sm:$0x6]  ;;  %v477_v28 = vunpack.c.l.bf16 %v903_v24  ;;  %v542_v43 = vunpack.c.l.bf16 %v911_v30  ;;  %s357_s12 = scalar_lea.vmem %s1413_s2, %s1299_s15 }
  0x34   : > { %v424_v21 = vunpack.c.l.bf16 %v420_v17  ;;  %v509_v32 = vunpack.c.l.bf16 %v907_v25  ;;  %v915_v38 = vld [vmem:[%s1237_s29 + $0x8] sm:$0x7]  ;;  %v369_v40 = vld [vmem:[%s1237_s29 + $0x4] sm:$0x3]  ;;  %v1268_v46 = vld [vmem:[%s319_s27 + $0x8] ss:$0 sm:$0xff] }
  0x35   : > { %v378_v12 = vsub.s32 0, %v377_v9  ;;  %v398_v16 = vsub.s32 1, %v377_v9  ;;  %v430_v18 = vsub.s32 2, %v377_v9  ;;  %v463_v23 = vsub.s32 3, %v377_v9  ;;  %v919_v39 = vld [vmem:[%s1237_s29 + $0x8] sm:$0x6] }
  0x36   : > { %v483_v29 = vsub.s32 4, %v377_v9  ;;  %v515_v33 = vsub.s32 5, %v377_v9  ;;  %v548_v44 = vsub.s32 6, %v377_v9  ;;  %v389_v45 = vld [vmem:[%s1237_s29 + $0x4] sm:$0x7]  ;;  %v568_v50 = vsub.s32 7, %v377_v9 }
  0x37   : > { %v1243_v20 = vrot.slane %v365_v10, %v378_v12  ;;  %v1247_v26 = vrot.slane %v365_v10, %v398_v16  ;;  %v1249_v27 = vrot.slane %v365_v10, %v430_v18  ;;  %v1252_v31 = vrot.slane %v365_v10, %v463_v23  ;;  %v421_v55 = vld [vmem:[%s1237_s29 + $0x4] sm:$0x6]  ;;  %v900_v60 = vld [vmem:[%s1237_s29 + $0x8] sm:$0x3]  ;;  %v912_v6 = vld [vmem:[%s1237_s29 + $0xc] sm:$0x3] }
  0x38   : > { %v1257_v37 = vrot.slane %v365_v10, %v483_v29  ;;  %v1263_v42 = vrot.slane %v365_v10, %v515_v33  ;;  %v562_v52 = vunpack.c.l.bf16 %v915_v38  ;;  %v594_v53 = vunpack.c.l.bf16 %v919_v39  ;;  %v904_v61 = vld [vmem:[%s1237_s29 + $0x8] sm:$0x7]  ;;  %v916_v11 = vld [vmem:[%s1237_s29 + $0xc] sm:$0x7]  ;;  %s359_s17 = scalar_select %p358_p2, %s1083_s20, 1 }
  0x39   : > { %v380_v34 = vmul.f32 %v1243_v20, %v372_v14  ;;  %v400_v35 = vmul.f32 %v1247_v26, %v392_v15  ;;  %v432_v36 = vmul.f32 %v1249_v27, %v424_v21  ;;  %v465_v41 = vmul.f32 %v1252_v31, %v457_v22  ;;  %v908_v62 = vld [vmem:[%s1237_s29 + $0x8] sm:$0x6]  ;;  %v920_v16 = vld [vmem:[%s1237_s29 + $0xc] sm:$0x6]  ;;  %s930_s27 = sshll.u32 (%p1203_p10), %s1083_s20, 3 }
  0x3a   : > { %v485_v49 = vmul.f32 %v1257_v37, %v477_v28  ;;  %v517_v51 = vmul.f32 %v1263_v42, %v509_v32  ;;  %v373_v54 = vunpack.c.l.bf16 %v369_v40  ;;  %v1273_v57 = vrot.slane %v365_v10, %v548_v44  ;;  %v370_v22 = vld [vmem:[%s1237_s29 + $0x8] sm:$0x3]  ;;  %v901_v40 = vld [vmem:[%s1237_s29 + $0xc] sm:$0x3]  ;;  %s898_s24 = sshll.u32 %s359_s17, 1 }
  0x3b   : > { %v408_v47 = vrot.slane %v400_v35, 1  ;;  %v440_v48 = vrot.slane %v432_v36, 2  ;;  %v1275_v58 = vrot.slane %v365_v10, %v568_v50  ;;  %v393_v59 = vunpack.c.l.bf16 %v389_v45  ;;  %v390_v29 = vld [vmem:[%s1237_s29 + $0x8] sm:$0x7]  ;;  %s363_s8 = sadd.s32 %s898_s24, %s1299_s15 }
  0x3c   : > { %v493_v63 = vrot.slane %v485_v49, 1  ;;  %v525_v0 = vrot.slane %v517_v51, 2  ;;  %v1281_v1 = vmul.f32 %v1268_v46, %v594_v53  ;;  %v381_v3 = vmul.f32 %v1243_v20, %v373_v54  ;;  %v422_v30 = vld [vmem:[%s1237_s29 + $0x8] sm:$0x6]  ;;  %v913_v53 = vld [vmem:[%s1237_s29 + $0x10] sm:$0x3]  ;;  %s364_s6 = scalar_lea.vmem %s1415_s4, %s363_s8 }
  0x3d   : > { %v416_v56 = vadd.f32 %v408_v47, %v380_v34  ;;  %v401_v4 = vmul.f32 %v1247_v26, %v393_v59  ;;  %v425_v5 = vunpack.c.l.bf16 %v421_v55  ;;  %v570_v7 = vmul.f32 %v1275_v58, %v562_v52  ;;  %v905_v47 = vld [vmem:[%s1237_s29 + $0xc] sm:$0x7]  ;;  %v917_v54 = vld [vmem:[%s1237_s29 + $0x10] sm:$0x7] }
  0x3e   : > { %v458_v8 = vunpack.c.l.bf16 %v900_v60  ;;  %v478_v9 = vunpack.c.l.bf16 %v904_v61  ;;  %v510_v10 = vunpack.c.l.bf16 %v908_v62  ;;  %v550_v13 = vmul.f32 %v1273_v57, %v542_v43 }
  0x3f   : > { %v448_v2 = vadd.f32 %v440_v48, %v416_v56  ;;  %v409_v14 = vrot.slane %v401_v4, 1  ;;  %v433_v15 = vmul.f32 %v1249_v27, %v425_v5  ;;  %v543_v21 = vunpack.c.l.bf16 %v912_v6  ;;  %v909_v48 = vld [vmem:[%s1237_s29 + $0xc] sm:$0x6] }
  0x40   : > { %v466_v17 = vmul.f32 %v1252_v31, %v458_v8  ;;  %v486_v18 = vmul.f32 %v1257_v37, %v478_v9  ;;  %v518_v19 = vmul.f32 %v1263_v42, %v510_v10  ;;  %v563_v28 = vunpack.c.l.bf16 %v916_v11  ;;  %v921_v10 = vld [vmem:[%s1237_s29 + $0x10] sm:$0x6]  ;;  %v371_v11 = vld [vmem:[%s1237_s29 + $0xc] sm:$0x3] }
  0x41   : > { %v469_v12 = vadd.f32 %v465_v41, %v448_v2  ;;  %v417_v24 = vadd.f32 %v409_v14, %v381_v3  ;;  %v441_v25 = vrot.slane %v433_v15, 2  ;;  %v578_v32 = vrot.slane %v570_v7, 1 }
  0x42   : > { %v610_v33 = vrot.slane %v1281_v1, 2  ;;  %v595_v34 = vunpack.c.l.bf16 %v920_v16  ;;  %v494_v38 = vrot.slane %v486_v18, 1  ;;  %v374_v39 = vunpack.c.l.bf16 %v370_v22  ;;  %v1319_v1 = vld [vmem:[%s357_s12] ss:$0 sm:$0xff]  ;;  %v391_v16 = vld [vmem:[%s1237_s29 + $0xc] sm:$0x7] }
  0x43   : > { %v501_v23 = vadd.f32 %v493_v63, %v469_v12  ;;  %v449_v36 = vadd.f32 %v441_v25, %v417_v24  ;;  %v526_v41 = vrot.slane %v518_v19, 2  ;;  %v551_v43 = vmul.f32 %v1273_v57, %v543_v21 }
  0x44   : > { %v394_v44 = vunpack.c.l.bf16 %v390_v29  ;;  %v426_v45 = vunpack.c.l.bf16 %v422_v30  ;;  %v571_v51 = vmul.f32 %v1275_v58, %v563_v28  ;;  %v603_v52 = vmul.f32 %v1268_v46, %v595_v34 }
  0x45   : > { %v533_v35 = vadd.f32 %v525_v0, %v501_v23  ;;  %v470_v50 = vadd.f32 %v466_v17, %v449_v36  ;;  %v382_v55 = vmul.f32 %v1243_v20, %v374_v39  ;;  %v459_v60 = vunpack.c.l.bf16 %v901_v40  ;;  %v423_v17 = vld [vmem:[%s1237_s29 + $0xc] sm:$0x6]  ;;  %v902_v23 = vld [vmem:[%s1237_s29 + $0x10] sm:$0x3] }
  0x46   : > { %v402_v56 = vmul.f32 %v1247_v26, %v394_v44  ;;  %v434_v59 = vmul.f32 %v1249_v27, %v426_v45  ;;  %v479_v63 = vunpack.c.l.bf16 %v905_v47  ;;  %v511_v0 = vunpack.c.l.bf16 %v909_v48  ;;  %v910_v36 = vld [vmem:[%s1237_s29 + $0x10] sm:$0x6] }
  0x47   : > { %v554_v49 = vadd.f32 %v550_v13, %v533_v35  ;;  %v502_v62 = vadd.f32 %v494_v38, %v470_v50  ;;  %v544_v4 = vunpack.c.l.bf16 %v913_v53  ;;  %v564_v5 = vunpack.c.l.bf16 %v917_v54  ;;  %v906_v35 = vld [vmem:[%s1237_s29 + $0x10] sm:$0x7] }
  0x48   : > { %v410_v2 = vrot.slane %v402_v56, 1  ;;  %v442_v3 = vrot.slane %v434_v59, 2  ;;  %v579_v8 = vrot.slane %v571_v51, 1  ;;  %v487_v9 = vmul.f32 %v1257_v37, %v479_v63  ;;  %v918_v51 = vld [vmem:[%s1237_s29 + $0x14] sm:$0x7] }
  0x49   : > { %v586_v61 = vadd.f32 %v578_v32, %v554_v49  ;;  %v534_v7 = vadd.f32 %v526_v41, %v502_v62  ;;  %v611_v12 = vrot.slane %v603_v52, 2  ;;  %v467_v14 = vmul.f32 %v1252_v31, %v459_v60 }
  0x4a   : > { %v418_v13 = vadd.f32 %v410_v2, %v382_v55  ;;  %v519_v15 = vmul.f32 %v1263_v42, %v511_v0  ;;  %v552_v21 = vmul.f32 %v1273_v57, %v544_v4  ;;  %v572_v22 = vmul.f32 %v1275_v58, %v564_v5  ;;  %v914_v55 = vld [vmem:[%s1237_s29 + $0x14] sm:$0x3] }
  0x4b   : > { %v618_v6 = vadd.f32 %v610_v33, %v586_v61  ;;  %v555_v19 = vadd.f32 %v551_v43, %v534_v7  ;;  %v495_v25 = vrot.slane %v487_v9, 1  ;;  %v596_v28 = vunpack.c.l.bf16 %v921_v10 }
  0x4c   : > { %v450_v24 = vadd.f32 %v442_v3, %v418_v13  ;;  %v375_v29 = vunpack.c.l.bf16 %v371_v11  ;;  %v395_v33 = vunpack.c.l.bf16 %v391_v16  ;;  %v427_v34 = vunpack.c.l.bf16 %v423_v17 }
  0x4d   : > { %v1329_v18 = vadd.f32 %v1319_v1, %v618_v6  ;;  %v587_v32 = vadd.f32 %v579_v8, %v555_v19  ;;  %v527_v39 = vrot.slane %v519_v15, 2  ;;  %v460_v41 = vunpack.c.l.bf16 %v902_v23 }
  0x4e   : > { %v471_v38 = vadd.f32 %v467_v14, %v450_v24  ;;  %v383_v40 = vmul.f32 %v1243_v20, %v375_v29  ;;  %v403_v44 = vmul.f32 %v1247_v26, %v395_v33  ;;  %v435_v45 = vmul.f32 %v1249_v27, %v427_v34  ;;  %v922_v26 = vld [vmem:[%s1237_s29 + $0x14] sm:$0x6]  ;;  %s699_s29 = sadd.s32 (%p1203_p10), %s1079_s19, %s930_s27 }
  0x4f   : > { %v925_v30 = vmul.f32 -1.442695, %v1329_v18  ;;  %v619_v43 = vadd.f32 %v611_v12, %v587_v32  ;;  %v604_v48 = vmul.f32 %v1268_v46, %v596_v28  ;;  %v480_v49 = vunpack.c.l.bf16 %v906_v35  ;;  %s931_s15 = sshll.u32 (%p1203_p10), %s699_s29, 1 }
  0x50   : > { %v503_v47 = vadd.f32 %v495_v25, %v471_v38  ;;  %v512_v50 = vunpack.c.l.bf16 %v910_v36  ;;  %v411_v53 = vrot.slane %v403_v44, 1  ;;  %v443_v54 = vrot.slane %v435_v45, 2  ;;  %s701_s12 = scalar_lea.vmem (%p1203_p10), %s1414_s3, %s931_s15 }
  0x51   : > { %1009 = vpow2.f32 %v925_v30  ;;  %v629_v52 = vadd.f32 %v1319_v1, %v619_v43  ;;  %v580_v56 = vrot.slane %v572_v22, 1  ;;  %v468_v59 = vmul.f32 %v1252_v31, %v460_v41 }
  0x52   : > { %v535_v20 = vadd.f32 %v527_v39, %v503_v47  ;;  %v488_v60 = vmul.f32 %v1257_v37, %v480_v49  ;;  %v419_v27 = vadd.f32 %v411_v53, %v383_v40  ;;  %v520_v62 = vmul.f32 %v1263_v42, %v512_v50 }
  0x53   : > { %v926_v61 = vmul.f32 -1.442695, %v629_v52  ;;  %v565_v63 = vunpack.c.l.bf16 %v918_v51  ;;  %v612_v2 = vrot.slane %v604_v48, 2  ;;  %v545_v3 = vunpack.c.l.bf16 %v914_v55 }
  0x54   : > { %v556_v0 = vadd.f32 %v552_v21, %v535_v20  ;;  %v451_v4 = vadd.f32 %v443_v54, %v419_v27  ;;  %v496_v5 = vrot.slane %v488_v60, 1  ;;  %v597_v6 = vunpack.c.l.bf16 %v922_v26 }
  0x55   : > { %1011 = vpow2.f32 %v926_v61  ;;  %v528_v9 = vrot.slane %v520_v62, 2  ;;  %v573_v31 = vmul.f32 %v1275_v58, %v565_v63  ;;  %v553_v11 = vmul.f32 %v1273_v57, %v545_v3 }
  0x56   : > { %v588_v7 = vadd.f32 %v580_v56, %v556_v0  ;;  %v472_v8 = vadd.f32 %v468_v59, %v451_v4  ;;  %v605_v12 = vmul.f32 %v1268_v46, %v597_v6  ;;  %vm668_vm0 = vcmask 1043456  }
  0x57   : > { %v581_v14 = vrot.slane %v573_v31, 1 }
  0x58   : > { %v620_v10 = vadd.f32 %v612_v2, %v588_v7  ;;  %v504_v37 = vadd.f32 %v496_v5, %v472_v8  ;;  %v613_v21 = vrot.slane %v605_v12, 2 }
  0x5a   : > { %v630_v42 = vadd.f32 %v1319_v1, %v620_v10  ;;  %v536_v13 = vadd.f32 %v528_v9, %v504_v37 }
  0x5c   : > { %v927_v16 = vmul.f32 -1.442695, %v630_v42  ;;  %v557_v19 = vadd.f32 %v553_v11, %v536_v13 }
  0x5e   : > { %v1010_v15 = vpop.eup %1009  ;;  %1013 = vpow2.f32 %v927_v16  ;;  %v589_v22 = vadd.f32 %v581_v14, %v557_v19 }
  0x5f   : > { %v644_v17 = vadd.f32 1.0, %v1010_v15 }
  0x60   : > { %v621_v58 = vadd.f32 %v613_v21, %v589_v22 }
  0x61   : > { %1015 = vrcp.f32 %v644_v17 }
  0x62   : > { %v1012_v23 = vpop.eup %1011  ;;  %v631_v57 = vadd.f32 %v1319_v1, %v621_v58 }
  0x63   : > { %v645_v24 = vadd.f32 1.0, %v1012_v23 }
  0x64   : > { %v928_v46 = vmul.f32 -1.442695, %v631_v57 }
  0x65   : > { %1017 = vrcp.f32 %v645_v24 }
  0x66   : > { %1019 = vpow2.f32 %v928_v46 }
  0x6b   : > { %v1014_v25 = vpop.eup %1013 }
  0x6c   : > { %v646_v29 = vadd.f32 1.0, %v1014_v25 }
  0x6e   : > { %v1016_v28 = vpop.eup %1015  ;;  %1021 = vrcp.f32 %v646_v29 }
  0x6f   : > { %v656_v30 = vmul.f32 %v1016_v28, %v1329_v18 }
  0x71   : > { %v660_v32 = vpack.c.bf16 %v656_v30, %v656_v30  ;;  %v669_v39 = vsel %vm668_vm0, %v656_v30, 0.0 }
  0x72   : > { %v1018_v33 = vpop.eup %1017 }
  0x73   : > { %664 = vst [vmem:[%s1356_s14] sm:$0x3] %v660_v32  ;;  %v657_v1 = vmul.f32 %v1018_v33, %v629_v52  ;;  %v1020_v34 = vpop.eup %1019 }
  0x74   : > { %v647_v36 = vadd.f32 1.0, %v1020_v34 }
  0x75   : > { %v661_v35 = vpack.c.bf16 %v657_v1, %v657_v1  ;;  %v670_v40 = vsel %vm668_vm0, %v657_v1, 0.0 }
  0x76   : > { %1023 = vrcp.f32 %v647_v36  ;;  %v671_v43 = vadd.f32 %v670_v40, %v669_v39 }
  0x77   : > { %665 = vst [vmem:[%s1356_s14 + $0x2] sm:$0x3] %v661_v35 }
  0x7a   : > { %v718_v60 = vld [vmem:[%s1356_s14] sm:$0x3] (%p1203_p10) }
  0x7b   : > { %v1022_v38 = vpop.eup %1021  ;;  %719 = vst [vmem:[%s701_s12] sm:$0x3] (%p1203_p10), %v718_v60 }
  0x7c   : > { %v658_v18 = vmul.f32 %v1022_v38, %v630_v42 }
  0x7e   : > { %v662_v41 = vpack.c.bf16 %v658_v18, %v658_v18  ;;  %v672_v44 = vsel %vm668_vm0, %v658_v18, 0.0  ;;  %v720_v26 = vld [vmem:[%s1356_s14 + $0x2] sm:$0x3] (%p1203_p10) }
  0x7f   : > { %v673_v47 = vadd.f32 %v672_v44, %v671_v43  ;;  %721 = vst [vmem:[%s701_s12 + $0x4] sm:$0x3] (%p1203_p10), %v720_v26 }
  0x80   : > { %666 = vst [vmem:[%s1356_s14 + $0x4] sm:$0x3] %v662_v41 }
  0x83   : > { %v1024_v45 = vpop.eup %1023 }
  0x84   : > { %v659_v48 = vmul.f32 %v1024_v45, %v631_v57 }
  0x86   : > { %v663_v49 = vpack.c.bf16 %v659_v48, %v659_v48  ;;  %v674_v50 = vsel %vm668_vm0, %v659_v48, 0.0 }
  0x87   : > { %v675_v51 = vadd.f32 %v674_v50, %v673_v47  ;;  %v722_v61 = vld [vmem:[%s1356_s14 + $0x4] sm:$0x3] (%p1203_p10) }
  0x88   : > { %667 = vst [vmem:[%s1356_s14 + $0x6] sm:$0x3] %v663_v49  ;;  %723 = vst [vmem:[%s701_s12 + $0x8] sm:$0x3] (%p1203_p10), %v722_v61 }
  0x89   : > { %v676_v52 = vsel %vm668_vm0, %v675_v51, 0.0 }
  0x8a   : > { %v677_v53 = vrot.slane %v676_v52, 4 }
  0x8c   : > { %v678_v54 = vadd.f32 %v677_v53, %v676_v52 }
  0x8e   : > { %v679_v55 = vrot.slane %v678_v54, 2 }
  0x8f   : > { %v724_v27 = vld [vmem:[%s1356_s14 + $0x6] sm:$0x3] (%p1203_p10) }
  0x90   : > { %v680_v20 = vadd.f32 %v679_v55, %v678_v54  ;;  %725 = vst [vmem:[%s701_s12 + $0xc] sm:$0x3] (%p1203_p10), %v724_v27 }
  0x92   : > { %v681_v56 = vrot.slane %v680_v20, 1  ;;  %697 = sbr.rel (!%p1203_p10) target bundleno = 151 (0x97), region = 115 }
  0x94   : > { %v682_v59 = vadd.f32 %v681_v56, %v680_v20 }
  0x96   : > { %683 = vst [vmem:[%s364_s6] sm:$0x1] %v682_v59 }
  0x97 PF: > { %s15_s23 = sadd.s32 1, %s1095_s23   ;;  %s1419_s15 = smov %s1067_s16 }
  0x98   : > { %p12_p3 = scmp.ge.s32.totalorder %s15_s23, 6   ;;  %s1420_s16 = smov %s1190_s5 }
  0x99   : > { %s1421_s17 = smov %s1075_s18  ;;  %s1422_s18 = smov %s1208_s10 }
  0x9a   : > { %s1423_s19 = smov %s1087_s21  ;;  %s1424_s20 = smov %s1091_s22 }
  0x9b   : > { %s1425_s21 = smov %s1428_s25  ;;  %s1426_s22 = smov %s1432_s26 }
  0x9c   :  { %14 = sbr.rel (!%p12_p3) target bundleno = 5 (0x5), region = 212 }

// kernel: _lambda_.25
= control target key start
LH: loop header
LB: loop body
LE: loop exit
PB: predicated region body
PF: predicated region fallthrough
CT: control target
= control target key end

     0   :  { %s833_s18 = smov 0   ;;  %s835_s19 = smov 0   ;;  %s957_s0 = inlined_call_operand.vmem [shape: bf16[2,16,256], index: 0, kind: input, shape index: {}]   ;;  %s958_s1 = inlined_call_operand.vmem [shape: f32[2,1,256], index: 1, kind: input, shape index: {}]   ;;  %s959_s2 = inlined_call_operand.vmem [shape: bf16[256,128], index: 2, kind: input, shape index: {}]   ;;  %s960_s3 = inlined_call_operand.vmem [shape: f32[1,128], index: 3, kind: input, shape index: {}]   ;;  %s961_s4 = inlined_call_operand.vmem [shape: bf16[2,16,128], index: 4, kind: input, shape index: {}]   ;;  %s962_s5 = inlined_call_operand.vmem [shape: bf16[2,16,128], index: 5, kind: output, shape index: {}]  }
   0x1   :  { %s837_s20 = smov 0   ;;  %s839_s21 = smov 0  }
   0x2   :  { %s841_s22 = smov 0  }
   0x3 LB: > { %s24_s23 = sadd.s32 1, %s793_s20  ;;  %s27_s24 = sadd.s32 1, %s797_s21  ;;  %s801_s22 = sphi %s841_s22, %s15_s22   ;;  %s797_s21 = sphi %s839_s21, %s966_s21   ;;  %s793_s20 = sphi %s837_s20, %s965_s20   ;;  %s789_s19 = sphi %s835_s19, %s964_s19   ;;  %s785_s18 = sphi %s833_s18, %s963_s18  }
   0x4   : > { %p25_p0 = scmp.ge.s32.totalorder %s24_s23, 2  ;;  %p654_p1 = scmp.ge.s32.totalorder %s801_s22, 1 }
   0x5   : > { %p231_p2 = scmp.lt.s32.totalorder %s801_s22, 5 }
   0x6   : > { %s968_s23 = smov (%p25_p0, %s24_s23), 0  ;;  %s970_s24 = smov (!%p25_p0, %s27_s24), %s797_s21 }
   0x7   : > { %p232_p3 = pnand %p654_p1, %p231_p2  ;;  %p29_p4 = scmp.ge.s32.totalorder %s970_s24, 2 }
   0x8   : > { %p278_p5 = scmp.lt.s32.totalorder (!%p232_p3), %s789_s19, 1  ;;  %p280_p6 = scmp.lt.s32.totalorder (!%p232_p3), %s785_s18, 1 }
   0x9   : > { %s972_s24 = smov (%p29_p4, %s970_s24), 0  ;;  %235 = sbr.rel (%p232_p3) target bundleno = 251 (0xfb), region = 40 }
   0xe   : > { %v747_v0 = vld [vmem:[%s959_s2 + $0x78] sm:$0xff]   ;;  %v749_v2 = vld [vmem:[%s959_s2 + $0x70] sm:$0xff]   ;;  %v751_v4 = vld [vmem:[%s959_s2 + $0x68] sm:$0xff]   ;;  %v311_v5 = vlaneseq  ;;  %s974_s19 = smov (!%p278_p5, %s789_s19), 1  ;;  %s976_s18 = smov (!%p280_p6, %s785_s18), 1 }
   0xf   : > { %v748_v1 = vld [vmem:[%s959_s2 + $0x38] sm:$0xff]   ;;  %685 = vmatprep.subr.bf16.mxu0 %v747_v0  ;;  %v750_v3 = vld [vmem:[%s959_s2 + $0x30] sm:$0xff]   ;;  %v752_v6 = vld [vmem:[%s959_s2 + $0x28] sm:$0xff]   ;;  %s658_s14 = sshll.u32 %s974_s19, 1  ;;  %s656_s17 = sshll.u32 %s974_s19, 2 }
  0x10   : > { %686 = vmatpush3.bf16.msra.mxu0 %v748_v1  ;;  %v753_v7 = vld [vmem:[%s959_s2 + $0x60] sm:$0xff]   ;;  %v312_v8 = vshrl.u32 %v311_v5, 7  ;;  %v755_v10 = vld [vmem:[%s959_s2 + $0x58] sm:$0xff]   ;;  %s655_s27 = sshll.u32 %s976_s18, 1  ;;  %s290_s30 = scalar_lea.vmem %s958_s1, %s658_s14  ;;  %v757_v14 = vld [vmem:[%s959_s2 + $0x50] sm:$0xff]  }
  0x11   : > { %687 = vmatprep.subr.bf16.mxu0 %v749_v2  ;;  %v754_v9 = vld [vmem:[%s959_s2 + $0x20] sm:$0xff]   ;;  %v756_v13 = vld [vmem:[%s959_s2 + $0x18] sm:$0xff]   ;;  %s284_s8 = sadd.s32 %s656_s17, %s655_s27  ;;  %v758_v18 = vld [vmem:[%s959_s2 + $0x10] sm:$0xff]  }
  0x12   : > { %v313_v11 = vsub.s32 0, %v312_v8  ;;  %v317_v12 = vsub.s32 1, %v312_v8  ;;  %v309_v15 = vld [vmem:[%s290_s30] sm:$0x3]  ;;  %s657_s11 = sshll.u32 %s284_s8, 2  ;;  %v759_v21 = vld [vmem:[%s959_s2 + $0x48] sm:$0xff]   ;;  %s296_s8 = sadd.s32 %s658_s14, %s976_s18 }
  0x13   : > { %s286_s26 = scalar_lea.vmem %s957_s0, %s657_s11  ;;  %v760_v24 = vld [vmem:[%s959_s2 + $0x8] sm:$0xff]   ;;  %v761_v27 = vld [vmem:[%s959_s2 + $0x40] sm:$0xff]   ;;  %s660_s9 = sshll.u32 %s296_s8, 2 }
  0x14   : > { %688 = vmatpush3.bf16.msra.mxu0 %v750_v3  ;;  %v314_v16 = vrot.slane %v309_v15, %v313_v11  ;;  %v318_v17 = vrot.slane %v309_v15, %v317_v12  ;;  %v308_v28 = vld [vmem:[%s286_s26] sm:$0xff]  ;;  %s298_s12 = scalar_lea.vmem %s961_s4, %s660_s9  ;;  %s306_s14 = scalar_lea.vmem %s962_s5, %s660_s9 }
  0x15   : > { %689 = vmatprep.subr.bf16.mxu0 %v751_v4  ;;  %v762_v30 = vld [vmem:[%s959_s2] sm:$0xff]  }
  0x16   : > { %v321_v19 = vpack.c.bf16 %v314_v16, %v314_v16  ;;  %v322_v20 = vpack.c.bf16 %v318_v17, %v318_v17  ;;  %v526_v35 = vld [vmem:[%s298_s12] sm:$0xf] }
  0x17   : > { %v664_v36 = vld [vmem:[%s960_s3] ss:$0 sm:$0xff]  ;;  %v527_v39 = vunpack.c.l.bf16 %v526_v35 }
  0x18   : > { %690 = vmatpush3.bf16.msra.mxu0 %v752_v6  ;;  %v324_v22 = vpack.i.b16 %v321_v19, %v321_v19  ;;  %v331_v23 = vpack.i.b16 %v322_v20, %v322_v20 }
  0x19   : > { %691 = vmatprep.subr.bf16.mxu0 %v753_v7 }
  0x1a   : > { %v329_v25 = vrot.slane %v324_v22, %v313_v11  ;;  %v336_v26 = vrot.slane %v331_v23, %v313_v11 }
  0x1c   : > { %692 = vmatpush3.bf16.msra.mxu0 %v754_v9  ;;  %v663_v29 = vcombine.low %v329_v25, %v336_v26 }
  0x1d   : > { %693 = vmatprep.subr.bf16.mxu0 %v755_v10 }
  0x1e   : > { %v343_v31 = vmul.bf16 %v663_v29, %v308_v28 }
  0x20   : > { %694 = vmatpush3.bf16.msra.mxu0 %v756_v13  ;;  %v666_v32 = vcombine.high %v343_v31, %v343_v31  ;;  %v665_v33 = vcombine.low %v343_v31, %v343_v31 }
  0x21   : > { %695 = vmatprep.subr.bf16.mxu0 %v757_v14 }
  0x22   : > { %518 = vmatprep.mubr.bf16.mxu0 %v666_v32 }
  0x24   : > { %696 = vmatpush3.bf16.msra.mxu0 %v758_v18 }
  0x25   : > { %697 = vmatprep.subr.bf16.mxu0 %v759_v21 }
  0x28   : > { %698 = vmatpush3.bf16.msra.mxu0 %v760_v24 }
  0x29   : > { %699 = vmatprep.subr.bf16.mxu0 %v761_v27 }
  0x2c   : > { %700 = vmatpush3.bf16.msra.mxu0 %v762_v30 }
  0x2f   : > { %519 = vmatmul.mubr.bf16.vlgmr.msra.gmra.mxu0 %v665_v33 }
  0xef   : > { %v701_v34 = vpop.f32.mrf.mxu0 }
  0xf1   : > { %v702_v37 = vpop.f32.mrf.mxu0 }
  0xf2   : > { %v703_v38 = vadd.f32 %v702_v37, %v701_v34 }
  0xf3   : > { %v704_v40 = vpop.f32.mrf.mxu0 }
  0xf4   : > { %v521_v41 = vadd.f32 %v703_v38, %v664_v36 }
  0xf5   : > { %v705_v42 = vpop.f32.mrf.mxu0 }
  0xf6   : > { %v528_v43 = vadd.f32 %v527_v39, %v521_v41 }
  0xf8   : > { %v529_v44 = vpack.c.bf16 %v528_v43, %v528_v43 }
  0xfa   : > { %530 = vst [vmem:[%s306_s14] sm:$0xf] %v529_v44 }
  0xfb PF: > { %s15_s22 = sadd.s32 1, %s801_s22   ;;  %s963_s18 = smov %s793_s20 }
  0xfc   : > { %p12_p7 = scmp.ge.s32.totalorder %s15_s22, 6   ;;  %s964_s19 = smov %s797_s21 }
  0xfd   : > { %s965_s20 = smov %s968_s23  ;;  %s966_s21 = smov %s972_s24 }
  0xfe   :  { %14 = sbr.rel (!%p12_p7) target bundleno = 3 (0x3), region = 76 }

// kernel: _lambda_.24
= control target key start
LH: loop header
LB: loop body
LE: loop exit
PB: predicated region body
PF: predicated region fallthrough
CT: control target
= control target key end

     0   :  { %s639_s18 = smov 0   ;;  %s782_s0 = inlined_call_operand.vmem [shape: f32[2,1,256], index: 0, kind: input, shape index: {}]   ;;  %s783_s1 = inlined_call_operand.vmem [shape: f32[256,6], index: 1, kind: input, shape index: {}]   ;;  %s784_s2 = inlined_call_operand.vmem [shape: f32[1,6], index: 2, kind: input, shape index: {}]   ;;  %s785_s3 = inlined_call_operand.vmem [shape: f32[6,256], index: 3, kind: input, shape index: {}]   ;;  %s786_s4 = inlined_call_operand.vmem [shape: f32[1,256], index: 4, kind: input, shape index: {}]   ;;  %s787_s5 = inlined_call_operand.vmem [shape: f32[2,1,256], index: 5, kind: output, shape index: {}]  }
   0x1 LB: > { %s527_s19 = sadd.s32 4294967295, %s605_s18   ;;  %p531_p0 = scmp.ge.s32.totalorder %s605_s18, 1  ;;  %s605_s18 = sphi %s639_s18, %s15_s18  }
   0x2   : > { %p186_p1 = scmp.lt.s32.totalorder %s605_s18, 3 }
   0x4   : > { %p187_p2 = pnand %p531_p0, %p186_p1 }
   0x5   : > { %p212_p3 = scmp.lt.s32.totalorder (!%p187_p2), %s527_s19, 1 }
   0x6   : > { %190 = sbr.rel (%p187_p2) target bundleno = 513 (0x201), region = 40 }
   0xb   : > { %v253_v0 = vld [vmem:[%s783_s1 + $0xf8] sm:$0xff]  ;;  %v252_v2 = vld [vmem:[%s783_s1 + $0xf0] sm:$0xff]  ;;  %v256_v4 = vlaneseq  ;;  %v251_v5 = vld [vmem:[%s783_s1 + $0xe8] sm:$0xff]  ;;  %s789_s19 = smov (!%p212_p3, %s527_s19), 1  ;;  %vm361_vm0 = vcmask 1045504   ;;  %v607_v42 = vmov 0.0  }
   0xc   : > { %v237_v1 = vld [vmem:[%s783_s1 + $0x78] sm:$0xff]  ;;  %542 = vmatprep.subr.mxu0 %v253_v0  ;;  %v236_v3 = vld [vmem:[%s783_s1 + $0x70] sm:$0xff]  ;;  %v235_v6 = vld [vmem:[%s783_s1 + $0x68] sm:$0xff]  ;;  %s532_s9 = sshll.u32 %s789_s19, 1  ;;  %432 = vmatprep.mubr.f32.mxu1 %v607_v42  ;;  %vm357_vm1 = vcmask 48128  }
   0xd   : > { %543 = vmatpush3.msra.mxu0 %v237_v1  ;;  %v250_v7 = vld [vmem:[%s783_s1 + $0xe0] sm:$0xff]  ;;  %v675_v9 = vshrl.u32 %v256_v4, 7  ;;  %v249_v10 = vld [vmem:[%s783_s1 + $0xd8] sm:$0xff]  ;;  %s215_s20 = scalar_lea.vmem %s782_s0, %s532_s9  ;;  %v248_v12 = vld [vmem:[%s783_s1 + $0xd0] sm:$0xff]  ;;  %s219_s6 = scalar_lea.vmem %s787_s5, %s532_s9  ;;  %vm471_vm2 = vcmp.lt.s32.totalorder %v256_v4, 256 }
   0xe   : > { %544 = vmatprep.subr.mxu0 %v252_v2  ;;  %v234_v8 = vld [vmem:[%s783_s1 + $0x60] sm:$0xff]  ;;  %v233_v11 = vld [vmem:[%s783_s1 + $0x58] sm:$0xff]  ;;  %v232_v13 = vld [vmem:[%s783_s1 + $0x50] sm:$0xff]  ;;  %v608_v2 = vmov 1966171168  }
   0xf   : > { %545 = vmatpush3.msra.mxu0 %v236_v3  ;;  %v262_v14 = vsub.s32 1, %v675_v9  ;;  %v247_v15 = vld [vmem:[%s783_s1 + $0xc8] sm:$0xff]  ;;  %v220_v16 = vld [vmem:[%s215_s20] sm:$0x3]  ;;  %v245_v22 = vld [vmem:[%s783_s1 + $0xb8] sm:$0xff]  ;;  %v258_v34 = vsub.s32 0, %v675_v9  ;;  %v455_v3 = vunpack.c.l.s4 %v608_v2 }
  0x10   : > { %546 = vmatprep.subr.mxu0 %v251_v5  ;;  %v231_v17 = vld [vmem:[%s783_s1 + $0x48] sm:$0xff]  ;;  %v221_v18 = vmul.f32 0.0625, %v220_v16  ;;  %v246_v19 = vld [vmem:[%s783_s1 + $0xc0] sm:$0xff]  ;;  %v229_v23 = vld [vmem:[%s783_s1 + $0x38] sm:$0xff] }
  0x11   : > { %547 = vmatpush3.msra.mxu0 %v235_v6  ;;  %v230_v20 = vld [vmem:[%s783_s1 + $0x40] sm:$0xff]  ;;  %v244_v24 = vld [vmem:[%s783_s1 + $0xb0] sm:$0xff]  ;;  %v243_v26 = vld [vmem:[%s783_s1 + $0xa8] sm:$0xff]  ;;  %v456_v5 = vunpack.c.0.s8 %v455_v3 }
  0x12   : > { %548 = vmatprep.subr.mxu0 %v250_v7  ;;  %v263_v21 = vrot.slane %v221_v18, %v262_v14  ;;  %v228_v25 = vld [vmem:[%s783_s1 + $0x30] sm:$0xff]  ;;  %v227_v27 = vld [vmem:[%s783_s1 + $0x28] sm:$0xff]  ;;  %v242_v28 = vld [vmem:[%s783_s1 + $0xa0] sm:$0xff]  ;;  %v259_v39 = vrot.slane %v221_v18, %v258_v34 }
  0x13   : > { %549 = vmatpush3.msra.mxu0 %v234_v8  ;;  %v226_v29 = vld [vmem:[%s783_s1 + $0x20] sm:$0xff]  ;;  %v241_v30 = vld [vmem:[%s783_s1 + $0x98] sm:$0xff]  ;;  %v240_v32 = vld [vmem:[%s783_s1 + $0x90] sm:$0xff]  ;;  %v459_v7 = vsub.s32 %v456_v5, %v675_v9 }
  0x14   : > { %550 = vmatprep.subr.mxu0 %v249_v10  ;;  %330 = vmatprep.mubr.f32.mxu0 %v263_v21  ;;  %v225_v31 = vld [vmem:[%s783_s1 + $0x18] sm:$0xff]  ;;  %v224_v33 = vld [vmem:[%s783_s1 + $0x10] sm:$0xff]  ;;  %v239_v35 = vld [vmem:[%s783_s1 + $0x88] sm:$0xff] }
  0x15   : > { %551 = vmatpush3.msra.mxu0 %v233_v11  ;;  %v223_v36 = vld [vmem:[%s783_s1 + $0x8] sm:$0xff]  ;;  %v238_v37 = vld [vmem:[%s783_s1 + $0x80] sm:$0xff] }
  0x16   : > { %552 = vmatprep.subr.mxu0 %v248_v12  ;;  %v222_v38 = vld [vmem:[%s783_s1] sm:$0xff]  ;;  %v344_v40 = vld [vmem:[%s785_s3 + $0x8] sm:$0x3f] }
  0x17   : > { %553 = vmatpush3.msra.mxu0 %v232_v13  ;;  %535 = vmatprep.subr.msk.mxu1 %vm361_vm0, %v344_v40  ;;  %v343_v41 = vld [vmem:[%s785_s3] sm:$0x3f] }
  0x18   : > { %554 = vmatprep.subr.mxu0 %v247_v15  ;;  %536 = vmatpush1.msk.msra.mxu1 %vm361_vm0, %v343_v41  ;;  %v254_v44 = vld [vmem:[%s784_s2] sm:$0x1] }
  0x19   : > { %555 = vmatpush3.msra.mxu0 %v231_v17  ;;  %v345_v53 = vld [vmem:[%s786_s4] sm:$0x3] }
  0x1a   : > { %556 = vmatprep.subr.mxu0 %v246_v19  ;;  %v350_v54 = vrot.slane %v345_v53, %v258_v34  ;;  %v354_v55 = vrot.slane %v345_v53, %v262_v14 }
  0x1b   : > { %557 = vmatpush3.msra.mxu0 %v230_v20 }
  0x1c   : > { %558 = vmatprep.subr.mxu0 %v245_v22 }
  0x1d   : > { %559 = vmatpush3.msra.mxu0 %v229_v23 }
  0x1e   : > { %560 = vmatprep.subr.mxu0 %v244_v24 }
  0x1f   : > { %561 = vmatpush3.msra.mxu0 %v228_v25 }
  0x20   : > { %562 = vmatprep.subr.mxu0 %v243_v26 }
  0x21   : > { %563 = vmatpush3.msra.mxu0 %v227_v27 }
  0x22   : > { %564 = vmatprep.subr.mxu0 %v242_v28 }
  0x23   : > { %565 = vmatpush3.msra.mxu0 %v226_v29 }
  0x24   : > { %566 = vmatprep.subr.mxu0 %v241_v30 }
  0x25   : > { %567 = vmatpush3.msra.mxu0 %v225_v31 }
  0x26   : > { %568 = vmatprep.subr.mxu0 %v240_v32 }
  0x27   : > { %569 = vmatpush3.msra.mxu0 %v224_v33 }
  0x28   : > { %570 = vmatprep.subr.mxu0 %v239_v35 }
  0x29   : > { %571 = vmatpush3.msra.mxu0 %v223_v36 }
  0x2a   : > { %572 = vmatprep.subr.mxu0 %v238_v37 }
  0x2b   : > { %573 = vmatpush3.msra.mxu0 %v222_v38 }
  0x2c   : > { %331 = vmatmul.mubr.f32.vlgmr.msra.gmra.mxu0 %v259_v39 }
  0xec   : > { %v574_v43 = vpop.f32.mrf.mxu0 }
  0xee   : > { %v575_v45 = vpop.f32.mrf.mxu0 }
  0xef   : > { %v576_v46 = vadd.f32 %v575_v45, %v574_v43 }
  0xf1   : > { %v333_v47 = vadd.f32 %v576_v46, %v254_v44 }
  0xf3   : > { %v534_v48 = vmul.f32 -1.442695, %v333_v47 }
  0xf5   : > { %587 = vpow2.f32 %v534_v48 }
 0x102   : > { %v588_v49 = vpop.eup %587 }
 0x103   : > { %v339_v50 = vadd.f32 1.0, %v588_v49 }
 0x105   : > { %589 = vrcp.f32 %v339_v50 }
 0x112   : > { %v590_v51 = vpop.eup %589 }
 0x113   : > { %v342_v52 = vmul.f32 %v590_v51, %v333_v47 }
 0x115   : > { %537 = vmatmul.mubr.msk.f32.vlgmr.msra.gmra.mxu1 %vm357_vm1, %v342_v52 }
 0x1d5   : > { %v434_v56 = vpop.f32.mrf.mxu1 }
 0x1d6   : > { %v435_v57 = vadd.f32 %v434_v56, %v350_v54 }
 0x1d7   : > { %v436_v58 = vpop.f32.mrf.mxu1 }
 0x1d8   : > { %v538_v59 = vmul.f32 -1.442695, %v435_v57  ;;  %v437_v60 = vadd.f32 %v436_v58, %v354_v55 }
 0x1da   : > { %591 = vpow2.f32 %v538_v59  ;;  %v539_v61 = vmul.f32 -1.442695, %v437_v60 }
 0x1dc   : > { %593 = vpow2.f32 %v539_v61 }
 0x1e7   : > { %v592_v62 = vpop.eup %591 }
 0x1e8   : > { %v445_v63 = vadd.f32 1.0, %v592_v62 }
 0x1e9   : > { %v594_v0 = vpop.eup %593 }
 0x1ea   : > { %v446_v1 = vadd.f32 1.0, %v594_v0  ;;  %595 = vrcp.f32 %v445_v63 }
 0x1ec   : > { %597 = vrcp.f32 %v446_v1 }
 0x1f7   : > { %v596_v6 = vpop.eup %595 }
 0x1f9   : > { %v598_v8 = vpop.eup %597 }
 0x1fa   : > { %v453_v10 = vcombine.low %v596_v6, %v598_v8 }
 0x1fc   : > { %v460_v11 = vrot.slane %v453_v10, %v459_v7 }
 0x1fe   : > { %v467_v12 = vrot.slane %v460_v11, %v459_v7 }
 0x200   : > { %473 = vst.msk [vmem:[%s219_s6] sm:$0x3] %vm471_vm2, %v467_v12 }
 0x201 PF: > { %s15_s18 = sadd.s32 1, %s605_s18  }
 0x202   : > { %p12_p4 = scmp.ge.s32.totalorder %s15_s18, 4  }
 0x204   :  { %14 = sbr.rel (!%p12_p4) target bundleno = 1 (0x1), region = 70 }

// kernel: _lambda_.26
= control target key start
LH: loop header
LB: loop body
LE: loop exit
PB: predicated region body
PF: predicated region fallthrough
CT: control target
= control target key end

     0   :  { %s1574_s12 = smov 0   ;;  %s1957_s0 = inlined_call_operand.vmem [shape: bf16[32,128], index: 0, kind: input, shape index: {}]   ;;  %s1958_s1 = inlined_call_operand.vmem [shape: bf16[128,1280], index: 1, kind: input, shape index: {}]   ;;  %s1959_s2 = inlined_call_operand.vmem [shape: f32[1,1280], index: 2, kind: input, shape index: {}]   ;;  %s1960_s3 = inlined_call_operand.vmem [shape: bf16[32,1280], index: 3, kind: output, shape index: {}]  }
   0x1 LB: > { %s1202_s13 = sadd.s32 4294967295, %s1551_s12   ;;  %p1206_p0 = scmp.ge.s32.totalorder %s1551_s12, 1  ;;  %s1551_s12 = sphi %s1574_s12, %s13_s12  }
   0x2   : > { %p138_p1 = scmp.lt.s32.totalorder %s1551_s12, 3 }
   0x4   : > { %p139_p2 = pnand %p1206_p0, %p138_p1 }
   0x5   : > { %s1207_s5 = sshll.u32 (!%p139_p2), %s1202_s13, 1 }
   0x6   : > { %142 = sbr.rel (%p139_p2) target bundleno = 347 (0x15b), region = 32  ;;  %p164_p3 = scmp.lt.s32.totalorder (!%p139_p2), %s1207_s5, 3 }
   0xb   : > { %v1344_v0 = vld [vmem:[%s1958_s1 + $0x234] ss:$40 sps:$4 sm:$0xff]   ;;  %v1553_v2 = vmov 0   ;;  %v1348_v3 = vld [vmem:[%s1958_s1 + $0x230] ss:$40 sps:$4 sm:$0xff]   ;;  %s1962_s5 = smov (!%p164_p3, %s1207_s5), 3 }
   0xc   : > { %v1346_v1 = vld [vmem:[%s1958_s1 + $0x23c] ss:$40 sps:$4 sm:$0xff]   ;;  %751 = vmatprep.mubr.bf16.mxu0 %v1553_v2  ;;  %794 = vmatprep.mubr.bf16.mxu1 %v1553_v2  ;;  %v1349_v4 = vld [vmem:[%s1958_s1 + $0x238] ss:$40 sps:$4 sm:$0xff]   ;;  %v1352_v6 = vld [vmem:[%s1958_s1 + $0x1ec] ss:$40 sps:$4 sm:$0xff]  }
   0xd   : > { %719 = vmatprep.subr.bf16.mxu0 %v1344_v0  ;;  %762 = vmatprep.subr.bf16.mxu1 %v1346_v1  ;;  %v1350_v5 = vld [vmem:[%s1958_s1 + $0x1e4] ss:$40 sps:$4 sm:$0xff]   ;;  %v1354_v7 = vld [vmem:[%s1958_s1 + $0x1e0] ss:$40 sps:$4 sm:$0xff]   ;;  %v1356_v9 = vld [vmem:[%s1958_s1 + $0x194] ss:$40 sps:$4 sm:$0xff]  }
   0xe   : > { %720 = vmatpush1.bf16.msra.mxu0 %v1348_v3  ;;  %763 = vmatpush1.bf16.msra.mxu1 %v1349_v4  ;;  %v1355_v8 = vld [vmem:[%s1958_s1 + $0x1e8] ss:$40 sps:$4 sm:$0xff]   ;;  %v1358_v10 = vld [vmem:[%s1958_s1 + $0x19c] ss:$40 sps:$4 sm:$0xff]   ;;  %v1361_v12 = vld [vmem:[%s1958_s1 + $0x198] ss:$40 sps:$4 sm:$0xff]  }
   0xf   : > { %721 = vmatprep.subr.bf16.mxu0 %v1350_v5  ;;  %764 = vmatprep.subr.bf16.mxu1 %v1352_v6  ;;  %v1360_v11 = vld [vmem:[%s1958_s1 + $0x190] ss:$40 sps:$4 sm:$0xff]   ;;  %v1362_v13 = vld [vmem:[%s1958_s1 + $0x144] ss:$40 sps:$4 sm:$0xff]   ;;  %v1366_v15 = vld [vmem:[%s1958_s1 + $0x140] ss:$40 sps:$4 sm:$0xff]  }
  0x10   : > { %v1364_v14 = vld [vmem:[%s1958_s1 + $0x14c] ss:$40 sps:$4 sm:$0xff]   ;;  %v1367_v16 = vld [vmem:[%s1958_s1 + $0x148] ss:$40 sps:$4 sm:$0xff]   ;;  %v1370_v18 = vld [vmem:[%s1958_s1 + $0xfc] ss:$40 sps:$4 sm:$0xff]  }
  0x11   : > { %v1368_v17 = vld [vmem:[%s1958_s1 + $0xf4] ss:$40 sps:$4 sm:$0xff]   ;;  %v1372_v19 = vld [vmem:[%s1958_s1 + $0xf0] ss:$40 sps:$4 sm:$0xff]   ;;  %v1374_v21 = vld [vmem:[%s1958_s1 + $0xa4] ss:$40 sps:$4 sm:$0xff]  }
  0x12   : > { %722 = vmatpush1.bf16.msra.mxu0 %v1354_v7  ;;  %765 = vmatpush1.bf16.msra.mxu1 %v1355_v8  ;;  %v1373_v20 = vld [vmem:[%s1958_s1 + $0xf8] ss:$40 sps:$4 sm:$0xff]   ;;  %v1376_v22 = vld [vmem:[%s1958_s1 + $0xac] ss:$40 sps:$4 sm:$0xff]   ;;  %s1208_s7 = sshll.u32 %s1962_s5, 2  ;;  %s1334_s30 = smul.u32 40, %s1962_s5 }
  0x13   : > { %723 = vmatprep.subr.bf16.mxu0 %v1356_v9  ;;  %766 = vmatprep.subr.bf16.mxu1 %v1358_v10  ;;  %v1378_v23 = vld [vmem:[%s1958_s1 + $0xa0] ss:$40 sps:$4 sm:$0xff]   ;;  %v1380_v25 = vld [vmem:[%s1958_s1 + $0x54] ss:$40 sps:$4 sm:$0xff]   ;;  %s167_s17 = scalar_lea.vmem %s1957_s0, %s1208_s7  ;;  %v1384_v27 = vld [vmem:[%s1958_s1 + $0x50] ss:$40 sps:$4 sm:$0xff]  }
  0x14   : > { %v1379_v24 = vld [vmem:[%s1958_s1 + $0xa8] ss:$40 sps:$4 sm:$0xff]   ;;  %v1382_v26 = vld [vmem:[%s1958_s1 + $0x5c] ss:$40 sps:$4 sm:$0xff]   ;;  %v1385_v28 = vld [vmem:[%s1958_s1 + $0x58] ss:$40 sps:$4 sm:$0xff]   ;;  %s1911_s6 = scalar_lea.vmem %s1960_s3, %s1334_s30 }
  0x15   : > { %v1386_v29 = vld [vmem:[%s1958_s1 + $0x4] ss:$40 sps:$4 sm:$0xff]   ;;  %v1390_v31 = vld [vmem:[%s1958_s1] ss:$40 sps:$4 sm:$0xff]   ;;  %v1401_v38 = vld [vmem:[%s1958_s1 + $0x1f4] ss:$40 sps:$4 sm:$0xff]  }
  0x16   : > { %724 = vmatpush1.bf16.msra.mxu0 %v1360_v11  ;;  %767 = vmatpush1.bf16.msra.mxu1 %v1361_v12  ;;  %v1388_v30 = vld [vmem:[%s1958_s1 + $0xc] ss:$40 sps:$4 sm:$0xff]   ;;  %v1391_v32 = vld [vmem:[%s1958_s1 + $0x8] ss:$40 sps:$4 sm:$0xff]   ;;  %v1692_v35 = vld [vmem:[%s167_s17] sm:$0xff]  }
  0x17   : > { %725 = vmatprep.subr.bf16.mxu0 %v1362_v13  ;;  %768 = vmatprep.subr.bf16.mxu1 %v1364_v14  ;;  %v1395_v33 = vld [vmem:[%s1958_s1 + $0x244] ss:$40 sps:$4 sm:$0xff]   ;;  %v1393_v36 = vld [vmem:[%s1958_s1 + $0x240] ss:$40 sps:$4 sm:$0xff]   ;;  %v1399_v40 = vld [vmem:[%s1958_s1 + $0x1f0] ss:$40 sps:$4 sm:$0xff]  }
  0x18   : > { %v1398_v34 = vld [vmem:[%s1958_s1 + $0x24c] ss:$40 sps:$4 sm:$0xff]   ;;  %v1396_v37 = vld [vmem:[%s1958_s1 + $0x248] ss:$40 sps:$4 sm:$0xff]   ;;  %v1404_v39 = vld [vmem:[%s1958_s1 + $0x1fc] ss:$40 sps:$4 sm:$0xff]  }
  0x19   : > { %v1402_v41 = vld [vmem:[%s1958_s1 + $0x1f8] ss:$40 sps:$4 sm:$0xff]   ;;  %v1407_v42 = vld [vmem:[%s1958_s1 + $0x1a4] ss:$40 sps:$4 sm:$0xff]   ;;  %v1408_v45 = vld [vmem:[%s1958_s1 + $0x1a8] ss:$40 sps:$4 sm:$0xff]  }
  0x1a   : > { %726 = vmatpush1.bf16.msra.mxu0 %v1366_v15  ;;  %769 = vmatpush1.bf16.msra.mxu1 %v1367_v16  ;;  %v1410_v43 = vld [vmem:[%s1958_s1 + $0x1ac] ss:$40 sps:$4 sm:$0xff]   ;;  %v1405_v44 = vld [vmem:[%s1958_s1 + $0x1a0] ss:$40 sps:$4 sm:$0xff]   ;;  %v1416_v47 = vld [vmem:[%s1958_s1 + $0x15c] ss:$40 sps:$4 sm:$0xff]  }
  0x1b   : > { %727 = vmatprep.subr.bf16.mxu0 %v1368_v17  ;;  %770 = vmatprep.subr.bf16.mxu1 %v1370_v18  ;;  %v1413_v46 = vld [vmem:[%s1958_s1 + $0x154] ss:$40 sps:$4 sm:$0xff]   ;;  %v1411_v48 = vld [vmem:[%s1958_s1 + $0x150] ss:$40 sps:$4 sm:$0xff]   ;;  %v1419_v50 = vld [vmem:[%s1958_s1 + $0x104] ss:$40 sps:$4 sm:$0xff]   ;;  %v263_v18 = vlaneseq }
  0x1c   : > { %v1414_v49 = vld [vmem:[%s1958_s1 + $0x158] ss:$40 sps:$4 sm:$0xff]   ;;  %v1422_v51 = vld [vmem:[%s1958_s1 + $0x10c] ss:$40 sps:$4 sm:$0xff]   ;;  %v1420_v53 = vld [vmem:[%s1958_s1 + $0x108] ss:$40 sps:$4 sm:$0xff]  }
  0x1d   : > { %v1417_v52 = vld [vmem:[%s1958_s1 + $0x100] ss:$40 sps:$4 sm:$0xff]   ;;  %v1425_v54 = vld [vmem:[%s1958_s1 + $0xb4] ss:$40 sps:$4 sm:$0xff]   ;;  %v1423_v56 = vld [vmem:[%s1958_s1 + $0xb0] ss:$40 sps:$4 sm:$0xff]  }
  0x1e   : > { %728 = vmatpush1.bf16.msra.mxu0 %v1372_v19  ;;  %771 = vmatpush1.bf16.msra.mxu1 %v1373_v20  ;;  %v1428_v55 = vld [vmem:[%s1958_s1 + $0xbc] ss:$40 sps:$4 sm:$0xff]   ;;  %v1426_v57 = vld [vmem:[%s1958_s1 + $0xb8] ss:$40 sps:$4 sm:$0xff]   ;;  %v1434_v59 = vld [vmem:[%s1958_s1 + $0x6c] ss:$40 sps:$4 sm:$0xff]  }
  0x1f   : > { %729 = vmatprep.subr.bf16.mxu0 %v1374_v21  ;;  %772 = vmatprep.subr.bf16.mxu1 %v1376_v22  ;;  %v1431_v58 = vld [vmem:[%s1958_s1 + $0x64] ss:$40 sps:$4 sm:$0xff]   ;;  %v1429_v60 = vld [vmem:[%s1958_s1 + $0x60] ss:$40 sps:$4 sm:$0xff]   ;;  %v1437_v62 = vld [vmem:[%s1958_s1 + $0x14] ss:$40 sps:$4 sm:$0xff]  }
  0x20   : > { %v1432_v61 = vld [vmem:[%s1958_s1 + $0x68] ss:$40 sps:$4 sm:$0xff]   ;;  %v1440_v63 = vld [vmem:[%s1958_s1 + $0x1c] ss:$40 sps:$4 sm:$0xff]   ;;  %v1438_v1 = vld [vmem:[%s1958_s1 + $0x18] ss:$40 sps:$4 sm:$0xff]  }
  0x21   : > { %v1435_v0 = vld [vmem:[%s1958_s1 + $0x10] ss:$40 sps:$4 sm:$0xff]   ;;  %v1443_v3 = vld [vmem:[%s1958_s1 + $0x254] ss:$40 sps:$4 sm:$0xff]   ;;  %v1446_v5 = vld [vmem:[%s1958_s1 + $0x204] ss:$40 sps:$4 sm:$0xff]  }
  0x22   : > { %730 = vmatpush1.bf16.msra.mxu0 %v1378_v23  ;;  %773 = vmatpush1.bf16.msra.mxu1 %v1379_v24  ;;  %v1441_v4 = vld [vmem:[%s1958_s1 + $0x250] ss:$40 sps:$4 sm:$0xff]   ;;  %v1444_v6 = vld [vmem:[%s1958_s1 + $0x200] ss:$40 sps:$4 sm:$0xff]   ;;  %v1449_v7 = vld [vmem:[%s1958_s1 + $0x1b4] ss:$40 sps:$4 sm:$0xff]  }
  0x23   : > { %731 = vmatprep.subr.bf16.mxu0 %v1380_v25  ;;  %774 = vmatprep.subr.bf16.mxu1 %v1382_v26  ;;  %v1447_v8 = vld [vmem:[%s1958_s1 + $0x1b0] ss:$40 sps:$4 sm:$0xff]   ;;  %v1452_v9 = vld [vmem:[%s1958_s1 + $0x164] ss:$40 sps:$4 sm:$0xff]   ;;  %v1455_v10 = vld [vmem:[%s1958_s1 + $0x114] ss:$40 sps:$4 sm:$0xff]  }
  0x24   : > { %v1453_v11 = vld [vmem:[%s1958_s1 + $0x110] ss:$40 sps:$4 sm:$0xff]   ;;  %v1458_v12 = vld [vmem:[%s1958_s1 + $0xc4] ss:$40 sps:$4 sm:$0xff]   ;;  %v1456_v13 = vld [vmem:[%s1958_s1 + $0xc0] ss:$40 sps:$4 sm:$0xff]  }
  0x25   : > { %v1461_v14 = vld [vmem:[%s1958_s1 + $0x74] ss:$40 sps:$4 sm:$0xff]   ;;  %v1459_v15 = vld [vmem:[%s1958_s1 + $0x70] ss:$40 sps:$4 sm:$0xff]   ;;  %v1464_v16 = vld [vmem:[%s1958_s1 + $0x24] ss:$40 sps:$4 sm:$0xff]  }
  0x26   : > { %732 = vmatpush1.bf16.msra.mxu0 %v1384_v27  ;;  %775 = vmatpush1.bf16.msra.mxu1 %v1385_v28  ;;  %v1462_v17 = vld [vmem:[%s1958_s1 + $0x20] ss:$40 sps:$4 sm:$0xff]   ;;  %v1840_v19 = vshrl.u32 %v263_v18, 7 }
  0x27   : > { %733 = vmatprep.subr.bf16.mxu0 %v1386_v29  ;;  %776 = vmatprep.subr.bf16.mxu1 %v1388_v30  ;;  %v1847_v22 = vld [vmem:[%s1959_s2] sm:$0xff] }
  0x28   : > { %v265_v20 = vsub.s32 0, %v1840_v19  ;;  %v273_v21 = vsub.s32 2, %v1840_v19  ;;  %v269_v23 = vsub.s32 1, %v1840_v19  ;;  %v277_v24 = vsub.s32 3, %v1840_v19 }
  0x2a   : > { %734 = vmatpush1.bf16.msra.mxu0 %v1390_v31  ;;  %777 = vmatpush1.bf16.msra.mxu1 %v1391_v32  ;;  %v266_v25 = vrot.slane %v1847_v22, %v265_v20  ;;  %v274_v26 = vrot.slane %v1847_v22, %v273_v21  ;;  %v270_v27 = vrot.slane %v1847_v22, %v269_v23 }
  0x2b   : > { %805 = vmatprep.subr.bf16.mxu0 %v1395_v33  ;;  %848 = vmatprep.subr.bf16.mxu1 %v1398_v34  ;;  %v278_v28 = vrot.slane %v1847_v22, %v277_v24 }
  0x2d   : > { %752 = vmatmul.mubr.bf16.vlgmr.msra.gmra.mxu0 %v1692_v35  ;;  %795 = vmatmul.mubr.bf16.vlgmr.msra.gmra.mxu1 %v1692_v35 }
  0x2e   : > { %806 = vmatpush1.bf16.msra.mxu0 %v1393_v36  ;;  %849 = vmatpush1.bf16.msra.mxu1 %v1396_v37 }
  0x2f   : > { %807 = vmatprep.subr.bf16.mxu0 %v1401_v38  ;;  %850 = vmatprep.subr.bf16.mxu1 %v1404_v39 }
  0x30   : > { %837 = vmatprep.mubr.bf16.mxu0 %v1553_v2  ;;  %880 = vmatprep.mubr.bf16.mxu1 %v1553_v2 }
  0x32   : > { %808 = vmatpush1.bf16.msra.mxu0 %v1399_v40  ;;  %851 = vmatpush1.bf16.msra.mxu1 %v1402_v41 }
  0x33   : > { %809 = vmatprep.subr.bf16.mxu0 %v1407_v42  ;;  %852 = vmatprep.subr.bf16.mxu1 %v1410_v43 }
  0x36   : > { %810 = vmatpush1.bf16.msra.mxu0 %v1405_v44  ;;  %853 = vmatpush1.bf16.msra.mxu1 %v1408_v45 }
  0x37   : > { %811 = vmatprep.subr.bf16.mxu0 %v1413_v46  ;;  %854 = vmatprep.subr.bf16.mxu1 %v1416_v47 }
  0x3a   : > { %812 = vmatpush1.bf16.msra.mxu0 %v1411_v48  ;;  %855 = vmatpush1.bf16.msra.mxu1 %v1414_v49 }
  0x3b   : > { %813 = vmatprep.subr.bf16.mxu0 %v1419_v50  ;;  %856 = vmatprep.subr.bf16.mxu1 %v1422_v51 }
  0x3e   : > { %814 = vmatpush1.bf16.msra.mxu0 %v1417_v52  ;;  %857 = vmatpush1.bf16.msra.mxu1 %v1420_v53 }
  0x3f   : > { %815 = vmatprep.subr.bf16.mxu0 %v1425_v54  ;;  %858 = vmatprep.subr.bf16.mxu1 %v1428_v55 }
  0x42   : > { %816 = vmatpush1.bf16.msra.mxu0 %v1423_v56  ;;  %859 = vmatpush1.bf16.msra.mxu1 %v1426_v57 }
  0x43   : > { %817 = vmatprep.subr.bf16.mxu0 %v1431_v58  ;;  %860 = vmatprep.subr.bf16.mxu1 %v1434_v59 }
  0x46   : > { %818 = vmatpush1.bf16.msra.mxu0 %v1429_v60  ;;  %861 = vmatpush1.bf16.msra.mxu1 %v1432_v61 }
  0x47   : > { %819 = vmatprep.subr.bf16.mxu0 %v1437_v62  ;;  %862 = vmatprep.subr.bf16.mxu1 %v1440_v63 }
  0x4a   : > { %820 = vmatpush1.bf16.msra.mxu0 %v1435_v0  ;;  %863 = vmatpush1.bf16.msra.mxu1 %v1438_v1 }
  0x4b   : > { %891 = vmatprep.subr.bf16.mxu0 %v1443_v3 }
  0x4d   : > { %838 = vmatmul.mubr.bf16.vlgmr.msra.gmra.mxu0 %v1692_v35  ;;  %881 = vmatmul.mubr.bf16.vlgmr.msra.gmra.mxu1 %v1692_v35 }
  0x4e   : > { %892 = vmatpush1.bf16.msra.mxu0 %v1441_v4  ;;  %923 = vmatprep.mubr.bf16.mxu0 %v1553_v2  ;;  %v1450_v2 = vld [vmem:[%s1958_s1 + $0x160] ss:$40 sps:$4 sm:$0xff]  }
  0x4f   : > { %893 = vmatprep.subr.bf16.mxu0 %v1446_v5  ;;  %v281_v5 = vsub.s32 4, %v1840_v19 }
  0x52   : > { %894 = vmatpush1.bf16.msra.mxu0 %v1444_v6  ;;  %v289_v6 = vsub.s32 6, %v1840_v19 }
  0x53   : > { %895 = vmatprep.subr.bf16.mxu0 %v1449_v7 }
  0x56   : > { %896 = vmatpush1.bf16.msra.mxu0 %v1447_v8  ;;  %v285_v8 = vsub.s32 5, %v1840_v19 }
  0x57   : > { %897 = vmatprep.subr.bf16.mxu0 %v1452_v9  ;;  %v293_v9 = vsub.s32 7, %v1840_v19 }
  0x5a   : > { %898 = vmatpush1.bf16.msra.mxu0 %v1450_v2  ;;  %v282_v2 = vrot.slane %v1847_v22, %v281_v5 }
  0x5b   : > { %899 = vmatprep.subr.bf16.mxu0 %v1455_v10  ;;  %v290_v10 = vrot.slane %v1847_v22, %v289_v6 }
  0x5e   : > { %900 = vmatpush1.bf16.msra.mxu0 %v1453_v11  ;;  %v286_v11 = vrot.slane %v1847_v22, %v285_v8 }
  0x5f   : > { %901 = vmatprep.subr.bf16.mxu0 %v1458_v12 }
  0x62   : > { %902 = vmatpush1.bf16.msra.mxu0 %v1456_v13 }
  0x63   : > { %903 = vmatprep.subr.bf16.mxu0 %v1461_v14  ;;  %v294_v14 = vrot.slane %v1847_v22, %v293_v9 }
  0x66   : > { %904 = vmatpush1.bf16.msra.mxu0 %v1459_v15 }
  0x67   : > { %905 = vmatprep.subr.bf16.mxu0 %v1464_v16 }
  0x6a   : > { %906 = vmatpush1.bf16.msra.mxu0 %v1462_v17 }
  0x6d   : > { %924 = vmatmul.mubr.bf16.vlgmr.msra.gmra.mxu0 %v1692_v35 }
  0xed   : > { %v753_v29 = vpop.f32.mrf.mxu0  ;;  %v796_v30 = vpop.f32.mrf.mxu1 }
  0xee   : > { %v1859_v31 = vadd.f32 %v753_v29, %v266_v25  ;;  %v1861_v32 = vadd.f32 %v796_v30, %v274_v26 }
  0xef   : > { %v755_v33 = vpop.f32.mrf.mxu0  ;;  %v798_v34 = vpop.f32.mrf.mxu1 }
  0xf0   : > { %v1292_v35 = vmul.f32 -1.442695, %v1859_v31  ;;  %v1294_v36 = vmul.f32 -1.442695, %v1861_v32  ;;  %v1865_v37 = vadd.f32 %v755_v33, %v270_v27  ;;  %v1867_v38 = vadd.f32 %v798_v34, %v278_v28 }
  0xf1   : > { %v757_v39 = vpop.f32.mrf.mxu0  ;;  %v800_v40 = vpop.f32.mrf.mxu1 }
  0xf2   : > { %1465 = vpow2.f32 %v1292_v35  ;;  %v1293_v41 = vmul.f32 -1.442695, %v1865_v37  ;;  %v1295_v42 = vmul.f32 -1.442695, %v1867_v38  ;;  %v1871_v43 = vadd.f32 %v757_v39, %v266_v25 }
  0xf3   : > { %1467 = vpow2.f32 %v1294_v36  ;;  %v1873_v44 = vadd.f32 %v800_v40, %v274_v26  ;;  %v759_v45 = vpop.f32.mrf.mxu0  ;;  %v802_v46 = vpop.f32.mrf.mxu1 }
  0xf4   : > { %1469 = vpow2.f32 %v1293_v41  ;;  %v1302_v47 = vmul.f32 -1.442695, %v1871_v43  ;;  %v1876_v48 = vadd.f32 %v759_v45, %v270_v27  ;;  %v1878_v49 = vadd.f32 %v802_v46, %v278_v28 }
  0xf5   : > { %1471 = vpow2.f32 %v1295_v42  ;;  %v1304_v50 = vmul.f32 -1.442695, %v1873_v44 }
  0xf6   : > { %1473 = vpow2.f32 %v1302_v47  ;;  %v1303_v51 = vmul.f32 -1.442695, %v1876_v48  ;;  %v1305_v52 = vmul.f32 -1.442695, %v1878_v49 }
  0xf7   : > { %1475 = vpow2.f32 %v1304_v50 }
  0xf8   : > { %1477 = vpow2.f32 %v1303_v51 }
  0xf9   : > { %1479 = vpow2.f32 %v1305_v52 }
  0xff   : > { %v1466_v53 = vpop.eup %1465 }
 0x100   : > { %v1468_v54 = vpop.eup %1467  ;;  %v994_v55 = vadd.f32 1.0, %v1466_v53 }
 0x101   : > { %v1470_v56 = vpop.eup %1469  ;;  %v996_v57 = vadd.f32 1.0, %v1468_v54 }
 0x102   : > { %v1472_v58 = vpop.eup %1471  ;;  %1481 = vrcp.f32 %v994_v55  ;;  %v995_v59 = vadd.f32 1.0, %v1470_v56 }
 0x103   : > { %v1474_v60 = vpop.eup %1473  ;;  %1483 = vrcp.f32 %v996_v57  ;;  %v997_v61 = vadd.f32 1.0, %v1472_v58 }
 0x104   : > { %v1476_v62 = vpop.eup %1475  ;;  %1485 = vrcp.f32 %v995_v59  ;;  %v1004_v63 = vadd.f32 1.0, %v1474_v60 }
 0x105   : > { %v1478_v0 = vpop.eup %1477  ;;  %1487 = vrcp.f32 %v997_v61  ;;  %v1006_v1 = vadd.f32 1.0, %v1476_v62 }
 0x106   : > { %v1480_v3 = vpop.eup %1479  ;;  %1489 = vrcp.f32 %v1004_v63  ;;  %v1005_v4 = vadd.f32 1.0, %v1478_v0 }
 0x107   : > { %1491 = vrcp.f32 %v1006_v1  ;;  %v1007_v7 = vadd.f32 1.0, %v1480_v3 }
 0x108   : > { %1493 = vrcp.f32 %v1005_v4 }
 0x109   : > { %1495 = vrcp.f32 %v1007_v7 }
 0x10d   : > { %v839_v12 = vpop.f32.mrf.mxu0  ;;  %v882_v13 = vpop.f32.mrf.mxu1 }
 0x10e   : > { %v1891_v15 = vadd.f32 %v839_v12, %v282_v2  ;;  %v1893_v16 = vadd.f32 %v882_v13, %v290_v10 }
 0x10f   : > { %v1482_v17 = vpop.eup %1481  ;;  %v841_v18 = vpop.f32.mrf.mxu0 }
 0x110   : > { %v884_v21 = vpop.f32.mrf.mxu1  ;;  %v1484_v24 = vpop.eup %1483  ;;  %v1296_v25 = vmul.f32 -1.442695, %v1891_v15  ;;  %v1298_v26 = vmul.f32 -1.442695, %v1893_v16  ;;  %v1898_v27 = vadd.f32 %v841_v18, %v286_v11  ;;  %v1054_v29 = vmul.f32 %v1482_v17, %v1859_v31 }
 0x111   : > { %v1486_v28 = vpop.eup %1485  ;;  %v1056_v22 = vmul.f32 %v1484_v24, %v1861_v32  ;;  %v1902_v30 = vadd.f32 %v884_v21, %v294_v14  ;;  %v843_v33 = vpop.f32.mrf.mxu0 }
 0x112   : > { %v886_v34 = vpop.f32.mrf.mxu1  ;;  %v1488_v35 = vpop.eup %1487  ;;  %v1055_v36 = vmul.f32 %v1486_v28, %v1865_v37  ;;  %1497 = vpow2.f32 %v1296_v25  ;;  %v1297_v39 = vmul.f32 -1.442695, %v1898_v27  ;;  %v1906_v40 = vadd.f32 %v843_v33, %v282_v2  ;;  %v260_v2 = vld [vmem:[%s1959_s2 + $0x8] sm:$0x3] }
 0x113   : > { %v1490_v41 = vpop.eup %1489  ;;  %v1057_v31 = vmul.f32 %v1488_v35, %v1867_v38  ;;  %1499 = vpow2.f32 %v1298_v26  ;;  %v1299_v32 = vmul.f32 -1.442695, %v1902_v30  ;;  %v1915_v42 = vadd.f32 %v886_v34, %v290_v10  ;;  %v845_v37 = vpop.f32.mrf.mxu0 }
 0x114   : > { %v888_v45 = vpop.f32.mrf.mxu1  ;;  %v1492_v46 = vpop.eup %1491  ;;  %v1324_v47 = vpack.c.bf16 %v1055_v36, %v1054_v29  ;;  %1501 = vpow2.f32 %v1297_v39  ;;  %v1306_v50 = vmul.f32 -1.442695, %v1906_v40  ;;  %v1064_v53 = vmul.f32 %v1490_v41, %v1871_v43 }
 0x115   : > { %v1494_v51 = vpop.eup %1493  ;;  %v1325_v52 = vpack.c.bf16 %v1057_v31, %v1056_v22  ;;  %1503 = vpow2.f32 %v1299_v32  ;;  %v1308_v38 = vmul.f32 -1.442695, %v1915_v42  ;;  %v1922_v56 = vadd.f32 %v845_v37, %v286_v11 }
 0x116   : > { %v1496_v54 = vpop.eup %1495  ;;  %1134 = vst [vmem:[%s1911_s6] sm:$0xff] %v1324_v47  ;;  %v1065_v55 = vmul.f32 %v1494_v51, %v1876_v48  ;;  %1505 = vpow2.f32 %v1306_v50  ;;  %v1924_v57 = vadd.f32 %v888_v45, %v294_v14  ;;  %v1066_v58 = vmul.f32 %v1492_v46, %v1873_v44 }
 0x117   : > { %1135 = vst [vmem:[%s1911_s6 + $0x8] sm:$0xff] %v1325_v52  ;;  %v1067_v59 = vmul.f32 %v1496_v54, %v1878_v49  ;;  %1507 = vpow2.f32 %v1308_v38  ;;  %v1307_v60 = vmul.f32 -1.442695, %v1922_v56  ;;  %v298_v13 = vrot.slane %v260_v2, %v265_v20 }
 0x118   : > { %v1329_v43 = vpack.c.bf16 %v1065_v55, %v1064_v53  ;;  %v1309_v61 = vmul.f32 -1.442695, %v1924_v57  ;;  %v302_v14 = vrot.slane %v260_v2, %v269_v23 }
 0x119   : > { %v1330_v62 = vpack.c.bf16 %v1067_v59, %v1066_v58  ;;  %1509 = vpow2.f32 %v1307_v60 }
 0x11a   : > { %1139 = vst [vmem:[%s1911_s6 + $0x28] sm:$0xff] %v1329_v43  ;;  %1511 = vpow2.f32 %v1309_v61 }
 0x11b   : > { %1140 = vst [vmem:[%s1911_s6 + $0x30] sm:$0xff] %v1330_v62 }
 0x11f   : > { %v1498_v48 = vpop.eup %1497 }
 0x120   : > { %v1500_v63 = vpop.eup %1499  ;;  %v998_v0 = vadd.f32 1.0, %v1498_v48 }
 0x121   : > { %v1502_v1 = vpop.eup %1501  ;;  %v1000_v3 = vadd.f32 1.0, %v1500_v63 }
 0x122   : > { %v1504_v4 = vpop.eup %1503  ;;  %1513 = vrcp.f32 %v998_v0  ;;  %v999_v44 = vadd.f32 1.0, %v1502_v1 }
 0x123   : > { %v1506_v49 = vpop.eup %1505  ;;  %1515 = vrcp.f32 %v1000_v3  ;;  %v1001_v5 = vadd.f32 1.0, %v1504_v4 }
 0x124   : > { %v1508_v6 = vpop.eup %1507  ;;  %1517 = vrcp.f32 %v999_v44  ;;  %v1008_v7 = vadd.f32 1.0, %v1506_v49 }
 0x125   : > { %1519 = vrcp.f32 %v1001_v5  ;;  %v1010_v8 = vadd.f32 1.0, %v1508_v6 }
 0x126   : > { %v1510_v9 = vpop.eup %1509  ;;  %1521 = vrcp.f32 %v1008_v7 }
 0x127   : > { %v1512_v10 = vpop.eup %1511  ;;  %v1009_v11 = vadd.f32 1.0, %v1510_v9  ;;  %1523 = vrcp.f32 %v1010_v8 }
 0x128   : > { %v1011_v12 = vadd.f32 1.0, %v1512_v10 }
 0x129   : > { %1525 = vrcp.f32 %v1009_v11 }
 0x12a   : > { %1527 = vrcp.f32 %v1011_v12 }
 0x12d   : > { %v925_v17 = vpop.f32.mrf.mxu0 }
 0x12e   : > { %v926_v18 = vadd.f32 %v925_v17, %v298_v13 }
 0x12f   : > { %v1514_v21 = vpop.eup %1513  ;;  %v927_v24 = vpop.f32.mrf.mxu0 }
 0x130   : > { %v1516_v25 = vpop.eup %1515  ;;  %v1300_v26 = vmul.f32 -1.442695, %v926_v18  ;;  %v928_v28 = vadd.f32 %v927_v24, %v302_v14  ;;  %v1058_v22 = vmul.f32 %v1514_v21, %v1891_v15 }
 0x131   : > { %v1518_v29 = vpop.eup %1517  ;;  %v929_v33 = vpop.f32.mrf.mxu0  ;;  %v1060_v23 = vmul.f32 %v1516_v25, %v1893_v16 }
 0x132   : > { %v1520_v34 = vpop.eup %1519  ;;  %v1059_v35 = vmul.f32 %v1518_v29, %v1898_v27  ;;  %1529 = vpow2.f32 %v1300_v26  ;;  %v1301_v20 = vmul.f32 -1.442695, %v928_v28  ;;  %v930_v19 = vadd.f32 %v929_v33, %v298_v13 }
 0x133   : > { %v1061_v36 = vmul.f32 %v1520_v34, %v1902_v30  ;;  %v931_v39 = vpop.f32.mrf.mxu0  ;;  %v1522_v32 = vpop.eup %1521 }
 0x134   : > { %v1326_v41 = vpack.c.bf16 %v1059_v35, %v1058_v22  ;;  %1531 = vpow2.f32 %v1301_v20  ;;  %v1310_v31 = vmul.f32 -1.442695, %v930_v19  ;;  %v932_v15 = vadd.f32 %v931_v39, %v302_v14  ;;  %v1524_v45 = vpop.eup %1523 }
 0x135   : > { %v1327_v37 = vpack.c.bf16 %v1061_v36, %v1060_v23  ;;  %v1068_v16 = vmul.f32 %v1522_v32, %v1906_v40  ;;  %v1070_v50 = vmul.f32 %v1524_v45, %v1915_v42 }
 0x136   : > { %1136 = vst [vmem:[%s1911_s6 + $0x10] sm:$0xff] %v1326_v41  ;;  %1533 = vpow2.f32 %v1310_v31  ;;  %v1526_v27 = vpop.eup %1525  ;;  %v1311_v46 = vmul.f32 -1.442695, %v932_v15 }
 0x137   : > { %1137 = vst [vmem:[%s1911_s6 + $0x18] sm:$0xff] %v1327_v37  ;;  %v1528_v47 = vpop.eup %1527  ;;  %v1069_v30 = vmul.f32 %v1526_v27, %v1922_v56 }
 0x138   : > { %v1071_v51 = vmul.f32 %v1528_v47, %v1924_v57  ;;  %1535 = vpow2.f32 %v1311_v46 }
 0x139   : > { %v1331_v52 = vpack.c.bf16 %v1069_v30, %v1068_v16 }
 0x13a   : > { %v1332_v53 = vpack.c.bf16 %v1071_v51, %v1070_v50 }
 0x13b   : > { %1141 = vst [vmem:[%s1911_s6 + $0x38] sm:$0xff] %v1331_v52 }
 0x13c   : > { %1142 = vst [vmem:[%s1911_s6 + $0x40] sm:$0xff] %v1332_v53 }
 0x13f   : > { %v1530_v38 = vpop.eup %1529 }
 0x140   : > { %v1002_v54 = vadd.f32 1.0, %v1530_v38 }
 0x141   : > { %v1532_v55 = vpop.eup %1531 }
 0x142   : > { %1537 = vrcp.f32 %v1002_v54  ;;  %v1003_v58 = vadd.f32 1.0, %v1532_v55 }
 0x143   : > { %v1534_v59 = vpop.eup %1533 }
 0x144   : > { %1539 = vrcp.f32 %v1003_v58  ;;  %v1012_v40 = vadd.f32 1.0, %v1534_v59 }
 0x145   : > { %v1536_v56 = vpop.eup %1535 }
 0x146   : > { %1541 = vrcp.f32 %v1012_v40  ;;  %v1013_v42 = vadd.f32 1.0, %v1536_v56 }
 0x148   : > { %1543 = vrcp.f32 %v1013_v42 }
 0x14f   : > { %v1538_v57 = vpop.eup %1537 }
 0x150   : > { %v1062_v60 = vmul.f32 %v1538_v57, %v926_v18 }
 0x151   : > { %v1540_v43 = vpop.eup %1539 }
 0x152   : > { %v1063_v61 = vmul.f32 %v1540_v43, %v928_v28 }
 0x153   : > { %v1542_v62 = vpop.eup %1541 }
 0x154   : > { %v1328_v48 = vpack.c.bf16 %v1063_v61, %v1062_v60  ;;  %v1072_v0 = vmul.f32 %v1542_v62, %v930_v19 }
 0x155   : > { %v1544_v63 = vpop.eup %1543 }
 0x156   : > { %1138 = vst [vmem:[%s1911_s6 + $0x20] sm:$0xff] %v1328_v48  ;;  %v1073_v1 = vmul.f32 %v1544_v63, %v932_v15 }
 0x158   : > { %v1333_v3 = vpack.c.bf16 %v1073_v1, %v1072_v0 }
 0x15a   : > { %1143 = vst [vmem:[%s1911_s6 + $0x48] sm:$0xff] %v1333_v3 }
 0x15b PF: > { %s13_s12 = sadd.s32 1, %s1551_s12  }
 0x15c   : > { %p10_p4 = scmp.ge.s32.totalorder %s13_s12, 4  }
 0x15e   :  { %12 = sbr.rel (!%p10_p4) target bundleno = 1 (0x1), region = 62 }

// kernel: _lambda_.27
= control target key start
LH: loop header
LB: loop body
LE: loop exit
PB: predicated region body
PF: predicated region fallthrough
CT: control target
= control target key end

     0   :  { %8 = vsyncpa [#allocation3], 0  ;;  %s1949_s0 = inlined_call_operand.vmem [shape: bf16[2,16,1280], index: 0, kind: input, shape index: {}]   ;;  %s1950_s1 = inlined_call_operand.vmem [shape: bf16[1280,10], index: 1, kind: input, shape index: {}]   ;;  %s1951_s2 = inlined_call_operand.vmem [shape: f32[1,10], index: 2, kind: input, shape index: {}]   ;;  %s1952_s3 = inlined_call_operand.hbm [shape: f32[2,1,10], index: 3, kind: output, shape index: {}]  }
   0x1   :  { %10 = vsyncpa [#allocation3 + $0x1], 0  ;;  %s1601_s12 = smov 0   ;;  %s1603_s13 = smov 0  }
   0x2   :  { %s1605_s14 = smov 0   ;;  %s1607_s15 = smov 0  }
   0x3 LB: > { %s1622_s16 = sadd.s32 4294967295, %s1578_s15   ;;  %s1200_s17 = sadd.s32 4294967294, %s1578_s15   ;;  %s1578_s15 = sphi %s1607_s15, %s1958_s15   ;;  %s1574_s14 = sphi %s1605_s14, %s1957_s14   ;;  %s1570_s13 = sphi %s1603_s13, %s1956_s13   ;;  %s1566_s12 = sphi %s1601_s12, %s1955_s12  }
   0x4   : > { %s1626_s18 = sadd.s32 1, %s1578_s15   ;;  %s91_s19 = sadd.s32 1, %s1574_s14 }
   0x5   : > { %s88_s20 = ssub.s32 %s1578_s15, %s1626_s18  ;;  %p101_p0 = scmp.ne.s32.totalorder %s1574_s14, %s1570_s13 }
   0x6   : > { %p89_p1 = scmp.eq.s32.totalorder %s88_s20, 0  ;;  %p102_p2 = scmp.eq.s32.totalorder %s1622_s16, 1 }
   0x7   : > { %p107_p3 = scmp.ne.s32.totalorder %s1570_s13, %s1566_s12  ;;  %p108_p4 = scmp.eq.s32.totalorder %s1200_s17, 1 }
   0x8   : > { %s1637_s21 = scalar_select %p89_p1, %s1574_s14, %s91_s19  }
   0x9   : > { %p1639_p5 = por %p102_p2, %p101_p0  ;;  %p1643_p6 = por %p108_p4, %p107_p3 }
   0xa   : > { %p1203_p7 = scmp.ge.s32.totalorder %s1578_s15, 1  ;;  %p140_p8 = scmp.lt.s32.totalorder %s1578_s15, 3 }
   0xc   : > { %p141_p9 = pnand %p1203_p7, %p140_p8 }
   0xd   : > { %p163_p10 = scmp.lt.s32.totalorder (!%p141_p9), %s1622_s16, 1  ;;  %s161_s6 = sand.u32 (!%p141_p9), 1, %s1570_s13  }
   0xe   : > { %144 = sbr.rel (%p141_p9) target bundleno = 329 (0x149), region = 32  ;;  %s1285_s7 = sshll.u32 (!%p141_p9), %s1622_s16, 4 }
   0xf   : > { %s162_s8 = scalar_lea.vmem (!%p141_p9), [#allocation2], %s161_s6  ;;  %s1133_s19 = scalar_lea.sflag (!%p141_p9), [#allocation3], %s161_s6 }
  0x10   : > { %s1145_s9 = sshll.u32 (!%p141_p9), %s162_s8, 4  ;;  %s1146_s9 = int_to_ptr.vmem [resolvable:$true] %s1145_s9 }
  0x11   : > { %s1518_s20 = scalar_lea.vmem (!%p141_p9), %s1146_s9, 16 }
  0x12   : > { %p1519_p11 = scmp.ne.s32.totalorder (!%p141_p9), %s1146_s9, %s1518_s20 }
  0x13   : > { %v1438_v0 = vld [vmem:[%s1950_s1 + $0x78] sm:$0xff]   ;;  %v1442_v4 = vld [vmem:[%s1950_s1 + $0x70] sm:$0xff]   ;;  %v1446_v8 = vld [vmem:[%s1950_s1 + $0x68] sm:$0xff]   ;;  %s164_s30 = scalar_select %p163_p10, %s1622_s16, 1  ;;  %vm1130_vm0 = vcmask 73728  }
  0x14   : > { %v1439_v1 = vld [vmem:[%s1950_s1 + $0x38] sm:$0xff]   ;;  %1288 = vmatprep.subr.bf16.mxu0 %v1438_v0  ;;  %v1443_v5 = vld [vmem:[%s1950_s1 + $0x30] sm:$0xff]   ;;  %v1447_v9 = vld [vmem:[%s1950_s1 + $0x28] sm:$0xff]   ;;  %p1520_p12 = pnand %p1519_p11, %p1639_p5  ;;  %s1580_s16 = smov [#allocation2]  }
  0x15   : > { %v1440_v2 = vld [vmem:[%s1950_s1 + $0xf8] sm:$0xff]   ;;  %1289 = vmatpush3.bf16.msra.mxu0 %v1439_v1  ;;  %v1444_v6 = vld [vmem:[%s1950_s1 + $0xf0] sm:$0xff]   ;;  %v1448_v10 = vld [vmem:[%s1950_s1 + $0xe8] sm:$0xff]   ;;  %s1398_s17 = smul.u32 80, %s164_s30  ;;  %s1522_s24 = sshll.u32 %s1580_s16, 4  ;;  %s1523_s24 = int_to_ptr.vmem [resolvable:$false] %s1522_s24 }
  0x16   : > { %v1441_v3 = vld [vmem:[%s1950_s1 + $0xb8] sm:$0xff]   ;;  %1310 = vmatprep.subr.bf16.mxu1 %v1440_v2  ;;  %1290 = vmatprep.subr.bf16.mxu0 %v1442_v4  ;;  %v1445_v7 = vld [vmem:[%s1950_s1 + $0xb0] sm:$0xff]   ;;  %v1449_v11 = vld [vmem:[%s1950_s1 + $0xa8] sm:$0xff]   ;;  %p1521_p13 = pneg %p1520_p12  ;;  %s1524_s25 = scalar_lea.vmem %s1523_s24, 32 }
  0x17   : > { %1311 = vmatpush3.bf16.msra.mxu1 %v1441_v3  ;;  %v1450_v12 = vld [vmem:[%s1950_s1 + $0x60] sm:$0xff]   ;;  %v1454_v16 = vld [vmem:[%s1950_s1 + $0x58] sm:$0xff]   ;;  %v1458_v20 = vld [vmem:[%s1950_s1 + $0x50] sm:$0xff]   ;;  %s1741_s5 = scalar_lea.vmem %s1949_s0, %s1398_s17  ;;  %s1914_s17 = scalar_lea.hbm %s1952_s3, %s1285_s7 }
  0x18   : > { %1312 = vmatprep.subr.bf16.mxu1 %v1444_v6  ;;  %v1451_v13 = vld [vmem:[%s1950_s1 + $0x20] sm:$0xff]   ;;  %v1455_v17 = vld [vmem:[%s1950_s1 + $0x18] sm:$0xff]   ;;  %v1459_v21 = vld [vmem:[%s1950_s1 + $0x10] sm:$0xff]   ;;  %p1525_p0 = scmp.lt.s32.totalorder %s1146_s9, %s1523_s24  ;;  %p1526_p1 = scmp.lt.s32.totalorder %s1524_s25, %s1518_s20 }
  0x19   : > { %1291 = vmatpush3.bf16.msra.mxu0 %v1443_v5  ;;  %v1452_v14 = vld [vmem:[%s1950_s1 + $0xe0] sm:$0xff]   ;;  %v1456_v18 = vld [vmem:[%s1950_s1 + $0xd8] sm:$0xff]   ;;  %v1460_v22 = vld [vmem:[%s1950_s1 + $0xd0] sm:$0xff]  }
  0x1a   : > { %1292 = vmatprep.subr.bf16.mxu0 %v1446_v8  ;;  %v1453_v15 = vld [vmem:[%s1950_s1 + $0xa0] sm:$0xff]   ;;  %v1457_v19 = vld [vmem:[%s1950_s1 + $0x98] sm:$0xff]   ;;  %v1461_v23 = vld [vmem:[%s1950_s1 + $0x90] sm:$0xff]   ;;  %p1527_p2 = por %p1526_p1, %p1525_p0 }
  0x1b   : > { %1313 = vmatpush3.bf16.msra.mxu1 %v1445_v7  ;;  %v1462_v24 = vld [vmem:[%s1950_s1 + $0x48] sm:$0xff]   ;;  %v1466_v28 = vld [vmem:[%s1950_s1 + $0x40] sm:$0xff]   ;;  %v1470_v38 = vld [vmem:[%s1950_s1 + $0x178] sm:$0xff]  }
  0x1c   : > { %1314 = vmatprep.subr.bf16.mxu1 %v1448_v10  ;;  %v1463_v25 = vld [vmem:[%s1950_s1 + $0x8] sm:$0xff]   ;;  %v1467_v29 = vld [vmem:[%s1950_s1] sm:$0xff]   ;;  %v175_v42 = vld [vmem:[%s1741_s5 + $0x30] sm:$0xff]  ;;  %p1528_p3 = pnand %p1527_p2, %p1521_p13 }
  0x1d   : > { %1293 = vmatpush3.bf16.msra.mxu0 %v1447_v9  ;;  %v1464_v26 = vld [vmem:[%s1950_s1 + $0xc8] sm:$0xff]   ;;  %v1468_v30 = vld [vmem:[%s1950_s1 + $0xc0] sm:$0xff]   ;;  %v191_v45 = vunpack.c.l.bf16 %v175_v42  ;;  %v192_v46 = vunpack.c.h.bf16 %v175_v42  ;;  %v1472_v49 = vld [vmem:[%s1950_s1 + $0x1f8] sm:$0xff]  }
  0x1e   : > { %1294 = vmatprep.subr.bf16.mxu0 %v1450_v12  ;;  %v1465_v27 = vld [vmem:[%s1950_s1 + $0x88] sm:$0xff]   ;;  %v169_v31 = vld [vmem:[%s1741_s5] sm:$0xff]  ;;  %v1490_v42 = vld [vmem:[%s1950_s1 + $0x150] sm:$0xff]  }
  0x1f   : > { %1315 = vmatpush3.bf16.msra.mxu1 %v1449_v11  ;;  %v174_v32 = vld [vmem:[%s1741_s5 + $0x28] sm:$0xff]  ;;  %v179_v33 = vunpack.c.l.bf16 %v169_v31  ;;  %v180_v34 = vunpack.c.h.bf16 %v169_v31  ;;  %v1469_v37 = vld [vmem:[%s1950_s1 + $0x80] sm:$0xff]   ;;  %v1486_v31 = vld [vmem:[%s1950_s1 + $0x158] sm:$0xff]  }
  0x20   : > { %1316 = vmatprep.subr.bf16.mxu1 %v1452_v14  ;;  %v189_v35 = vunpack.c.l.bf16 %v174_v32  ;;  %v190_v36 = vunpack.c.h.bf16 %v174_v32  ;;  %v170_v39 = vld [vmem:[%s1741_s5 + $0x8] sm:$0xff]  ;;  %v1471_v14 = vld [vmem:[%s1950_s1 + $0x138] sm:$0xff]   ;;  %v1485_v32 = vld [vmem:[%s1950_s1 + $0x1a0] sm:$0xff]  }
  0x21   : > { %1295 = vmatpush3.bf16.msra.mxu0 %v1451_v13  ;;  %v181_v43 = vunpack.c.l.bf16 %v170_v39  ;;  %v182_v44 = vunpack.c.h.bf16 %v170_v39 }
  0x22   : > { %1296 = vmatprep.subr.bf16.mxu0 %v1454_v16  ;;  %v206_v40 = vadd.f32 %v190_v36, %v180_v34  ;;  %v199_v41 = vadd.f32 %v189_v35, %v179_v33  ;;  %v1487_v33 = vld [vmem:[%s1950_s1 + $0x118] sm:$0xff]   ;;  %v171_v34 = vld [vmem:[%s1741_s5 + $0x10] sm:$0xff] }
  0x23   : > { %1317 = vmatpush3.bf16.msra.mxu1 %v1453_v15  ;;  %v220_v50 = vadd.f32 %v192_v46, %v182_v44  ;;  %v213_v51 = vadd.f32 %v191_v45, %v181_v43  ;;  %v176_v35 = vld [vmem:[%s1741_s5 + $0x38] sm:$0xff]  ;;  %v177_v46 = vld [vmem:[%s1741_s5 + $0x40] sm:$0xff] }
  0x24   : > { %1318 = vmatprep.subr.bf16.mxu1 %v1456_v18  ;;  %v207_v47 = vrot.slane %v206_v40, 4  ;;  %v200_v48 = vrot.slane %v199_v41, 4  ;;  %v1474_v18 = vld [vmem:[%s1950_s1 + $0x170] sm:$0xff]   ;;  %v1488_v36 = vld [vmem:[%s1950_s1 + $0x1d8] sm:$0xff]   ;;  %v193_v39 = vunpack.c.l.bf16 %v176_v35 }
  0x25   : > { %1297 = vmatpush3.bf16.msra.mxu0 %v1455_v17  ;;  %v221_v54 = vrot.slane %v220_v50, 4  ;;  %v214_v55 = vrot.slane %v213_v51, 4  ;;  %v1473_v17 = vld [vmem:[%s1950_s1 + $0x1b8] sm:$0xff]  }
  0x26   : > { %1298 = vmatprep.subr.bf16.mxu0 %v1458_v20  ;;  %v208_v52 = vadd.f32 %v207_v47, %v206_v40  ;;  %v201_v53 = vadd.f32 %v200_v48, %v199_v41  ;;  %v194_v40 = vunpack.c.h.bf16 %v176_v35  ;;  %v1489_v41 = vld [vmem:[%s1950_s1 + $0x198] sm:$0xff]   ;;  %v1491_v47 = vld [vmem:[%s1950_s1 + $0x110] sm:$0xff]  }
  0x27   : > { %1319 = vmatpush3.bf16.msra.mxu1 %v1457_v19  ;;  %v222_v58 = vadd.f32 %v221_v54, %v220_v50  ;;  %v215_v59 = vadd.f32 %v214_v55, %v213_v51  ;;  %v172_v45 = vld [vmem:[%s1741_s5 + $0x18] sm:$0xff]  ;;  %v195_v50 = vunpack.c.l.bf16 %v177_v46  ;;  %v196_v51 = vunpack.c.h.bf16 %v177_v46 }
  0x28   : > { %1320 = vmatprep.subr.bf16.mxu1 %v1460_v22  ;;  %v209_v56 = vrot.slane %v208_v52, 2  ;;  %v202_v57 = vrot.slane %v201_v53, 2  ;;  %v1476_v22 = vld [vmem:[%s1950_s1 + $0x1f0] sm:$0xff]   ;;  %v185_v48 = vunpack.c.l.bf16 %v172_v45 }
  0x29   : > { %1299 = vmatpush3.bf16.msra.mxu0 %v1459_v21  ;;  %v223_v62 = vrot.slane %v222_v58, 2  ;;  %v216_v63 = vrot.slane %v215_v59, 2  ;;  %v1475_v21 = vld [vmem:[%s1950_s1 + $0x130] sm:$0xff]  }
  0x2a   : > { %1300 = vmatprep.subr.bf16.mxu0 %v1462_v24  ;;  %v210_v60 = vadd.f32 %v209_v56, %v208_v52  ;;  %v203_v61 = vadd.f32 %v202_v57, %v201_v53  ;;  %v1477_v24 = vld [vmem:[%s1950_s1 + $0x1b0] sm:$0xff]   ;;  %v1494_v53 = vld [vmem:[%s1950_s1 + $0x148] sm:$0xff]   ;;  %v241_v57 = vadd.f32 %v195_v50, %v185_v48  ;;  %v1508_v50 = vld [vmem:[%s1950_s1 + $0x260] sm:$0xff]  }
  0x2b   : > { %1321 = vmatpush3.bf16.msra.mxu1 %v1461_v23  ;;  %v224_v2 = vadd.f32 %v223_v62, %v222_v58  ;;  %v217_v3 = vadd.f32 %v216_v63, %v215_v59  ;;  %v1478_v23 = vld [vmem:[%s1950_s1 + $0x168] sm:$0xff]   ;;  %v1492_v52 = vld [vmem:[%s1950_s1 + $0x1d0] sm:$0xff]  }
  0x2c   : > { %1322 = vmatprep.subr.bf16.mxu1 %v1464_v26  ;;  %v211_v0 = vrot.slane %v210_v60, 1  ;;  %v204_v1 = vrot.slane %v203_v61, 1  ;;  %v1480_v26 = vld [vmem:[%s1950_s1 + $0x1e8] sm:$0xff]   ;;  %v1493_v58 = vld [vmem:[%s1950_s1 + $0x190] sm:$0xff]  }
  0x2d   : > { %1301 = vmatpush3.bf16.msra.mxu0 %v1463_v25  ;;  %v225_v6 = vrot.slane %v224_v2, 1  ;;  %v218_v7 = vrot.slane %v217_v3, 1  ;;  %v1479_v25 = vld [vmem:[%s1950_s1 + $0x128] sm:$0xff]  }
  0x2e   : > { %1302 = vmatprep.subr.bf16.mxu0 %v1466_v28  ;;  %v212_v4 = vadd.f32 %v211_v0, %v210_v60  ;;  %v205_v5 = vadd.f32 %v204_v1, %v203_v61  ;;  %v1481_v28 = vld [vmem:[%s1950_s1 + $0x1a8] sm:$0xff]   ;;  %v242_v0 = vrot.slane %v241_v57, 4 }
  0x2f   : > { %1323 = vmatpush3.bf16.msra.mxu1 %v1465_v27  ;;  %v226_v10 = vadd.f32 %v225_v6, %v224_v2  ;;  %v219_v11 = vadd.f32 %v218_v7, %v217_v3  ;;  %v1482_v27 = vld [vmem:[%s1950_s1 + $0x160] sm:$0xff]   ;;  %v1495_v61 = vld [vmem:[%s1950_s1 + $0x108] sm:$0xff]  }
  0x30   : > { %1324 = vmatprep.subr.bf16.mxu1 %v1468_v30  ;;  %v270_v8 = vmul.f32 0.0625, %v212_v4  ;;  %v269_v9 = vmul.f32 0.0625, %v205_v5  ;;  %v1484_v30 = vld [vmem:[%s1950_s1 + $0x1e0] sm:$0xff]   ;;  %v1496_v62 = vld [vmem:[%s1950_s1 + $0x1c8] sm:$0xff]   ;;  %v243_v6 = vadd.f32 %v242_v0, %v241_v57 }
  0x31   : > { %1303 = vmatpush3.bf16.msra.mxu0 %v1467_v29  ;;  %v272_v15 = vmul.f32 0.0625, %v226_v10  ;;  %v271_v16 = vmul.f32 0.0625, %v219_v11  ;;  %v1483_v29 = vld [vmem:[%s1950_s1 + $0x120] sm:$0xff]   ;;  %v1497_v3 = vld [vmem:[%s1950_s1 + $0x188] sm:$0xff]  }
  0x32   : > { %1332 = vmatprep.subr.bf16.mxu0 %v1470_v38  ;;  %v280_v12 = vpack.c.bf16 %v270_v8, %v270_v8  ;;  %v279_v13 = vpack.c.bf16 %v269_v9, %v269_v9  ;;  %v184_v38 = vunpack.c.h.bf16 %v171_v34  ;;  %v1498_v4 = vld [vmem:[%s1950_s1 + $0x140] sm:$0xff]   ;;  %v244_v11 = vrot.slane %v243_v6, 2 }
  0x33   : > { %1325 = vmatpush3.bf16.msra.mxu1 %v1469_v37  ;;  %v282_v19 = vpack.c.bf16 %v272_v15, %v272_v15  ;;  %v281_v20 = vpack.c.bf16 %v271_v16, %v271_v16  ;;  %v183_v37 = vunpack.c.l.bf16 %v171_v34  ;;  %v1499_v7 = vld [vmem:[%s1950_s1 + $0x100] sm:$0xff]   ;;  %v1502_v15 = vld [vmem:[%s1950_s1 + $0x278] sm:$0xff]   ;;  %v178_v34 = vld [vmem:[%s1741_s5 + $0x48] sm:$0xff] }
  0x34   : > { %1354 = vmatprep.subr.bf16.mxu1 %v1472_v49  ;;  %962 = vmatprep.mubr.bf16.mxu0 %v280_v12  ;;  %v234_v43 = vadd.f32 %v194_v40, %v184_v38  ;;  %v186_v49 = vunpack.c.h.bf16 %v172_v45  ;;  %v1500_v12 = vld [vmem:[%s1950_s1 + $0x1c0] sm:$0xff]   ;;  %v198_v38 = vunpack.c.h.bf16 %v178_v34 }
  0x35   : > { %963 = vmatmul.mubr.bf16.vlgmr.msra.gmra.mxu0 %v279_v13  ;;  %1002 = vmatprep.mubr.bf16.mxu1 %v282_v19  ;;  %v227_v44 = vadd.f32 %v193_v39, %v183_v37  ;;  %v197_v37 = vunpack.c.l.bf16 %v178_v34 }
  0x36   : > { %1333 = vmatpush3.bf16.msra.mxu0 %v1471_v14  ;;  %1003 = vmatmul.mubr.bf16.vlgmr.msra.gmra.mxu1 %v281_v20  ;;  %v235_v54 = vrot.slane %v234_v43, 4  ;;  %v248_v56 = vadd.f32 %v196_v51, %v186_v49  ;;  %v1501_v20 = vld [vmem:[%s1950_s1 + $0x180] sm:$0xff]  }
  0x37   : > { %1334 = vmatprep.subr.bf16.mxu0 %v1474_v18  ;;  %1355 = vmatpush3.bf16.msra.mxu1 %v1473_v17  ;;  %v228_v55 = vrot.slane %v227_v44, 4  ;;  %v245_v17 = vadd.f32 %v244_v11, %v243_v6  ;;  %v1517_v6 = vld [vmem:[%s1950_s1 + $0x200] sm:$0xff]  }
  0x38   : > { %1356 = vmatprep.subr.bf16.mxu1 %v1476_v22  ;;  %v236_v59 = vadd.f32 %v235_v54, %v234_v43  ;;  %v249_v63 = vrot.slane %v248_v56, 4 }
  0x39   : > { %v229_v60 = vadd.f32 %v228_v55, %v227_v44  ;;  %v246_v22 = vrot.slane %v245_v17, 1  ;;  %v1506_v44 = vld [vmem:[%s1950_s1 + $0x268] sm:$0xff]   ;;  %v1510_v55 = vld [vmem:[%s1950_s1 + $0x258] sm:$0xff]  }
  0x3a   : > { %1335 = vmatpush3.bf16.msra.mxu0 %v1475_v21  ;;  %v237_v1 = vrot.slane %v236_v59, 2  ;;  %v250_v5 = vadd.f32 %v249_v63, %v248_v56  ;;  %v1513_v63 = vld [vmem:[%s1950_s1 + $0x210] sm:$0xff]  }
  0x3b   : > { %1336 = vmatprep.subr.bf16.mxu0 %v1478_v23  ;;  %1357 = vmatpush3.bf16.msra.mxu1 %v1477_v24  ;;  %v230_v2 = vrot.slane %v229_v60, 2 }
  0x3c   : > { %1358 = vmatprep.subr.bf16.mxu1 %v1480_v26  ;;  %v238_v8 = vadd.f32 %v237_v1, %v236_v59  ;;  %v251_v10 = vrot.slane %v250_v5, 2  ;;  %v247_v26 = vadd.f32 %v246_v22, %v245_v17  ;;  %v1514_v1 = vld [vmem:[%s1950_s1 + $0x248] sm:$0xff]  }
  0x3d   : > { %v231_v9 = vadd.f32 %v230_v2, %v229_v60  ;;  %v1512_v60 = vld [vmem:[%s1950_s1 + $0x250] sm:$0xff]  }
  0x3e   : > { %1337 = vmatpush3.bf16.msra.mxu0 %v1479_v25  ;;  %v239_v13 = vrot.slane %v238_v8, 1  ;;  %v252_v16 = vadd.f32 %v251_v10, %v250_v5 }
  0x3f   : > { %1338 = vmatprep.subr.bf16.mxu0 %v1482_v27  ;;  %1359 = vmatpush3.bf16.msra.mxu1 %v1481_v28  ;;  %v232_v14 = vrot.slane %v231_v9, 1 }
  0x40   : > { %1360 = vmatprep.subr.bf16.mxu1 %v1484_v30  ;;  %v240_v18 = vadd.f32 %v239_v13, %v238_v8  ;;  %v253_v21 = vrot.slane %v252_v16, 1  ;;  %v173_v30 = vld [vmem:[%s1741_s5 + $0x20] sm:$0xff] }
  0x41   : > { %v233_v19 = vadd.f32 %v232_v14, %v231_v9  ;;  %v187_v35 = vunpack.c.l.bf16 %v173_v30 }
  0x42   : > { %1339 = vmatpush3.bf16.msra.mxu0 %v1483_v29  ;;  %v274_v23 = vmul.f32 0.0625, %v240_v18  ;;  %v254_v25 = vadd.f32 %v253_v21, %v252_v16  ;;  %v1503_v29 = vld [vmem:[%s1950_s1 + $0x238] sm:$0xff]  }
  0x43   : > { %1340 = vmatprep.subr.bf16.mxu0 %v1486_v31  ;;  %1361 = vmatpush3.bf16.msra.mxu1 %v1485_v32  ;;  %v273_v24 = vmul.f32 0.0625, %v233_v19  ;;  %v275_v32 = vmul.f32 0.0625, %v247_v26  ;;  %v255_v43 = vadd.f32 %v197_v37, %v187_v35 }
  0x44   : > { %1362 = vmatprep.subr.bf16.mxu1 %v1488_v36  ;;  %v284_v27 = vpack.c.bf16 %v274_v23, %v274_v23  ;;  %v276_v31 = vmul.f32 0.0625, %v254_v25  ;;  %v188_v36 = vunpack.c.h.bf16 %v173_v30  ;;  %v449_v25 = vld [vmem:[%s1951_s2] sm:$0x1] }
  0x45   : > { %v283_v28 = vpack.c.bf16 %v273_v24, %v273_v24  ;;  %v285_v40 = vpack.c.bf16 %v275_v32, %v275_v32  ;;  %v256_v46 = vrot.slane %v255_v43, 4 }
  0x46   : > { %1341 = vmatpush3.bf16.msra.mxu0 %v1487_v33  ;;  %v1504_v33 = vld [vmem:[%s1950_s1 + $0x270] sm:$0xff]   ;;  %1042 = vmatprep.mubr.bf16.mxu0 %v284_v27  ;;  %v286_v39 = vpack.c.bf16 %v276_v31, %v276_v31 }
  0x47   : > { %1342 = vmatprep.subr.bf16.mxu0 %v1490_v42  ;;  %1363 = vmatpush3.bf16.msra.mxu1 %v1489_v41  ;;  %v1505_v41 = vld [vmem:[%s1950_s1 + $0x230] sm:$0xff]   ;;  %v262_v42 = vadd.f32 %v198_v38, %v188_v36  ;;  %v257_v49 = vadd.f32 %v256_v46, %v255_v43 }
  0x48   : > { %1364 = vmatprep.subr.bf16.mxu1 %v1492_v52  ;;  %1082 = vmatprep.mubr.bf16.mxu1 %v286_v39 }
  0x49   : > { %v263_v45 = vrot.slane %v262_v42, 4  ;;  %v258_v52 = vrot.slane %v257_v49, 2 }
  0x4a   : > { %1343 = vmatpush3.bf16.msra.mxu0 %v1491_v47  ;;  %v1507_v47 = vld [vmem:[%s1950_s1 + $0x228] sm:$0xff]  }
  0x4b   : > { %1344 = vmatprep.subr.bf16.mxu0 %v1494_v53  ;;  %1365 = vmatpush3.bf16.msra.mxu1 %v1493_v58  ;;  %v264_v48 = vadd.f32 %v263_v45, %v262_v42  ;;  %v1509_v53 = vld [vmem:[%s1950_s1 + $0x220] sm:$0xff]   ;;  %v259_v57 = vadd.f32 %v258_v52, %v257_v49  ;;  %v1511_v58 = vld [vmem:[%s1950_s1 + $0x218] sm:$0xff]  }
  0x4c   : > { %1366 = vmatprep.subr.bf16.mxu1 %v1496_v62 }
  0x4d   : > { %v265_v51 = vrot.slane %v264_v48, 2  ;;  %v260_v62 = vrot.slane %v259_v57, 1 }
  0x4e   : > { %1345 = vmatpush3.bf16.msra.mxu0 %v1495_v61 }
  0x4f   : > { %1346 = vmatprep.subr.bf16.mxu0 %v1498_v4  ;;  %1367 = vmatpush3.bf16.msra.mxu1 %v1497_v3  ;;  %v266_v54 = vadd.f32 %v265_v51, %v264_v48  ;;  %v261_v2 = vadd.f32 %v260_v62, %v259_v57  ;;  %v1515_v3 = vld [vmem:[%s1950_s1 + $0x208] sm:$0xff]   ;;  %v1516_v4 = vld [vmem:[%s1950_s1 + $0x240] sm:$0xff]  }
  0x50   : > { %1368 = vmatprep.subr.bf16.mxu1 %v1500_v12 }
  0x51   : > { %v267_v56 = vrot.slane %v266_v54, 1  ;;  %v277_v5 = vmul.f32 0.0625, %v261_v2 }
  0x52   : > { %1347 = vmatpush3.bf16.msra.mxu0 %v1499_v7 }
  0x53   : > { %1376 = vmatprep.subr.bf16.mxu0 %v1502_v15  ;;  %1369 = vmatpush3.bf16.msra.mxu1 %v1501_v20  ;;  %v268_v59 = vadd.f32 %v267_v56, %v266_v54  ;;  %v287_v7 = vpack.c.bf16 %v277_v5, %v277_v5 }
  0x55   : > { %1043 = vmatmul.mubr.bf16.vlgmr.msra.gmra.mxu0 %v283_v28  ;;  %v278_v61 = vmul.f32 0.0625, %v268_v59 }
  0x56   : > { %1377 = vmatpush3.bf16.msra.mxu0 %v1503_v29  ;;  %1083 = vmatmul.mubr.bf16.vlgmr.msra.gmra.mxu1 %v285_v40 }
  0x57   : > { %1378 = vmatprep.subr.bf16.mxu0 %v1504_v33  ;;  %v288_v0 = vpack.c.bf16 %v278_v61, %v278_v61 }
  0x59   : > { %1122 = vmatprep.mubr.bf16.mxu0 %v288_v0 }
  0x5a   : > { %1379 = vmatpush3.bf16.msra.mxu0 %v1505_v41 }
  0x5b   : > { %1380 = vmatprep.subr.bf16.mxu0 %v1506_v44 }
  0x5e   : > { %1381 = vmatpush3.bf16.msra.mxu0 %v1507_v47 }
  0x5f   : > { %1382 = vmatprep.subr.bf16.mxu0 %v1508_v50 }
  0x62   : > { %1383 = vmatpush3.bf16.msra.mxu0 %v1509_v53 }
  0x63   : > { %1384 = vmatprep.subr.bf16.mxu0 %v1510_v55 }
  0x66   : > { %1385 = vmatpush3.bf16.msra.mxu0 %v1511_v58 }
  0x67   : > { %1386 = vmatprep.subr.bf16.mxu0 %v1512_v60 }
  0x6a   : > { %1387 = vmatpush3.bf16.msra.mxu0 %v1513_v63 }
  0x6b   : > { %1388 = vmatprep.subr.bf16.mxu0 %v1514_v1 }
  0x6e   : > { %1389 = vmatpush3.bf16.msra.mxu0 %v1515_v3 }
  0x6f   : > { %1390 = vmatprep.subr.bf16.mxu0 %v1516_v4 }
  0x72   : > { %1391 = vmatpush3.bf16.msra.mxu0 %v1517_v6 }
  0x75   : > { %1123 = vmatmul.mubr.bf16.vlgmr.msra.gmra.mxu0 %v287_v7 }
  0xf5   : > { %v1304_v8 = vpop.f32.mrf.mxu0 }
  0xf6   : > { %v1326_v10 = vpop.f32.mrf.mxu1 }
  0xf7   : > { %v1305_v9 = vpop.f32.mrf.mxu0 }
  0xf8   : > { %v1327_v12 = vpop.f32.mrf.mxu1  ;;  %v1306_v24 = vadd.f32 %v1305_v9, %v1304_v8 }
  0xf9   : > { %v1307_v11 = vpop.f32.mrf.mxu0  ;;  %v1328_v27 = vadd.f32 %v1327_v12, %v1326_v10 }
  0xfa   : > { %v1329_v14 = vpop.f32.mrf.mxu1  ;;  %v965_v26 = vadd.f32 %v1306_v24, %v449_v25 }
  0xfb   : > { %v1308_v13 = vpop.f32.mrf.mxu0 }
  0xfc   : > { %v1330_v15 = vpop.f32.mrf.mxu1  ;;  %v1005_v29 = vadd.f32 %v1328_v27, %v965_v26 }
 0x115   : > { %v1348_v16 = vpop.f32.mrf.mxu0 }
 0x116   : > { %v1370_v18 = vpop.f32.mrf.mxu1 }
 0x117   : > { %v1349_v17 = vpop.f32.mrf.mxu0 }
 0x118   : > { %v1371_v20 = vpop.f32.mrf.mxu1  ;;  %v1350_v28 = vadd.f32 %v1349_v17, %v1348_v16 }
 0x119   : > { %v1351_v19 = vpop.f32.mrf.mxu0  ;;  %v1372_v31 = vadd.f32 %v1371_v20, %v1370_v18 }
 0x11a   : > { %v1373_v22 = vpop.f32.mrf.mxu1  ;;  %v1045_v30 = vadd.f32 %v1350_v28, %v1005_v29 }
 0x11b   : > { %v1352_v21 = vpop.f32.mrf.mxu0 }
 0x11c   : > { %v1374_v23 = vpop.f32.mrf.mxu1  ;;  %v1085_v34 = vadd.f32 %v1372_v31, %v1045_v30 }
 0x135   : > { %v1392_v32 = vpop.f32.mrf.mxu0 }
 0x137   : > { %v1393_v33 = vpop.f32.mrf.mxu0 }
 0x138   : > { %v1394_v35 = vadd.f32 %v1393_v33, %v1392_v32 }
 0x139   : > { %v1395_v36 = vpop.f32.mrf.mxu0 }
 0x13a   : > { %v1125_v37 = vadd.f32 %v1394_v35, %v1085_v34 }
 0x13b   : > { %v1396_v38 = vpop.f32.mrf.mxu0 }
 0x13c   : > { %1131 = vst.msk [vmem:[%s162_s8] sm:$0x1] %vm1130_vm0, %v1125_v37 }
 0x13d   : > { %1531 = shalt.err (!%p1528_p3)
}
 0x13e   : > { %s1532_s26 = scalar_lea.hbm %s1914_s17, 16  ;;  %s1536_s28 = scalar_lea.hbm %s1952_s3, 32 }
 0x13f   : > { %p1533_p4 = scmp.ne.s32.totalorder %s1914_s17, %s1532_s26  ;;  %p1537_p9 = scmp.lt.s32.totalorder %s1914_s17, %s1952_s3 }
 0x140   : > { %p1538_p10 = scmp.lt.s32.totalorder %s1536_s28, %s1532_s26 }
 0x141   : > { %p1534_p7 = pnand %p1533_p4, %p1639_p5 }
 0x142   : > { %p1539_p11 = por %p1538_p10, %p1537_p9 }
 0x143   : > { %p1535_p8 = pneg %p1534_p7 }
 0x145   : > { %p1540_p12 = pnand %p1539_p11, %p1535_p8 }
 0x147   : > { %1543 = shalt.err (!%p1540_p12)
}
 0x148   : > { %1399 = dma.vmem_to_hbm [thread:$0]  (%p1639_p5), %s1146_s9, 16, %s1914_s17, %s1133_s19  }
 0x149 PF: > { %p1405_p13 = scmp.ge.s32.totalorder %s1578_s15, 2  ;;  %s1157_s4 = sand.u32 1, %s1566_s12  }
 0x14a   : > { %s1158_s6 = scalar_lea.sflag [#allocation3], %s1157_s4 }
 0x14b   : > { %p1402_p0 = pnand %p1405_p13, %p1643_p6 }
 0x14d   : > { %p1403_p1 = pneg %p1402_p0 }
 0x14f   : > { %1561 = dma.done.wait (%p1403_p1), %s1158_s6, 16  }
 0x150   : > { %1563 = vsyncadd (%p1403_p1), %s1158_s6, 4294967280  ;;  %p13_p2 = scmp.ge.s32.totalorder %s1626_s18, 4   ;;  %s1955_s12 = smov %s1570_s13 }
 0x151   : > { %s1956_s13 = smov %s1574_s14  ;;  %s1957_s14 = smov %s1637_s21 }
 0x152   : > { %s1958_s15 = smov %s1626_s18  ;;  %15 = sbr.rel (!%p13_p2) target bundleno = 3 (0x3), region = 67 }
 0x157   :  { %1162 = vsyncpa [#allocation3], 1 }
 0x158   :  { %1164 = vsyncpa [#allocation3 + $0x1], 1 }

</bundles_post_ra>
